<compile_context>
chip_gen: v7x
topology: tpu7x:2x2x1
jax: 0.10.0
libtpu: 0.0.40
codegen_flags: <defaults>
</compile_context>

<pallas_src>
import numpy as np
import jax
import jax.numpy as jnp
from jax.experimental import pallas as pl
from jax.experimental.pallas import tpu as pltpu

LATENT_DIM = 100
BERT_DIM = 768
CHANNELS = 3
IMG_SIZE = 64
IMG_PIXELS = CHANNELS * IMG_SIZE * IMG_SIZE   # 12288
IN_DIM = LATENT_DIM + BERT_DIM                # 868
IN_DIM_PAD = 896                              # pad contraction dim to multiple of 128
BN_EPS = 0.8                                  # nn.BatchNorm1d(out_feat, 0.8) -> eps = 0.8

TILE_N = 2048                                 # head tile (bf16 block = 4 MiB)
N_TILES = IMG_PIXELS // TILE_N                # 6 (even -> balanced on 2-core chips)


def _leaky(x):
    return jnp.where(x > 0, x, 0.2 * x)


def _bn_train(x, gamma, beta):
    # BatchNorm1d in training mode: per-batch statistics, biased variance.
    mu = jnp.mean(x, axis=0, keepdims=True)
    var = jnp.mean((x - mu) ** 2, axis=0, keepdims=True)
    return (x - mu) * jax.lax.rsqrt(var + BN_EPS) * gamma + beta


# ---------------------------------------------------------------------------
# Fused kernel: trunk MLP (recomputed per step, hidden under DMA) + one tile
# of the output head Linear(1024,12288)+Tanh per grid step.
# ---------------------------------------------------------------------------
def generator_kernel(z_ref, w1_ref, b1_ref,
                     w2_ref, b2_ref, g2_ref, be2_ref,
                     w3_ref, b3_ref, g3_ref, be3_ref,
                     w4_ref, b4_ref, g4_ref, be4_ref,
                     w5_ref, b5_ref, o_ref):
    # --- trunk (f32, ~0.8 MFLOP*B; recomputed each step so the kernel is
    #     correct on any core-sharding of the grid) ---------------------------
    z = z_ref[...]
    h = _leaky(jnp.dot(z, w1_ref[...], preferred_element_type=jnp.float32)
               + b1_ref[...])
    h = _leaky(_bn_train(
        jnp.dot(h, w2_ref[...], preferred_element_type=jnp.float32) + b2_ref[...],
        g2_ref[...], be2_ref[...]))
    h = _leaky(_bn_train(
        jnp.dot(h, w3_ref[...], preferred_element_type=jnp.float32) + b3_ref[...],
        g3_ref[...], be3_ref[...]))
    h = _leaky(_bn_train(
        jnp.dot(h, w4_ref[...], preferred_element_type=jnp.float32) + b4_ref[...],
        g4_ref[...], be4_ref[...]))

    # --- output head tile: bf16 weights/activations, f32 accumulate ---------
    hb = h.astype(jnp.bfloat16)
    w_tile = w5_ref[0]                         # (1024, TILE_N) bf16, contiguous in HBM
    o = jnp.dot(hb, w_tile, preferred_element_type=jnp.float32) + b5_ref[...]
    o_ref[...] = jnp.tanh(o)


def prepare_params(params):
    """One-time layout/dtype transform of canonical f32 params for the kernel."""
    kp = dict(params)
    # pad contraction dim of w1 with zeros once (exact: padded z cols are zero too)
    kp["w1"] = jnp.pad(params["w1"], ((0, IN_DIM_PAD - IN_DIM), (0, 0)))
    # bf16 + contiguous per-tile layout of the dominant 48 MiB head weight
    w5_bf16 = params["w5"].astype(jnp.bfloat16)             # (1024, 12288)
    kp["w5"] = jnp.transpose(
        w5_bf16.reshape(1024, N_TILES, TILE_N), (1, 0, 2))  # (N_TILES, 1024, TILE_N)
    return kp


def generator_forward(z, kp):
    B = z.shape[0]
    # tiny per-call pad of z (868 -> 896); zero columns hit zero w1 rows -> exact
    z_pad = jnp.pad(z, ((0, 0), (0, IN_DIM_PAD - IN_DIM)))

    const = lambda j: (0, 0)
    full = lambda arr: pl.BlockSpec(arr.shape, const)

    inputs = (z_pad, kp["w1"], kp["b1"],
              kp["w2"], kp["b2"], kp["g2"], kp["be2"],
              kp["w3"], kp["b3"], kp["g3"], kp["be3"],
              kp["w4"], kp["b4"], kp["g4"], kp["be4"],
              kp["w5"], kp["b5"])

    in_specs = (
        [full(z_pad)] +
        [full(kp[n]) for n in ("w1", "b1",
                               "w2", "b2", "g2", "be2",
                               "w3", "b3", "g3", "be3",
                               "w4", "b4", "g4", "be4")] +
        [pl.BlockSpec((1, 1024, TILE_N), lambda j: (j, 0, 0)),   # w5 tile j
         pl.BlockSpec((1, TILE_N), lambda j: (0, j))]            # b5 tile j
    )
    out_spec = pl.BlockSpec((B, TILE_N), lambda j: (0, j))

    trunk_flops = 2 * B * (IN_DIM_PAD * 128 + 128 * 256 + 256 * 512 + 512 * 1024)
    head_flops = 2 * B * 1024 * IMG_PIXELS
    bytes_accessed = int(sum(x.size * x.dtype.itemsize for x in inputs)
                         + B * IMG_PIXELS * 4)
    cost = pl.CostEstimate(
        flops=int(head_flops + N_TILES * trunk_flops),
        transcendentals=int(B * IMG_PIXELS + N_TILES * B * (256 + 512 + 1024)),
        bytes_accessed=bytes_accessed)

    flat = pl.pallas_call(
        generator_kernel,
        out_shape=jax.ShapeDtypeStruct((B, IMG_PIXELS), jnp.float32),
        grid=(N_TILES,),
        in_specs=in_specs,
        out_specs=out_spec,
        compiler_params=pltpu.CompilerParams(
            dimension_semantics=("parallel",),
            vmem_limit_bytes=48 * 1024 * 1024),
        cost_estimate=cost,
    )(*inputs)

    return flat.reshape(B, CHANNELS, IMG_SIZE, IMG_SIZE)


def generator_reference(z, params):
    # Pure-JAX f32 reference for correctness check.
    h = _leaky(z @ params["w1"] + params["b1"])
    for i in (2, 3, 4):
        h = _leaky(_bn_train(h @ params[f"w{i}"] + params[f"b{i}"],
                             params[f"g{i}"], params[f"be{i}"]))
    flat = jnp.tanh(h @ params["w5"] + params["b5"])
    return flat.reshape(z.shape[0], CHANNELS, IMG_SIZE, IMG_SIZE)


def init_params(key):
    # Deterministic synthetic init. Linear layers use PyTorch-style
    # U(-1/sqrt(fan_in), 1/sqrt(fan_in)); BatchNorm affine params use the
    # PyTorch defaults (weight=1, bias=0).
    dims = [(IN_DIM, 128), (128, 256), (256, 512), (512, 1024), (1024, IMG_PIXELS)]
    keys = jax.random.split(key, 2 * len(dims))
    params = {}
    for i, (fi, fo) in enumerate(dims, start=1):
        bound = 1.0 / np.sqrt(fi)
        params[f"w{i}"] = jax.random.uniform(
            keys[2 * (i - 1)], (fi, fo), jnp.float32, -bound, bound)
        params[f"b{i}"] = jax.random.uniform(
            keys[2 * (i - 1) + 1], (1, fo), jnp.float32, -bound, bound)
    for i, fo in zip((2, 3, 4), (256, 512, 1024)):
        params[f"g{i}"] = jnp.ones((1, fo), jnp.float32)
        params[f"be{i}"] = jnp.zeros((1, fo), jnp.float32)
    return params


if __name__ == "__main__":
    key = jax.random.PRNGKey(0)
    kz, kp_key = jax.random.split(key)

    B = 8  # small batch; feature dim fixed by module: latent_dim + bert_dim = 868
    z = jax.random.normal(kz, (B, IN_DIM), jnp.float32)
    params = init_params(kp_key)
    kparams = prepare_params(params)   # one-time pad / bf16 cast / retile of weights

    img = jax.jit(generator_forward)(z, kparams)
    img = jax.block_until_ready(img)

    assert img.shape == (B, CHANNELS, IMG_SIZE, IMG_SIZE)
    ref = generator_reference(z, params)
    np.testing.assert_allclose(np.asarray(img), np.asarray(ref),
                               atol=2e-2, rtol=2e-2)
    print("KERNEL_OK")
</pallas_src>

<mosaic_0001>
module attributes {stable_mosaic.version = 11 : i64} {
  func.func @generator_kernel(%arg0: i32, %arg1: memref<8x896xf32, #tpu.memory_space<vmem>>, %arg2: memref<896x128xf32, #tpu.memory_space<vmem>>, %arg3: memref<1x128xf32, #tpu.memory_space<vmem>>, %arg4: memref<128x256xf32, #tpu.memory_space<vmem>>, %arg5: memref<1x256xf32, #tpu.memory_space<vmem>>, %arg6: memref<1x256xf32, #tpu.memory_space<vmem>>, %arg7: memref<1x256xf32, #tpu.memory_space<vmem>>, %arg8: memref<256x512xf32, #tpu.memory_space<vmem>>, %arg9: memref<1x512xf32, #tpu.memory_space<vmem>>, %arg10: memref<1x512xf32, #tpu.memory_space<vmem>>, %arg11: memref<1x512xf32, #tpu.memory_space<vmem>>, %arg12: memref<512x1024xf32, #tpu.memory_space<vmem>>, %arg13: memref<1x1024xf32, #tpu.memory_space<vmem>>, %arg14: memref<1x1024xf32, #tpu.memory_space<vmem>>, %arg15: memref<1x1024xf32, #tpu.memory_space<vmem>>, %arg16: memref<1x1024x2048xbf16, #tpu.memory_space<vmem>>, %arg17: memref<1x2048xf32, #tpu.memory_space<vmem>>, %arg18: memref<8x2048xf32, #tpu.memory_space<vmem>>) attributes {dimension_semantics = [#tpu.dimension_semantics<parallel>], iteration_bounds = array<i64: 6>, scalar_prefetch = 0 : i64, scratch_operands = 0 : i64, tpu.core_type = #tpu.core_type<tc>, window_params = [{pipeline_mode = #tpu.pipeline_mode<synchronous>, transform_indices = @transform_0, window_bounds = array<i64: 8, 896>}, {pipeline_mode = #tpu.pipeline_mode<synchronous>, transform_indices = @transform_1, window_bounds = array<i64: 896, 128>}, {pipeline_mode = #tpu.pipeline_mode<synchronous>, transform_indices = @transform_2, window_bounds = array<i64: 1, 128>}, {pipeline_mode = #tpu.pipeline_mode<synchronous>, transform_indices = @transform_3, window_bounds = array<i64: 128, 256>}, {pipeline_mode = #tpu.pipeline_mode<synchronous>, transform_indices = @transform_4, window_bounds = array<i64: 1, 256>}, {pipeline_mode = #tpu.pipeline_mode<synchronous>, transform_indices = @transform_5, window_bounds = array<i64: 1, 256>}, {pipeline_mode = #tpu.pipeline_mode<synchronous>, transform_indices = @transform_6, window_bounds = array<i64: 1, 256>}, {pipeline_mode = #tpu.pipeline_mode<synchronous>, transform_indices = @transform_7, window_bounds = array<i64: 256, 512>}, {pipeline_mode = #tpu.pipeline_mode<synchronous>, transform_indices = @transform_8, window_bounds = array<i64: 1, 512>}, {pipeline_mode = #tpu.pipeline_mode<synchronous>, transform_indices = @transform_9, window_bounds = array<i64: 1, 512>}, {pipeline_mode = #tpu.pipeline_mode<synchronous>, transform_indices = @transform_10, window_bounds = array<i64: 1, 512>}, {pipeline_mode = #tpu.pipeline_mode<synchronous>, transform_indices = @transform_11, window_bounds = array<i64: 512, 1024>}, {pipeline_mode = #tpu.pipeline_mode<synchronous>, transform_indices = @transform_12, window_bounds = array<i64: 1, 1024>}, {pipeline_mode = #tpu.pipeline_mode<synchronous>, transform_indices = @transform_13, window_bounds = array<i64: 1, 1024>}, {pipeline_mode = #tpu.pipeline_mode<synchronous>, transform_indices = @transform_14, window_bounds = array<i64: 1, 1024>}, {transform_indices = @transform_15, window_bounds = array<i64: 1, 1024, 2048>}, {transform_indices = @transform_16, window_bounds = array<i64: 1, 2048>}, {transform_indices = @transform_17, window_bounds = array<i64: 8, 2048>}]} {
    %c0 = arith.constant 0 : index
    %c0_0 = arith.constant 0 : index
    %0 = vector.load %arg1[%c0, %c0_0] : memref<8x896xf32, #tpu.memory_space<vmem>>, vector<8x896xf32>
    %c0_1 = arith.constant 0 : index
    %c0_2 = arith.constant 0 : index
    %1 = vector.load %arg2[%c0_1, %c0_2] : memref<896x128xf32, #tpu.memory_space<vmem>>, vector<896x128xf32>
    %cst = arith.constant dense<0.000000e+00> : vector<8x128xf32>
    %2 = tpu.matmul %0, %1, %cst {dimension_numbers = #tpu.dot_dimension_numbers<[1], [0], [0], [1], [0, 0, 1, 1], [], []>} : vector<8x896xf32>, vector<896x128xf32>, vector<8x128xf32> -> vector<8x128xf32>
    %c0_3 = arith.constant 0 : index
    %c0_4 = arith.constant 0 : index
    %3 = vector.load %arg3[%c0_3, %c0_4] : memref<1x128xf32, #tpu.memory_space<vmem>>, vector<1x128xf32>
    %4 = vector.broadcast %3 : vector<1x128xf32> to vector<8x128xf32>
    %5 = arith.addf %2, %4 : vector<8x128xf32>
    %cst_5 = arith.constant 0.000000e+00 : f32
    %6 = vector.broadcast %cst_5 : f32 to vector<8x128xf32>
    %7 = arith.cmpf ogt, %5, %6 : vector<8x128xf32>
    %cst_6 = arith.constant 2.000000e-01 : f32
    %8 = vector.broadcast %cst_6 : f32 to vector<8x128xf32>
    %9 = arith.mulf %8, %5 : vector<8x128xf32>
    %10 = arith.select %7, %5, %9 : vector<8x128xi1>, vector<8x128xf32>
    %c0_7 = arith.constant 0 : index
    %c0_8 = arith.constant 0 : index
    %11 = vector.load %arg4[%c0_7, %c0_8] : memref<128x256xf32, #tpu.memory_space<vmem>>, vector<128x256xf32>
    %cst_9 = arith.constant dense<0.000000e+00> : vector<8x256xf32>
    %12 = tpu.matmul %10, %11, %cst_9 {dimension_numbers = #tpu.dot_dimension_numbers<[1], [0], [0], [1], [0, 0, 1, 1], [], []>} : vector<8x128xf32>, vector<128x256xf32>, vector<8x256xf32> -> vector<8x256xf32>
    %c0_10 = arith.constant 0 : index
    %c0_11 = arith.constant 0 : index
    %13 = vector.load %arg5[%c0_10, %c0_11] : memref<1x256xf32, #tpu.memory_space<vmem>>, vector<1x256xf32>
    %14 = vector.broadcast %13 : vector<1x256xf32> to vector<8x256xf32>
    %15 = arith.addf %12, %14 : vector<8x256xf32>
    %c0_12 = arith.constant 0 : index
    %c0_13 = arith.constant 0 : index
    %16 = vector.load %arg6[%c0_12, %c0_13] : memref<1x256xf32, #tpu.memory_space<vmem>>, vector<1x256xf32>
    %c0_14 = arith.constant 0 : index
    %c0_15 = arith.constant 0 : index
    %17 = vector.load %arg7[%c0_14, %c0_15] : memref<1x256xf32, #tpu.memory_space<vmem>>, vector<1x256xf32>
    %cst_16 = arith.constant dense<0.000000e+00> : vector<256xf32>
    %18 = vector.multi_reduction <add>, %15, %cst_16 [0] : vector<8x256xf32> to vector<256xf32>
    %19 = vector.shape_cast %18 : vector<256xf32> to vector<1x256xf32>
    %cst_17 = arith.constant 8.000000e+00 : f32
    %20 = vector.broadcast %cst_17 : f32 to vector<1x256xf32>
    %21 = arith.divf %19, %20 : vector<1x256xf32>
    %22 = vector.broadcast %21 : vector<1x256xf32> to vector<8x256xf32>
    %23 = arith.subf %15, %22 : vector<8x256xf32>
    %24 = arith.mulf %23, %23 : vector<8x256xf32>
    %cst_18 = arith.constant dense<0.000000e+00> : vector<256xf32>
    %25 = vector.multi_reduction <add>, %24, %cst_18 [0] : vector<8x256xf32> to vector<256xf32>
    %26 = vector.shape_cast %25 : vector<256xf32> to vector<1x256xf32>
    %cst_19 = arith.constant 8.000000e+00 : f32
    %27 = vector.broadcast %cst_19 : f32 to vector<1x256xf32>
    %28 = arith.divf %26, %27 : vector<1x256xf32>
    %29 = vector.broadcast %21 : vector<1x256xf32> to vector<8x256xf32>
    %30 = arith.subf %15, %29 : vector<8x256xf32>
    %cst_20 = arith.constant 8.000000e-01 : f32
    %31 = vector.broadcast %cst_20 : f32 to vector<1x256xf32>
    %32 = arith.addf %28, %31 : vector<1x256xf32>
    %33 = math.rsqrt %32 : vector<1x256xf32>
    %34 = vector.broadcast %33 : vector<1x256xf32> to vector<8x256xf32>
    %35 = arith.mulf %30, %34 : vector<8x256xf32>
    %36 = vector.broadcast %16 : vector<1x256xf32> to vector<8x256xf32>
    %37 = arith.mulf %35, %36 : vector<8x256xf32>
    %38 = vector.broadcast %17 : vector<1x256xf32> to vector<8x256xf32>
    %39 = arith.addf %37, %38 : vector<8x256xf32>
    %cst_21 = arith.constant 0.000000e+00 : f32
    %40 = vector.broadcast %cst_21 : f32 to vector<8x256xf32>
    %41 = arith.cmpf ogt, %39, %40 : vector<8x256xf32>
    %cst_22 = arith.constant 2.000000e-01 : f32
    %42 = vector.broadcast %cst_22 : f32 to vector<8x256xf32>
    %43 = arith.mulf %42, %39 : vector<8x256xf32>
    %44 = arith.select %41, %39, %43 : vector<8x256xi1>, vector<8x256xf32>
    %c0_23 = arith.constant 0 : index
    %c0_24 = arith.constant 0 : index
    %45 = vector.load %arg8[%c0_23, %c0_24] : memref<256x512xf32, #tpu.memory_space<vmem>>, vector<256x512xf32>
    %cst_25 = arith.constant dense<0.000000e+00> : vector<8x512xf32>
    %46 = tpu.matmul %44, %45, %cst_25 {dimension_numbers = #tpu.dot_dimension_numbers<[1], [0], [0], [1], [0, 0, 1, 1], [], []>} : vector<8x256xf32>, vector<256x512xf32>, vector<8x512xf32> -> vector<8x512xf32>
    %c0_26 = arith.constant 0 : index
    %c0_27 = arith.constant 0 : index
    %47 = vector.load %arg9[%c0_26, %c0_27] : memref<1x512xf32, #tpu.memory_space<vmem>>, vector<1x512xf32>
    %48 = vector.broadcast %47 : vector<1x512xf32> to vector<8x512xf32>
    %49 = arith.addf %46, %48 : vector<8x512xf32>
    %c0_28 = arith.constant 0 : index
    %c0_29 = arith.constant 0 : index
    %50 = vector.load %arg10[%c0_28, %c0_29] : memref<1x512xf32, #tpu.memory_space<vmem>>, vector<1x512xf32>
    %c0_30 = arith.constant 0 : index
    %c0_31 = arith.constant 0 : index
    %51 = vector.load %arg11[%c0_30, %c0_31] : memref<1x512xf32, #tpu.memory_space<vmem>>, vector<1x512xf32>
    %cst_32 = arith.constant dense<0.000000e+00> : vector<512xf32>
    %52 = vector.multi_reduction <add>, %49, %cst_32 [0] : vector<8x512xf32> to vector<512xf32>
    %53 = vector.shape_cast %52 : vector<512xf32> to vector<1x512xf32>
    %cst_33 = arith.constant 8.000000e+00 : f32
    %54 = vector.broadcast %cst_33 : f32 to vector<1x512xf32>
    %55 = arith.divf %53, %54 : vector<1x512xf32>
    %56 = vector.broadcast %55 : vector<1x512xf32> to vector<8x512xf32>
    %57 = arith.subf %49, %56 : vector<8x512xf32>
    %58 = arith.mulf %57, %57 : vector<8x512xf32>
    %cst_34 = arith.constant dense<0.000000e+00> : vector<512xf32>
    %59 = vector.multi_reduction <add>, %58, %cst_34 [0] : vector<8x512xf32> to vector<512xf32>
    %60 = vector.shape_cast %59 : vector<512xf32> to vector<1x512xf32>
    %cst_35 = arith.constant 8.000000e+00 : f32
    %61 = vector.broadcast %cst_35 : f32 to vector<1x512xf32>
    %62 = arith.divf %60, %61 : vector<1x512xf32>
    %63 = vector.broadcast %55 : vector<1x512xf32> to vector<8x512xf32>
    %64 = arith.subf %49, %63 : vector<8x512xf32>
    %cst_36 = arith.constant 8.000000e-01 : f32
    %65 = vector.broadcast %cst_36 : f32 to vector<1x512xf32>
    %66 = arith.addf %62, %65 : vector<1x512xf32>
    %67 = math.rsqrt %66 : vector<1x512xf32>
    %68 = vector.broadcast %67 : vector<1x512xf32> to vector<8x512xf32>
    %69 = arith.mulf %64, %68 : vector<8x512xf32>
    %70 = vector.broadcast %50 : vector<1x512xf32> to vector<8x512xf32>
    %71 = arith.mulf %69, %70 : vector<8x512xf32>
    %72 = vector.broadcast %51 : vector<1x512xf32> to vector<8x512xf32>
    %73 = arith.addf %71, %72 : vector<8x512xf32>
    %cst_37 = arith.constant 0.000000e+00 : f32
    %74 = vector.broadcast %cst_37 : f32 to vector<8x512xf32>
    %75 = arith.cmpf ogt, %73, %74 : vector<8x512xf32>
    %cst_38 = arith.constant 2.000000e-01 : f32
    %76 = vector.broadcast %cst_38 : f32 to vector<8x512xf32>
    %77 = arith.mulf %76, %73 : vector<8x512xf32>
    %78 = arith.select %75, %73, %77 : vector<8x512xi1>, vector<8x512xf32>
    %c0_39 = arith.constant 0 : index
    %c0_40 = arith.constant 0 : index
    %79 = vector.load %arg12[%c0_39, %c0_40] : memref<512x1024xf32, #tpu.memory_space<vmem>>, vector<512x1024xf32>
    %cst_41 = arith.constant dense<0.000000e+00> : vector<8x1024xf32>
    %80 = tpu.matmul %78, %79, %cst_41 {dimension_numbers = #tpu.dot_dimension_numbers<[1], [0], [0], [1], [0, 0, 1, 1], [], []>} : vector<8x512xf32>, vector<512x1024xf32>, vector<8x1024xf32> -> vector<8x1024xf32>
    %c0_42 = arith.constant 0 : index
    %c0_43 = arith.constant 0 : index
    %81 = vector.load %arg13[%c0_42, %c0_43] : memref<1x1024xf32, #tpu.memory_space<vmem>>, vector<1x1024xf32>
    %82 = vector.broadcast %81 : vector<1x1024xf32> to vector<8x1024xf32>
    %83 = arith.addf %80, %82 : vector<8x1024xf32>
    %c0_44 = arith.constant 0 : index
    %c0_45 = arith.constant 0 : index
    %84 = vector.load %arg14[%c0_44, %c0_45] : memref<1x1024xf32, #tpu.memory_space<vmem>>, vector<1x1024xf32>
    %c0_46 = arith.constant 0 : index
    %c0_47 = arith.constant 0 : index
    %85 = vector.load %arg15[%c0_46, %c0_47] : memref<1x1024xf32, #tpu.memory_space<vmem>>, vector<1x1024xf32>
    %cst_48 = arith.constant dense<0.000000e+00> : vector<1024xf32>
    %86 = vector.multi_reduction <add>, %83, %cst_48 [0] : vector<8x1024xf32> to vector<1024xf32>
    %87 = vector.shape_cast %86 : vector<1024xf32> to vector<1x1024xf32>
    %cst_49 = arith.constant 8.000000e+00 : f32
    %88 = vector.broadcast %cst_49 : f32 to vector<1x1024xf32>
    %89 = arith.divf %87, %88 : vector<1x1024xf32>
    %90 = vector.broadcast %89 : vector<1x1024xf32> to vector<8x1024xf32>
    %91 = arith.subf %83, %90 : vector<8x1024xf32>
    %92 = arith.mulf %91, %91 : vector<8x1024xf32>
    %cst_50 = arith.constant dense<0.000000e+00> : vector<1024xf32>
    %93 = vector.multi_reduction <add>, %92, %cst_50 [0] : vector<8x1024xf32> to vector<1024xf32>
    %94 = vector.shape_cast %93 : vector<1024xf32> to vector<1x1024xf32>
    %cst_51 = arith.constant 8.000000e+00 : f32
    %95 = vector.broadcast %cst_51 : f32 to vector<1x1024xf32>
    %96 = arith.divf %94, %95 : vector<1x1024xf32>
    %97 = vector.broadcast %89 : vector<1x1024xf32> to vector<8x1024xf32>
    %98 = arith.subf %83, %97 : vector<8x1024xf32>
    %cst_52 = arith.constant 8.000000e-01 : f32
    %99 = vector.broadcast %cst_52 : f32 to vector<1x1024xf32>
    %100 = arith.addf %96, %99 : vector<1x1024xf32>
    %101 = math.rsqrt %100 : vector<1x1024xf32>
    %102 = vector.broadcast %101 : vector<1x1024xf32> to vector<8x1024xf32>
    %103 = arith.mulf %98, %102 : vector<8x1024xf32>
    %104 = vector.broadcast %84 : vector<1x1024xf32> to vector<8x1024xf32>
    %105 = arith.mulf %103, %104 : vector<8x1024xf32>
    %106 = vector.broadcast %85 : vector<1x1024xf32> to vector<8x1024xf32>
    %107 = arith.addf %105, %106 : vector<8x1024xf32>
    %cst_53 = arith.constant 0.000000e+00 : f32
    %108 = vector.broadcast %cst_53 : f32 to vector<8x1024xf32>
    %109 = arith.cmpf ogt, %107, %108 : vector<8x1024xf32>
    %cst_54 = arith.constant 2.000000e-01 : f32
    %110 = vector.broadcast %cst_54 : f32 to vector<8x1024xf32>
    %111 = arith.mulf %110, %107 : vector<8x1024xf32>
    %112 = arith.select %109, %107, %111 : vector<8x1024xi1>, vector<8x1024xf32>
    %113 = arith.truncf %112 : vector<8x1024xf32> to vector<8x1024xbf16>
    %c0_55 = arith.constant 0 : index
    %c0_56 = arith.constant 0 : index
    %c0_57 = arith.constant 0 : index
    %114 = vector.load %arg16[%c0_55, %c0_56, %c0_57] : memref<1x1024x2048xbf16, #tpu.memory_space<vmem>>, vector<1x1024x2048xbf16>
    %115 = vector.shape_cast %114 : vector<1x1024x2048xbf16> to vector<1024x2048xbf16>
    %cst_58 = arith.constant dense<0.000000e+00> : vector<8x2048xf32>
    %116 = tpu.matmul %113, %115, %cst_58 {dimension_numbers = #tpu.dot_dimension_numbers<[1], [0], [0], [1], [0, 0, 1, 1], [], []>} : vector<8x1024xbf16>, vector<1024x2048xbf16>, vector<8x2048xf32> -> vector<8x2048xf32>
    %c0_59 = arith.constant 0 : index
    %c0_60 = arith.constant 0 : index
    %117 = vector.load %arg17[%c0_59, %c0_60] : memref<1x2048xf32, #tpu.memory_space<vmem>>, vector<1x2048xf32>
    %118 = vector.broadcast %117 : vector<1x2048xf32> to vector<8x2048xf32>
    %119 = arith.addf %116, %118 : vector<8x2048xf32>
    %120 = math.tanh %119 : vector<8x2048xf32>
    %c0_61 = arith.constant 0 : index
    %c0_62 = arith.constant 0 : index
    %121 = vector.load %arg18[%c0_61, %c0_62] : memref<8x2048xf32, #tpu.memory_space<vmem>>, vector<8x2048xf32>
    tpu.vector_store %arg18[%c0_61, %c0_62], %120 {strides = array<i32>} : memref<8x2048xf32, #tpu.memory_space<vmem>>, vector<8x2048xf32>,
    return
  }
  func.func @transform_0(%arg0: i32) -> (i32, i32) {
    %c0_i32 = arith.constant 0 : i32
    %c0_i32_0 = arith.constant 0 : i32
    %c0_i32_1 = arith.constant 0 : i32
    return %c0_i32, %c0_i32_0 : i32, i32
  }
  func.func @transform_1(%arg0: i32) -> (i32, i32) {
    %c0_i32 = arith.constant 0 : i32
    %c0_i32_0 = arith.constant 0 : i32
    %c0_i32_1 = arith.constant 0 : i32
    return %c0_i32, %c0_i32_0 : i32, i32
  }
  func.func @transform_2(%arg0: i32) -> (i32, i32) {
    %c0_i32 = arith.constant 0 : i32
    %c0_i32_0 = arith.constant 0 : i32
    %c0_i32_1 = arith.constant 0 : i32
    return %c0_i32, %c0_i32_0 : i32, i32
  }
  func.func @transform_3(%arg0: i32) -> (i32, i32) {
    %c0_i32 = arith.constant 0 : i32
    %c0_i32_0 = arith.constant 0 : i32
    %c0_i32_1 = arith.constant 0 : i32
    return %c0_i32, %c0_i32_0 : i32, i32
  }
  func.func @transform_4(%arg0: i32) -> (i32, i32) {
    %c0_i32 = arith.constant 0 : i32
    %c0_i32_0 = arith.constant 0 : i32
    %c0_i32_1 = arith.constant 0 : i32
    return %c0_i32, %c0_i32_0 : i32, i32
  }
  func.func @transform_5(%arg0: i32) -> (i32, i32) {
    %c0_i32 = arith.constant 0 : i32
    %c0_i32_0 = arith.constant 0 : i32
    %c0_i32_1 = arith.constant 0 : i32
    return %c0_i32, %c0_i32_0 : i32, i32
  }
  func.func @transform_6(%arg0: i32) -> (i32, i32) {
    %c0_i32 = arith.constant 0 : i32
    %c0_i32_0 = arith.constant 0 : i32
    %c0_i32_1 = arith.constant 0 : i32
    return %c0_i32, %c0_i32_0 : i32, i32
  }
  func.func @transform_7(%arg0: i32) -> (i32, i32) {
    %c0_i32 = arith.constant 0 : i32
    %c0_i32_0 = arith.constant 0 : i32
    %c0_i32_1 = arith.constant 0 : i32
    return %c0_i32, %c0_i32_0 : i32, i32
  }
  func.func @transform_8(%arg0: i32) -> (i32, i32) {
    %c0_i32 = arith.constant 0 : i32
    %c0_i32_0 = arith.constant 0 : i32
    %c0_i32_1 = arith.constant 0 : i32
    return %c0_i32, %c0_i32_0 : i32, i32
  }
  func.func @transform_9(%arg0: i32) -> (i32, i32) {
    %c0_i32 = arith.constant 0 : i32
    %c0_i32_0 = arith.constant 0 : i32
    %c0_i32_1 = arith.constant 0 : i32
    return %c0_i32, %c0_i32_0 : i32, i32
  }
  func.func @transform_10(%arg0: i32) -> (i32, i32) {
    %c0_i32 = arith.constant 0 : i32
    %c0_i32_0 = arith.constant 0 : i32
    %c0_i32_1 = arith.constant 0 : i32
    return %c0_i32, %c0_i32_0 : i32, i32
  }
  func.func @transform_11(%arg0: i32) -> (i32, i32) {
    %c0_i32 = arith.constant 0 : i32
    %c0_i32_0 = arith.constant 0 : i32
    %c0_i32_1 = arith.constant 0 : i32
    return %c0_i32, %c0_i32_0 : i32, i32
  }
  func.func @transform_12(%arg0: i32) -> (i32, i32) {
    %c0_i32 = arith.constant 0 : i32
    %c0_i32_0 = arith.constant 0 : i32
    %c0_i32_1 = arith.constant 0 : i32
    return %c0_i32, %c0_i32_0 : i32, i32
  }
  func.func @transform_13(%arg0: i32) -> (i32, i32) {
    %c0_i32 = arith.constant 0 : i32
    %c0_i32_0 = arith.constant 0 : i32
    %c0_i32_1 = arith.constant 0 : i32
    return %c0_i32, %c0_i32_0 : i32, i32
  }
  func.func @transform_14(%arg0: i32) -> (i32, i32) {
    %c0_i32 = arith.constant 0 : i32
    %c0_i32_0 = arith.constant 0 : i32
    %c0_i32_1 = arith.constant 0 : i32
    return %c0_i32, %c0_i32_0 : i32, i32
  }
  func.func @transform_15(%arg0: i32) -> (i32, i32, i32) {
    %c0_i32 = arith.constant 0 : i32
    %c0_i32_0 = arith.constant 0 : i32
    %c0_i32_1 = arith.constant 0 : i32
    return %arg0, %c0_i32, %c0_i32_0 : i32, i32, i32
  }
  func.func @transform_16(%arg0: i32) -> (i32, i32) {
    %c0_i32 = arith.constant 0 : i32
    %c0_i32_0 = arith.constant 0 : i32
    return %c0_i32, %arg0 : i32, i32
  }
  func.func @transform_17(%arg0: i32) -> (i32, i32) {
    %c0_i32 = arith.constant 0 : i32
    %c0_i32_0 = arith.constant 0 : i32
    return %c0_i32, %arg0 : i32, i32
  }
}

</mosaic_0001>

<bundles_post_ra>
// kernel: generator_forward.1
= control target key start
LH: loop header
LB: loop body
LE: loop exit
PB: predicated region body
PF: predicated region fallthrough
CT: control target
= control target key end

     0   :  { %s15932_s0 = inlined_call_operand.vmem [shape: f32[8,896], index: 0, kind: input, shape index: {}]   ;;  %s15933_s1 = inlined_call_operand.hbm [shape: f32[896,128], index: 1, kind: input, shape index: {}]   ;;  %s15934_s2 = inlined_call_operand.hbm [shape: f32[1,128], index: 2, kind: input, shape index: {}]   ;;  %s15935_s3 = inlined_call_operand.hbm [shape: f32[128,256], index: 3, kind: input, shape index: {}]   ;;  %s15936_s4 = inlined_call_operand.hbm [shape: f32[1,256], index: 4, kind: input, shape index: {}]   ;;  %s15937_s5 = inlined_call_operand.hbm [shape: f32[1,256], index: 5, kind: input, shape index: {}]   ;;  %s15938_s6 = inlined_call_operand.hbm [shape: f32[1,256], index: 6, kind: input, shape index: {}]   ;;  %s15939_s7 = inlined_call_operand.hbm [shape: f32[256,512], index: 7, kind: input, shape index: {}]   ;;  %s15940_s8 = inlined_call_operand.hbm [shape: f32[1,512], index: 8, kind: input, shape index: {}]   ;;  %s15941_s9 = inlined_call_operand.hbm [shape: f32[1,512], index: 9, kind: input, shape index: {}]   ;;  %s15942_s10 = inlined_call_operand.hbm [shape: f32[1,512], index: 10, kind: input, shape index: {}]   ;;  %s15943_s11 = inlined_call_operand.hbm [shape: f32[512,1024], index: 11, kind: input, shape index: {}]   ;;  %s15944_s12 = inlined_call_operand.hbm [shape: f32[1,1024], index: 12, kind: input, shape index: {}]   ;;  %s15945_s13 = inlined_call_operand.hbm [shape: f32[1,1024], index: 13, kind: input, shape index: {}]   ;;  %s15946_s14 = inlined_call_operand.hbm [shape: f32[1,1024], index: 14, kind: input, shape index: {}]   ;;  %s15947_s15 = inlined_call_operand.hbm [shape: bf16[6,1024,2048], index: 15, kind: input, shape index: {}]   ;;  %s15948_s16 = inlined_call_operand.hbm [shape: f32[1,12288], index: 16, kind: input, shape index: {}]   ;;  %s15949_s17 = inlined_call_operand.vmem [shape: f32[8,12288], index: 17, kind: output, shape index: {}]  }
   0x1   :  { %15971 = sst [smem:[#allocation36_spill]] %s15932_s0 }
   0x2   :  { %15972 = sst [smem:[#allocation37_spill]] %s15933_s1 }
   0x3   :  { %15973 = sst [smem:[#allocation38_spill]] %s15934_s2 }
   0x4   :  { %15974 = sst [smem:[#allocation39_spill]] %s15935_s3 }
   0x5   :  { %15975 = sst [smem:[#allocation40_spill]] %s15936_s4 }
   0x6   :  { %15976 = sst [smem:[#allocation41_spill]] %s15937_s5 }
   0x7   :  { %15977 = sst [smem:[#allocation42_spill]] %s15938_s6 }
   0x8   :  { %15978 = sst [smem:[#allocation43_spill]] %s15939_s7 }
   0x9   :  { %15979 = sst [smem:[#allocation44_spill]] %s15940_s8 }
   0xa   :  { %15980 = sst [smem:[#allocation45_spill]] %s15941_s9 }
   0xb   :  { %15981 = sst [smem:[#allocation46_spill]] %s15942_s10 }
   0xc   :  { %15982 = sst [smem:[#allocation47_spill]] %s15943_s11 }
   0xd   :  { %15983 = sst [smem:[#allocation48_spill]] %s15944_s12 }
   0xe   :  { %15984 = sst [smem:[#allocation49_spill]] %s15945_s13 }
   0xf   :  { %15985 = sst [smem:[#allocation50_spill]] %s15946_s14 }
  0x10   :  { %15986 = sst [smem:[#allocation51_spill]] %s15948_s16 }
  0x11   :  { %15987 = sst [smem:[#allocation52_spill]] %s15949_s17 }
  0x12   :  { %22 = vsyncpa [#allocation3], 0 }
  0x13   :  { %23 = vsyncpa [#allocation5], 0 }
  0x14   :  { %24 = vsyncpa [#allocation8], 0 }
  0x15   :  { %25 = vsyncpa [#allocation11], 0 }
  0x16   :  { %26 = vsyncpa [#allocation14], 0 }
  0x17   :  { %27 = vsyncpa [#allocation17], 0 }
  0x18   :  { %28 = vsyncpa [#allocation20], 0 }
  0x19   :  { %29 = vsyncpa [#allocation23], 0  ;;  %s14059_s24 = smov 0   ;;  %s14061_s25 = smov 0  }
  0x1a   :  { %s14063_s26 = smov 0   ;;  %s14065_s27 = smov 0  }
  0x1b LB: > { %s13942_s28 = smov [#allocation2]   ;;  %s14080_s0 = sadd.s32 4294967295, %s13940_s27   ;;  %s13940_s27 = sphi %s14065_s27, %s16042_s27   ;;  %s13936_s26 = sphi %s14063_s26, %s16041_s26   ;;  %s13932_s25 = sphi %s14061_s25, %s16040_s25   ;;  %s13928_s24 = sphi %s14059_s24, %s16039_s24  }
  0x1c   : > { %s448_s29 = sshll.u32 %s13942_s28, 4  ;;  %p11016_p0 = scmp.ge.s32.totalorder %s13940_s27, 1  ;;  %s14085_s29 = int_to_ptr.vmem [resolvable:$true] %s448_s29 }
  0x1d   : > { %p15959_p1 = scmp.eq.s32.totalorder %s14080_s0, 0  ;;  %p433_p2 = scmp.lt.s32.totalorder %s13940_s27, 7 }
  0x1e   : > { %s13943_s18 = smov [#allocation4]   ;;  %s13944_s20 = smov [#allocation7]  }
  0x1f   : > { %p14087_p3 = pnand %p11016_p0, %p433_p2  ;;  %s462_s19 = sshll.u32 %s13943_s18, 4  ;;  %s14099_s19 = int_to_ptr.vmem [resolvable:$true] %s462_s19 }
  0x20   : > { %s486_s21 = sshll.u32 %s13944_s20, 4  ;;  %s15991_s28 = sld [smem:[#allocation37_spill]]  ;;  %s14101_s21 = int_to_ptr.vmem [resolvable:$true] %s486_s21 }
  0x21   : > { %s15988_s30 = scalar_select %p14087_p3, 1, 0 }
  0x22   : > { %p13223_p4 = pneg %p14087_p3 }
  0x23   : > { %15989 = sst [smem:[#allocation35_spill]] %s15988_s30 }
  0x24   : > { %p14095_p5 = pnand %p13223_p4, %p15959_p1 }
  0x26   : > { %s15990_s1 = scalar_select %p14095_p5, 1, 0 }
  0x27   : > { %s13422_s17 = scalar_lea.hbm %s15991_s28, 14336  ;;  %p14111_p7 = pneg %p14095_p5 }
  0x28   : > { %p13423_p6 = scmp.ne.s32.totalorder %s15991_s28, %s13422_s17  ;;  %p13429_p10 = scmp.lt.u32.totalorder %s13422_s17, %s15991_s28 }
  0x2a   : > { %p13425_p8 = pnand %p14111_p7, %p13423_p6 }
  0x2c   : > { %p13426_p9 = pneg %p13425_p8 }
  0x2e   : > { %p13431_p11 = pnand %p13429_p10, %p13426_p9 }
  0x30   : > { %13434 = shalt.err (!%p13431_p11)
}
  0x31   : > { %s13435_s16 = scalar_lea.vmem %s14085_s29, 14336  ;;  %p13443_p2 = scmp.lt.s32.totalorder %s14085_s29, %s14085_s29 }
  0x32   : > { %p13436_p12 = scmp.ne.s32.totalorder %s14085_s29, %s13435_s16  ;;  %p13444_p4 = scmp.lt.s32.totalorder %s13435_s16, %s13435_s16 }
  0x34   : > { %p13438_p13 = pnand %p13436_p12, %p14111_p7  ;;  %p13445_p6 = por %p13444_p4, %p13443_p2 }
  0x36   : > { %p13439_p0 = pneg %p13438_p13 }
  0x38   : > { %p13446_p8 = pnand %p13445_p6, %p13439_p0 }
  0x3a   : > { %13449 = shalt.err (!%p13446_p8)
}
  0x3b   : > { %s13945_s30 = smov 128   ;;  %s13946_s14 = smov 8  }
  0x3c   : > { %13226 = dma.hbm_to_vmem [thread:$0]  (!%p14095_p5), %s15991_s28, 14336, %s14085_s29, [#allocation3], %s13945_s30, %s13945_s30, %s13946_s14  }
  0x3d   : > { %s15993_s2 = sld [smem:[#allocation38_spill]] }
  0x43   : > { %s13450_s13 = scalar_lea.hbm %s15993_s2, 16 }
  0x44   : > { %p13451_p9 = scmp.ne.s32.totalorder %s15993_s2, %s13450_s13  ;;  %p13457_p12 = scmp.lt.u32.totalorder %s13450_s13, %s15993_s2 }
  0x46   : > { %p13453_p10 = pnand %p13451_p9, %p14111_p7 }
  0x48   : > { %p13454_p11 = pneg %p13453_p10 }
  0x4a   : > { %p13459_p13 = pnand %p13457_p12, %p13454_p11 }
  0x4c   : > { %13462 = shalt.err (!%p13459_p13)
}
  0x4d   : > { %s13463_s29 = scalar_lea.vmem %s14099_s19, 16  ;;  %s13470_s9 = scalar_lea.vmem %s14099_s19, 32 }
  0x4e   : > { %p13464_p0 = scmp.ne.s32.totalorder %s14099_s19, %s13463_s29  ;;  %p13471_p6 = scmp.lt.s32.totalorder %s14099_s19, %s14099_s19 }
  0x4f   : > { %p13472_p8 = scmp.lt.s32.totalorder %s13470_s9, %s13463_s29 }
  0x50   : > { %p13466_p2 = pnand %p13464_p0, %p14111_p7 }
  0x51   : > { %p13473_p9 = por %p13472_p8, %p13471_p6 }
  0x52   : > { %p13467_p4 = pneg %p13466_p2 }
  0x54   : > { %p13474_p10 = pnand %p13473_p9, %p13467_p4 }
  0x56   : > { %13477 = shalt.err (!%p13474_p10)
}
  0x57   : > { %13229 = dma.hbm_to_vmem [thread:$0]  (!%p14095_p5), %s15993_s2, 16, %s14099_s19, [#allocation5]  }
  0x58   : > { %s15994_s4 = sld [smem:[#allocation40_spill]] }
  0x5e   : > { %s13478_s14 = scalar_lea.hbm %s15994_s4, 32 }
  0x5f   : > { %p13479_p11 = scmp.ne.s32.totalorder %s15994_s4, %s13478_s14  ;;  %p13485_p0 = scmp.lt.u32.totalorder %s13478_s14, %s15994_s4 }
  0x61   : > { %p13481_p12 = pnand %p13479_p11, %p14111_p7 }
  0x63   : > { %p13482_p13 = pneg %p13481_p12 }
  0x65   : > { %p13487_p2 = pnand %p13485_p0, %p13482_p13 }
  0x67   : > { %13490 = shalt.err (!%p13487_p2)
}
  0x68   : > { %s13491_s19 = scalar_lea.vmem %s14101_s21, 32  ;;  %p13499_p9 = scmp.lt.s32.totalorder %s14101_s21, %s14101_s21 }
  0x69   : > { %p13492_p4 = scmp.ne.s32.totalorder %s14101_s21, %s13491_s19  ;;  %p13500_p10 = scmp.lt.s32.totalorder %s13491_s19, %s13491_s19 }
  0x6b   : > { %p13494_p6 = pnand %p13492_p4, %p14111_p7  ;;  %p13501_p11 = por %p13500_p10, %p13499_p9 }
  0x6d   : > { %p13495_p8 = pneg %p13494_p6 }
  0x6f   : > { %p13502_p12 = pnand %p13501_p11, %p13495_p8 }
  0x71   : > { %13505 = shalt.err (!%p13502_p12)
}
  0x72   : > { %13235 = dma.hbm_to_vmem [thread:$0]  (!%p14095_p5), %s15994_s4, 32, %s14101_s21, [#allocation8]  }
  0x73   : > { %s13947_s9 = smov [#allocation10]   ;;  %s13948_s11 = smov [#allocation13]  }
  0x74   : > { %s508_s7 = sshll.u32 %s13947_s9, 4  ;;  %s532_s13 = sshll.u32 %s13948_s11, 4  ;;  %s509_s7 = int_to_ptr.vmem [resolvable:$true] %s508_s7  ;;  %s533_s13 = int_to_ptr.vmem [resolvable:$true] %s532_s13 }
  0x75   : > { %s15995_s6 = sld [smem:[#allocation42_spill]] }
  0x7b   : > { %s13506_s17 = scalar_lea.hbm %s15995_s6, 32 }
  0x7c   : > { %p13507_p13 = scmp.ne.s32.totalorder %s15995_s6, %s13506_s17  ;;  %p13513_p4 = scmp.lt.u32.totalorder %s13506_s17, %s15995_s6 }
  0x7e   : > { %p13509_p0 = pnand %p13507_p13, %p14111_p7 }
  0x80   : > { %p13510_p2 = pneg %p13509_p0 }
  0x82   : > { %p13515_p6 = pnand %p13513_p4, %p13510_p2 }
  0x84   : > { %13518 = shalt.err (!%p13515_p6)
}
  0x85   : > { %s13519_s21 = scalar_lea.vmem %s509_s7, 32  ;;  %p13527_p11 = scmp.lt.s32.totalorder %s509_s7, %s509_s7 }
  0x86   : > { %p13520_p8 = scmp.ne.s32.totalorder %s509_s7, %s13519_s21  ;;  %p13528_p12 = scmp.lt.s32.totalorder %s13519_s21, %s13519_s21 }
  0x88   : > { %p13522_p9 = pnand %p13520_p8, %p14111_p7  ;;  %p13529_p1 = por %p13528_p12, %p13527_p11 }
  0x8a   : > { %p13523_p10 = pneg %p13522_p9 }
  0x8c   : > { %p13530_p3 = pnand %p13529_p1, %p13523_p10 }
  0x8e   : > { %13533 = shalt.err (!%p13530_p3)
}
  0x8f   : > { %13241 = dma.hbm_to_vmem [thread:$0]  (!%p14095_p5), %s15995_s6, 32, %s509_s7, [#allocation11]  }
  0x90   : > { %s15996_s8 = sld [smem:[#allocation44_spill]] }
  0x96   : > { %s13534_s30 = scalar_lea.hbm %s15996_s8, 64 }
  0x97   : > { %p13535_p13 = scmp.ne.s32.totalorder %s15996_s8, %s13534_s30  ;;  %p13541_p3 = scmp.lt.u32.totalorder %s13534_s30, %s15996_s8 }
  0x99   : > { %p13537_p0 = pnand %p13535_p13, %p14111_p7 }
  0x9b   : > { %p13538_p1 = pneg %p13537_p0 }
  0x9d   : > { %p13543_p2 = pnand %p13541_p3, %p13538_p1 }
  0x9f   : > { %13546 = shalt.err (!%p13543_p2)
}
  0xa0   : > { %s13547_s20 = scalar_lea.vmem %s533_s13, 64  ;;  %p13555_p9 = scmp.lt.s32.totalorder %s533_s13, %s533_s13 }
  0xa1   : > { %p13548_p4 = scmp.ne.s32.totalorder %s533_s13, %s13547_s20  ;;  %p13556_p10 = scmp.lt.s32.totalorder %s13547_s20, %s13547_s20 }
  0xa3   : > { %p13550_p6 = pnand %p13548_p4, %p14111_p7  ;;  %p13557_p11 = por %p13556_p10, %p13555_p9 }
  0xa5   : > { %p13551_p8 = pneg %p13550_p6 }
  0xa7   : > { %p13558_p12 = pnand %p13557_p11, %p13551_p8 }
  0xa9   : > { %13561 = shalt.err (!%p13558_p12)
}
  0xaa   : > { %13247 = dma.hbm_to_vmem [thread:$0]  (!%p14095_p5), %s15996_s8, 64, %s533_s13, [#allocation14]  }
  0xab   : > { %s13949_s21 = smov [#allocation16]   ;;  %s13950_s29 = smov [#allocation19]  }
  0xac   : > { %s554_s16 = sshll.u32 %s13949_s21, 4  ;;  %s578_s9 = sshll.u32 %s13950_s29, 4  ;;  %s555_s16 = int_to_ptr.vmem [resolvable:$true] %s554_s16  ;;  %s579_s9 = int_to_ptr.vmem [resolvable:$true] %s578_s9 }
  0xad   : > { %s15997_s10 = sld [smem:[#allocation46_spill]] }
  0xb3   : > { %s13562_s14 = scalar_lea.hbm %s15997_s10, 64 }
  0xb4   : > { %p13563_p13 = scmp.ne.s32.totalorder %s15997_s10, %s13562_s14  ;;  %p13569_p3 = scmp.lt.u32.totalorder %s13562_s14, %s15997_s10 }
  0xb6   : > { %p13565_p0 = pnand %p13563_p13, %p14111_p7 }
  0xb8   : > { %p13566_p1 = pneg %p13565_p0 }
  0xba   : > { %p13571_p2 = pnand %p13569_p3, %p13566_p1 }
  0xbc   : > { %13574 = shalt.err (!%p13571_p2)
}
  0xbd   : > { %s13575_s13 = scalar_lea.vmem %s555_s16, 64  ;;  %p13583_p9 = scmp.lt.s32.totalorder %s555_s16, %s555_s16 }
  0xbe   : > { %p13576_p4 = scmp.ne.s32.totalorder %s555_s16, %s13575_s13  ;;  %p13584_p10 = scmp.lt.s32.totalorder %s13575_s13, %s13575_s13 }
  0xc0   : > { %p13578_p6 = pnand %p13576_p4, %p14111_p7  ;;  %p13585_p11 = por %p13584_p10, %p13583_p9 }
  0xc2   : > { %p13579_p8 = pneg %p13578_p6 }
  0xc4   : > { %p13586_p12 = pnand %p13585_p11, %p13579_p8 }
  0xc6   : > { %13589 = shalt.err (!%p13586_p12)
}
  0xc7   : > { %13253 = dma.hbm_to_vmem [thread:$0]  (!%p14095_p5), %s15997_s10, 64, %s555_s16, [#allocation17]  }
  0xc8   : > { %s15998_s12 = sld [smem:[#allocation48_spill]] }
  0xce   : > { %s13590_s11 = scalar_lea.hbm %s15998_s12, 128 }
  0xcf   : > { %p13591_p13 = scmp.ne.s32.totalorder %s15998_s12, %s13590_s11  ;;  %p13597_p3 = scmp.lt.u32.totalorder %s13590_s11, %s15998_s12 }
  0xd1   : > { %p13593_p0 = pnand %p13591_p13, %p14111_p7 }
  0xd3   : > { %p13594_p1 = pneg %p13593_p0 }
  0xd5   : > { %p13599_p2 = pnand %p13597_p3, %p13594_p1 }
  0xd7   : > { %13602 = shalt.err (!%p13599_p2)
}
  0xd8   : > { %s13603_s23 = scalar_lea.vmem %s579_s9, 128  ;;  %p13611_p9 = scmp.lt.s32.totalorder %s579_s9, %s579_s9 }
  0xd9   : > { %p13604_p4 = scmp.ne.s32.totalorder %s579_s9, %s13603_s23  ;;  %p13612_p10 = scmp.lt.s32.totalorder %s13603_s23, %s13603_s23 }
  0xdb   : > { %p13606_p6 = pnand %p13604_p4, %p14111_p7  ;;  %p13613_p11 = por %p13612_p10, %p13611_p9 }
  0xdd   : > { %p13607_p8 = pneg %p13606_p6 }
  0xdf   : > { %p13614_p12 = pnand %p13613_p11, %p13607_p8 }
  0xe1   : > { %13617 = shalt.err (!%p13614_p12)
}
  0xe2   : > { %13259 = dma.hbm_to_vmem [thread:$0]  (!%p14095_p5), %s15998_s12, 128, %s579_s9, [#allocation20]  }
  0xe3   : > { %s14252_s13 = sadd.s32 1, %s13940_s27   ;;  %s357_s19 = sadd.s32 1, %s13936_s26 }
  0xe4   : > { %s354_s7 = ssub.s32 %s13940_s27, %s14252_s13  ;;  %p364_p0 = scmp.ne.s32.totalorder %s13936_s26, %s13932_s25 }
  0xe5   : > { %p355_p13 = scmp.eq.s32.totalorder %s354_s7, 0  ;;  %p365_p1 = scmp.eq.s32.totalorder %s13940_s27, 0 }
  0xe6   : > { %p370_p3 = scmp.ne.s32.totalorder %s13932_s25, %s13928_s24  ;;  %p15999_p4 = scmp.eq.s32.totalorder %s14080_s0, 0 }
  0xe7   : > { %s14263_s21 = scalar_select %p355_p13, %s13936_s26, %s357_s19  }
  0xe8   : > { %p366_p2 = por %p365_p1, %p364_p0  ;;  %p14267_p6 = por %p15999_p4, %p370_p3 }
  0xe9   : > { %p13287_p8 = scmp.lt.s32.totalorder %s13940_s27, 6  ;;  %s611_s11 = sand.u32 1, %s13940_s27  }
  0xea   : > { %s16000_s29 = scalar_select %p14267_p6, 1, 0 }
  0xeb   : > { %s15961_s9 = sand.u32 1, %s13936_s26   ;;  %s12084_s14 = sshll.u32 %s13940_s27, 17 }
  0xec   : > { %s11032_s30 = sshll.u32 %s15961_s9, 13  ;;  %s14280_s23 = scalar_lea.hbm %s15947_s15, %s12084_s14 }
  0xed   : > { %s615_s24 = scalar_lea.vmem [#allocation24], %s11032_s30  ;;  %p14282_p9 = pnand %p13287_p8, %p366_p2 }
  0xee   : > { %s622_s16 = sshll.u32 %s615_s24, 4  ;;  %s13951_s7 = smov [#allocation6]   ;;  %s14286_s16 = int_to_ptr.vmem [resolvable:$true] %s622_s16 }
  0xef   : > { %s16001_s20 = scalar_select %p14282_p9, 1, 0 }
  0xf0   : > { %s14288_s19 = sshll.u32 %s13951_s7, 4  ;;  %s14290_s17 = scalar_lea.sflag [#allocation3], %s611_s11  ;;  %s473_s19 = int_to_ptr.vmem [resolvable:$true] %s14288_s19 }
  0xf1   : > { %s13618_s14 = scalar_lea.hbm %s14280_s23, 131072  ;;  %p15965_p11 = pneg %p14282_p9 }
  0xf2   : > { %p13619_p10 = scmp.ne.s32.totalorder %s14280_s23, %s13618_s14  ;;  %s13623_s24 = scalar_lea.hbm %s15947_s15, 786432 }
  0xf3   : > { %p13624_p0 = scmp.lt.u32.totalorder %s14280_s23, %s15947_s15  ;;  %p13625_p1 = scmp.lt.u32.totalorder %s13623_s24, %s13618_s14 }
  0xf4   : > { %p13621_p12 = pnand %p15965_p11, %p13619_p10  ;;  %p13627_p2 = scmp.lt.u32.totalorder %s13618_s14, %s14280_s23 }
  0xf5   : > { %p13626_p3 = por %p13625_p1, %p13624_p0 }
  0xf6   : > { %p13622_p13 = pneg %p13621_p12 }
  0xf7   : > { %p13628_p4 = por %p13627_p2, %p13626_p3 }
  0xf9   : > { %p13629_p8 = pnand %p13628_p4, %p13622_p13 }
  0xfb   : > { %13632 = shalt.err (!%p13629_p8)
}
  0xfc   : > { %s13633_s11 = scalar_lea.vmem %s14286_s16, 131072  ;;  %s13952_s7 = smov [#allocation24]  }
  0xfd   : > { %p13634_p10 = scmp.ne.s32.totalorder %s14286_s16, %s13633_s11  ;;  %s13638_s30 = sshll.u32 %s13952_s7, 4  ;;  %s13639_s30 = int_to_ptr.vmem [resolvable:$false] %s13638_s30 }
  0xfe   : > { %s13640_s2 = scalar_lea.vmem %s13639_s30, 262144  ;;  %p13641_p5 = scmp.lt.s32.totalorder %s14286_s16, %s13639_s30 }
  0xff   : > { %p13636_p12 = pnand %p13634_p10, %p15965_p11  ;;  %p13642_p0 = scmp.lt.s32.totalorder %s13640_s2, %s13633_s11 }
 0x101   : > { %p13637_p6 = pneg %p13636_p12  ;;  %p13643_p1 = por %p13642_p0, %p13641_p5 }
 0x103   : > { %p13644_p3 = pnand %p13643_p1, %p13637_p6 }
 0x105   : > { %13647 = shalt.err (!%p13644_p3)
}
 0x106   : > { %s15966_s9 = smov 1024   ;;  %s15967_s14 = smov 64  }
 0x107   : > { %13269 = dma.hbm_to_vmem [thread:$0]  (!%p14282_p9), %s14280_s23, 131072, %s14286_s16, %s14290_s17, %s15966_s9, %s15966_s9, %s15967_s14  }
 0x108   : > { %s16002_s3 = sld [smem:[#allocation39_spill]] }
 0x10e   : > { %s13648_s11 = scalar_lea.hbm %s16002_s3, 4096 }
 0x10f   : > { %p13649_p5 = scmp.ne.s32.totalorder %s16002_s3, %s13648_s11  ;;  %p13655_p2 = scmp.lt.u32.totalorder %s13648_s11, %s16002_s3 }
 0x111   : > { %p13651_p6 = pnand %p13649_p5, %p14111_p7 }
 0x113   : > { %p13652_p13 = pneg %p13651_p6 }
 0x115   : > { %p13657_p4 = pnand %p13655_p2, %p13652_p13 }
 0x117   : > { %13660 = shalt.err (!%p13657_p4)
}
 0x118   : > { %s13661_s6 = scalar_lea.vmem %s473_s19, 4096  ;;  %p13669_p0 = scmp.lt.s32.totalorder %s473_s19, %s473_s19 }
 0x119   : > { %p13662_p8 = scmp.ne.s32.totalorder %s473_s19, %s13661_s6  ;;  %p13670_p1 = scmp.lt.s32.totalorder %s13661_s6, %s13661_s6 }
 0x11b   : > { %p13664_p10 = pnand %p13662_p8, %p14111_p7  ;;  %p13671_p3 = por %p13670_p1, %p13669_p0 }
 0x11d   : > { %p13665_p12 = pneg %p13664_p10 }
 0x11f   : > { %p13672_p11 = pnand %p13671_p3, %p13665_p12 }
 0x121   : > { %13675 = shalt.err (!%p13672_p11)
}
 0x122   : > { %s13955_s23 = smov 256   ;;  %s13956_s16 = smov 16  }
 0x123   : > { %p16003_p5 = scmp.ne.s32.totalorder %s15990_s1, 0  ;;  %s13957_s24 = smov [#allocation9]  }
 0x124   : > { %s497_s11 = sshll.u32 %s13957_s24, 4  ;;  %s13958_s7 = smov [#allocation12]   ;;  %s498_s11 = int_to_ptr.vmem [resolvable:$true] %s497_s11 }
 0x125   : > { %13232 = dma.hbm_to_vmem [thread:$0]  (!%p16003_p5), %s16002_s3, 4096, %s473_s19, [#allocation5], %s13955_s23, %s13955_s23, %s13956_s16  }
 0x126   : > { %s518_s30 = sshll.u32 %s13958_s7, 4  ;;  %s16004_s5 = sld [smem:[#allocation41_spill]]  ;;  %s519_s30 = int_to_ptr.vmem [resolvable:$true] %s518_s30 }
 0x12c   : > { %s13676_s6 = scalar_lea.hbm %s16004_s5, 32 }
 0x12d   : > { %p13677_p11 = scmp.ne.s32.totalorder %s16004_s5, %s13676_s6  ;;  %p13683_p2 = scmp.lt.u32.totalorder %s13676_s6, %s16004_s5 }
 0x12f   : > { %p13679_p6 = pnand %p13677_p11, %p14111_p7 }
 0x131   : > { %p13680_p13 = pneg %p13679_p6 }
 0x133   : > { %p13685_p4 = pnand %p13683_p2, %p13680_p13 }
 0x135   : > { %13688 = shalt.err (!%p13685_p4)
}
 0x136   : > { %s13689_s19 = scalar_lea.vmem %s498_s11, 32  ;;  %p13697_p0 = scmp.lt.s32.totalorder %s498_s11, %s498_s11 }
 0x137   : > { %p13690_p8 = scmp.ne.s32.totalorder %s498_s11, %s13689_s19  ;;  %p13698_p1 = scmp.lt.s32.totalorder %s13689_s19, %s13689_s19 }
 0x139   : > { %p13692_p10 = pnand %p13690_p8, %p14111_p7  ;;  %p13699_p3 = por %p13698_p1, %p13697_p0 }
 0x13b   : > { %p13693_p12 = pneg %p13692_p10 }
 0x13d   : > { %p13700_p9 = pnand %p13699_p3, %p13693_p12 }
 0x13f   : > { %13703 = shalt.err (!%p13700_p9)
}
 0x140   : > { %13238 = dma.hbm_to_vmem [thread:$0]  (!%p16003_p5), %s16004_s5, 32, %s498_s11, [#allocation8]  }
 0x141   : > { %s16005_s14 = sld [smem:[#allocation43_spill]] }
 0x147   : > { %s13704_s23 = scalar_lea.hbm %s16005_s14, 16384 }
 0x148   : > { %p13705_p11 = scmp.ne.s32.totalorder %s16005_s14, %s13704_s23  ;;  %p13711_p9 = scmp.lt.u32.totalorder %s13704_s23, %s16005_s14 }
 0x14a   : > { %p13707_p6 = pnand %p13705_p11, %p14111_p7 }
 0x14c   : > { %p13708_p13 = pneg %p13707_p6 }
 0x14e   : > { %p13713_p2 = pnand %p13711_p9, %p13708_p13 }
 0x150   : > { %13716 = shalt.err (!%p13713_p2)
}
 0x151   : > { %s13717_s7 = scalar_lea.vmem %s519_s30, 16384  ;;  %p13725_p12 = scmp.lt.s32.totalorder %s519_s30, %s519_s30 }
 0x152   : > { %p13718_p4 = scmp.ne.s32.totalorder %s519_s30, %s13717_s7  ;;  %p13726_p0 = scmp.lt.s32.totalorder %s13717_s7, %s13717_s7 }
 0x154   : > { %p13720_p8 = pnand %p13718_p4, %p14111_p7  ;;  %p13727_p1 = por %p13726_p0, %p13725_p12 }
 0x156   : > { %p13721_p10 = pneg %p13720_p8 }
 0x158   : > { %p13728_p3 = pnand %p13727_p1, %p13721_p10 }
 0x15a   : > { %13731 = shalt.err (!%p13728_p3)
}
 0x15b   : > { %s13959_s11 = smov 512   ;;  %s13960_s2 = smov 32  }
 0x15c   : > { %13244 = dma.hbm_to_vmem [thread:$0]  (!%p16003_p5), %s16005_s14, 16384, %s519_s30, [#allocation11], %s13959_s11, %s13959_s11, %s13960_s2  }
 0x15d   : > { %s13961_s8 = smov [#allocation15]   ;;  %s13962_s10 = smov [#allocation18]  }
 0x15e   : > { %s543_s9 = sshll.u32 %s13961_s8, 4  ;;  %s564_s12 = sshll.u32 %s13962_s10, 4  ;;  %s544_s9 = int_to_ptr.vmem [resolvable:$true] %s543_s9  ;;  %s565_s12 = int_to_ptr.vmem [resolvable:$true] %s564_s12 }
 0x15f   : > { %s16006_s4 = sld [smem:[#allocation45_spill]] }
 0x165   : > { %s13732_s22 = scalar_lea.hbm %s16006_s4, 64 }
 0x166   : > { %p13733_p11 = scmp.ne.s32.totalorder %s16006_s4, %s13732_s22  ;;  %p13739_p9 = scmp.lt.u32.totalorder %s13732_s22, %s16006_s4 }
 0x168   : > { %p13735_p6 = pnand %p13733_p11, %p14111_p7 }
 0x16a   : > { %p13736_p13 = pneg %p13735_p6 }
 0x16c   : > { %p13741_p2 = pnand %p13739_p9, %p13736_p13 }
 0x16e   : > { %13744 = shalt.err (!%p13741_p2)
}
 0x16f   : > { %s13745_s30 = scalar_lea.vmem %s544_s9, 64  ;;  %p13753_p12 = scmp.lt.s32.totalorder %s544_s9, %s544_s9 }
 0x170   : > { %p13746_p4 = scmp.ne.s32.totalorder %s544_s9, %s13745_s30  ;;  %p13754_p0 = scmp.lt.s32.totalorder %s13745_s30, %s13745_s30 }
 0x172   : > { %p13748_p8 = pnand %p13746_p4, %p14111_p7  ;;  %p13755_p1 = por %p13754_p0, %p13753_p12 }
 0x174   : > { %p13749_p10 = pneg %p13748_p8 }
 0x176   : > { %p13756_p3 = pnand %p13755_p1, %p13749_p10 }
 0x178   : > { %13759 = shalt.err (!%p13756_p3)
}
 0x179   : > { %13250 = dma.hbm_to_vmem [thread:$0]  (!%p16003_p5), %s16006_s4, 64, %s544_s9, [#allocation14]  }
 0x17a   : > { %s16007_s6 = sld [smem:[#allocation47_spill]] }
 0x180   : > { %s13760_s19 = scalar_lea.hbm %s16007_s6, 65536 }
 0x181   : > { %p13761_p11 = scmp.ne.s32.totalorder %s16007_s6, %s13760_s19  ;;  %p13767_p9 = scmp.lt.u32.totalorder %s13760_s19, %s16007_s6 }
 0x183   : > { %p13763_p6 = pnand %p13761_p11, %p14111_p7 }
 0x185   : > { %p13764_p13 = pneg %p13763_p6 }
 0x187   : > { %p13769_p2 = pnand %p13767_p9, %p13764_p13 }
 0x189   : > { %13772 = shalt.err (!%p13769_p2)
}
 0x18a   : > { %s13773_s22 = scalar_lea.vmem %s565_s12, 65536  ;;  %p13781_p12 = scmp.lt.s32.totalorder %s565_s12, %s565_s12 }
 0x18b   : > { %p13774_p4 = scmp.ne.s32.totalorder %s565_s12, %s13773_s22  ;;  %p13782_p0 = scmp.lt.s32.totalorder %s13773_s22, %s13773_s22 }
 0x18d   : > { %p13776_p8 = pnand %p13774_p4, %p14111_p7  ;;  %p13783_p1 = por %p13782_p0, %p13781_p12 }
 0x18f   : > { %p13777_p10 = pneg %p13776_p8 }
 0x191   : > { %p13784_p3 = pnand %p13783_p1, %p13777_p10 }
 0x193   : > { %13787 = shalt.err (!%p13784_p3)
}
 0x194   : > { %s16008_s9 = smov 64   ;;  %s16009_s24 = smov 1024  }
 0x195   : > { %13256 = dma.hbm_to_vmem [thread:$0]  (!%p16003_p5), %s16007_s6, 65536, %s565_s12, [#allocation17], %s16009_s24, %s16009_s24, %s16008_s9  }
 0x196   : > { %s13963_s11 = smov [#allocation21]   ;;  %s13964_s3 = smov [#allocation22]  }
 0x197   : > { %s589_s2 = sshll.u32 %s13963_s11, 4  ;;  %s600_s5 = sshll.u32 %s13964_s3, 4  ;;  %s590_s2 = int_to_ptr.vmem [resolvable:$true] %s589_s2  ;;  %s601_s5 = int_to_ptr.vmem [resolvable:$true] %s600_s5 }
 0x198   : > { %s16010_s10 = sld [smem:[#allocation49_spill]] }
 0x19e   : > { %s13788_s23 = scalar_lea.hbm %s16010_s10, 128 }
 0x19f   : > { %p13789_p11 = scmp.ne.s32.totalorder %s16010_s10, %s13788_s23  ;;  %p13795_p9 = scmp.lt.u32.totalorder %s13788_s23, %s16010_s10 }
 0x1a1   : > { %p13791_p6 = pnand %p13789_p11, %p14111_p7 }
 0x1a3   : > { %p13792_p13 = pneg %p13791_p6 }
 0x1a5   : > { %p13797_p2 = pnand %p13795_p9, %p13792_p13 }
 0x1a7   : > { %13800 = shalt.err (!%p13797_p2)
}
 0x1a8   : > { %s13801_s12 = scalar_lea.vmem %s590_s2, 128  ;;  %p13809_p12 = scmp.lt.s32.totalorder %s590_s2, %s590_s2 }
 0x1a9   : > { %p13802_p4 = scmp.ne.s32.totalorder %s590_s2, %s13801_s12  ;;  %p13810_p0 = scmp.lt.s32.totalorder %s13801_s12, %s13801_s12 }
 0x1ab   : > { %p13804_p8 = pnand %p13802_p4, %p14111_p7  ;;  %p13811_p1 = por %p13810_p0, %p13809_p12 }
 0x1ad   : > { %p13805_p10 = pneg %p13804_p8 }
 0x1af   : > { %p13812_p3 = pnand %p13811_p1, %p13805_p10 }
 0x1b1   : > { %13815 = shalt.err (!%p13812_p3)
}
 0x1b2   : > { %13262 = dma.hbm_to_vmem [thread:$0]  (!%p16003_p5), %s16010_s10, 128, %s590_s2, [#allocation20]  }
 0x1b3   : > { %s16011_s4 = sand.u32 1, %s13936_s26   ;;  %s16012_s19 = sld [smem:[#allocation50_spill]] }
 0x1b4   : > { %s11035_s30 = sshll.u32 %s16011_s4, 4 }
 0x1b9   : > { %s13816_s8 = scalar_lea.hbm %s16012_s19, 128 }
 0x1ba   : > { %p13817_p11 = scmp.ne.s32.totalorder %s16012_s19, %s13816_s8  ;;  %p13823_p9 = scmp.lt.u32.totalorder %s13816_s8, %s16012_s19 }
 0x1bc   : > { %p13819_p6 = pnand %p13817_p11, %p14111_p7 }
 0x1be   : > { %p13820_p13 = pneg %p13819_p6 }
 0x1c0   : > { %p13825_p2 = pnand %p13823_p9, %p13820_p13 }
 0x1c2   : > { %13828 = shalt.err (!%p13825_p2)
}
 0x1c3   : > { %s13829_s2 = scalar_lea.vmem %s601_s5, 128  ;;  %p13837_p12 = scmp.lt.s32.totalorder %s601_s5, %s601_s5 }
 0x1c4   : > { %p13830_p4 = scmp.ne.s32.totalorder %s601_s5, %s13829_s2  ;;  %p13838_p0 = scmp.lt.s32.totalorder %s13829_s2, %s13829_s2 }
 0x1c6   : > { %p13832_p8 = pnand %p13830_p4, %p14111_p7  ;;  %p13839_p1 = por %p13838_p0, %p13837_p12 }
 0x1c8   : > { %p13833_p10 = pneg %p13832_p8 }
 0x1ca   : > { %p13840_p3 = pnand %p13839_p1, %p13833_p10 }
 0x1cc   : > { %13843 = shalt.err (!%p13840_p3)
}
 0x1cd   : > { %13265 = dma.hbm_to_vmem [thread:$0]  (!%p16003_p5), %s16012_s19, 128, %s601_s5, [#allocation23]  }
 0x1ce   : > { %s12085_s24 = sshll.u32 %s13940_s27, 8  ;;  %s16013_s3 = sld [smem:[#allocation51_spill]] }
 0x1cf   : > { %s636_s8 = scalar_lea.vmem [#allocation25], %s11035_s30  ;;  %p16014_p11 = scmp.ne.s32.totalorder %s16001_s20, 0 }
 0x1d0   : > { %s644_s23 = sshll.u32 %s636_s8, 4  ;;  %s645_s23 = int_to_ptr.vmem [resolvable:$true] %s644_s23 }
 0x1d1   : > { %p16015_p6 = pneg %p16014_p11 }
 0x1d4   : > { %s14457_s18 = scalar_lea.hbm %s16013_s3, %s12085_s24  ;;  %s13849_s16 = scalar_lea.hbm %s16013_s3, 1536 }
 0x1d5   : > { %s13844_s1 = scalar_lea.hbm %s14457_s18, 256  ;;  %p13850_p5 = scmp.lt.u32.totalorder %s14457_s18, %s16013_s3 }
 0x1d6   : > { %p13845_p7 = scmp.ne.s32.totalorder %s14457_s18, %s13844_s1  ;;  %p13851_p2 = scmp.lt.u32.totalorder %s13849_s16, %s13844_s1 }
 0x1d7   : > { %p13853_p8 = scmp.lt.u32.totalorder %s13844_s1, %s14457_s18 }
 0x1d8   : > { %p13847_p13 = pnand %p13845_p7, %p16015_p6  ;;  %p13852_p4 = por %p13851_p2, %p13850_p5 }
 0x1da   : > { %p13848_p9 = pneg %p13847_p13  ;;  %p13854_p10 = por %p13853_p8, %p13852_p4 }
 0x1dc   : > { %p13855_p12 = pnand %p13854_p10, %p13848_p9 }
 0x1de   : > { %13858 = shalt.err (!%p13855_p12)
}
 0x1df   : > { %s13859_s30 = scalar_lea.vmem %s645_s23, 256  ;;  %p16016_p1 = pmov %p16015_p6 }
 0x1e0   : > { %p13860_p0 = scmp.ne.s32.totalorder %s645_s23, %s13859_s30  ;;  %s13965_s2 = smov [#allocation25]  }
 0x1e1   : > { %s13864_s12 = sshll.u32 %s13965_s2, 4  ;;  %s13865_s12 = int_to_ptr.vmem [resolvable:$false] %s13864_s12 }
 0x1e2   : > { %p13862_p3 = pnand %p13860_p0, %p16016_p1  ;;  %s13866_s9 = scalar_lea.vmem %s13865_s12, 512 }
 0x1e3   : > { %p13867_p6 = scmp.lt.s32.totalorder %s645_s23, %s13865_s12  ;;  %p13868_p13 = scmp.lt.s32.totalorder %s13866_s9, %s13859_s30 }
 0x1e4   : > { %p13863_p7 = pneg %p13862_p3 }
 0x1e5   : > { %p13869_p2 = por %p13868_p13, %p13867_p6 }
 0x1e7   : > { %p13870_p5 = pnand %p13869_p2, %p13863_p7 }
 0x1e9   : > { %13873 = shalt.err (!%p13870_p5)
}
 0x1ea   : > { %13272 = dma.hbm_to_vmem [thread:$0]  (!%p16014_p11), %s14457_s18, 256, %s645_s23, %s14290_s17  }
 0x1eb   : > { %s16017_s24 = sld [smem:[#allocation35_spill]] }
 0x1f1   : > { %p16018_p9 = scmp.ne.s32.totalorder %s16017_s24, 0 }
 0x1f2   : > { %p16019_p4 = scmp.eq.s32.totalorder (!%p16018_p9), %s14080_s0, 0 }
 0x1f3   : > { %653 = sbr.rel (%p16018_p9) target bundleno = 2888 (0xb48), region = 88 }
 0x1fa   : > { %13891 = dma.done.wait (%p16019_p4), [#allocation3], 14336   ;;  %p16020_p8 = pmov %p16019_p4 }
 0x1fb   : > { %p16021_p10 = pmov %p16019_p4 }
 0x1fc   : > { %13893 = vsyncadd (%p16020_p8), [#allocation3], 4294952960 }
 0x1fd   : > { %13895 = dma.done.wait (%p16021_p10), [#allocation5], 4112   ;;  %p16022_p12 = pmov %p16019_p4 }
 0x1fe   : > { %p16023_p0 = pmov %p16019_p4 }
 0x1ff   : > { %13897 = vsyncadd (%p16022_p12), [#allocation5], 4294963184 }
 0x200   : > { %13899 = dma.done.wait (%p16023_p0), [#allocation8], 64   ;;  %p16024_p11 = pmov %p16023_p0 }
 0x201   : > { %p16025_p1 = pmov %p16023_p0 }
 0x202   : > { %13901 = vsyncadd (%p16024_p11), [#allocation8], 4294967232 }
 0x203   : > { %13903 = dma.done.wait (%p16025_p1), [#allocation11], 16416   ;;  %p16026_p3 = pmov %p16023_p0 }
 0x204   : > { %p16027_p7 = pmov %p16023_p0 }
 0x205   : > { %13905 = vsyncadd (%p16026_p3), [#allocation11], 4294950880 }
 0x206   : > { %13907 = dma.done.wait (%p16027_p7), [#allocation14], 128   ;;  %p16028_p6 = pmov %p16023_p0 }
 0x207   : > { %p16029_p13 = pmov %p16023_p0 }
 0x208   : > { %13909 = vsyncadd (%p16028_p6), [#allocation14], 4294967168 }
 0x209   : > { %13911 = dma.done.wait (%p16029_p13), [#allocation17], 65600   ;;  %p16030_p2 = pmov %p16023_p0 }
 0x20a   : > { %p16031_p5 = pmov %p16023_p0 }
 0x20b   : > { %13913 = vsyncadd (%p16030_p2), [#allocation17], 4294901696 }
 0x20c   : > { %13915 = dma.done.wait (%p16031_p5), [#allocation20], 256   ;;  %p16032_p9 = pmov %p16023_p0 }
 0x20d   : > { %p16033_p4 = pmov %p16023_p0 }
 0x20e   : > { %13917 = vsyncadd (%p16032_p9), [#allocation20], 4294967040 }
 0x20f   : > { %13919 = dma.done.wait (%p16033_p4), [#allocation23], 128   ;;  %p16034_p8 = pmov %p16023_p0 }
 0x210   : > { %s711_s20 = sand.u32 1, %s14080_s0   ;;  %s713_s17 = sand.u32 1, %s13932_s25  }
 0x211   : > { %13921 = vsyncadd (%p16034_p8), [#allocation23], 4294967168  ;;  %s11053_s4 = sshll.u32 %s713_s17, 13  ;;  %s712_s11 = scalar_lea.sflag [#allocation3], %s711_s20 }
 0x212   : > { %s14517_s18 = scalar_lea.vmem [#allocation24], %s11053_s4  ;;  %p16035_p10 = scmp.ne.s32.totalorder %s16000_s29, 0 }
 0x214   : > { %13923 = dma.done.wait (%p16035_p10), %s712_s11, 131328  }
 0x215   : > { %13925 = vsyncadd (%p16035_p10), %s712_s11, 4294835968  ;;  %v810_v0 = vld [vmem:[#allocation2 + $0x80] sm:$0xff]  ;;  %v811_v1 = vld [vmem:[#allocation2 + $0x88] sm:$0xff]  ;;  %s16036_s23 = sld [smem:[#allocation36_spill]]  ;;  %vm13967_vm0 = vmmov 0   ;;  %s11054_s4 = sshll.u32 %s713_s17, 4 }
 0x216   : > { %v794_v2 = vld [vmem:[#allocation2] sm:$0xff]  ;;  %v12243_v3 = vpack.c.bf16 %v811_v1, %v810_v0  ;;  %v795_v4 = vld [vmem:[#allocation2 + $0x8] sm:$0xff]  ;;  %v812_v11 = vld [vmem:[#allocation2 + $0x90] sm:$0xff]  ;;  %s15270_s17 = scalar_lea.vmem [#allocation25], %s11054_s4  ;;  %s11055_s11 = sshll.u32 %s14080_s0, 4 }
 0x217   : > { %v842_v5 = vld [vmem:[#allocation2 + $0x180] sm:$0xff]  ;;  %v843_v6 = vld [vmem:[#allocation2 + $0x188] sm:$0xff]  ;;  %v12245_v7 = vpack.c.bf16 %v795_v4, %v794_v2  ;;  %v813_v13 = vld [vmem:[#allocation2 + $0x98] sm:$0xff]  ;;  %p15284_p12 = scmp.lt.s32.totalorder %s11055_s11, 95  ;;  %s16038_s5 = sld [smem:[#allocation52_spill]] }
 0x218   : > { %v12275_v8 = vpack.c.bf16 %v843_v6, %v842_v5  ;;  %v826_v9 = vld [vmem:[#allocation2 + $0x100] sm:$0xff]  ;;  %v827_v10 = vld [vmem:[#allocation2 + $0x108] sm:$0xff]  ;;  %12244 = vmatprep.subr.bf16.mxu0 %v12243_v3  ;;  %v796_v14 = vld [vmem:[#allocation2 + $0x10] sm:$0xff]  ;;  %v12247_v16 = vpack.c.bf16 %v813_v13, %v812_v11 }
 0x219   : > { %v12277_v12 = vpack.c.bf16 %v827_v10, %v826_v9  ;;  %v797_v15 = vld [vmem:[#allocation2 + $0x18] sm:$0xff]  ;;  %12246 = vmatpush3.bf16.msra.mxu0 %v12245_v7  ;;  %v844_v18 = vld [vmem:[#allocation2 + $0x190] sm:$0xff]  ;;  %v814_v23 = vld [vmem:[#allocation2 + $0xa0] sm:$0xff]  ;;  %s16044_s11 = smov (!%p15284_p12, %s11055_s11), 95 }
 0x21a   : > { %12276 = vmatprep.subr.bf16.mxu1 %v12275_v8  ;;  %v12249_v17 = vpack.c.bf16 %v797_v15, %v796_v14  ;;  %v845_v19 = vld [vmem:[#allocation2 + $0x198] sm:$0xff]  ;;  %v828_v20 = vld [vmem:[#allocation2 + $0x110] sm:$0xff]  ;;  %v815_v24 = vld [vmem:[#allocation2 + $0xa8] sm:$0xff]  ;;  %12248 = vmatprep.subr.bf16.mxu0 %v12247_v16  ;;  %s11056_s0 = sshll.u32 %s16044_s11, 3 }
 0x21b   : > { %12278 = vmatpush3.bf16.msra.mxu1 %v12277_v12  ;;  %v12279_v21 = vpack.c.bf16 %v845_v19, %v844_v18  ;;  %v829_v22 = vld [vmem:[#allocation2 + $0x118] sm:$0xff]  ;;  %v12251_v26 = vpack.c.bf16 %v815_v24, %v814_v23  ;;  %v798_v27 = vld [vmem:[#allocation2 + $0x20] sm:$0xff]  ;;  %v799_v28 = vld [vmem:[#allocation2 + $0x28] sm:$0xff] }
 0x21c   : > { %v12281_v25 = vpack.c.bf16 %v829_v22, %v828_v20  ;;  %v846_v29 = vld [vmem:[#allocation2 + $0x1a0] sm:$0xff]  ;;  %v847_v30 = vld [vmem:[#allocation2 + $0x1a8] sm:$0xff]  ;;  %v12253_v33 = vpack.c.bf16 %v799_v28, %v798_v27  ;;  %v816_v35 = vld [vmem:[#allocation2 + $0xb0] sm:$0xff] }
 0x21d   : > { %12280 = vmatprep.subr.bf16.mxu1 %v12279_v21  ;;  %v830_v31 = vld [vmem:[#allocation2 + $0x120] sm:$0xff]  ;;  %v831_v32 = vld [vmem:[#allocation2 + $0x128] sm:$0xff]  ;;  %12250 = vmatpush3.bf16.msra.mxu0 %v12249_v17  ;;  %v12283_v34 = vpack.c.bf16 %v847_v30, %v846_v29  ;;  %v817_v36 = vld [vmem:[#allocation2 + $0xb8] sm:$0xff]  ;;  %s15307_s27 = scalar_lea.vmem %s16038_s5, %s11056_s0 }
 0x21e   : > { %v800_v37 = vld [vmem:[#allocation2 + $0x30] sm:$0xff]  ;;  %12252 = vmatprep.subr.bf16.mxu0 %v12251_v26  ;;  %v12285_v38 = vpack.c.bf16 %v831_v32, %v830_v31  ;;  %v12255_v39 = vpack.c.bf16 %v817_v36, %v816_v35  ;;  %v801_v40 = vld [vmem:[#allocation2 + $0x38] sm:$0xff]  ;;  %v818_v46 = vld [vmem:[#allocation2 + $0xc0] sm:$0xff] }
 0x21f   : > { %12282 = vmatpush3.bf16.msra.mxu1 %v12281_v25  ;;  %v848_v41 = vld [vmem:[#allocation2 + $0x1b0] sm:$0xff]  ;;  %v849_v42 = vld [vmem:[#allocation2 + $0x1b8] sm:$0xff]  ;;  %v819_v47 = vld [vmem:[#allocation2 + $0xc8] sm:$0xff]  ;;  %v12257_v48 = vpack.c.bf16 %v801_v40, %v800_v37 }
 0x220   : > { %12284 = vmatprep.subr.bf16.mxu1 %v12283_v34  ;;  %v12287_v43 = vpack.c.bf16 %v849_v42, %v848_v41  ;;  %v832_v44 = vld [vmem:[#allocation2 + $0x130] sm:$0xff]  ;;  %v833_v45 = vld [vmem:[#allocation2 + $0x138] sm:$0xff]  ;;  %v850_v49 = vld [vmem:[#allocation2 + $0x1c0] sm:$0xff]  ;;  %v12259_v52 = vpack.c.bf16 %v819_v47, %v818_v46 }
 0x221   : > { %12254 = vmatpush3.bf16.msra.mxu0 %v12253_v33  ;;  %v851_v50 = vld [vmem:[#allocation2 + $0x1c8] sm:$0xff]  ;;  %v12289_v51 = vpack.c.bf16 %v833_v45, %v832_v44  ;;  %v802_v53 = vld [vmem:[#allocation2 + $0x40] sm:$0xff]  ;;  %v820_v58 = vld [vmem:[#allocation2 + $0xd0] sm:$0xff] }
 0x222   : > { %12256 = vmatprep.subr.bf16.mxu0 %v12255_v39  ;;  %v803_v54 = vld [vmem:[#allocation2 + $0x48] sm:$0xff]  ;;  %v834_v55 = vld [vmem:[#allocation2 + $0x140] sm:$0xff]  ;;  %v12291_v56 = vpack.c.bf16 %v851_v50, %v850_v49  ;;  %v821_v59 = vld [vmem:[#allocation2 + $0xd8] sm:$0xff] }
 0x223   : > { %12286 = vmatpush3.bf16.msra.mxu1 %v12285_v38  ;;  %v835_v57 = vld [vmem:[#allocation2 + $0x148] sm:$0xff]  ;;  %v852_v60 = vld [vmem:[#allocation2 + $0x1d0] sm:$0xff]  ;;  %v853_v61 = vld [vmem:[#allocation2 + $0x1d8] sm:$0xff]  ;;  %v12261_v62 = vpack.c.bf16 %v803_v54, %v802_v53  ;;  %v12263_v0 = vpack.c.bf16 %v821_v59, %v820_v58 }
 0x224   : > { %12288 = vmatprep.subr.bf16.mxu1 %v12287_v43  ;;  %v12293_v63 = vpack.c.bf16 %v835_v57, %v834_v55  ;;  %v804_v1 = vld [vmem:[#allocation2 + $0x50] sm:$0xff]  ;;  %v805_v2 = vld [vmem:[#allocation2 + $0x58] sm:$0xff]  ;;  %v12295_v4 = vpack.c.bf16 %v853_v61, %v852_v60  ;;  %v822_v6 = vld [vmem:[#allocation2 + $0xe0] sm:$0xff] }
 0x225   : > { %12258 = vmatpush3.bf16.msra.mxu0 %v12257_v48  ;;  %v836_v3 = vld [vmem:[#allocation2 + $0x150] sm:$0xff]  ;;  %v837_v5 = vld [vmem:[#allocation2 + $0x158] sm:$0xff]  ;;  %v823_v7 = vld [vmem:[#allocation2 + $0xe8] sm:$0xff]  ;;  %v12265_v10 = vpack.c.bf16 %v805_v2, %v804_v1  ;;  %v13968_v1 = vmov 0.0  }
 0x226   : > { %12260 = vmatprep.subr.bf16.mxu0 %v12259_v52  ;;  %v854_v8 = vld [vmem:[#allocation2 + $0x1e0] sm:$0xff]  ;;  %v855_v9 = vld [vmem:[#allocation2 + $0x1e8] sm:$0xff]  ;;  %v12297_v13 = vpack.c.bf16 %v837_v5, %v836_v3  ;;  %v12267_v14 = vpack.c.bf16 %v823_v7, %v822_v6  ;;  %v824_v19 = vld [vmem:[#allocation2 + $0xf0] sm:$0xff] }
 0x227   : > { %12290 = vmatpush3.bf16.msra.mxu1 %v12289_v51  ;;  %v806_v11 = vld [vmem:[#allocation2 + $0x60] sm:$0xff]  ;;  %v788_v12 = vld [vmem:[%s16036_s23 + $0x8] sm:$0xff]  ;;  %v12299_v18 = vpack.c.bf16 %v855_v9, %v854_v8  ;;  %v825_v20 = vld [vmem:[#allocation2 + $0xf8] sm:$0xff]  ;;  %v13966_v51 = vmov 0.0|0.0  }
 0x228   : > { %12292 = vmatprep.subr.bf16.mxu1 %v12291_v56  ;;  %v807_v15 = vld [vmem:[#allocation2 + $0x68] sm:$0xff]  ;;  %v838_v16 = vld [vmem:[#allocation2 + $0x160] sm:$0xff]  ;;  %977 = vmatprep.mubr.f32.mxu0 %v788_v12  ;;  %v790_v21 = vld [vmem:[%s16036_s23 + $0x18] sm:$0xff]  ;;  %v12271_v26 = vpack.c.bf16 %v825_v20, %v824_v19 }
 0x229   : > { %12262 = vmatpush3.bf16.msra.mxu0 %v12261_v62  ;;  %v839_v17 = vld [vmem:[#allocation2 + $0x168] sm:$0xff]  ;;  %v856_v22 = vld [vmem:[#allocation2 + $0x1f0] sm:$0xff]  ;;  %v857_v23 = vld [vmem:[#allocation2 + $0x1f8] sm:$0xff]  ;;  %1047 = vmatprep.mubr.f32.mxu1 %v790_v21  ;;  %v12269_v24 = vpack.c.bf16 %v807_v15, %v806_v11 }
 0x22a   : > { %12264 = vmatprep.subr.bf16.mxu0 %v12263_v0  ;;  %v12301_v25 = vpack.c.bf16 %v839_v17, %v838_v16  ;;  %v808_v27 = vld [vmem:[#allocation2 + $0x70] sm:$0xff]  ;;  %v809_v28 = vld [vmem:[#allocation2 + $0x78] sm:$0xff]  ;;  %v12303_v30 = vpack.c.bf16 %v857_v23, %v856_v22  ;;  %v874_v32 = vld [vmem:[#allocation2 + $0x280] sm:$0xff] }
 0x22b   : > { %12294 = vmatpush3.bf16.msra.mxu1 %v12293_v63  ;;  %v840_v29 = vld [vmem:[#allocation2 + $0x170] sm:$0xff]  ;;  %v841_v31 = vld [vmem:[#allocation2 + $0x178] sm:$0xff]  ;;  %v875_v33 = vld [vmem:[#allocation2 + $0x288] sm:$0xff]  ;;  %v12273_v34 = vpack.c.bf16 %v809_v28, %v808_v27 }
 0x22c   : > { %12296 = vmatprep.subr.bf16.mxu1 %v12295_v4  ;;  %v12305_v35 = vpack.c.bf16 %v841_v31, %v840_v29  ;;  %v12307_v36 = vpack.c.bf16 %v875_v33, %v874_v32  ;;  %v858_v37 = vld [vmem:[#allocation2 + $0x200] sm:$0xff]  ;;  %v859_v38 = vld [vmem:[#allocation2 + $0x208] sm:$0xff]  ;;  %v876_v39 = vld [vmem:[#allocation2 + $0x290] sm:$0xff] }
 0x22d   : > { %12266 = vmatpush3.bf16.msra.mxu0 %v12265_v10  ;;  %v877_v40 = vld [vmem:[#allocation2 + $0x298] sm:$0xff]  ;;  %v890_v41 = vld [vmem:[#allocation2 + $0x300] sm:$0xff]  ;;  %v891_v42 = vld [vmem:[#allocation2 + $0x308] sm:$0xff]  ;;  %v12309_v44 = vpack.c.bf16 %v859_v38, %v858_v37 }
 0x22e   : > { %12268 = vmatprep.subr.bf16.mxu0 %v12267_v14  ;;  %v787_v43 = vld [vmem:[%s16036_s23] sm:$0xff]  ;;  %v789_v45 = vld [vmem:[%s16036_s23 + $0x10] sm:$0xff]  ;;  %v12311_v46 = vpack.c.bf16 %v877_v40, %v876_v39  ;;  %v861_v48 = vld [vmem:[#allocation2 + $0x218] sm:$0xff]  ;;  %v12340_v49 = vpack.c.bf16 %v891_v42, %v890_v41 }
 0x22f   : > { %12298 = vmatpush3.bf16.msra.mxu1 %v12297_v13  ;;  %v860_v47 = vld [vmem:[#allocation2 + $0x210] sm:$0xff]  ;;  %v878_v50 = vld [vmem:[#allocation2 + $0x2a0] sm:$0xff]  ;;  %v879_v52 = vld [vmem:[#allocation2 + $0x2a8] sm:$0xff] }
 0x230   : > { %12300 = vmatprep.subr.bf16.mxu1 %v12299_v18  ;;  %v892_v53 = vld [vmem:[#allocation2 + $0x310] sm:$0xff]  ;;  %v893_v54 = vld [vmem:[#allocation2 + $0x318] sm:$0xff]  ;;  %v12313_v55 = vpack.c.bf16 %v861_v48, %v860_v47  ;;  %v862_v56 = vld [vmem:[#allocation2 + $0x220] sm:$0xff]  ;;  %v12315_v57 = vpack.c.bf16 %v879_v52, %v878_v50 }
 0x231   : > { %12270 = vmatpush3.bf16.msra.mxu0 %v12269_v24  ;;  %v863_v58 = vld [vmem:[#allocation2 + $0x228] sm:$0xff]  ;;  %v12343_v59 = vpack.c.bf16 %v893_v54, %v892_v53  ;;  %v880_v60 = vld [vmem:[#allocation2 + $0x2b0] sm:$0xff]  ;;  %v881_v61 = vld [vmem:[#allocation2 + $0x2b8] sm:$0xff] }
 0x232   : > { %12272 = vmatprep.subr.bf16.mxu0 %v12271_v26  ;;  %v894_v62 = vld [vmem:[#allocation2 + $0x320] sm:$0xff]  ;;  %v895_v63 = vld [vmem:[#allocation2 + $0x328] sm:$0xff]  ;;  %v12317_v2 = vpack.c.bf16 %v863_v58, %v862_v56  ;;  %v12319_v3 = vpack.c.bf16 %v881_v61, %v880_v60  ;;  %v864_v4 = vld [vmem:[#allocation2 + $0x230] sm:$0xff] }
 0x233   : > { %12302 = vmatpush3.bf16.msra.mxu1 %v12301_v25  ;;  %v792_v0 = vld [vmem:[%s16036_s23 + $0x28] sm:$0xff]  ;;  %v865_v5 = vld [vmem:[#allocation2 + $0x238] sm:$0xff]  ;;  %v12346_v6 = vpack.c.bf16 %v895_v63, %v894_v62  ;;  %v882_v7 = vld [vmem:[#allocation2 + $0x2c0] sm:$0xff] }
 0x234   : > { %12304 = vmatprep.subr.bf16.mxu1 %v12303_v30  ;;  %v883_v8 = vld [vmem:[#allocation2 + $0x2c8] sm:$0xff]  ;;  %v896_v9 = vld [vmem:[#allocation2 + $0x330] sm:$0xff]  ;;  %v897_v10 = vld [vmem:[#allocation2 + $0x338] sm:$0xff]  ;;  %v12321_v11 = vpack.c.bf16 %v865_v5, %v864_v4 }
 0x235   : > { %12274 = vmatpush3.bf16.msra.mxu0 %v12273_v34  ;;  %v12323_v12 = vpack.c.bf16 %v883_v8, %v882_v7  ;;  %v866_v13 = vld [vmem:[#allocation2 + $0x240] sm:$0xff]  ;;  %v867_v14 = vld [vmem:[#allocation2 + $0x248] sm:$0xff]  ;;  %v12349_v15 = vpack.c.bf16 %v897_v10, %v896_v9  ;;  %v884_v16 = vld [vmem:[#allocation2 + $0x2d0] sm:$0xff] }
 0x236   : > { %12308 = vmatprep.subr.bf16.mxu0 %v12307_v36  ;;  %v885_v17 = vld [vmem:[#allocation2 + $0x2d8] sm:$0xff]  ;;  %v898_v18 = vld [vmem:[#allocation2 + $0x340] sm:$0xff]  ;;  %v899_v19 = vld [vmem:[#allocation2 + $0x348] sm:$0xff]  ;;  %v12325_v20 = vpack.c.bf16 %v867_v14, %v866_v13 }
 0x237   : > { %12306 = vmatpush3.bf16.msra.mxu1 %v12305_v35  ;;  %v12327_v21 = vpack.c.bf16 %v885_v17, %v884_v16  ;;  %v868_v22 = vld [vmem:[#allocation2 + $0x250] sm:$0xff]  ;;  %v869_v23 = vld [vmem:[#allocation2 + $0x258] sm:$0xff]  ;;  %v12352_v24 = vpack.c.bf16 %v899_v19, %v898_v18  ;;  %v886_v25 = vld [vmem:[#allocation2 + $0x2e0] sm:$0xff] }
 0x238   : > { %12339 = vmatprep.subr.bf16.mxu1 %v13966_v51  ;;  %978 = vmatmul.mubr.f32.vlgmr.msra.gmra.mrb[0].mxu0 %v787_v43  ;;  %v887_v26 = vld [vmem:[#allocation2 + $0x2e8] sm:$0xff]  ;;  %v900_v27 = vld [vmem:[#allocation2 + $0x350] sm:$0xff]  ;;  %v901_v28 = vld [vmem:[#allocation2 + $0x358] sm:$0xff]  ;;  %v12329_v29 = vpack.c.bf16 %v869_v23, %v868_v22 }
 0x239   : > { %12310 = vmatpush3.bf16.msra.mxu0 %v12309_v44  ;;  %1117 = vmatprep.mubr.f32.mxu0 %v792_v0  ;;  %v12331_v30 = vpack.c.bf16 %v887_v26, %v886_v25  ;;  %v870_v31 = vld [vmem:[#allocation2 + $0x260] sm:$0xff]  ;;  %v871_v32 = vld [vmem:[#allocation2 + $0x268] sm:$0xff]  ;;  %v12355_v33 = vpack.c.bf16 %v901_v28, %v900_v27  ;;  %v888_v34 = vld [vmem:[#allocation2 + $0x2f0] sm:$0xff] }
 0x23a   : > { %1048 = vmatmul.mubr.f32.vlgmr.msra.gmra.mrb[0].mxu1 %v789_v45  ;;  %12312 = vmatprep.subr.bf16.mxu0 %v12311_v46  ;;  %v889_v35 = vld [vmem:[#allocation2 + $0x2f8] sm:$0xff]  ;;  %v902_v36 = vld [vmem:[#allocation2 + $0x360] sm:$0xff]  ;;  %v903_v37 = vld [vmem:[#allocation2 + $0x368] sm:$0xff]  ;;  %v12333_v38 = vpack.c.bf16 %v871_v32, %v870_v31 }
 0x23b   : > { %12341 = vmatpush3.bf16.msra.mxu1 %v12340_v49  ;;  %12240 = vmatprep.mubr.msk.f32.mxu1 %vm13967_vm0, %v13968_v1  ;;  %v12335_v39 = vpack.c.bf16 %v889_v35, %v888_v34  ;;  %v872_v40 = vld [vmem:[#allocation2 + $0x270] sm:$0xff]  ;;  %v873_v41 = vld [vmem:[#allocation2 + $0x278] sm:$0xff]  ;;  %v12358_v42 = vpack.c.bf16 %v903_v37, %v902_v36  ;;  %v791_v47 = vld [vmem:[%s16036_s23 + $0x20] sm:$0xff] }
 0x23c   : > { %12342 = vmatprep.subr.bf16.mxu1 %v13966_v51  ;;  %v904_v43 = vld [vmem:[#allocation2 + $0x370] sm:$0xff]  ;;  %v905_v44 = vld [vmem:[#allocation2 + $0x378] sm:$0xff]  ;;  %v12337_v45 = vpack.c.bf16 %v873_v41, %v872_v40  ;;  %v1196_v52 = vld [vmem:[#allocation6] sm:$0xff] }
 0x23d   : > { %12314 = vmatpush3.bf16.msra.mxu0 %v12313_v55  ;;  %v12361_v46 = vpack.c.bf16 %v905_v44, %v904_v43  ;;  %v793_v48 = vld [vmem:[%s16036_s23 + $0x30] sm:$0xff]  ;;  %v1199_v50 = vld [vmem:[#allocation6 + $0x18] sm:$0xff]  ;;  %v1200_v58 = vld [vmem:[#allocation6 + $0x20] sm:$0xff] }
 0x23e   : > { %12316 = vmatprep.subr.bf16.mxu0 %v12315_v57  ;;  %v1197_v49 = vld [vmem:[#allocation6 + $0x8] sm:$0xff]  ;;  %v1198_v54 = vld [vmem:[#allocation6 + $0x10] sm:$0xff]  ;;  %v1203_v55 = vld [vmem:[#allocation6 + $0x38] sm:$0xff] }
 0x23f   : > { %12344 = vmatpush3.bf16.msra.mxu1 %v12343_v59  ;;  %v12363_v53 = vpack.c.bf16 %v1199_v50, %v1197_v49  ;;  %v12365_v56 = vpack.c.bf16 %v1198_v54, %v1196_v52  ;;  %v1202_v59 = vld [vmem:[#allocation6 + $0x30] sm:$0xff]  ;;  %v1205_v60 = vld [vmem:[#allocation6 + $0x48] sm:$0xff]  ;;  %v1207_v61 = vld [vmem:[#allocation6 + $0x58] sm:$0xff] }
 0x240   : > { %12345 = vmatprep.subr.bf16.mxu1 %v13966_v51  ;;  %v12369_v62 = vpack.c.bf16 %v1202_v59, %v1200_v58  ;;  %v12371_v63 = vpack.c.bf16 %v1207_v61, %v1205_v60  ;;  %v1204_v0 = vld [vmem:[#allocation6 + $0x40] sm:$0xff]  ;;  %v1210_v7 = vld [vmem:[#allocation6 + $0x70] sm:$0xff]  ;;  %v1213_v8 = vld [vmem:[#allocation6 + $0x88] sm:$0xff] }
 0x241   : > { %12318 = vmatpush3.bf16.msra.mxu0 %v12317_v2  ;;  %v1209_v2 = vld [vmem:[#allocation6 + $0x68] sm:$0xff]  ;;  %v1215_v9 = vld [vmem:[#allocation6 + $0x98] sm:$0xff]  ;;  %v1214_v13 = vld [vmem:[#allocation6 + $0x90] sm:$0xff] }
 0x242   : > { %12320 = vmatprep.subr.bf16.mxu0 %v12319_v3  ;;  %v1211_v3 = vld [vmem:[#allocation6 + $0x78] sm:$0xff]  ;;  %v1217_v14 = vld [vmem:[#allocation6 + $0xa8] sm:$0xff]  ;;  %v1216_v18 = vld [vmem:[#allocation6 + $0xa0] sm:$0xff] }
 0x243   : > { %12347 = vmatpush3.bf16.msra.mxu1 %v12346_v6  ;;  %v12375_v5 = vpack.c.bf16 %v1211_v3, %v1209_v2  ;;  %v1208_v6 = vld [vmem:[#allocation6 + $0x60] sm:$0xff]  ;;  %v1218_v19 = vld [vmem:[#allocation6 + $0xb0] sm:$0xff]  ;;  %v1223_v22 = vld [vmem:[#allocation6 + $0xd8] sm:$0xff] }
 0x244   : > { %12348 = vmatprep.subr.bf16.mxu1 %v13966_v51  ;;  %v12377_v10 = vpack.c.bf16 %v1210_v7, %v1208_v6  ;;  %v1222_v25 = vld [vmem:[#allocation6 + $0xd0] sm:$0xff]  ;;  %v1225_v27 = vld [vmem:[#allocation6 + $0xe8] sm:$0xff]  ;;  %v1227_v28 = vld [vmem:[#allocation6 + $0xf8] sm:$0xff] }
 0x245   : > { %12322 = vmatpush3.bf16.msra.mxu0 %v12321_v11  ;;  %v12379_v11 = vpack.c.bf16 %v1215_v9, %v1213_v8  ;;  %v1226_v31 = vld [vmem:[#allocation6 + $0xf0] sm:$0xff]  ;;  %v1387_v35 = vld [vmem:[#allocation12 + $0x18] sm:$0xff]  ;;  %v1396_v6 = vld [vmem:[#allocation12 + $0x60] sm:$0xff] }
 0x246   : > { %12324 = vmatprep.subr.bf16.mxu0 %v12323_v12  ;;  %v1212_v12 = vld [vmem:[#allocation6 + $0x80] sm:$0xff]  ;;  %v1389_v34 = vld [vmem:[#allocation12 + $0x28] sm:$0xff]  ;;  %v1386_v60 = vld [vmem:[#allocation12 + $0x10] sm:$0xff] }
 0x247   : > { %12350 = vmatpush3.bf16.msra.mxu1 %v12349_v15  ;;  %v1219_v15 = vld [vmem:[#allocation6 + $0xb8] sm:$0xff]  ;;  %v12381_v16 = vpack.c.bf16 %v1214_v13, %v1212_v12  ;;  %v1397_v43 = vld [vmem:[#allocation12 + $0x68] sm:$0xff] }
 0x248   : > { %12351 = vmatprep.subr.bf16.mxu1 %v13966_v51  ;;  %v12383_v17 = vpack.c.bf16 %v1219_v15, %v1217_v14  ;;  %v1391_v37 = vld [vmem:[#allocation12 + $0x38] sm:$0xff]  ;;  %v1390_v61 = vld [vmem:[#allocation12 + $0x30] sm:$0xff]  ;;  %v1405_v12 = vld [vmem:[#allocation12 + $0xa8] sm:$0xff] }
 0x249   : > { %12326 = vmatpush3.bf16.msra.mxu0 %v12325_v20  ;;  %v12385_v20 = vpack.c.bf16 %v1218_v19, %v1216_v18  ;;  %v12459_v40 = vpack.c.bf16 %v1391_v37, %v1387_v35  ;;  %v12461_v2 = vpack.c.bf16 %v1390_v61, %v1386_v60  ;;  %v1394_v7 = vld [vmem:[#allocation12 + $0x50] sm:$0xff]  ;;  %v1403_v13 = vld [vmem:[#allocation12 + $0x98] sm:$0xff]  ;;  %v1404_v18 = vld [vmem:[#allocation12 + $0xa0] sm:$0xff] }
 0x24a   : > { %12328 = vmatprep.subr.bf16.mxu0 %v12327_v21  ;;  %v1221_v21 = vld [vmem:[#allocation6 + $0xc8] sm:$0xff]  ;;  %v1398_v9 = vld [vmem:[#allocation12 + $0x70] sm:$0xff]  ;;  %v1407_v15 = vld [vmem:[#allocation12 + $0xb8] sm:$0xff] }
 0x24b   : > { %12353 = vmatpush3.bf16.msra.mxu1 %v12352_v24  ;;  %v12387_v23 = vpack.c.bf16 %v1223_v22, %v1221_v21  ;;  %v1220_v24 = vld [vmem:[#allocation6 + $0xc0] sm:$0xff]  ;;  %v1402_v19 = vld [vmem:[#allocation12 + $0x90] sm:$0xff]  ;;  %v1417_v35 = vld [vmem:[#allocation12 + $0x108] sm:$0xff] }
 0x24c   : > { %12354 = vmatprep.subr.bf16.mxu1 %v13966_v51  ;;  %v12389_v26 = vpack.c.bf16 %v1222_v25, %v1220_v24  ;;  %v1413_v24 = vld [vmem:[#allocation12 + $0xe8] sm:$0xff]  ;;  %v1411_v25 = vld [vmem:[#allocation12 + $0xd8] sm:$0xff] }
 0x24d   : > { %12330 = vmatpush3.bf16.msra.mxu0 %v12329_v29  ;;  %v12391_v29 = vpack.c.bf16 %v1227_v28, %v1225_v27  ;;  %v1415_v27 = vld [vmem:[#allocation12 + $0xf8] sm:$0xff]  ;;  %v1408_v28 = vld [vmem:[#allocation12 + $0xc0] sm:$0xff]  ;;  %v1437_v60 = vld [vmem:[#allocation12 + $0x1a8] sm:$0xff] }
 0x24e   : > { %12332 = vmatprep.subr.bf16.mxu0 %v12331_v30  ;;  %v1224_v30 = vld [vmem:[#allocation6 + $0xe0] sm:$0xff] }
 0x24f   : > { %12356 = vmatpush3.bf16.msra.mxu1 %v12355_v33  ;;  %v12393_v32 = vpack.c.bf16 %v1226_v31, %v1224_v30  ;;  %v1385_v33 = vld [vmem:[#allocation12 + $0x8] sm:$0xff]  ;;  %v12471_v30 = vpack.c.bf16 %v1415_v27, %v1411_v25  ;;  %v1419_v37 = vld [vmem:[#allocation12 + $0x118] sm:$0xff]  ;;  %v1452_v25 = vld [vmem:[#allocation12 + $0x220] sm:$0xff] }
 0x250   : > { %12357 = vmatprep.subr.bf16.mxu1 %v13966_v51  ;;  %v12395_v36 = vpack.c.bf16 %v1389_v34, %v1385_v33  ;;  %v1414_v33 = vld [vmem:[#allocation12 + $0xf0] sm:$0xff]  ;;  %v1435_v61 = vld [vmem:[#allocation12 + $0x198] sm:$0xff] }
 0x251   : > { %12334 = vmatpush3.bf16.msra.mxu0 %v12333_v38  ;;  %v1384_v38 = vld [vmem:[#allocation12] sm:$0xff] }
 0x252   : > { %12336 = vmatprep.subr.bf16.mxu0 %v12335_v39  ;;  %v1388_v39 = vld [vmem:[#allocation12 + $0x20] sm:$0xff] }
 0x253   : > { %12359 = vmatpush3.bf16.msra.mxu1 %v12358_v42  ;;  %v12397_v41 = vpack.c.bf16 %v1388_v39, %v1384_v38  ;;  %v1393_v42 = vld [vmem:[#allocation12 + $0x48] sm:$0xff]  ;;  %v1423_v39 = vld [vmem:[#allocation12 + $0x138] sm:$0xff] }
 0x254   : > { %12360 = vmatprep.subr.bf16.mxu1 %v13966_v51  ;;  %v1201_v51 = vld [vmem:[#allocation6 + $0x28] sm:$0xff]  ;;  %v12399_v44 = vpack.c.bf16 %v1397_v43, %v1393_v42  ;;  %v12475_v42 = vpack.c.bf16 %v1423_v39, %v1419_v37 }
 0x255   : > { %12338 = vmatpush3.bf16.msra.mxu0 %v12337_v45  ;;  %v12367_v57 = vpack.c.bf16 %v1203_v55, %v1201_v51  ;;  %v1460_v37 = vld [vmem:[#allocation12 + $0x260] sm:$0xff] }
 0x256   : > { %12364 = vmatprep.subr.bf16.mxu0 %v12363_v53 }
 0x257   : > { %12362 = vmatpush3.bf16.msra.mxu1 %v12361_v46  ;;  %v11057_v46 = vld [vmem:[#allocation4] ss:$0 sm:$0xff] }
 0x258   : > { %1118 = vmatmul.mubr.f32.vlgmr.msra.gmra.mrb[2].mxu0 %v791_v47  ;;  %12396 = vmatprep.subr.bf16.mxu1 %v12395_v36  ;;  %v1421_v36 = vld [vmem:[#allocation12 + $0x128] sm:$0xff] }
 0x259   : > { %1304 = vmatprep.mubr.f32.mxu0 %v13968_v1  ;;  %12366 = vmatpush1.bf16.msra.mxu0 %v12365_v56  ;;  %v1206_v1 = vld [vmem:[#allocation6 + $0x50] sm:$0xff]  ;;  %v12411_v38 = vpack.c.bf16 %v1421_v36, %v1417_v35  ;;  %v1463_v35 = vld [vmem:[#allocation12 + $0x278] sm:$0xff]  ;;  %v1456_v36 = vld [vmem:[#allocation12 + $0x240] sm:$0xff] }
 0x25a   : > { %12241 = vmatmul.mubr.f32.vlgmr.msra.gmra.mrb[2].mxu1 %v793_v48  ;;  %12368 = vmatprep.subr.bf16.mxu0 %v12367_v57  ;;  %v12373_v4 = vpack.c.bf16 %v1206_v1, %v1204_v0  ;;  %v1399_v0 = vld [vmem:[#allocation12 + $0x78] sm:$0xff]  ;;  %v12433_v39 = vpack.c.bf16 %v1460_v37, %v1456_v36  ;;  %v1498_v36 = vld [vmem:[#allocation12 + $0x390] sm:$0xff] }
 0x25b   : > { %12398 = vmatpush1.bf16.msra.mxu1 %v12397_v41  ;;  %v1420_v41 = vld [vmem:[#allocation12 + $0x120] sm:$0xff]  ;;  %v1502_v37 = vld [vmem:[#allocation12 + $0x3b0] sm:$0xff] }
 0x25c   : > { %12400 = vmatprep.subr.bf16.mxu1 %v12399_v44  ;;  %v1418_v44 = vld [vmem:[#allocation12 + $0x110] sm:$0xff] }
 0x25d   : > { %12370 = vmatpush1.bf16.msra.mxu0 %v12369_v62 }
 0x25e   : > { %12372 = vmatprep.subr.bf16.mxu0 %v12371_v63  ;;  %v1395_v63 = vld [vmem:[#allocation12 + $0x58] sm:$0xff] }
 0x25f   : > { %v12463_v3 = vpack.c.bf16 %v1399_v0, %v1395_v63  ;;  %v1439_v63 = vld [vmem:[#allocation12 + $0x1b8] sm:$0xff]  ;;  %v1432_v0 = vld [vmem:[#allocation12 + $0x180] sm:$0xff] }
 0x261   : > { %12374 = vmatpush1.bf16.msra.mxu0 %v12373_v4 }
 0x262   : > { %12376 = vmatprep.subr.bf16.mxu0 %v12375_v5  ;;  %v1392_v5 = vld [vmem:[#allocation12 + $0x40] sm:$0xff] }
 0x263   : > { %v12401_v8 = vpack.c.bf16 %v1396_v6, %v1392_v5  ;;  %v1438_v5 = vld [vmem:[#allocation12 + $0x1b0] sm:$0xff] }
 0x265   : > { %12378 = vmatpush1.bf16.msra.mxu0 %v12377_v10  ;;  %v12465_v10 = vpack.c.bf16 %v1398_v9, %v1394_v7  ;;  %12402 = vmatpush1.bf16.msra.mxu1 %v12401_v8  ;;  %v1441_v7 = vld [vmem:[#allocation12 + $0x1c8] sm:$0xff]  ;;  %v1443_v9 = vld [vmem:[#allocation12 + $0x1d8] sm:$0xff] }
 0x266   : > { %12380 = vmatprep.subr.bf16.mxu0 %v12379_v11  ;;  %v1401_v11 = vld [vmem:[#allocation12 + $0x88] sm:$0xff] }
 0x267   : > { %v12403_v14 = vpack.c.bf16 %v1405_v12, %v1401_v11  ;;  %v1445_v8 = vld [vmem:[#allocation12 + $0x1e8] sm:$0xff]  ;;  %v1447_v11 = vld [vmem:[#allocation12 + $0x1f8] sm:$0xff]  ;;  %v1440_v12 = vld [vmem:[#allocation12 + $0x1c0] sm:$0xff] }
 0x269   : > { %12382 = vmatpush1.bf16.msra.mxu0 %v12381_v16  ;;  %v1400_v16 = vld [vmem:[#allocation12 + $0x80] sm:$0xff]  ;;  %12404 = vmatprep.subr.bf16.mxu1 %v12403_v14  ;;  %v12487_v14 = vpack.c.bf16 %v1447_v11, %v1443_v9 }
 0x26a   : > { %12384 = vmatprep.subr.bf16.mxu0 %v12383_v17  ;;  %v12467_v17 = vpack.c.bf16 %v1407_v15, %v1403_v13  ;;  %v12405_v21 = vpack.c.bf16 %v1404_v18, %v1400_v16  ;;  %v1444_v13 = vld [vmem:[#allocation12 + $0x1e0] sm:$0xff]  ;;  %v1442_v16 = vld [vmem:[#allocation12 + $0x1d0] sm:$0xff] }
 0x26b   : > { %v12425_v15 = vpack.c.bf16 %v1444_v13, %v1440_v12  ;;  %v1484_v9 = vld [vmem:[#allocation12 + $0x320] sm:$0xff]  ;;  %v1482_v12 = vld [vmem:[#allocation12 + $0x310] sm:$0xff] }
 0x26c   : > { %12406 = vmatpush1.bf16.msra.mxu1 %v12405_v21  ;;  %v1451_v21 = vld [vmem:[#allocation12 + $0x218] sm:$0xff]  ;;  %v1486_v13 = vld [vmem:[#allocation12 + $0x330] sm:$0xff] }
 0x26d   : > { %12386 = vmatpush1.bf16.msra.mxu0 %v12385_v20  ;;  %v1406_v20 = vld [vmem:[#allocation12 + $0xb0] sm:$0xff] }
 0x26e   : > { %12388 = vmatprep.subr.bf16.mxu0 %v12387_v23  ;;  %v12469_v22 = vpack.c.bf16 %v1406_v20, %v1402_v19  ;;  %v1409_v23 = vld [vmem:[#allocation12 + $0xc8] sm:$0xff] }
 0x26f   : > { %v1449_v19 = vld [vmem:[#allocation12 + $0x208] sm:$0xff] }
 0x270   : > { %v1453_v20 = vld [vmem:[#allocation12 + $0x228] sm:$0xff] }
 0x271   : > { %12390 = vmatpush1.bf16.msra.mxu0 %v12389_v26  ;;  %v12407_v26 = vpack.c.bf16 %v1413_v24, %v1409_v23  ;;  %v1455_v23 = vld [vmem:[#allocation12 + $0x238] sm:$0xff]  ;;  %v1448_v24 = vld [vmem:[#allocation12 + $0x200] sm:$0xff] }
 0x272   : > { %12392 = vmatprep.subr.bf16.mxu0 %v12391_v29  ;;  %v1412_v29 = vld [vmem:[#allocation12 + $0xe0] sm:$0xff]  ;;  %v12429_v27 = vpack.c.bf16 %v1452_v25, %v1448_v24  ;;  %v1490_v24 = vld [vmem:[#allocation12 + $0x350] sm:$0xff] }
 0x273   : > { %v12409_v31 = vpack.c.bf16 %v1412_v29, %v1408_v28  ;;  %12408 = vmatprep.subr.bf16.mxu1 %v12407_v26  ;;  %v12491_v26 = vpack.c.bf16 %v1455_v23, %v1451_v21  ;;  %v1450_v28 = vld [vmem:[#allocation12 + $0x210] sm:$0xff]  ;;  %v1492_v21 = vld [vmem:[#allocation12 + $0x360] sm:$0xff] }
 0x274   : > { %v1454_v29 = vld [vmem:[#allocation12 + $0x230] sm:$0xff] }
 0x275   : > { %12394 = vmatpush1.bf16.msra.mxu0 %v12393_v32  ;;  %v1410_v32 = vld [vmem:[#allocation12 + $0xd0] sm:$0xff]  ;;  %12410 = vmatpush1.bf16.msra.mxu1 %v12409_v31  ;;  %v1457_v31 = vld [vmem:[#allocation12 + $0x248] sm:$0xff] }
 0x276   : > { %12460 = vmatprep.subr.bf16.mxu0 %v12459_v40  ;;  %v12473_v34 = vpack.c.bf16 %v1414_v33, %v1410_v32  ;;  %v1416_v40 = vld [vmem:[#allocation12 + $0x100] sm:$0xff]  ;;  %12412 = vmatprep.subr.bf16.mxu1 %v12411_v38  ;;  %v1461_v32 = vld [vmem:[#allocation12 + $0x268] sm:$0xff]  ;;  %v1459_v33 = vld [vmem:[#allocation12 + $0x258] sm:$0xff] }
 0x277   : > { %v12413_v43 = vpack.c.bf16 %v1420_v41, %v1416_v40  ;;  %v12495_v38 = vpack.c.bf16 %v1463_v35, %v1459_v33  ;;  %v1458_v40 = vld [vmem:[#allocation12 + $0x250] sm:$0xff]  ;;  %v1500_v33 = vld [vmem:[#allocation12 + $0x3a0] sm:$0xff] }
 0x278   : > { %v1462_v41 = vld [vmem:[#allocation12 + $0x270] sm:$0xff] }
 0x279   : > { %12414 = vmatpush1.bf16.msra.mxu1 %v12413_v43  ;;  %v1465_v43 = vld [vmem:[#allocation12 + $0x288] sm:$0xff]  ;;  %v1494_v25 = vld [vmem:[#allocation12 + $0x370] sm:$0xff] }
 0x30b   : > { %v12118_v45 = vpop.f32.mrb[0].mxu0 }
 0x30c   : > { %v12119_v47 = vpop.f32.mrb[1].mxu0 }
 0x30d   : > { %v12153_v48 = vpop.f32.mrb[0].mxu1  ;;  %v12120_v49 = vadd.f32 %v12119_v47, %v12118_v45  ;;  %v1422_v45 = vld [vmem:[#allocation12 + $0x130] sm:$0xff]  ;;  %v1425_v47 = vld [vmem:[#allocation12 + $0x148] sm:$0xff] }
 0x30e   : > { %v12154_v50 = vpop.f32.mrb[1].mxu1 }
 0x30f   : > { %v12155_v52 = vadd.f32 %v12154_v50, %v12153_v48  ;;  %v980_v53 = vadd.f32 %v12120_v49, %v11057_v46  ;;  %v12477_v46 = vpack.c.bf16 %v1422_v45, %v1418_v44  ;;  %v1429_v48 = vld [vmem:[#allocation12 + $0x168] sm:$0xff]  ;;  %v1427_v49 = vld [vmem:[#allocation12 + $0x158] sm:$0xff] }
 0x310   : > { %v12415_v50 = vpack.c.bf16 %v1429_v48, %v1425_v47  ;;  %v1469_v44 = vld [vmem:[#allocation12 + $0x2a8] sm:$0xff]  ;;  %v1467_v45 = vld [vmem:[#allocation12 + $0x298] sm:$0xff]  ;;  %v1464_v48 = vld [vmem:[#allocation12 + $0x280] sm:$0xff] }
 0x311   : > { %v1050_v54 = vadd.f32 %v12155_v52, %v980_v53  ;;  %v1431_v52 = vld [vmem:[#allocation12 + $0x178] sm:$0xff]  ;;  %v1424_v53 = vld [vmem:[#allocation12 + $0x140] sm:$0xff] }
 0x312   : > { %12416 = vmatprep.subr.bf16.mxu1 %v12415_v50  ;;  %v1471_v47 = vld [vmem:[#allocation12 + $0x2b8] sm:$0xff] }
 0x313   : > { %v12499_v50 = vpack.c.bf16 %v1471_v47, %v1467_v45  ;;  %v1504_v45 = vld [vmem:[#allocation12 + $0x3c0] sm:$0xff]  ;;  %v1506_v47 = vld [vmem:[#allocation12 + $0x3d0] sm:$0xff] }
 0x32b   : > { %v12188_v51 = vpop.f32.mrb[2].mxu0 }
 0x32c   : > { %v12189_v55 = vpop.f32.mrb[3].mxu0 }
 0x32d   : > { %v1189_v56 = vpop.f32.mrb[2].mxu1  ;;  %v12190_v57 = vadd.f32 %v12189_v55, %v12188_v51  ;;  %v12479_v51 = vpack.c.bf16 %v1431_v52, %v1427_v49  ;;  %v1468_v49 = vld [vmem:[#allocation12 + $0x2a0] sm:$0xff] }
 0x32e   : > { %v12242_v58 = vpop.f32.mrb[3].mxu1  ;;  %v12437_v52 = vpack.c.bf16 %v1468_v49, %v1464_v48  ;;  %v1510_v49 = vld [vmem:[#allocation12 + $0x3f0] sm:$0xff] }
 0x32f   : > { %v1120_v59 = vadd.f32 %v12190_v57, %v1050_v54  ;;  %v1428_v54 = vld [vmem:[#allocation12 + $0x160] sm:$0xff]  ;;  %v1430_v57 = vld [vmem:[#allocation12 + $0x170] sm:$0xff] }
 0x330   : > { %v12417_v55 = vpack.c.bf16 %v1428_v54, %v1424_v53  ;;  %v1466_v53 = vld [vmem:[#allocation12 + $0x290] sm:$0xff] }
 0x331   : > { %v1190_v62 = vadd.f32 %v1189_v56, %v1120_v59  ;;  %v1426_v56 = vld [vmem:[#allocation12 + $0x150] sm:$0xff]  ;;  %v1433_v59 = vld [vmem:[#allocation12 + $0x188] sm:$0xff] }
 0x332   : > { %v12481_v58 = vpack.c.bf16 %v1430_v57, %v1426_v56  ;;  %12418 = vmatpush1.bf16.msra.mxu1 %v12417_v55  ;;  %v1470_v54 = vld [vmem:[#allocation12 + $0x2b0] sm:$0xff]  ;;  %v1473_v55 = vld [vmem:[#allocation12 + $0x2c8] sm:$0xff]  ;;  %v1475_v57 = vld [vmem:[#allocation12 + $0x2d8] sm:$0xff] }
 0x333   : > { %vm1193_vm1 = vcmp.gt.f32.partialorder %v1190_v62, 0.0  ;;  %v1194_v1 = vmul.f32 0.2, %v1190_v62  ;;  %v1477_v56 = vld [vmem:[#allocation12 + $0x2e8] sm:$0xff] }
 0x335   : > { %v1195_v4 = vsel %vm1193_vm1, %v1190_v62, %v1194_v1  ;;  %v12419_v62 = vpack.c.bf16 %v1437_v60, %v1433_v59  ;;  %v1436_v1 = vld [vmem:[#allocation12 + $0x1a0] sm:$0xff]  ;;  %v1479_v59 = vld [vmem:[#allocation12 + $0x2f8] sm:$0xff] }
 0x336   : > { %1305 = vmatmul.mubr.f32.vlgmr.msra.gmra.mrb[4].mxu0 %v1195_v4  ;;  %v1434_v4 = vld [vmem:[#allocation12 + $0x190] sm:$0xff]  ;;  %v1472_v60 = vld [vmem:[#allocation12 + $0x2c0] sm:$0xff] }
 0x337   : > { %12462 = vmatpush1.bf16.msra.mxu0 %v12461_v2  ;;  %v12483_v2 = vpack.c.bf16 %v1439_v63, %v1435_v61  ;;  %12420 = vmatprep.subr.bf16.mxu1 %v12419_v62  ;;  %v12485_v6 = vpack.c.bf16 %v1438_v5, %v1434_v4  ;;  %v1476_v61 = vld [vmem:[#allocation12 + $0x2e0] sm:$0xff]  ;;  %v12503_v62 = vpack.c.bf16 %v1479_v59, %v1475_v57  ;;  %v1485_v4 = vld [vmem:[#allocation12 + $0x328] sm:$0xff]  ;;  %v1483_v5 = vld [vmem:[#allocation12 + $0x318] sm:$0xff]  ;;  %v1230_v57 = vlaneseq }
 0x338   : > { %12464 = vmatprep.subr.bf16.mxu0 %v12463_v3  ;;  %v12421_v3 = vpack.c.bf16 %v1436_v1, %v1432_v0  ;;  %v12441_v63 = vpack.c.bf16 %v1476_v61, %v1472_v60  ;;  %v1474_v0 = vld [vmem:[#allocation12 + $0x2d0] sm:$0xff]  ;;  %v1228_v60 = vld [vmem:[#allocation7] sm:$0x3] }
 0x339   : > { %v1478_v1 = vld [vmem:[#allocation12 + $0x2f0] sm:$0xff] }
 0x33a   : > { %12422 = vmatpush1.bf16.msra.mxu1 %v12421_v3  ;;  %v1481_v3 = vld [vmem:[#allocation12 + $0x308] sm:$0xff] }
 0x33b   : > { %12466 = vmatpush1.bf16.msra.mxu0 %v12465_v10  ;;  %v12423_v10 = vpack.c.bf16 %v1445_v8, %v1441_v7  ;;  %v1487_v7 = vld [vmem:[#allocation12 + $0x338] sm:$0xff]  ;;  %v1480_v8 = vld [vmem:[#allocation12 + $0x300] sm:$0xff] }
 0x33c   : > { %12468 = vmatprep.subr.bf16.mxu0 %v12467_v17  ;;  %v1446_v17 = vld [vmem:[#allocation12 + $0x1f0] sm:$0xff]  ;;  %v12445_v11 = vpack.c.bf16 %v1484_v9, %v1480_v8 }
 0x33d   : > { %12424 = vmatprep.subr.bf16.mxu1 %v12423_v10  ;;  %v12489_v18 = vpack.c.bf16 %v1446_v17, %v1442_v16  ;;  %v12507_v10 = vpack.c.bf16 %v1487_v7, %v1483_v5  ;;  %v1493_v16 = vld [vmem:[#allocation12 + $0x368] sm:$0xff]  ;;  %v1491_v17 = vld [vmem:[#allocation12 + $0x358] sm:$0xff] }
 0x33e   : > { %12426 = vmatpush1.bf16.msra.mxu1 %v12425_v15  ;;  %v1489_v15 = vld [vmem:[#allocation12 + $0x348] sm:$0xff] }
 0x33f   : > { %12470 = vmatpush1.bf16.msra.mxu0 %v12469_v22  ;;  %v12427_v22 = vpack.c.bf16 %v1453_v20, %v1449_v19  ;;  %v1495_v19 = vld [vmem:[#allocation12 + $0x378] sm:$0xff]  ;;  %v1488_v20 = vld [vmem:[#allocation12 + $0x340] sm:$0xff] }
 0x340   : > { %12472 = vmatprep.subr.bf16.mxu0 %v12471_v30  ;;  %v12493_v30 = vpack.c.bf16 %v1454_v29, %v1450_v28  ;;  %v12449_v23 = vpack.c.bf16 %v1492_v21, %v1488_v20  ;;  %v1501_v28 = vld [vmem:[#allocation12 + $0x3a8] sm:$0xff]  ;;  %v1499_v29 = vld [vmem:[#allocation12 + $0x398] sm:$0xff] }
 0x341   : > { %12428 = vmatprep.subr.bf16.mxu1 %v12427_v22  ;;  %v12511_v22 = vpack.c.bf16 %v1495_v19, %v1491_v17 }
 0x342   : > { %12430 = vmatpush1.bf16.msra.mxu1 %v12429_v27  ;;  %v1497_v27 = vld [vmem:[#allocation12 + $0x388] sm:$0xff] }
 0x343   : > { %12474 = vmatpush1.bf16.msra.mxu0 %v12473_v34  ;;  %v12431_v34 = vpack.c.bf16 %v1461_v32, %v1457_v31  ;;  %v1503_v31 = vld [vmem:[#allocation12 + $0x3b8] sm:$0xff]  ;;  %v1496_v32 = vld [vmem:[#allocation12 + $0x380] sm:$0xff] }
 0x344   : > { %12476 = vmatprep.subr.bf16.mxu0 %v12475_v42  ;;  %v12497_v42 = vpack.c.bf16 %v1462_v41, %v1458_v40  ;;  %v12453_v35 = vpack.c.bf16 %v1500_v33, %v1496_v32  ;;  %v1509_v40 = vld [vmem:[#allocation12 + $0x3e8] sm:$0xff]  ;;  %v1507_v41 = vld [vmem:[#allocation12 + $0x3d8] sm:$0xff] }
 0x345   : > { %12432 = vmatprep.subr.bf16.mxu1 %v12431_v34  ;;  %v12515_v34 = vpack.c.bf16 %v1503_v31, %v1499_v29 }
 0x346   : > { %12434 = vmatpush1.bf16.msra.mxu1 %v12433_v39  ;;  %v12517_v39 = vpack.c.bf16 %v1502_v37, %v1498_v36 }
 0x347   : > { %12478 = vmatpush1.bf16.msra.mxu0 %v12477_v46  ;;  %v12435_v46 = vpack.c.bf16 %v1469_v44, %v1465_v43 }
 0x348   : > { %12480 = vmatprep.subr.bf16.mxu0 %v12479_v51  ;;  %v12501_v51 = vpack.c.bf16 %v1470_v54, %v1466_v53  ;;  %v1825_v53 = vld [vmem:[#allocation18 + $0x48] sm:$0xff]  ;;  %v1819_v54 = vld [vmem:[#allocation18 + $0x18] sm:$0xff] }
 0x349   : > { %12436 = vmatprep.subr.bf16.mxu1 %v12435_v46  ;;  %v1508_v46 = vld [vmem:[#allocation12 + $0x3e0] sm:$0xff] }
 0x34a   : > { %12438 = vmatpush1.bf16.msra.mxu1 %v12437_v52  ;;  %v12457_v48 = vpack.c.bf16 %v1508_v46, %v1504_v45  ;;  %v1817_v52 = vld [vmem:[#allocation18 + $0x8] sm:$0xff] }
 0x34b   : > { %12482 = vmatpush1.bf16.msra.mxu0 %v12481_v58  ;;  %v12439_v58 = vpack.c.bf16 %v1477_v56, %v1473_v55  ;;  %v1827_v55 = vld [vmem:[#allocation18 + $0x58] sm:$0xff] }
 0x34c   : > { %12484 = vmatprep.subr.bf16.mxu0 %v12483_v2  ;;  %v12505_v2 = vpack.c.bf16 %v1478_v1, %v1474_v0  ;;  %v12651_v56 = vpack.c.bf16 %v1827_v55, %v1819_v54  ;;  %v1826_v55 = vld [vmem:[#allocation18 + $0x50] sm:$0xff] }
 0x34d   : > { %12440 = vmatprep.subr.bf16.mxu1 %v12439_v58  ;;  %v14554_v58 = vshrl.u32 %v1230_v57, 7 }
 0x34e   : > { %12442 = vmatpush1.bf16.msra.mxu1 %v12441_v63 }
 0x34f   : > { %12486 = vmatpush1.bf16.msra.mxu0 %v12485_v6  ;;  %v12443_v6 = vpack.c.bf16 %v1485_v4, %v1481_v3  ;;  %v14557_v59 = vsub.s32 0, %v14554_v58  ;;  %v14560_v61 = vsub.s32 1, %v14554_v58 }
 0x350   : > { %12488 = vmatprep.subr.bf16.mxu0 %v12487_v14  ;;  %v12509_v14 = vpack.c.bf16 %v1486_v13, %v1482_v12 }
 0x351   : > { %12444 = vmatprep.subr.bf16.mxu1 %v12443_v6  ;;  %v1237_v63 = vrot.slane %v1228_v60, %v14560_v61 }
 0x352   : > { %12446 = vmatpush1.bf16.msra.mxu1 %v12445_v11 }
 0x353   : > { %12490 = vmatpush1.bf16.msra.mxu0 %v12489_v18  ;;  %v12447_v18 = vpack.c.bf16 %v1493_v16, %v1489_v15 }
 0x354   : > { %12492 = vmatprep.subr.bf16.mxu0 %v12491_v26  ;;  %v12513_v26 = vpack.c.bf16 %v1494_v25, %v1490_v24 }
 0x355   : > { %12448 = vmatprep.subr.bf16.mxu1 %v12447_v18 }
 0x356   : > { %12450 = vmatpush1.bf16.msra.mxu1 %v12449_v23 }
 0x357   : > { %12494 = vmatpush1.bf16.msra.mxu0 %v12493_v30  ;;  %v12451_v30 = vpack.c.bf16 %v1501_v28, %v1497_v27 }
 0x358   : > { %12496 = vmatprep.subr.bf16.mxu0 %v12495_v38  ;;  %v1505_v38 = vld [vmem:[#allocation12 + $0x3c8] sm:$0xff] }
 0x359   : > { %12452 = vmatprep.subr.bf16.mxu1 %v12451_v30  ;;  %v12455_v43 = vpack.c.bf16 %v1509_v40, %v1505_v38  ;;  %v1311_v38 = vld [vmem:[#allocation9] sm:$0x3] }
 0x35a   : > { %12454 = vmatpush1.bf16.msra.mxu1 %v12453_v35  ;;  %v1356_v40 = vrot.slane %v1311_v38, %v14557_v59 }
 0x35b   : > { %12498 = vmatpush1.bf16.msra.mxu0 %v12497_v42  ;;  %v1511_v42 = vld [vmem:[#allocation12 + $0x3f8] sm:$0xff]  ;;  %12456 = vmatprep.subr.bf16.mxu1 %v12455_v43 }
 0x35c   : > { %12500 = vmatprep.subr.bf16.mxu0 %v12499_v50  ;;  %v12519_v44 = vpack.c.bf16 %v1511_v42, %v1507_v41  ;;  %v12521_v50 = vpack.c.bf16 %v1510_v49, %v1506_v47  ;;  %v1360_v42 = vrot.slane %v1311_v38, %v14560_v61  ;;  %v1889_v38 = vld [vmem:[#allocation18 + $0x248] sm:$0xff] }
 0x35e   : > { %12458 = vmatpush1.bf16.msra.mxu1 %v12457_v48 }
 0x35f   : > { %12502 = vmatpush1.bf16.msra.mxu0 %v12501_v51  ;;  %v12523_v51 = vpack.c.bf16 %v1825_v53, %v1817_v52  ;;  %v1816_v52 = vld [vmem:[#allocation18] sm:$0xff] }
 0x360   : > { %12504 = vmatprep.subr.bf16.mxu0 %v12503_v62  ;;  %v1233_v62 = vrot.slane %v1228_v60, %v14557_v59  ;;  %v1824_v53 = vld [vmem:[#allocation18 + $0x40] sm:$0xff]  ;;  %v1841_v60 = vld [vmem:[#allocation18 + $0xc8] sm:$0xff] }
 0x361   : > { %12524 = vmatprep.subr.bf16.mxu1 %v12523_v51  ;;  %v1818_v51 = vld [vmem:[#allocation18 + $0x10] sm:$0xff] }
 0x363   : > { %12506 = vmatpush1.bf16.msra.mxu0 %v12505_v2 }
 0x364   : > { %12508 = vmatprep.subr.bf16.mxu0 %v12507_v10 }
 0x367   : > { %12510 = vmatpush1.bf16.msra.mxu0 %v12509_v14 }
 0x368   : > { %12512 = vmatprep.subr.bf16.mxu0 %v12511_v22 }
 0x36b   : > { %12514 = vmatpush1.bf16.msra.mxu0 %v12513_v26 }
 0x36c   : > { %12516 = vmatprep.subr.bf16.mxu0 %v12515_v34 }
 0x36f   : > { %12518 = vmatpush1.bf16.msra.mxu0 %v12517_v39  ;;  %v1312_v39 = vld [vmem:[#allocation10] sm:$0x3] }
 0x370   : > { %12520 = vmatprep.subr.bf16.mxu0 %v12519_v44  ;;  %v1369_v45 = vrot.slane %v1312_v39, %v14557_v59  ;;  %v1373_v47 = vrot.slane %v1312_v39, %v14560_v61  ;;  %v1883_v39 = vld [vmem:[#allocation18 + $0x218] sm:$0xff] }
 0x373   : > { %12522 = vmatpush1.bf16.msra.mxu0 %v12521_v50 }
 0x374   : > { %12652 = vmatprep.subr.bf16.mxu0 %v12651_v56  ;;  %v1833_v56 = vld [vmem:[#allocation18 + $0x88] sm:$0xff] }
 0x409   : > { %v1306_v0 = vpop.f32.mrb[4].mxu0 }
 0x40a   : > { %v1307_v1 = vadd.f32 %v1306_v0, %v1233_v62  ;;  %v1308_v2 = vpop.f32.mrb[5].mxu0  ;;  %v1835_v62 = vld [vmem:[#allocation18 + $0x98] sm:$0xff] }
 0x40b   : > { %v1309_v3 = vadd.f32 %v1308_v2, %v1237_v63  ;;  %v1843_v63 = vld [vmem:[#allocation18 + $0xd8] sm:$0xff]  ;;  %v12653_v2 = vpack.c.bf16 %v1826_v55, %v1818_v51  ;;  %v1896_v51 = vld [vmem:[#allocation18 + $0x280] sm:$0xff] }
 0x40c   : > { %v1313_v4 = vrot.slane %v1307_v1, 4  ;;  %v1904_v55 = vld [vmem:[#allocation18 + $0x2c0] sm:$0xff] }
 0x40d   : > { %v1319_v5 = vrot.slane %v1309_v3, 4 }
 0x40e   : > { %v1314_v6 = vadd.f32 %v1313_v4, %v1307_v1 }
 0x40f   : > { %v1320_v7 = vadd.f32 %v1319_v5, %v1309_v3  ;;  %v12527_v5 = vpack.c.bf16 %v1841_v60, %v1833_v56  ;;  %v1898_v60 = vld [vmem:[#allocation18 + $0x290] sm:$0xff] }
 0x410   : > { %v1315_v8 = vrot.slane %v1314_v6, 2 }
 0x411   : > { %v1321_v9 = vrot.slane %v1320_v7, 2 }
 0x412   : > { %v1316_v10 = vadd.f32 %v1315_v8, %v1314_v6  ;;  %v12655_v6 = vpack.c.bf16 %v1843_v63, %v1835_v62  ;;  %v1834_v8 = vld [vmem:[#allocation18 + $0x90] sm:$0xff] }
 0x413   : > { %v1322_v11 = vadd.f32 %v1321_v9, %v1320_v7  ;;  %v1840_v7 = vld [vmem:[#allocation18 + $0xc0] sm:$0xff]  ;;  %v1842_v9 = vld [vmem:[#allocation18 + $0xd0] sm:$0xff] }
 0x414   : > { %v1317_v12 = vrot.slane %v1316_v10, 1  ;;  %v1906_v62 = vld [vmem:[#allocation18 + $0x2d0] sm:$0xff] }
 0x415   : > { %v1323_v13 = vrot.slane %v1322_v11, 1  ;;  %v12673_v63 = vpack.c.bf16 %v1906_v62, %v1898_v60  ;;  %v1986_v60 = vld [vmem:[#allocation18 + $0x550] sm:$0xff] }
 0x416   : > { %v1318_v14 = vadd.f32 %v1317_v12, %v1316_v10  ;;  %v12657_v12 = vpack.c.bf16 %v1842_v9, %v1834_v8  ;;  %v1914_v9 = vld [vmem:[#allocation18 + $0x310] sm:$0xff] }
 0x417   : > { %v1324_v15 = vadd.f32 %v1323_v13, %v1322_v11  ;;  %v1849_v13 = vld [vmem:[#allocation18 + $0x108] sm:$0xff] }
 0x418   : > { %v1326_v16 = vmul.f32 0.125, %v1318_v14  ;;  %v1857_v14 = vld [vmem:[#allocation18 + $0x148] sm:$0xff] }
 0x419   : > { %v1327_v17 = vmul.f32 0.125, %v1324_v15  ;;  %v12531_v15 = vpack.c.bf16 %v1857_v14, %v1849_v13  ;;  %v1937_v13 = vld [vmem:[#allocation18 + $0x3c8] sm:$0xff]  ;;  %v1931_v14 = vld [vmem:[#allocation18 + $0x398] sm:$0xff] }
 0x41a   : > { %v1328_v18 = vsub.f32 %v1307_v1, %v1326_v16  ;;  %v12525_v1 = vpack.c.bf16 %v1824_v53, %v1816_v52  ;;  %v1851_v16 = vld [vmem:[#allocation18 + $0x118] sm:$0xff] }
 0x41b   : > { %v1329_v19 = vsub.f32 %v1309_v3, %v1327_v17  ;;  %v1832_v3 = vld [vmem:[#allocation18 + $0x80] sm:$0xff]  ;;  %v1859_v17 = vld [vmem:[#allocation18 + $0x158] sm:$0xff] }
 0x41c   : > { %v1330_v20 = vmul.f32 %v1328_v18, %v1328_v18  ;;  %v12529_v11 = vpack.c.bf16 %v1840_v7, %v1832_v3  ;;  %v1899_v52 = vld [vmem:[#allocation18 + $0x298] sm:$0xff] }
 0x41d   : > { %v1331_v21 = vmul.f32 %v1329_v19, %v1329_v19 }
 0x41e   : > { %v1332_v22 = vrot.slane %v1330_v20, 4 }
 0x41f   : > { %v1338_v23 = vrot.slane %v1331_v21, 4 }
 0x420   : > { %v1333_v24 = vadd.f32 %v1332_v22, %v1330_v20  ;;  %v1856_v20 = vld [vmem:[#allocation18 + $0x140] sm:$0xff]  ;;  %v1858_v22 = vld [vmem:[#allocation18 + $0x150] sm:$0xff] }
 0x421   : > { %v1339_v25 = vadd.f32 %v1338_v23, %v1331_v21  ;;  %v1850_v21 = vld [vmem:[#allocation18 + $0x110] sm:$0xff] }
 0x422   : > { %v1334_v26 = vrot.slane %v1333_v24, 2 }
 0x423   : > { %v1340_v27 = vrot.slane %v1339_v25, 2 }
 0x424   : > { %v1335_v28 = vadd.f32 %v1334_v26, %v1333_v24  ;;  %v12661_v24 = vpack.c.bf16 %v1858_v22, %v1850_v21  ;;  %v1873_v26 = vld [vmem:[#allocation18 + $0x1c8] sm:$0xff]  ;;  %v1930_v21 = vld [vmem:[#allocation18 + $0x390] sm:$0xff] }
 0x425   : > { %v1341_v29 = vadd.f32 %v1340_v27, %v1339_v25  ;;  %v1865_v25 = vld [vmem:[#allocation18 + $0x188] sm:$0xff]  ;;  %v1867_v27 = vld [vmem:[#allocation18 + $0x198] sm:$0xff]  ;;  %v1938_v22 = vld [vmem:[#allocation18 + $0x3d0] sm:$0xff] }
 0x426   : > { %v1336_v30 = vrot.slane %v1335_v28, 1 }
 0x427   : > { %v1342_v31 = vrot.slane %v1341_v29, 1 }
 0x428   : > { %v1337_v32 = vadd.f32 %v1336_v30, %v1335_v28  ;;  %v12535_v28 = vpack.c.bf16 %v1873_v26, %v1865_v25  ;;  %v1864_v30 = vld [vmem:[#allocation18 + $0x180] sm:$0xff]  ;;  %v1953_v25 = vld [vmem:[#allocation18 + $0x448] sm:$0xff]  ;;  %v1947_v26 = vld [vmem:[#allocation18 + $0x418] sm:$0xff] }
 0x429   : > { %v1343_v33 = vadd.f32 %v1342_v31, %v1341_v29  ;;  %v1875_v29 = vld [vmem:[#allocation18 + $0x1d8] sm:$0xff]  ;;  %v1872_v31 = vld [vmem:[#allocation18 + $0x1c0] sm:$0xff] }
 0x42a   : > { %v1344_v34 = vmul.f32 0.125, %v1337_v32  ;;  %v12663_v32 = vpack.c.bf16 %v1875_v29, %v1867_v27  ;;  %v1944_v29 = vld [vmem:[#allocation18 + $0x400] sm:$0xff] }
 0x42b   : > { %v1345_v35 = vmul.f32 0.125, %v1343_v33  ;;  %v12537_v33 = vpack.c.bf16 %v1872_v31, %v1864_v30  ;;  %v1952_v30 = vld [vmem:[#allocation18 + $0x440] sm:$0xff] }
 0x42c   : > { %v1346_v36 = vadd.f32 0.8, %v1344_v34  ;;  %v1866_v34 = vld [vmem:[#allocation18 + $0x190] sm:$0xff] }
 0x42d   : > { %v1347_v37 = vadd.f32 0.8, %v1345_v35  ;;  %v1874_v35 = vld [vmem:[#allocation18 + $0x1d0] sm:$0xff] }
 0x42e   : > { %13359 = vrsqrt.f32 %v1346_v36  ;;  %v12665_v36 = vpack.c.bf16 %v1874_v35, %v1866_v34  ;;  %v1954_v34 = vld [vmem:[#allocation18 + $0x450] sm:$0xff] }
 0x42f   : > { %13361 = vrsqrt.f32 %v1347_v37  ;;  %v1881_v37 = vld [vmem:[#allocation18 + $0x208] sm:$0xff] }
 0x438   : > { %v13360_v41 = vpop.eup %13359 }
 0x439   : > { %v13362_v43 = vpop.eup %13361  ;;  %v1350_v44 = vmul.f32 %v13360_v41, %v1328_v18  ;;  %v1848_v18 = vld [vmem:[#allocation18 + $0x100] sm:$0xff]  ;;  %v1891_v41 = vld [vmem:[#allocation18 + $0x258] sm:$0xff] }
 0x43a   : > { %v1351_v46 = vmul.f32 %v13362_v43, %v1329_v19  ;;  %v12659_v19 = vpack.c.bf16 %v1859_v17, %v1851_v16  ;;  %v12533_v23 = vpack.c.bf16 %v1856_v20, %v1848_v18  ;;  %v1888_v43 = vld [vmem:[#allocation18 + $0x240] sm:$0xff]  ;;  %v1939_v16 = vld [vmem:[#allocation18 + $0x3d8] sm:$0xff] }
 0x43b   : > { %v1363_v48 = vmul.f32 %v1356_v40, %v1350_v44  ;;  %v12539_v40 = vpack.c.bf16 %v1889_v38, %v1881_v37  ;;  %v12667_v44 = vpack.c.bf16 %v1891_v41, %v1883_v39  ;;  %v1928_v17 = vld [vmem:[#allocation18 + $0x380] sm:$0xff]  ;;  %v1969_v37 = vld [vmem:[#allocation18 + $0x4c8] sm:$0xff]  ;;  %v1963_v38 = vld [vmem:[#allocation18 + $0x498] sm:$0xff] }
 0x43c   : > { %v1364_v49 = vmul.f32 %v1360_v42, %v1351_v46  ;;  %v1880_v42 = vld [vmem:[#allocation18 + $0x200] sm:$0xff]  ;;  %v1882_v46 = vld [vmem:[#allocation18 + $0x210] sm:$0xff] }
 0x43d   : > { %v1376_v50 = vadd.f32 %v1369_v45, %v1363_v48  ;;  %v12541_v45 = vpack.c.bf16 %v1888_v43, %v1880_v42  ;;  %v1936_v18 = vld [vmem:[#allocation18 + $0x3c0] sm:$0xff] }
 0x43e   : > { %v1377_v54 = vadd.f32 %v1373_v47, %v1364_v49  ;;  %v1890_v47 = vld [vmem:[#allocation18 + $0x250] sm:$0xff]  ;;  %v1897_v49 = vld [vmem:[#allocation18 + $0x288] sm:$0xff]  ;;  %v12553_v20 = vpack.c.bf16 %v1936_v18, %v1928_v17  ;;  %v1960_v41 = vld [vmem:[#allocation18 + $0x480] sm:$0xff] }
 0x43f   : > { %v1380_v57 = vmul.f32 0.2, %v1376_v50  ;;  %vm1378_vm3 = vcmp.gt.f32.partialorder %v1376_v50, 0.0  ;;  %v12669_v48 = vpack.c.bf16 %v1890_v47, %v1882_v46  ;;  %v1968_v42 = vld [vmem:[#allocation18 + $0x4c0] sm:$0xff]  ;;  %v1970_v46 = vld [vmem:[#allocation18 + $0x4d0] sm:$0xff] }
 0x440   : > { %vm1379_vm2 = vcmp.gt.f32.partialorder %v1377_v54, 0.0  ;;  %v1381_v0 = vmul.f32 0.2, %v1377_v54  ;;  %v2016_v17 = vld [vmem:[#allocation18 + $0x640] sm:$0xff] }
 0x441   : > { %v1382_v10 = vsel %vm1378_vm3, %v1376_v50, %v1380_v57  ;;  %v1905_v50 = vld [vmem:[#allocation18 + $0x2c8] sm:$0xff]  ;;  %v12545_v57 = vpack.c.bf16 %v1904_v55, %v1896_v51  ;;  %v1984_v51 = vld [vmem:[#allocation18 + $0x540] sm:$0xff] }
 0x442   : > { %v1383_v4 = vsel %vm1379_vm2, %v1377_v54, %v1381_v0  ;;  %v12543_v53 = vpack.c.bf16 %v1905_v50, %v1897_v49  ;;  %v1907_v54 = vld [vmem:[#allocation18 + $0x2d8] sm:$0xff]  ;;  %v1913_v0 = vld [vmem:[#allocation18 + $0x308] sm:$0xff] }
 0x443   : > { %1598 = vmatprep.mubr.f32.mxu1 %v1383_v4  ;;  %1669 = vmatprep.mubr.f32.mxu0 %v1383_v4  ;;  %v12671_v56 = vpack.c.bf16 %v1907_v54, %v1899_v52  ;;  %v1923_v4 = vld [vmem:[#allocation18 + $0x358] sm:$0xff]  ;;  %v1985_v49 = vld [vmem:[#allocation18 + $0x548] sm:$0xff]  ;;  %v1976_v54 = vld [vmem:[#allocation18 + $0x500] sm:$0xff] }
 0x444   : > { %1599 = vmatmul.mubr.f32.vlgmr.msra.gmra.mrb[4].mxu1 %v1382_v10  ;;  %1670 = vmatmul.mubr.f32.vlgmr.msra.gmra.mrb[6].mxu0 %v1382_v10  ;;  %v1922_v10 = vld [vmem:[#allocation18 + $0x350] sm:$0xff]  ;;  %v1979_v50 = vld [vmem:[#allocation18 + $0x518] sm:$0xff] }
 0x445   : > { %12526 = vmatpush1.bf16.msra.mxu1 %v12525_v1  ;;  %12654 = vmatpush1.bf16.msra.mxu0 %v12653_v2  ;;  %v1921_v1 = vld [vmem:[#allocation18 + $0x348] sm:$0xff]  ;;  %v1915_v2 = vld [vmem:[#allocation18 + $0x318] sm:$0xff] }
 0x446   : > { %12528 = vmatprep.subr.bf16.mxu1 %v12527_v5  ;;  %12656 = vmatprep.subr.bf16.mxu0 %v12655_v6  ;;  %v12547_v3 = vpack.c.bf16 %v1921_v1, %v1913_v0  ;;  %v1912_v5 = vld [vmem:[#allocation18 + $0x300] sm:$0xff]  ;;  %v12675_v7 = vpack.c.bf16 %v1923_v4, %v1915_v2  ;;  %v2001_v0 = vld [vmem:[#allocation18 + $0x5c8] sm:$0xff]  ;;  %v1995_v1 = vld [vmem:[#allocation18 + $0x598] sm:$0xff] }
 0x447   : > { %v1920_v6 = vld [vmem:[#allocation18 + $0x340] sm:$0xff] }
 0x448   : > { %v12549_v8 = vpack.c.bf16 %v1920_v6, %v1912_v5  ;;  %v1992_v4 = vld [vmem:[#allocation18 + $0x580] sm:$0xff] }
 0x449   : > { %12530 = vmatpush1.bf16.msra.mxu1 %v12529_v11  ;;  %12658 = vmatpush1.bf16.msra.mxu0 %v12657_v12  ;;  %v12677_v11 = vpack.c.bf16 %v1922_v10, %v1914_v9  ;;  %v1929_v12 = vld [vmem:[#allocation18 + $0x388] sm:$0xff]  ;;  %v2000_v5 = vld [vmem:[#allocation18 + $0x5c0] sm:$0xff]  ;;  %v2002_v9 = vld [vmem:[#allocation18 + $0x5d0] sm:$0xff] }
 0x44a   : > { %12532 = vmatprep.subr.bf16.mxu1 %v12531_v15  ;;  %12660 = vmatprep.subr.bf16.mxu0 %v12659_v19  ;;  %v12551_v15 = vpack.c.bf16 %v1937_v13, %v1929_v12  ;;  %v12679_v19 = vpack.c.bf16 %v1939_v16, %v1931_v14  ;;  %v2017_v12 = vld [vmem:[#allocation18 + $0x648] sm:$0xff]  ;;  %v2011_v13 = vld [vmem:[#allocation18 + $0x618] sm:$0xff]  ;;  %v2008_v16 = vld [vmem:[#allocation18 + $0x600] sm:$0xff] }
 0x44d   : > { %12534 = vmatpush1.bf16.msra.mxu1 %v12533_v23  ;;  %12662 = vmatpush1.bf16.msra.mxu0 %v12661_v24  ;;  %v12681_v23 = vpack.c.bf16 %v1938_v22, %v1930_v21  ;;  %v1945_v24 = vld [vmem:[#allocation18 + $0x408] sm:$0xff]  ;;  %v2018_v21 = vld [vmem:[#allocation18 + $0x650] sm:$0xff] }
 0x44e   : > { %12536 = vmatprep.subr.bf16.mxu1 %v12535_v28  ;;  %12664 = vmatprep.subr.bf16.mxu0 %v12663_v32  ;;  %v12555_v27 = vpack.c.bf16 %v1953_v25, %v1945_v24  ;;  %v1955_v28 = vld [vmem:[#allocation18 + $0x458] sm:$0xff]  ;;  %v12557_v32 = vpack.c.bf16 %v1952_v30, %v1944_v29  ;;  %v2033_v24 = vld [vmem:[#allocation18 + $0x6c8] sm:$0xff]  ;;  %v2032_v29 = vld [vmem:[#allocation18 + $0x6c0] sm:$0xff] }
 0x44f   : > { %v12683_v31 = vpack.c.bf16 %v1955_v28, %v1947_v26  ;;  %v2027_v25 = vld [vmem:[#allocation18 + $0x698] sm:$0xff]  ;;  %v2024_v28 = vld [vmem:[#allocation18 + $0x680] sm:$0xff] }
 0x451   : > { %12538 = vmatpush1.bf16.msra.mxu1 %v12537_v33  ;;  %12666 = vmatpush1.bf16.msra.mxu0 %v12665_v36  ;;  %v1946_v33 = vld [vmem:[#allocation18 + $0x410] sm:$0xff]  ;;  %v1961_v36 = vld [vmem:[#allocation18 + $0x488] sm:$0xff] }
 0x452   : > { %12540 = vmatprep.subr.bf16.mxu1 %v12539_v40  ;;  %12668 = vmatprep.subr.bf16.mxu0 %v12667_v44  ;;  %v12685_v35 = vpack.c.bf16 %v1954_v34, %v1946_v33  ;;  %v12559_v39 = vpack.c.bf16 %v1969_v37, %v1961_v36  ;;  %v1971_v40 = vld [vmem:[#allocation18 + $0x4d8] sm:$0xff]  ;;  %v12561_v44 = vpack.c.bf16 %v1968_v42, %v1960_v41  ;;  %v2034_v33 = vld [vmem:[#allocation18 + $0x6d0] sm:$0xff]  ;;  %v2049_v36 = vld [vmem:[#allocation18 + $0x748] sm:$0xff] }
 0x453   : > { %v12687_v43 = vpack.c.bf16 %v1971_v40, %v1963_v38  ;;  %v2043_v37 = vld [vmem:[#allocation18 + $0x718] sm:$0xff]  ;;  %v2040_v40 = vld [vmem:[#allocation18 + $0x700] sm:$0xff] }
 0x454   : > { %v2048_v41 = vld [vmem:[#allocation18 + $0x740] sm:$0xff] }
 0x455   : > { %12542 = vmatpush1.bf16.msra.mxu1 %v12541_v45  ;;  %12670 = vmatpush1.bf16.msra.mxu0 %v12669_v48  ;;  %v1962_v45 = vld [vmem:[#allocation18 + $0x490] sm:$0xff]  ;;  %v1977_v48 = vld [vmem:[#allocation18 + $0x508] sm:$0xff] }
 0x456   : > { %12544 = vmatprep.subr.bf16.mxu1 %v12543_v53  ;;  %12672 = vmatprep.subr.bf16.mxu0 %v12671_v56  ;;  %v12689_v47 = vpack.c.bf16 %v1970_v46, %v1962_v45  ;;  %v12563_v52 = vpack.c.bf16 %v1985_v49, %v1977_v48  ;;  %v1987_v53 = vld [vmem:[#allocation18 + $0x558] sm:$0xff]  ;;  %v12565_v56 = vpack.c.bf16 %v1984_v51, %v1976_v54  ;;  %v2050_v45 = vld [vmem:[#allocation18 + $0x750] sm:$0xff]  ;;  %v2065_v48 = vld [vmem:[#allocation18 + $0x7c8] sm:$0xff] }
 0x457   : > { %v12691_v55 = vpack.c.bf16 %v1987_v53, %v1979_v50  ;;  %v2059_v49 = vld [vmem:[#allocation18 + $0x798] sm:$0xff]  ;;  %v2056_v53 = vld [vmem:[#allocation18 + $0x780] sm:$0xff] }
 0x458   : > { %v2064_v54 = vld [vmem:[#allocation18 + $0x7c0] sm:$0xff] }
 0x459   : > { %12546 = vmatpush1.bf16.msra.mxu1 %v12545_v57  ;;  %12674 = vmatpush1.bf16.msra.mxu0 %v12673_v63  ;;  %v1978_v57 = vld [vmem:[#allocation18 + $0x510] sm:$0xff]  ;;  %v1993_v63 = vld [vmem:[#allocation18 + $0x588] sm:$0xff] }
 0x45a   : > { %12548 = vmatprep.subr.bf16.mxu1 %v12547_v3  ;;  %12676 = vmatprep.subr.bf16.mxu0 %v12675_v7  ;;  %v12693_v62 = vpack.c.bf16 %v1986_v60, %v1978_v57  ;;  %v12567_v2 = vpack.c.bf16 %v2001_v0, %v1993_v63  ;;  %v2003_v3 = vld [vmem:[#allocation18 + $0x5d8] sm:$0xff]  ;;  %v12569_v7 = vpack.c.bf16 %v2000_v5, %v1992_v4  ;;  %v2066_v57 = vld [vmem:[#allocation18 + $0x7d0] sm:$0xff]  ;;  %v2081_v63 = vld [vmem:[#allocation18 + $0x848] sm:$0xff]  ;;  %v14569_v4 = vsub.s32 2, %v14554_v58 }
 0x45b   : > { %v12695_v6 = vpack.c.bf16 %v2003_v3, %v1995_v1  ;;  %v2075_v0 = vld [vmem:[#allocation18 + $0x818] sm:$0xff]  ;;  %v1512_v5 = vld [vmem:[#allocation13] sm:$0xf] }
 0x45d   : > { %12550 = vmatpush1.bf16.msra.mxu1 %v12549_v8  ;;  %12678 = vmatpush1.bf16.msra.mxu0 %v12677_v11  ;;  %v1994_v8 = vld [vmem:[#allocation18 + $0x590] sm:$0xff]  ;;  %v2009_v11 = vld [vmem:[#allocation18 + $0x608] sm:$0xff] }
 0x45e   : > { %12552 = vmatprep.subr.bf16.mxu1 %v12551_v15  ;;  %12680 = vmatprep.subr.bf16.mxu0 %v12679_v19  ;;  %v12697_v10 = vpack.c.bf16 %v2002_v9, %v1994_v8  ;;  %v12571_v14 = vpack.c.bf16 %v2017_v12, %v2009_v11  ;;  %v2019_v15 = vld [vmem:[#allocation18 + $0x658] sm:$0xff]  ;;  %v12573_v19 = vpack.c.bf16 %v2016_v17, %v2008_v16 }
 0x45f   : > { %v12699_v18 = vpack.c.bf16 %v2019_v15, %v2011_v13  ;;  %v1525_v8 = vrot.slane %v1512_v5, %v14569_v4  ;;  %v1521_v9 = vrot.slane %v1512_v5, %v14560_v61 }
 0x461   : > { %12554 = vmatpush1.bf16.msra.mxu1 %v12553_v20  ;;  %12682 = vmatpush1.bf16.msra.mxu0 %v12681_v23  ;;  %v2010_v20 = vld [vmem:[#allocation18 + $0x610] sm:$0xff]  ;;  %v2025_v23 = vld [vmem:[#allocation18 + $0x688] sm:$0xff] }
 0x462   : > { %12556 = vmatprep.subr.bf16.mxu1 %v12555_v27  ;;  %12684 = vmatprep.subr.bf16.mxu0 %v12683_v31  ;;  %v12701_v22 = vpack.c.bf16 %v2018_v21, %v2010_v20  ;;  %v12575_v26 = vpack.c.bf16 %v2033_v24, %v2025_v23  ;;  %v2035_v27 = vld [vmem:[#allocation18 + $0x6d8] sm:$0xff]  ;;  %v12577_v31 = vpack.c.bf16 %v2032_v29, %v2024_v28 }
 0x463   : > { %v12703_v30 = vpack.c.bf16 %v2035_v27, %v2027_v25 }
 0x465   : > { %12558 = vmatpush1.bf16.msra.mxu1 %v12557_v32  ;;  %12686 = vmatpush1.bf16.msra.mxu0 %v12685_v35  ;;  %v2026_v32 = vld [vmem:[#allocation18 + $0x690] sm:$0xff]  ;;  %v2041_v35 = vld [vmem:[#allocation18 + $0x708] sm:$0xff] }
 0x466   : > { %12560 = vmatprep.subr.bf16.mxu1 %v12559_v39  ;;  %12688 = vmatprep.subr.bf16.mxu0 %v12687_v43  ;;  %v12705_v34 = vpack.c.bf16 %v2034_v33, %v2026_v32  ;;  %v12579_v38 = vpack.c.bf16 %v2049_v36, %v2041_v35  ;;  %v2051_v39 = vld [vmem:[#allocation18 + $0x758] sm:$0xff]  ;;  %v12581_v43 = vpack.c.bf16 %v2048_v41, %v2040_v40 }
 0x467   : > { %v12707_v42 = vpack.c.bf16 %v2051_v39, %v2043_v37 }
 0x469   : > { %12562 = vmatpush1.bf16.msra.mxu1 %v12561_v44  ;;  %12690 = vmatpush1.bf16.msra.mxu0 %v12689_v47  ;;  %v2042_v44 = vld [vmem:[#allocation18 + $0x710] sm:$0xff]  ;;  %v2057_v47 = vld [vmem:[#allocation18 + $0x788] sm:$0xff] }
 0x46a   : > { %12564 = vmatprep.subr.bf16.mxu1 %v12563_v52  ;;  %12692 = vmatprep.subr.bf16.mxu0 %v12691_v55  ;;  %v12709_v46 = vpack.c.bf16 %v2050_v45, %v2042_v44  ;;  %v12583_v50 = vpack.c.bf16 %v2065_v48, %v2057_v47  ;;  %v2067_v52 = vld [vmem:[#allocation18 + $0x7d8] sm:$0xff]  ;;  %v12585_v55 = vpack.c.bf16 %v2064_v54, %v2056_v53 }
 0x46b   : > { %v12711_v51 = vpack.c.bf16 %v2067_v52, %v2059_v49 }
 0x46d   : > { %12566 = vmatpush1.bf16.msra.mxu1 %v12565_v56  ;;  %12694 = vmatpush1.bf16.msra.mxu0 %v12693_v62  ;;  %v2058_v56 = vld [vmem:[#allocation18 + $0x790] sm:$0xff]  ;;  %v2073_v62 = vld [vmem:[#allocation18 + $0x808] sm:$0xff] }
 0x46e   : > { %12568 = vmatprep.subr.bf16.mxu1 %v12567_v2  ;;  %12696 = vmatprep.subr.bf16.mxu0 %v12695_v6  ;;  %v12713_v60 = vpack.c.bf16 %v2066_v57, %v2058_v56  ;;  %v12587_v1 = vpack.c.bf16 %v2081_v63, %v2073_v62  ;;  %v2083_v2 = vld [vmem:[#allocation18 + $0x858] sm:$0xff]  ;;  %v14572_v6 = vsub.s32 3, %v14554_v58 }
 0x46f   : > { %v12715_v3 = vpack.c.bf16 %v2083_v2, %v2075_v0 }
 0x471   : > { %12570 = vmatpush1.bf16.msra.mxu1 %v12569_v7  ;;  %12698 = vmatpush1.bf16.msra.mxu0 %v12697_v10  ;;  %v1517_v7 = vrot.slane %v1512_v5, %v14557_v59  ;;  %v1529_v10 = vrot.slane %v1512_v5, %v14572_v6 }
 0x472   : > { %12572 = vmatprep.subr.bf16.mxu1 %v12571_v14  ;;  %12700 = vmatprep.subr.bf16.mxu0 %v12699_v18 }
 0x475   : > { %12574 = vmatpush1.bf16.msra.mxu1 %v12573_v19  ;;  %12702 = vmatpush1.bf16.msra.mxu0 %v12701_v22 }
 0x476   : > { %12576 = vmatprep.subr.bf16.mxu1 %v12575_v26  ;;  %12704 = vmatprep.subr.bf16.mxu0 %v12703_v30 }
 0x479   : > { %12578 = vmatpush1.bf16.msra.mxu1 %v12577_v31  ;;  %12706 = vmatpush1.bf16.msra.mxu0 %v12705_v34 }
 0x47a   : > { %12580 = vmatprep.subr.bf16.mxu1 %v12579_v38  ;;  %12708 = vmatprep.subr.bf16.mxu0 %v12707_v42 }
 0x47d   : > { %12582 = vmatpush1.bf16.msra.mxu1 %v12581_v43  ;;  %12710 = vmatpush1.bf16.msra.mxu0 %v12709_v46 }
 0x47e   : > { %12584 = vmatprep.subr.bf16.mxu1 %v12583_v50  ;;  %12712 = vmatprep.subr.bf16.mxu0 %v12711_v51 }
 0x481   : > { %12586 = vmatpush1.bf16.msra.mxu1 %v12585_v55  ;;  %12714 = vmatpush1.bf16.msra.mxu0 %v12713_v60 }
 0x482   : > { %12588 = vmatprep.subr.bf16.mxu1 %v12587_v1  ;;  %12716 = vmatprep.subr.bf16.mxu0 %v12715_v3 }
 0x517   : > { %v1600_v11 = vpop.f32.mrb[4].mxu1  ;;  %v1671_v12 = vpop.f32.mrb[6].mxu0 }
 0x518   : > { %v1601_v13 = vadd.f32 %v1600_v11, %v1517_v7  ;;  %v1672_v14 = vadd.f32 %v1671_v12, %v1525_v8  ;;  %v1602_v15 = vpop.f32.mrb[5].mxu1  ;;  %v1673_v16 = vpop.f32.mrb[7].mxu0 }
 0x519   : > { %v1603_v17 = vadd.f32 %v1602_v15, %v1521_v9  ;;  %v1674_v18 = vadd.f32 %v1673_v16, %v1529_v10 }
 0x51a   : > { %v1678_v19 = vrot.slane %v1601_v13, 4  ;;  %v1690_v20 = vrot.slane %v1672_v14, 4 }
 0x51b   : > { %v1684_v21 = vrot.slane %v1603_v17, 4  ;;  %v1696_v22 = vrot.slane %v1674_v18, 4 }
 0x51c   : > { %v1679_v23 = vadd.f32 %v1678_v19, %v1601_v13  ;;  %v1691_v24 = vadd.f32 %v1690_v20, %v1672_v14 }
 0x51d   : > { %v1685_v25 = vadd.f32 %v1684_v21, %v1603_v17  ;;  %v1697_v26 = vadd.f32 %v1696_v22, %v1674_v18 }
 0x51e   : > { %v1680_v27 = vrot.slane %v1679_v23, 2  ;;  %v1692_v28 = vrot.slane %v1691_v24, 2 }
 0x51f   : > { %v1686_v29 = vrot.slane %v1685_v25, 2  ;;  %v1698_v30 = vrot.slane %v1697_v26, 2 }
 0x520   : > { %v1681_v31 = vadd.f32 %v1680_v27, %v1679_v23  ;;  %v1693_v32 = vadd.f32 %v1692_v28, %v1691_v24  ;;  %v1676_v28 = vld [vmem:[#allocation15] sm:$0xf] }
 0x521   : > { %v1687_v33 = vadd.f32 %v1686_v29, %v1685_v25  ;;  %v1699_v34 = vadd.f32 %v1698_v30, %v1697_v26  ;;  %v1677_v29 = vld [vmem:[#allocation16] sm:$0xf]  ;;  %v1758_v30 = vrot.slane %v1676_v28, %v14557_v59 }
 0x522   : > { %v1682_v35 = vrot.slane %v1681_v31, 1  ;;  %v1694_v36 = vrot.slane %v1693_v32, 1 }
 0x523   : > { %v1688_v37 = vrot.slane %v1687_v33, 1  ;;  %v1700_v38 = vrot.slane %v1699_v34, 1 }
 0x524   : > { %v1683_v39 = vadd.f32 %v1682_v35, %v1681_v31  ;;  %v1695_v40 = vadd.f32 %v1694_v36, %v1693_v32  ;;  %v1766_v32 = vrot.slane %v1676_v28, %v14569_v4  ;;  %v1762_v35 = vrot.slane %v1676_v28, %v14560_v61 }
 0x525   : > { %v1689_v41 = vadd.f32 %v1688_v37, %v1687_v33  ;;  %v1701_v42 = vadd.f32 %v1700_v38, %v1699_v34  ;;  %v1783_v36 = vrot.slane %v1677_v29, %v14557_v59 }
 0x526   : > { %v1702_v43 = vmul.f32 0.125, %v1683_v39  ;;  %v1704_v44 = vmul.f32 0.125, %v1695_v40  ;;  %v1770_v39 = vrot.slane %v1676_v28, %v14572_v6  ;;  %v1791_v40 = vrot.slane %v1677_v29, %v14569_v4  ;;  %v2114_v28 = vld [vmem:[#allocation18 + $0x950] sm:$0xff] }
 0x527   : > { %v1703_v45 = vmul.f32 0.125, %v1689_v41  ;;  %v1705_v46 = vmul.f32 0.125, %v1701_v42 }
 0x528   : > { %v1706_v47 = vsub.f32 %v1601_v13, %v1702_v43  ;;  %v1708_v48 = vsub.f32 %v1672_v14, %v1704_v44  ;;  %v1787_v44 = vrot.slane %v1677_v29, %v14560_v61 }
 0x529   : > { %v1707_v49 = vsub.f32 %v1603_v17, %v1703_v45  ;;  %v1709_v50 = vsub.f32 %v1674_v18, %v1705_v46 }
 0x52a   : > { %v1710_v52 = vmul.f32 %v1706_v47, %v1706_v47  ;;  %v1712_v53 = vmul.f32 %v1708_v48, %v1708_v48 }
 0x52b   : > { %v1711_v54 = vmul.f32 %v1707_v49, %v1707_v49  ;;  %v1713_v51 = vmul.f32 %v1709_v50, %v1709_v50 }
 0x52c   : > { %v1714_v55 = vrot.slane %v1710_v52, 4  ;;  %v1726_v56 = vrot.slane %v1712_v53, 4 }
 0x52d   : > { %v1720_v57 = vrot.slane %v1711_v54, 4  ;;  %v1732_v60 = vrot.slane %v1713_v51, 4 }
 0x52e   : > { %v1715_v62 = vadd.f32 %v1714_v55, %v1710_v52  ;;  %v1727_v63 = vadd.f32 %v1726_v56, %v1712_v53  ;;  %v1795_v52 = vrot.slane %v1677_v29, %v14572_v6  ;;  %v2080_v56 = vld [vmem:[#allocation18 + $0x840] sm:$0xff]  ;;  %v2121_v29 = vld [vmem:[#allocation18 + $0x988] sm:$0xff] }
 0x52f   : > { %v1721_v0 = vadd.f32 %v1720_v57, %v1711_v54  ;;  %v1733_v1 = vadd.f32 %v1732_v60, %v1713_v51  ;;  %v2072_v51 = vld [vmem:[#allocation18 + $0x800] sm:$0xff]  ;;  %v2074_v57 = vld [vmem:[#allocation18 + $0x810] sm:$0xff] }
 0x530   : > { %v1716_v2 = vrot.slane %v1715_v62, 2  ;;  %v1728_v3 = vrot.slane %v1727_v63, 2  ;;  %v2082_v60 = vld [vmem:[#allocation18 + $0x850] sm:$0xff] }
 0x531   : > { %v1722_v5 = vrot.slane %v1721_v0, 2  ;;  %v1734_v7 = vrot.slane %v1733_v1, 2 }
 0x532   : > { %v1717_v8 = vadd.f32 %v1716_v2, %v1715_v62  ;;  %v1729_v9 = vadd.f32 %v1728_v3, %v1727_v63  ;;  %v2099_v2 = vld [vmem:[#allocation18 + $0x8d8] sm:$0xff]  ;;  %v12589_v3 = vpack.c.bf16 %v2080_v56, %v2072_v51  ;;  %v2138_v51 = vld [vmem:[#allocation18 + $0xa10] sm:$0xff]  ;;  %v2153_v56 = vld [vmem:[#allocation18 + $0xa88] sm:$0xff] }
 0x533   : > { %v1723_v10 = vadd.f32 %v1722_v5, %v1721_v0  ;;  %v1735_v11 = vadd.f32 %v1734_v7, %v1733_v1  ;;  %v2089_v0 = vld [vmem:[#allocation18 + $0x888] sm:$0xff]  ;;  %v12717_v5 = vpack.c.bf16 %v2082_v60, %v2074_v57  ;;  %v2155_v60 = vld [vmem:[#allocation18 + $0xa98] sm:$0xff] }
 0x534   : > { %v1718_v12 = vrot.slane %v1717_v8, 1  ;;  %v1730_v13 = vrot.slane %v1729_v9, 1  ;;  %v2161_v57 = vld [vmem:[#allocation18 + $0xac8] sm:$0xff] }
 0x535   : > { %v1724_v14 = vrot.slane %v1723_v10, 1  ;;  %v1736_v15 = vrot.slane %v1735_v11, 1 }
 0x536   : > { %v1719_v16 = vadd.f32 %v1718_v12, %v1717_v8  ;;  %v1731_v17 = vadd.f32 %v1730_v13, %v1729_v9  ;;  %v2088_v8 = vld [vmem:[#allocation18 + $0x880] sm:$0xff]  ;;  %v2098_v12 = vld [vmem:[#allocation18 + $0x8d0] sm:$0xff]  ;;  %v2105_v13 = vld [vmem:[#allocation18 + $0x908] sm:$0xff] }
 0x537   : > { %v1725_v18 = vadd.f32 %v1724_v14, %v1723_v10  ;;  %v1737_v19 = vadd.f32 %v1736_v15, %v1735_v11  ;;  %v2096_v9 = vld [vmem:[#allocation18 + $0x8c0] sm:$0xff]  ;;  %v2090_v11 = vld [vmem:[#allocation18 + $0x890] sm:$0xff] }
 0x538   : > { %v1738_v20 = vmul.f32 0.125, %v1719_v16  ;;  %v1740_v21 = vmul.f32 0.125, %v1731_v17  ;;  %v2113_v17 = vld [vmem:[#allocation18 + $0x948] sm:$0xff] }
 0x539   : > { %v1739_v22 = vmul.f32 0.125, %v1725_v18  ;;  %v1741_v23 = vmul.f32 0.125, %v1737_v19  ;;  %v2107_v18 = vld [vmem:[#allocation18 + $0x918] sm:$0xff] }
 0x53a   : > { %v1742_v24 = vadd.f32 0.8, %v1738_v20  ;;  %v1744_v25 = vadd.f32 0.8, %v1740_v21  ;;  %v2115_v19 = vld [vmem:[#allocation18 + $0x958] sm:$0xff]  ;;  %v12593_v21 = vpack.c.bf16 %v2096_v9, %v2088_v8  ;;  %v2177_v8 = vld [vmem:[#allocation18 + $0xb48] sm:$0xff] }
 0x53b   : > { %v1743_v26 = vadd.f32 0.8, %v1739_v22  ;;  %v1745_v27 = vadd.f32 0.8, %v1741_v23  ;;  %v12721_v22 = vpack.c.bf16 %v2098_v12, %v2090_v11  ;;  %v2104_v23 = vld [vmem:[#allocation18 + $0x900] sm:$0xff]  ;;  %v2171_v9 = vld [vmem:[#allocation18 + $0xb18] sm:$0xff] }
 0x53c   : > { %13363 = vrsqrt.f32 %v1742_v24  ;;  %v2112_v24 = vld [vmem:[#allocation18 + $0x940] sm:$0xff]  ;;  %v2179_v11 = vld [vmem:[#allocation18 + $0xb58] sm:$0xff] }
 0x53d   : > { %13365 = vrsqrt.f32 %v1744_v25  ;;  %v12595_v25 = vpack.c.bf16 %v2113_v17, %v2105_v13 }
 0x53e   : > { %13367 = vrsqrt.f32 %v1743_v26  ;;  %v12723_v26 = vpack.c.bf16 %v2115_v19, %v2107_v18  ;;  %v12739_v18 = vpack.c.bf16 %v2179_v11, %v2171_v9  ;;  %v2170_v19 = vld [vmem:[#allocation18 + $0xb10] sm:$0xff] }
 0x53f   : > { %13369 = vrsqrt.f32 %v1745_v27  ;;  %v2106_v27 = vld [vmem:[#allocation18 + $0x910] sm:$0xff] }
 0x540   : > { %v2234_v11 = vld [vmem:[#allocation18 + $0xd10] sm:$0xff] }
 0x546   : > { %v13364_v31 = vpop.eup %13363 }
 0x547   : > { %v13366_v33 = vpop.eup %13365  ;;  %v1750_v34 = vmul.f32 %v13364_v31, %v1706_v47  ;;  %v2123_v31 = vld [vmem:[#allocation18 + $0x998] sm:$0xff] }
 0x548   : > { %v13368_v37 = vpop.eup %13367  ;;  %v1752_v38 = vmul.f32 %v13366_v33, %v1708_v48  ;;  %v12597_v33 = vpack.c.bf16 %v2112_v24, %v2104_v23  ;;  %v2193_v23 = vld [vmem:[#allocation18 + $0xbc8] sm:$0xff]  ;;  %v2187_v24 = vld [vmem:[#allocation18 + $0xb98] sm:$0xff] }
 0x549   : > { %v13370_v41 = vpop.eup %13369  ;;  %v1775_v42 = vmul.f32 %v1758_v30, %v1750_v34  ;;  %v1751_v43 = vmul.f32 %v13368_v37, %v1707_v49  ;;  %v2097_v49 = vld [vmem:[#allocation18 + $0x8c8] sm:$0xff]  ;;  %v12725_v34 = vpack.c.bf16 %v2114_v28, %v2106_v27  ;;  %v2184_v28 = vld [vmem:[#allocation18 + $0xb80] sm:$0xff] }
 0x54a   : > { %v1777_v45 = vmul.f32 %v1766_v32, %v1752_v38  ;;  %v1753_v46 = vmul.f32 %v13370_v41, %v1709_v50  ;;  %v2091_v50 = vld [vmem:[#allocation18 + $0x898] sm:$0xff]  ;;  %v12591_v15 = vpack.c.bf16 %v2097_v49, %v2089_v0  ;;  %v2129_v30 = vld [vmem:[#allocation18 + $0x9c8] sm:$0xff]  ;;  %v2152_v49 = vld [vmem:[#allocation18 + $0xa80] sm:$0xff] }
 0x54b   : > { %v1776_v47 = vmul.f32 %v1762_v35, %v1751_v43  ;;  %v1800_v53 = vadd.f32 %v1783_v36, %v1775_v42  ;;  %v12719_v16 = vpack.c.bf16 %v2099_v2, %v2091_v50  ;;  %v2131_v32 = vld [vmem:[#allocation18 + $0x9d8] sm:$0xff]  ;;  %v2120_v35 = vld [vmem:[#allocation18 + $0x980] sm:$0xff]  ;;  %v12599_v37 = vpack.c.bf16 %v2129_v30, %v2121_v29  ;;  %v2137_v41 = vld [vmem:[#allocation18 + $0xa08] sm:$0xff] }
 0x54c   : > { %v1778_v54 = vmul.f32 %v1770_v39, %v1753_v46  ;;  %v14586_v55 = vadd.f32 %v1791_v40, %v1777_v45  ;;  %v2128_v36 = vld [vmem:[#allocation18 + $0x9c0] sm:$0xff]  ;;  %v12727_v38 = vpack.c.bf16 %v2131_v32, %v2123_v31  ;;  %v2122_v39 = vld [vmem:[#allocation18 + $0x990] sm:$0xff]  ;;  %v2145_v42 = vld [vmem:[#allocation18 + $0xa48] sm:$0xff]  ;;  %v12607_v50 = vpack.c.bf16 %v2161_v57, %v2153_v56 }
 0x54d   : > { %v1801_v48 = vadd.f32 %v1787_v44, %v1776_v47  ;;  %v1808_v62 = vmul.f32 0.2, %v1800_v53  ;;  %vm1804_vm5 = vcmp.gt.f32.partialorder %v1800_v53, 0.0  ;;  %v2130_v40 = vld [vmem:[#allocation18 + $0x9d0] sm:$0xff]  ;;  %v2139_v43 = vld [vmem:[#allocation18 + $0xa18] sm:$0xff]  ;;  %v12601_v45 = vpack.c.bf16 %v2128_v36, %v2120_v35  ;;  %v2144_v47 = vld [vmem:[#allocation18 + $0xa40] sm:$0xff] }
 0x54e   : > { %v1803_v63 = vadd.f32 %v1795_v52, %v1778_v54  ;;  %v2147_v44 = vld [vmem:[#allocation18 + $0xa58] sm:$0xff]  ;;  %v12729_v46 = vpack.c.bf16 %v2130_v40, %v2122_v39  ;;  %v2136_v52 = vld [vmem:[#allocation18 + $0xa00] sm:$0xff]  ;;  %v2186_v32 = vld [vmem:[#allocation18 + $0xb90] sm:$0xff]  ;;  %vm1806_vm7 = vcmp.gt.f32.partialorder %v14586_v55, 0.0 }
 0x54f   : > { %vm1805_vm4 = vcmp.gt.f32.partialorder %v1801_v48, 0.0  ;;  %v1809_v1 = vmul.f32 0.2, %v1801_v48  ;;  %v14592_v14 = vsel %vm1804_vm5, %v1800_v53, %v1808_v62  ;;  %v12603_v53 = vpack.c.bf16 %v2145_v42, %v2137_v41  ;;  %v2163_v62 = vld [vmem:[#allocation18 + $0xad8] sm:$0xff]  ;;  %v2192_v29 = vld [vmem:[#allocation18 + $0xbc0] sm:$0xff]  ;;  %v2209_v35 = vld [vmem:[#allocation18 + $0xc48] sm:$0xff] }
 0x550   : > { %v1811_v7 = vmul.f32 0.2, %v1803_v63  ;;  %vm1807_vm6 = vcmp.gt.f32.partialorder %v1803_v63, 0.0  ;;  %v12731_v54 = vpack.c.bf16 %v2147_v44, %v2139_v43  ;;  %v12735_v2 = vpack.c.bf16 %v2163_v62, %v2155_v60  ;;  %v2203_v36 = vld [vmem:[#allocation18 + $0xc18] sm:$0xff]  ;;  %v2200_v40 = vld [vmem:[#allocation18 + $0xc00] sm:$0xff]  ;;  %v2202_v44 = vld [vmem:[#allocation18 + $0xc10] sm:$0xff] }
 0x551   : > { %v14588_v10 = vsel %vm1805_vm4, %v1801_v48, %v1809_v1  ;;  %v2146_v48 = vld [vmem:[#allocation18 + $0xa50] sm:$0xff]  ;;  %v2160_v1 = vld [vmem:[#allocation18 + $0xac0] sm:$0xff] }
 0x552   : > { %2434 = vmatprep.mubr.f32.mxu1 %v14588_v10  ;;  %2576 = vmatprep.mubr.f32.mxu0 %v14588_v10  ;;  %v14597_v20 = vsel %vm1807_vm6, %v1803_v63, %v1811_v7  ;;  %v12605_v63 = vpack.c.bf16 %v2144_v47, %v2136_v52  ;;  %v12733_v0 = vpack.c.bf16 %v2146_v48, %v2138_v51  ;;  %v2169_v7 = vld [vmem:[#allocation18 + $0xb08] sm:$0xff]  ;;  %v2208_v41 = vld [vmem:[#allocation18 + $0xc40] sm:$0xff]  ;;  %v2219_v47 = vld [vmem:[#allocation18 + $0xc98] sm:$0xff] }
 0x553   : > { %2435 = vmatmul.mubr.f32.vlgmr.msra.gmra.mrb[6].mxu1 %v14592_v14  ;;  %2577 = vmatmul.mubr.f32.vlgmr.msra.gmra.mrb[8].mxu0 %v14592_v14  ;;  %v12609_v12 = vpack.c.bf16 %v2160_v1, %v2152_v49  ;;  %v12611_v17 = vpack.c.bf16 %v2177_v8, %v2169_v7  ;;  %v2225_v52 = vld [vmem:[#allocation18 + $0xcc8] sm:$0xff]  ;;  %v2216_v48 = vld [vmem:[#allocation18 + $0xc80] sm:$0xff]  ;;  %v2218_v62 = vld [vmem:[#allocation18 + $0xc90] sm:$0xff] }
 0x554   : > { %12590 = vmatpush1.bf16.msra.mxu1 %v12589_v3  ;;  %12718 = vmatpush1.bf16.msra.mxu0 %v12717_v5  ;;  %v2154_v3 = vld [vmem:[#allocation18 + $0xa90] sm:$0xff]  ;;  %v2224_v56 = vld [vmem:[#allocation18 + $0xcc0] sm:$0xff]  ;;  %v2241_v49 = vld [vmem:[#allocation18 + $0xd48] sm:$0xff] }
 0x555   : > { %2505 = vmatprep.mubr.f32.mxu1 %v14597_v20  ;;  %2647 = vmatprep.mubr.f32.mxu0 %v14597_v20  ;;  %v2162_v5 = vld [vmem:[#allocation18 + $0xad0] sm:$0xff]  ;;  %v2235_v1 = vld [vmem:[#allocation18 + $0xd18] sm:$0xff]  ;;  %v2240_v7 = vld [vmem:[#allocation18 + $0xd40] sm:$0xff] }
 0x556   : > { %12592 = vmatprep.subr.bf16.mxu1 %v12591_v15  ;;  %12720 = vmatprep.subr.bf16.mxu0 %v12719_v16  ;;  %v12737_v13 = vpack.c.bf16 %v2162_v5, %v2154_v3  ;;  %v2168_v15 = vld [vmem:[#allocation18 + $0xb00] sm:$0xff] }
 0x557   : > { %v2176_v16 = vld [vmem:[#allocation18 + $0xb40] sm:$0xff] }
 0x558   : > { %12594 = vmatpush1.bf16.msra.mxu1 %v12593_v21  ;;  %12722 = vmatpush1.bf16.msra.mxu0 %v12721_v22  ;;  %v2178_v21 = vld [vmem:[#allocation18 + $0xb50] sm:$0xff]  ;;  %v2185_v22 = vld [vmem:[#allocation18 + $0xb88] sm:$0xff]  ;;  %v2232_v5 = vld [vmem:[#allocation18 + $0xd00] sm:$0xff] }
 0x559   : > { %12596 = vmatprep.subr.bf16.mxu1 %v12595_v25  ;;  %12724 = vmatprep.subr.bf16.mxu0 %v12723_v26  ;;  %v2195_v25 = vld [vmem:[#allocation18 + $0xbd8] sm:$0xff]  ;;  %v12613_v26 = vpack.c.bf16 %v2176_v16, %v2168_v15  ;;  %v12741_v27 = vpack.c.bf16 %v2178_v21, %v2170_v19  ;;  %v12615_v30 = vpack.c.bf16 %v2193_v23, %v2185_v22  ;;  %v2257_v15 = vld [vmem:[#allocation18 + $0xdc8] sm:$0xff]  ;;  %v2248_v21 = vld [vmem:[#allocation18 + $0xd80] sm:$0xff] }
 0x55a   : > { %v12743_v31 = vpack.c.bf16 %v2195_v25, %v2187_v24  ;;  %v2251_v16 = vld [vmem:[#allocation18 + $0xd98] sm:$0xff]  ;;  %v2256_v22 = vld [vmem:[#allocation18 + $0xdc0] sm:$0xff]  ;;  %v2250_v25 = vld [vmem:[#allocation18 + $0xd90] sm:$0xff] }
 0x55c   : > { %12598 = vmatpush1.bf16.msra.mxu1 %v12597_v33  ;;  %12726 = vmatpush1.bf16.msra.mxu0 %v12725_v34  ;;  %v2194_v33 = vld [vmem:[#allocation18 + $0xbd0] sm:$0xff]  ;;  %v2201_v34 = vld [vmem:[#allocation18 + $0xc08] sm:$0xff] }
 0x55d   : > { %12600 = vmatprep.subr.bf16.mxu1 %v12599_v37  ;;  %12728 = vmatprep.subr.bf16.mxu0 %v12727_v38  ;;  %v2211_v37 = vld [vmem:[#allocation18 + $0xc58] sm:$0xff]  ;;  %v12617_v38 = vpack.c.bf16 %v2192_v29, %v2184_v28  ;;  %v12745_v39 = vpack.c.bf16 %v2194_v33, %v2186_v32  ;;  %v12619_v42 = vpack.c.bf16 %v2209_v35, %v2201_v34  ;;  %v2273_v28 = vld [vmem:[#allocation18 + $0xe48] sm:$0xff]  ;;  %v2264_v33 = vld [vmem:[#allocation18 + $0xe00] sm:$0xff] }
 0x55e   : > { %v12747_v43 = vpack.c.bf16 %v2211_v37, %v2203_v36  ;;  %v2267_v29 = vld [vmem:[#allocation18 + $0xe18] sm:$0xff]  ;;  %v2272_v34 = vld [vmem:[#allocation18 + $0xe40] sm:$0xff]  ;;  %v2266_v37 = vld [vmem:[#allocation18 + $0xe10] sm:$0xff] }
 0x560   : > { %12602 = vmatpush1.bf16.msra.mxu1 %v12601_v45  ;;  %12730 = vmatpush1.bf16.msra.mxu0 %v12729_v46  ;;  %v2210_v45 = vld [vmem:[#allocation18 + $0xc50] sm:$0xff]  ;;  %v2217_v46 = vld [vmem:[#allocation18 + $0xc88] sm:$0xff] }
 0x561   : > { %12604 = vmatprep.subr.bf16.mxu1 %v12603_v53  ;;  %12732 = vmatprep.subr.bf16.mxu0 %v12731_v54  ;;  %v2227_v53 = vld [vmem:[#allocation18 + $0xcd8] sm:$0xff]  ;;  %v12621_v54 = vpack.c.bf16 %v2208_v41, %v2200_v40  ;;  %v12749_v51 = vpack.c.bf16 %v2210_v45, %v2202_v44  ;;  %v12623_v57 = vpack.c.bf16 %v2225_v52, %v2217_v46  ;;  %v2289_v40 = vld [vmem:[#allocation18 + $0xec8] sm:$0xff]  ;;  %v2280_v45 = vld [vmem:[#allocation18 + $0xe80] sm:$0xff] }
 0x562   : > { %v12751_v60 = vpack.c.bf16 %v2227_v53, %v2219_v47  ;;  %v2283_v41 = vld [vmem:[#allocation18 + $0xe98] sm:$0xff]  ;;  %v2288_v46 = vld [vmem:[#allocation18 + $0xec0] sm:$0xff]  ;;  %v2282_v53 = vld [vmem:[#allocation18 + $0xe90] sm:$0xff] }
 0x564   : > { %12606 = vmatpush1.bf16.msra.mxu1 %v12605_v63  ;;  %12734 = vmatpush1.bf16.msra.mxu0 %v12733_v0  ;;  %v2226_v63 = vld [vmem:[#allocation18 + $0xcd0] sm:$0xff]  ;;  %v2233_v0 = vld [vmem:[#allocation18 + $0xd08] sm:$0xff] }
 0x565   : > { %12608 = vmatprep.subr.bf16.mxu1 %v12607_v50  ;;  %12736 = vmatprep.subr.bf16.mxu0 %v12735_v2  ;;  %v2243_v50 = vld [vmem:[#allocation18 + $0xd58] sm:$0xff]  ;;  %v12625_v2 = vpack.c.bf16 %v2224_v56, %v2216_v48  ;;  %v12753_v3 = vpack.c.bf16 %v2226_v63, %v2218_v62  ;;  %v12627_v8 = vpack.c.bf16 %v2241_v49, %v2233_v0  ;;  %v2305_v48 = vld [vmem:[#allocation18 + $0xf48] sm:$0xff]  ;;  %v2296_v63 = vld [vmem:[#allocation18 + $0xf00] sm:$0xff] }
 0x566   : > { %v12755_v9 = vpack.c.bf16 %v2243_v50, %v2235_v1  ;;  %v2299_v56 = vld [vmem:[#allocation18 + $0xf18] sm:$0xff]  ;;  %v2304_v0 = vld [vmem:[#allocation18 + $0xf40] sm:$0xff]  ;;  %v2298_v50 = vld [vmem:[#allocation18 + $0xf10] sm:$0xff] }
 0x568   : > { %12610 = vmatpush1.bf16.msra.mxu1 %v12609_v12  ;;  %12738 = vmatpush1.bf16.msra.mxu0 %v12737_v13  ;;  %v2242_v12 = vld [vmem:[#allocation18 + $0xd50] sm:$0xff]  ;;  %v2249_v13 = vld [vmem:[#allocation18 + $0xd88] sm:$0xff] }
 0x569   : > { %12612 = vmatprep.subr.bf16.mxu1 %v12611_v17  ;;  %12740 = vmatprep.subr.bf16.mxu0 %v12739_v18  ;;  %v2259_v17 = vld [vmem:[#allocation18 + $0xdd8] sm:$0xff]  ;;  %v12629_v18 = vpack.c.bf16 %v2240_v7, %v2232_v5  ;;  %v12757_v19 = vpack.c.bf16 %v2242_v12, %v2234_v11  ;;  %v12631_v23 = vpack.c.bf16 %v2257_v15, %v2249_v13  ;;  %v2321_v5 = vld [vmem:[#allocation18 + $0xfc8] sm:$0xff]  ;;  %v2312_v12 = vld [vmem:[#allocation18 + $0xf80] sm:$0xff] }
 0x56a   : > { %v12759_v24 = vpack.c.bf16 %v2259_v17, %v2251_v16  ;;  %v2315_v7 = vld [vmem:[#allocation18 + $0xf98] sm:$0xff]  ;;  %v2320_v13 = vld [vmem:[#allocation18 + $0xfc0] sm:$0xff]  ;;  %v2314_v17 = vld [vmem:[#allocation18 + $0xf90] sm:$0xff] }
 0x56c   : > { %12614 = vmatpush1.bf16.msra.mxu1 %v12613_v26  ;;  %12742 = vmatpush1.bf16.msra.mxu0 %v12741_v27  ;;  %v2258_v26 = vld [vmem:[#allocation18 + $0xdd0] sm:$0xff]  ;;  %v2265_v27 = vld [vmem:[#allocation18 + $0xe08] sm:$0xff] }
 0x56d   : > { %12616 = vmatprep.subr.bf16.mxu1 %v12615_v30  ;;  %12744 = vmatprep.subr.bf16.mxu0 %v12743_v31  ;;  %v2275_v30 = vld [vmem:[#allocation18 + $0xe58] sm:$0xff]  ;;  %v12633_v31 = vpack.c.bf16 %v2256_v22, %v2248_v21  ;;  %v12761_v32 = vpack.c.bf16 %v2258_v26, %v2250_v25  ;;  %v12635_v35 = vpack.c.bf16 %v2273_v28, %v2265_v27  ;;  %v1829_v21 = vld [vmem:[#allocation18 + $0x68] sm:$0xff]  ;;  %v1820_v28 = vld [vmem:[#allocation18 + $0x20] sm:$0xff] }
 0x56e   : > { %v12763_v36 = vpack.c.bf16 %v2275_v30, %v2267_v29  ;;  %v1823_v22 = vld [vmem:[#allocation18 + $0x38] sm:$0xff]  ;;  %v1828_v29 = vld [vmem:[#allocation18 + $0x60] sm:$0xff]  ;;  %v1810_v30 = vmul.f32 0.2, %v14586_v55 }
 0x570   : > { %12618 = vmatpush1.bf16.msra.mxu1 %v12617_v38  ;;  %12746 = vmatpush1.bf16.msra.mxu0 %v12745_v39  ;;  %v2274_v38 = vld [vmem:[#allocation18 + $0xe50] sm:$0xff]  ;;  %v2281_v39 = vld [vmem:[#allocation18 + $0xe88] sm:$0xff] }
 0x571   : > { %12620 = vmatprep.subr.bf16.mxu1 %v12619_v42  ;;  %12748 = vmatprep.subr.bf16.mxu0 %v12747_v43  ;;  %v2291_v42 = vld [vmem:[#allocation18 + $0xed8] sm:$0xff]  ;;  %v12637_v43 = vpack.c.bf16 %v2272_v34, %v2264_v33  ;;  %v12765_v44 = vpack.c.bf16 %v2274_v38, %v2266_v37  ;;  %v12639_v52 = vpack.c.bf16 %v2289_v40, %v2281_v39  ;;  %v1837_v33 = vld [vmem:[#allocation18 + $0xa8] sm:$0xff]  ;;  %v1836_v39 = vld [vmem:[#allocation18 + $0xa0] sm:$0xff] }
 0x572   : > { %v12767_v47 = vpack.c.bf16 %v2291_v42, %v2283_v41  ;;  %v1845_v34 = vld [vmem:[#allocation18 + $0xe8] sm:$0xff]  ;;  %v12781_v37 = vpack.c.bf16 %v1828_v29, %v1820_v28  ;;  %v1844_v40 = vld [vmem:[#allocation18 + $0xe0] sm:$0xff]  ;;  %v1838_v41 = vld [vmem:[#allocation18 + $0xb0] sm:$0xff]  ;;  %v14604_v42 = vsel %vm1806_vm7, %v14586_v55, %v1810_v30 }
 0x573   : > { %v1911_v28 = vld [vmem:[#allocation18 + $0x2f8] sm:$0xff] }
 0x574   : > { %12622 = vmatpush1.bf16.msra.mxu1 %v12621_v54  ;;  %12750 = vmatpush1.bf16.msra.mxu0 %v12749_v51  ;;  %v2290_v54 = vld [vmem:[#allocation18 + $0xed0] sm:$0xff]  ;;  %v2297_v51 = vld [vmem:[#allocation18 + $0xf08] sm:$0xff] }
 0x575   : > { %12624 = vmatprep.subr.bf16.mxu1 %v12623_v57  ;;  %12752 = vmatprep.subr.bf16.mxu0 %v12751_v60  ;;  %v2307_v57 = vld [vmem:[#allocation18 + $0xf58] sm:$0xff]  ;;  %v12641_v60 = vpack.c.bf16 %v2288_v46, %v2280_v45  ;;  %v12769_v62 = vpack.c.bf16 %v2290_v54, %v2282_v53  ;;  %v12643_v49 = vpack.c.bf16 %v2305_v48, %v2297_v51  ;;  %v1846_v45 = vld [vmem:[#allocation18 + $0xf0] sm:$0xff]  ;;  %v1853_v46 = vld [vmem:[#allocation18 + $0x128] sm:$0xff] }
 0x576   : > { %v12771_v1 = vpack.c.bf16 %v2307_v57, %v2299_v56  ;;  %v1863_v53 = vld [vmem:[#allocation18 + $0x178] sm:$0xff]  ;;  %v12785_v54 = vpack.c.bf16 %v1844_v40, %v1836_v39  ;;  %v12913_v55 = vpack.c.bf16 %v1846_v45, %v1838_v41  ;;  %v1852_v48 = vld [vmem:[#allocation18 + $0x120] sm:$0xff]  ;;  %v1854_v57 = vld [vmem:[#allocation18 + $0x130] sm:$0xff] }
 0x577   : > { %v1860_v56 = vld [vmem:[#allocation18 + $0x160] sm:$0xff]  ;;  %v1919_v39 = vld [vmem:[#allocation18 + $0x338] sm:$0xff] }
 0x578   : > { %12626 = vmatpush1.bf16.msra.mxu1 %v12625_v2  ;;  %12754 = vmatpush1.bf16.msra.mxu0 %v12753_v3  ;;  %v2306_v2 = vld [vmem:[#allocation18 + $0xf50] sm:$0xff]  ;;  %v2313_v3 = vld [vmem:[#allocation18 + $0xf88] sm:$0xff]  ;;  %v1927_v40 = vld [vmem:[#allocation18 + $0x378] sm:$0xff] }
 0x579   : > { %12628 = vmatprep.subr.bf16.mxu1 %v12627_v8  ;;  %12756 = vmatprep.subr.bf16.mxu0 %v12755_v9  ;;  %v2323_v8 = vld [vmem:[#allocation18 + $0xfd8] sm:$0xff]  ;;  %v12645_v9 = vpack.c.bf16 %v2304_v0, %v2296_v63  ;;  %v12773_v11 = vpack.c.bf16 %v2306_v2, %v2298_v50  ;;  %v12647_v15 = vpack.c.bf16 %v2321_v5, %v2313_v3  ;;  %v1869_v63 = vld [vmem:[#allocation18 + $0x1a8] sm:$0xff]  ;;  %v1876_v5 = vld [vmem:[#allocation18 + $0x1e0] sm:$0xff] }
 0x57a   : > { %v12775_v16 = vpack.c.bf16 %v2323_v8, %v2315_v7  ;;  %v1877_v0 = vld [vmem:[#allocation18 + $0x1e8] sm:$0xff]  ;;  %v12789_v50 = vpack.c.bf16 %v1860_v56, %v1852_v48  ;;  %v1870_v7 = vld [vmem:[#allocation18 + $0x1b0] sm:$0xff]  ;;  %v1916_v45 = vld [vmem:[#allocation18 + $0x320] sm:$0xff] }
 0x57b   : > { %v12791_v3 = vpack.c.bf16 %v1877_v0, %v1869_v63  ;;  %v1943_v48 = vld [vmem:[#allocation18 + $0x3f8] sm:$0xff]  ;;  %v1940_v63 = vld [vmem:[#allocation18 + $0x3e0] sm:$0xff]  ;;  %v1934_v0 = vld [vmem:[#allocation18 + $0x3b0] sm:$0xff] }
 0x57c   : > { %12630 = vmatpush1.bf16.msra.mxu1 %v12629_v18  ;;  %12758 = vmatpush1.bf16.msra.mxu0 %v12757_v19  ;;  %v2322_v18 = vld [vmem:[#allocation18 + $0xfd0] sm:$0xff]  ;;  %v1821_v19 = vld [vmem:[#allocation18 + $0x28] sm:$0xff] }
 0x57d   : > { %12632 = vmatprep.subr.bf16.mxu1 %v12631_v23  ;;  %12760 = vmatprep.subr.bf16.mxu0 %v12759_v24  ;;  %v1831_v23 = vld [vmem:[#allocation18 + $0x78] sm:$0xff]  ;;  %v12649_v24 = vpack.c.bf16 %v2320_v13, %v2312_v12  ;;  %v12777_v25 = vpack.c.bf16 %v2322_v18, %v2314_v17  ;;  %v12779_v26 = vpack.c.bf16 %v1829_v21, %v1821_v19  ;;  %v1893_v12 = vld [vmem:[#allocation18 + $0x268] sm:$0xff]  ;;  %v1884_v19 = vld [vmem:[#allocation18 + $0x220] sm:$0xff] }
 0x57e   : > { %v12907_v27 = vpack.c.bf16 %v1831_v23, %v1823_v22  ;;  %v1887_v13 = vld [vmem:[#allocation18 + $0x238] sm:$0xff]  ;;  %v1892_v21 = vld [vmem:[#allocation18 + $0x260] sm:$0xff]  ;;  %v1886_v22 = vld [vmem:[#allocation18 + $0x230] sm:$0xff] }
 0x57f   : > { %v12797_v29 = vpack.c.bf16 %v1892_v21, %v1884_v19  ;;  %v1975_v19 = vld [vmem:[#allocation18 + $0x4f8] sm:$0xff] }
 0x580   : > { %12634 = vmatpush1.bf16.msra.mxu1 %v12633_v31  ;;  %12762 = vmatpush1.bf16.msra.mxu0 %v12761_v32  ;;  %v1822_v31 = vld [vmem:[#allocation18 + $0x30] sm:$0xff] }
 0x581   : > { %12636 = vmatprep.subr.bf16.mxu1 %v12635_v35  ;;  %12764 = vmatprep.subr.bf16.mxu0 %v12763_v36  ;;  %v1830_v32 = vld [vmem:[#allocation18 + $0x70] sm:$0xff]  ;;  %v1839_v35 = vld [vmem:[#allocation18 + $0xb8] sm:$0xff] }
 0x582   : > { %v1847_v36 = vld [vmem:[#allocation18 + $0xf8] sm:$0xff]  ;;  %v12909_v38 = vpack.c.bf16 %v1830_v32, %v1822_v31  ;;  %v1900_v32 = vld [vmem:[#allocation18 + $0x2a0] sm:$0xff] }
 0x584   : > { %12638 = vmatpush1.bf16.msra.mxu1 %v12637_v43  ;;  %12766 = vmatpush1.bf16.msra.mxu0 %v12765_v44  ;;  %v12783_v43 = vpack.c.bf16 %v1845_v34, %v1837_v33  ;;  %v12911_v44 = vpack.c.bf16 %v1847_v36, %v1839_v35  ;;  %v1908_v33 = vld [vmem:[#allocation18 + $0x2e0] sm:$0xff]  ;;  %v1902_v34 = vld [vmem:[#allocation18 + $0x2b0] sm:$0xff] }
 0x585   : > { %12640 = vmatprep.subr.bf16.mxu1 %v12639_v52  ;;  %12768 = vmatprep.subr.bf16.mxu0 %v12767_v47  ;;  %v1861_v52 = vld [vmem:[#allocation18 + $0x168] sm:$0xff]  ;;  %v1855_v47 = vld [vmem:[#allocation18 + $0x138] sm:$0xff]  ;;  %v1910_v36 = vld [vmem:[#allocation18 + $0x2f0] sm:$0xff]  ;;  %v12801_v41 = vpack.c.bf16 %v1908_v33, %v1900_v32 }
 0x586   : > { %v12787_v51 = vpack.c.bf16 %v1861_v52, %v1853_v46  ;;  %v1924_v46 = vld [vmem:[#allocation18 + $0x360] sm:$0xff]  ;;  %v1918_v52 = vld [vmem:[#allocation18 + $0x330] sm:$0xff]  ;;  %v1991_v32 = vld [vmem:[#allocation18 + $0x578] sm:$0xff] }
 0x587   : > { %v12805_v56 = vpack.c.bf16 %v1924_v46, %v1916_v45  ;;  %v2007_v45 = vld [vmem:[#allocation18 + $0x5f8] sm:$0xff] }
 0x588   : > { %12642 = vmatpush1.bf16.msra.mxu1 %v12641_v60  ;;  %12770 = vmatpush1.bf16.msra.mxu0 %v12769_v62  ;;  %v12915_v60 = vpack.c.bf16 %v1863_v53, %v1855_v47  ;;  %v1862_v62 = vld [vmem:[#allocation18 + $0x170] sm:$0xff]  ;;  %v12931_v47 = vpack.c.bf16 %v1927_v40, %v1919_v39 }
 0x589   : > { %12644 = vmatprep.subr.bf16.mxu1 %v12643_v49  ;;  %12772 = vmatprep.subr.bf16.mxu0 %v12771_v1  ;;  %v1871_v49 = vld [vmem:[#allocation18 + $0x1b8] sm:$0xff]  ;;  %v12917_v2 = vpack.c.bf16 %v1862_v62, %v1854_v57  ;;  %v1926_v53 = vld [vmem:[#allocation18 + $0x370] sm:$0xff]  ;;  %v1932_v62 = vld [vmem:[#allocation18 + $0x3a0] sm:$0xff] }
 0x58a   : > { %v1879_v1 = vld [vmem:[#allocation18 + $0x1f8] sm:$0xff]  ;;  %v12933_v57 = vpack.c.bf16 %v1926_v53, %v1918_v52  ;;  %v1990_v40 = vld [vmem:[#allocation18 + $0x570] sm:$0xff]  ;;  %v1996_v53 = vld [vmem:[#allocation18 + $0x5a0] sm:$0xff] }
 0x58b   : > { %v12919_v8 = vpack.c.bf16 %v1879_v1, %v1871_v49  ;;  %v1942_v1 = vld [vmem:[#allocation18 + $0x3f0] sm:$0xff] }
 0x58c   : > { %12646 = vmatpush1.bf16.msra.mxu1 %v12645_v9  ;;  %12774 = vmatpush1.bf16.msra.mxu0 %v12773_v11  ;;  %v1878_v9 = vld [vmem:[#allocation18 + $0x1f0] sm:$0xff]  ;;  %v1885_v11 = vld [vmem:[#allocation18 + $0x228] sm:$0xff] }
 0x58d   : > { %12648 = vmatprep.subr.bf16.mxu1 %v12647_v15  ;;  %12776 = vmatprep.subr.bf16.mxu0 %v12775_v16  ;;  %v1895_v15 = vld [vmem:[#allocation18 + $0x278] sm:$0xff]  ;;  %v12921_v17 = vpack.c.bf16 %v1878_v9, %v1870_v7  ;;  %v12795_v18 = vpack.c.bf16 %v1893_v12, %v1885_v11  ;;  %v12937_v7 = vpack.c.bf16 %v1942_v1, %v1934_v0  ;;  %v1948_v9 = vld [vmem:[#allocation18 + $0x420] sm:$0xff]  ;;  %v1950_v12 = vld [vmem:[#allocation18 + $0x430] sm:$0xff] }
 0x58e   : > { %v12923_v23 = vpack.c.bf16 %v1895_v15, %v1887_v13  ;;  %v1956_v11 = vld [vmem:[#allocation18 + $0x460] sm:$0xff]  ;;  %v1958_v15 = vld [vmem:[#allocation18 + $0x470] sm:$0xff] }
 0x58f   : > { %v12813_v21 = vpack.c.bf16 %v1956_v11, %v1948_v9  ;;  %v2012_v1 = vld [vmem:[#allocation18 + $0x620] sm:$0xff]  ;;  %v2039_v9 = vld [vmem:[#allocation18 + $0x6f8] sm:$0xff] }
 0x590   : > { %12650 = vmatpush1.bf16.msra.mxu1 %v12649_v24  ;;  %12778 = vmatpush1.bf16.msra.mxu0 %v12777_v25  ;;  %v1894_v24 = vld [vmem:[#allocation18 + $0x270] sm:$0xff]  ;;  %v1901_v25 = vld [vmem:[#allocation18 + $0x2a8] sm:$0xff] }
 0x591   : > { %12780 = vmatprep.subr.bf16.mxu1 %v12779_v26  ;;  %12908 = vmatprep.subr.bf16.mxu0 %v12907_v27  ;;  %v1909_v26 = vld [vmem:[#allocation18 + $0x2e8] sm:$0xff]  ;;  %v1903_v27 = vld [vmem:[#allocation18 + $0x2b8] sm:$0xff]  ;;  %v12925_v30 = vpack.c.bf16 %v1894_v24, %v1886_v22  ;;  %v12941_v22 = vpack.c.bf16 %v1958_v15, %v1950_v12  ;;  %v1964_v24 = vld [vmem:[#allocation18 + $0x4a0] sm:$0xff] }
 0x592   : > { %v12799_v31 = vpack.c.bf16 %v1909_v26, %v1901_v25  ;;  %v12927_v35 = vpack.c.bf16 %v1911_v28, %v1903_v27  ;;  %v1972_v25 = vld [vmem:[#allocation18 + $0x4e0] sm:$0xff]  ;;  %v1966_v26 = vld [vmem:[#allocation18 + $0x4b0] sm:$0xff] }
 0x593   : > { %2506 = vmatmul.mubr.f32.vlgmr.msra.gmra.mrb[6].mxu1 %v14604_v42  ;;  %2648 = vmatmul.mubr.f32.vlgmr.msra.gmra.mrb[8].mxu0 %v14604_v42  ;;  %v1974_v28 = vld [vmem:[#allocation18 + $0x4f0] sm:$0xff]  ;;  %v12817_v33 = vpack.c.bf16 %v1972_v25, %v1964_v24  ;;  %v2028_v15 = vld [vmem:[#allocation18 + $0x6a0] sm:$0xff]  ;;  %v2055_v24 = vld [vmem:[#allocation18 + $0x778] sm:$0xff] }
 0x594   : > { %12782 = vmatpush1.bf16.msra.mxu1 %v12781_v37  ;;  %2718 = vmatprep.mubr.f32.mxu1 %v14588_v10  ;;  %v1917_v37 = vld [vmem:[#allocation18 + $0x328] sm:$0xff] }
 0x595   : > { %12910 = vmatpush1.bf16.msra.mxu0 %v12909_v38  ;;  %2860 = vmatprep.mubr.f32.mxu0 %v14588_v10  ;;  %v1868_v10 = vld [vmem:[#allocation18 + $0x1a0] sm:$0xff]  ;;  %v1925_v38 = vld [vmem:[#allocation18 + $0x368] sm:$0xff] }
 0x596   : > { %12784 = vmatprep.subr.bf16.mxu1 %v12783_v43  ;;  %12912 = vmatprep.subr.bf16.mxu0 %v12911_v44  ;;  %v12793_v16 = vpack.c.bf16 %v1876_v5, %v1868_v10  ;;  %v12929_v43 = vpack.c.bf16 %v1910_v36, %v1902_v34  ;;  %v12803_v44 = vpack.c.bf16 %v1925_v38, %v1917_v37  ;;  %v1959_v10 = vld [vmem:[#allocation18 + $0x478] sm:$0xff]  ;;  %v1980_v36 = vld [vmem:[#allocation18 + $0x520] sm:$0xff]  ;;  %v1982_v38 = vld [vmem:[#allocation18 + $0x530] sm:$0xff] }
 0x597   : > { %v12809_v5 = vpack.c.bf16 %v1940_v63, %v1932_v62  ;;  %v12945_v34 = vpack.c.bf16 %v1974_v28, %v1966_v26  ;;  %v1988_v37 = vld [vmem:[#allocation18 + $0x560] sm:$0xff]  ;;  %v12949_v52 = vpack.c.bf16 %v1990_v40, %v1982_v38  ;;  %v2023_v62 = vld [vmem:[#allocation18 + $0x678] sm:$0xff] }
 0x598   : > { %12786 = vmatpush1.bf16.msra.mxu1 %v12785_v54  ;;  %v1933_v54 = vld [vmem:[#allocation18 + $0x3a8] sm:$0xff]  ;;  %v12821_v46 = vpack.c.bf16 %v1988_v37, %v1980_v36  ;;  %v2044_v28 = vld [vmem:[#allocation18 + $0x720] sm:$0xff]  ;;  %v2071_v36 = vld [vmem:[#allocation18 + $0x7f8] sm:$0xff] }
 0x599   : > { %12914 = vmatpush1.bf16.msra.mxu0 %v12913_v55  ;;  %12788 = vmatprep.subr.bf16.mxu1 %v12787_v51  ;;  %v1941_v55 = vld [vmem:[#allocation18 + $0x3e8] sm:$0xff]  ;;  %v1935_v51 = vld [vmem:[#allocation18 + $0x3b8] sm:$0xff]  ;;  %v2060_v40 = vld [vmem:[#allocation18 + $0x7a0] sm:$0xff] }
 0x59a   : > { %12916 = vmatprep.subr.bf16.mxu0 %v12915_v60  ;;  %v12807_v60 = vpack.c.bf16 %v1941_v55, %v1933_v54  ;;  %v12935_v49 = vpack.c.bf16 %v1943_v48, %v1935_v51  ;;  %v2004_v54 = vld [vmem:[#allocation18 + $0x5e0] sm:$0xff]  ;;  %v1998_v55 = vld [vmem:[#allocation18 + $0x5b0] sm:$0xff] }
 0x59b   : > { %v2006_v48 = vld [vmem:[#allocation18 + $0x5f0] sm:$0xff]  ;;  %v12825_v63 = vpack.c.bf16 %v2004_v54, %v1996_v53  ;;  %v2087_v53 = vld [vmem:[#allocation18 + $0x878] sm:$0xff] }
 0x59c   : > { %12790 = vmatpush1.bf16.msra.mxu1 %v12789_v50  ;;  %v1949_v50 = vld [vmem:[#allocation18 + $0x428] sm:$0xff]  ;;  %v12953_v0 = vpack.c.bf16 %v2006_v48, %v1998_v55  ;;  %v2076_v48 = vld [vmem:[#allocation18 + $0x820] sm:$0xff] }
 0x59d   : > { %12918 = vmatpush1.bf16.msra.mxu0 %v12917_v2  ;;  %12792 = vmatprep.subr.bf16.mxu1 %v12791_v3  ;;  %v1957_v2 = vld [vmem:[#allocation18 + $0x468] sm:$0xff]  ;;  %v1951_v3 = vld [vmem:[#allocation18 + $0x438] sm:$0xff] }
 0x59e   : > { %12920 = vmatprep.subr.bf16.mxu0 %v12919_v8  ;;  %v12811_v8 = vpack.c.bf16 %v1957_v2, %v1949_v50  ;;  %v12939_v13 = vpack.c.bf16 %v1959_v10, %v1951_v3  ;;  %v2020_v50 = vld [vmem:[#allocation18 + $0x660] sm:$0xff]  ;;  %v2014_v2 = vld [vmem:[#allocation18 + $0x630] sm:$0xff] }
 0x59f   : > { %v2022_v10 = vld [vmem:[#allocation18 + $0x670] sm:$0xff]  ;;  %v12829_v11 = vpack.c.bf16 %v2020_v50, %v2012_v1  ;;  %v2095_v1 = vld [vmem:[#allocation18 + $0x8b8] sm:$0xff] }
 0x5a0   : > { %12794 = vmatpush1.bf16.msra.mxu1 %v12793_v16  ;;  %v1965_v16 = vld [vmem:[#allocation18 + $0x4a8] sm:$0xff]  ;;  %v12957_v12 = vpack.c.bf16 %v2022_v10, %v2014_v2  ;;  %v2103_v50 = vld [vmem:[#allocation18 + $0x8f8] sm:$0xff]  ;;  %v2100_v10 = vld [vmem:[#allocation18 + $0x8e0] sm:$0xff] }
 0x5a1   : > { %12922 = vmatpush1.bf16.msra.mxu0 %v12921_v17  ;;  %12796 = vmatprep.subr.bf16.mxu1 %v12795_v18  ;;  %v1973_v17 = vld [vmem:[#allocation18 + $0x4e8] sm:$0xff]  ;;  %v1967_v18 = vld [vmem:[#allocation18 + $0x4b8] sm:$0xff] }
 0x5a2   : > { %12924 = vmatprep.subr.bf16.mxu0 %v12923_v23  ;;  %v12815_v23 = vpack.c.bf16 %v1973_v17, %v1965_v16  ;;  %v12943_v27 = vpack.c.bf16 %v1975_v19, %v1967_v18  ;;  %v2036_v16 = vld [vmem:[#allocation18 + $0x6e0] sm:$0xff]  ;;  %v2030_v17 = vld [vmem:[#allocation18 + $0x6b0] sm:$0xff] }
 0x5a3   : > { %v2038_v19 = vld [vmem:[#allocation18 + $0x6f0] sm:$0xff]  ;;  %v12833_v25 = vpack.c.bf16 %v2036_v16, %v2028_v15  ;;  %v2119_v15 = vld [vmem:[#allocation18 + $0x978] sm:$0xff] }
 0x5a4   : > { %12798 = vmatpush1.bf16.msra.mxu1 %v12797_v29  ;;  %v1981_v29 = vld [vmem:[#allocation18 + $0x528] sm:$0xff]  ;;  %v12961_v26 = vpack.c.bf16 %v2038_v19, %v2030_v17  ;;  %v2108_v19 = vld [vmem:[#allocation18 + $0x920] sm:$0xff] }
 0x5a5   : > { %12926 = vmatpush1.bf16.msra.mxu0 %v12925_v30  ;;  %12800 = vmatprep.subr.bf16.mxu1 %v12799_v31  ;;  %v1989_v30 = vld [vmem:[#allocation18 + $0x568] sm:$0xff]  ;;  %v1983_v31 = vld [vmem:[#allocation18 + $0x538] sm:$0xff] }
 0x5a6   : > { %12928 = vmatprep.subr.bf16.mxu0 %v12927_v35  ;;  %v12819_v35 = vpack.c.bf16 %v1989_v30, %v1981_v29  ;;  %v12947_v39 = vpack.c.bf16 %v1991_v32, %v1983_v31  ;;  %v2052_v29 = vld [vmem:[#allocation18 + $0x760] sm:$0xff]  ;;  %v2046_v30 = vld [vmem:[#allocation18 + $0x730] sm:$0xff] }
 0x5a7   : > { %v2054_v32 = vld [vmem:[#allocation18 + $0x770] sm:$0xff]  ;;  %v12837_v37 = vpack.c.bf16 %v2052_v29, %v2044_v28 }
 0x5a8   : > { %12802 = vmatpush1.bf16.msra.mxu1 %v12801_v41  ;;  %v1997_v41 = vld [vmem:[#allocation18 + $0x5a8] sm:$0xff]  ;;  %v12965_v38 = vpack.c.bf16 %v2054_v32, %v2046_v30  ;;  %v2132_v32 = vld [vmem:[#allocation18 + $0x9e0] sm:$0xff] }
 0x5a9   : > { %12930 = vmatpush1.bf16.msra.mxu0 %v12929_v43  ;;  %12804 = vmatprep.subr.bf16.mxu1 %v12803_v44  ;;  %v2005_v43 = vld [vmem:[#allocation18 + $0x5e8] sm:$0xff]  ;;  %v1999_v44 = vld [vmem:[#allocation18 + $0x5b8] sm:$0xff] }
 0x5aa   : > { %12932 = vmatprep.subr.bf16.mxu0 %v12931_v47  ;;  %v12823_v47 = vpack.c.bf16 %v2005_v43, %v1997_v41  ;;  %v12951_v51 = vpack.c.bf16 %v2007_v45, %v1999_v44  ;;  %v2068_v41 = vld [vmem:[#allocation18 + $0x7e0] sm:$0xff]  ;;  %v2062_v43 = vld [vmem:[#allocation18 + $0x7b0] sm:$0xff] }
 0x5ab   : > { %v2070_v45 = vld [vmem:[#allocation18 + $0x7f0] sm:$0xff]  ;;  %v12841_v54 = vpack.c.bf16 %v2068_v41, %v2060_v40 }
 0x5ac   : > { %12806 = vmatpush1.bf16.msra.mxu1 %v12805_v56  ;;  %v2013_v56 = vld [vmem:[#allocation18 + $0x628] sm:$0xff]  ;;  %v12969_v55 = vpack.c.bf16 %v2070_v45, %v2062_v43  ;;  %v2140_v43 = vld [vmem:[#allocation18 + $0xa20] sm:$0xff]  ;;  %v2142_v45 = vld [vmem:[#allocation18 + $0xa30] sm:$0xff] }
 0x5ad   : > { %12934 = vmatpush1.bf16.msra.mxu0 %v12933_v57  ;;  %12808 = vmatprep.subr.bf16.mxu1 %v12807_v60  ;;  %v2021_v57 = vld [vmem:[#allocation18 + $0x668] sm:$0xff]  ;;  %v2015_v60 = vld [vmem:[#allocation18 + $0x638] sm:$0xff] }
 0x5ae   : > { %12936 = vmatprep.subr.bf16.mxu0 %v12935_v49  ;;  %v12827_v49 = vpack.c.bf16 %v2021_v57, %v2013_v56  ;;  %v12955_v3 = vpack.c.bf16 %v2023_v62, %v2015_v60  ;;  %v2084_v56 = vld [vmem:[#allocation18 + $0x860] sm:$0xff]  ;;  %v2078_v60 = vld [vmem:[#allocation18 + $0x830] sm:$0xff] }
 0x5af   : > { %v2086_v62 = vld [vmem:[#allocation18 + $0x870] sm:$0xff] }
 0x5b0   : > { %12810 = vmatpush1.bf16.msra.mxu1 %v12809_v5  ;;  %v2029_v5 = vld [vmem:[#allocation18 + $0x6a8] sm:$0xff]  ;;  %v12973_v2 = vpack.c.bf16 %v2086_v62, %v2078_v60  ;;  %v2164_v60 = vld [vmem:[#allocation18 + $0xae0] sm:$0xff]  ;;  %v2158_v62 = vld [vmem:[#allocation18 + $0xab0] sm:$0xff] }
 0x5b1   : > { %12938 = vmatpush1.bf16.msra.mxu0 %v12937_v7  ;;  %12812 = vmatprep.subr.bf16.mxu1 %v12811_v8  ;;  %v2037_v7 = vld [vmem:[#allocation18 + $0x6e8] sm:$0xff]  ;;  %v2031_v8 = vld [vmem:[#allocation18 + $0x6b8] sm:$0xff] }
 0x5b2   : > { %12940 = vmatprep.subr.bf16.mxu0 %v12939_v13  ;;  %v12831_v13 = vpack.c.bf16 %v2037_v7, %v2029_v5  ;;  %v12959_v18 = vpack.c.bf16 %v2039_v9, %v2031_v8  ;;  %v2094_v5 = vld [vmem:[#allocation18 + $0x8b0] sm:$0xff]  ;;  %v2109_v9 = vld [vmem:[#allocation18 + $0x928] sm:$0xff] }
 0x5b3   : > { %v2102_v8 = vld [vmem:[#allocation18 + $0x8f0] sm:$0xff] }
 0x5b4   : > { %12814 = vmatpush1.bf16.msra.mxu1 %v12813_v21  ;;  %v2045_v21 = vld [vmem:[#allocation18 + $0x728] sm:$0xff]  ;;  %v12977_v17 = vpack.c.bf16 %v2102_v8, %v2094_v5  ;;  %v2180_v8 = vld [vmem:[#allocation18 + $0xb60] sm:$0xff] }
 0x5b5   : > { %12942 = vmatpush1.bf16.msra.mxu0 %v12941_v22  ;;  %12816 = vmatprep.subr.bf16.mxu1 %v12815_v23  ;;  %v2053_v22 = vld [vmem:[#allocation18 + $0x768] sm:$0xff]  ;;  %v2047_v23 = vld [vmem:[#allocation18 + $0x738] sm:$0xff] }
 0x5b6   : > { %12944 = vmatprep.subr.bf16.mxu0 %v12943_v27  ;;  %v12835_v27 = vpack.c.bf16 %v2053_v22, %v2045_v21  ;;  %v12963_v31 = vpack.c.bf16 %v2055_v24, %v2047_v23  ;;  %v2116_v21 = vld [vmem:[#allocation18 + $0x960] sm:$0xff]  ;;  %v2110_v22 = vld [vmem:[#allocation18 + $0x930] sm:$0xff] }
 0x5b7   : > { %v2118_v24 = vld [vmem:[#allocation18 + $0x970] sm:$0xff]  ;;  %v12853_v28 = vpack.c.bf16 %v2116_v21, %v2108_v19 }
 0x5b8   : > { %12818 = vmatpush1.bf16.msra.mxu1 %v12817_v33  ;;  %v2061_v33 = vld [vmem:[#allocation18 + $0x7a8] sm:$0xff]  ;;  %v12981_v29 = vpack.c.bf16 %v2118_v24, %v2110_v22  ;;  %v2188_v22 = vld [vmem:[#allocation18 + $0xba0] sm:$0xff]  ;;  %v2190_v24 = vld [vmem:[#allocation18 + $0xbb0] sm:$0xff] }
 0x5b9   : > { %12946 = vmatpush1.bf16.msra.mxu0 %v12945_v34  ;;  %12820 = vmatprep.subr.bf16.mxu1 %v12819_v35  ;;  %v2069_v34 = vld [vmem:[#allocation18 + $0x7e8] sm:$0xff]  ;;  %v2063_v35 = vld [vmem:[#allocation18 + $0x7b8] sm:$0xff] }
 0x5ba   : > { %12948 = vmatprep.subr.bf16.mxu0 %v12947_v39  ;;  %v12839_v39 = vpack.c.bf16 %v2069_v34, %v2061_v33  ;;  %v12967_v44 = vpack.c.bf16 %v2071_v36, %v2063_v35  ;;  %v2126_v33 = vld [vmem:[#allocation18 + $0x9b0] sm:$0xff]  ;;  %v2141_v35 = vld [vmem:[#allocation18 + $0xa28] sm:$0xff] }
 0x5bb   : > { %v2149_v36 = vld [vmem:[#allocation18 + $0xa68] sm:$0xff] }
 0x5bc   : > { %12822 = vmatpush1.bf16.msra.mxu1 %v12821_v46  ;;  %v2077_v46 = vld [vmem:[#allocation18 + $0x828] sm:$0xff]  ;;  %v12859_v41 = vpack.c.bf16 %v2149_v36, %v2141_v35  ;;  %v2214_v36 = vld [vmem:[#allocation18 + $0xc70] sm:$0xff] }
 0x5bd   : > { %12950 = vmatpush1.bf16.msra.mxu0 %v12949_v52  ;;  %12824 = vmatprep.subr.bf16.mxu1 %v12823_v47  ;;  %v2085_v52 = vld [vmem:[#allocation18 + $0x868] sm:$0xff]  ;;  %v2079_v47 = vld [vmem:[#allocation18 + $0x838] sm:$0xff] }
 0x5be   : > { %12952 = vmatprep.subr.bf16.mxu0 %v12951_v51  ;;  %v12843_v51 = vpack.c.bf16 %v2085_v52, %v2077_v46  ;;  %v12971_v57 = vpack.c.bf16 %v2087_v53, %v2079_v47  ;;  %v2150_v52 = vld [vmem:[#allocation18 + $0xa70] sm:$0xff]  ;;  %v2157_v47 = vld [vmem:[#allocation18 + $0xaa8] sm:$0xff] }
 0x5bf   : > { %v2165_v53 = vld [vmem:[#allocation18 + $0xae8] sm:$0xff] }
 0x5c0   : > { %12826 = vmatpush1.bf16.msra.mxu1 %v12825_v63  ;;  %v2093_v63 = vld [vmem:[#allocation18 + $0x8a8] sm:$0xff] }
 0x5c1   : > { %12954 = vmatpush1.bf16.msra.mxu0 %v12953_v0  ;;  %12828 = vmatprep.subr.bf16.mxu1 %v12827_v49  ;;  %v2101_v0 = vld [vmem:[#allocation18 + $0x8e8] sm:$0xff]  ;;  %v12845_v49 = vpack.c.bf16 %v2084_v56, %v2076_v48  ;;  %v12989_v48 = vpack.c.bf16 %v2150_v52, %v2142_v45  ;;  %v12863_v56 = vpack.c.bf16 %v2165_v53, %v2157_v47  ;;  %v2220_v45 = vld [vmem:[#allocation18 + $0xca0] sm:$0xff]  ;;  %v2222_v52 = vld [vmem:[#allocation18 + $0xcb0] sm:$0xff] }
 0x5c2   : > { %12956 = vmatprep.subr.bf16.mxu0 %v12955_v3  ;;  %v2092_v3 = vld [vmem:[#allocation18 + $0x8a0] sm:$0xff]  ;;  %v12847_v7 = vpack.c.bf16 %v2101_v0, %v2093_v63  ;;  %v2166_v0 = vld [vmem:[#allocation18 + $0xaf0] sm:$0xff] }
 0x5c3   : > { %v12849_v16 = vpack.c.bf16 %v2100_v10, %v2092_v3  ;;  %v12993_v10 = vpack.c.bf16 %v2166_v0, %v2158_v62  ;;  %v2230_v53 = vld [vmem:[#allocation18 + $0xcf0] sm:$0xff]  ;;  %v2236_v62 = vld [vmem:[#allocation18 + $0xd20] sm:$0xff] }
 0x5c4   : > { %12830 = vmatpush1.bf16.msra.mxu1 %v12829_v11  ;;  %v2117_v11 = vld [vmem:[#allocation18 + $0x968] sm:$0xff]  ;;  %v2238_v0 = vld [vmem:[#allocation18 + $0xd30] sm:$0xff] }
 0x5c5   : > { %12958 = vmatpush1.bf16.msra.mxu0 %v12957_v12  ;;  %12832 = vmatprep.subr.bf16.mxu1 %v12831_v13  ;;  %v12975_v12 = vpack.c.bf16 %v2103_v50, %v2095_v1  ;;  %v2111_v13 = vld [vmem:[#allocation18 + $0x938] sm:$0xff]  ;;  %v2181_v1 = vld [vmem:[#allocation18 + $0xb68] sm:$0xff] }
 0x5c6   : > { %12960 = vmatprep.subr.bf16.mxu0 %v12959_v18  ;;  %v12851_v18 = vpack.c.bf16 %v2117_v11, %v2109_v9  ;;  %v12979_v23 = vpack.c.bf16 %v2119_v15, %v2111_v13  ;;  %v2175_v50 = vld [vmem:[#allocation18 + $0xb38] sm:$0xff]  ;;  %v2174_v9 = vld [vmem:[#allocation18 + $0xb30] sm:$0xff]  ;;  %v2189_v13 = vld [vmem:[#allocation18 + $0xba8] sm:$0xff] }
 0x5c7   : > { %v2197_v15 = vld [vmem:[#allocation18 + $0xbe8] sm:$0xff] }
 0x5c8   : > { %12834 = vmatpush1.bf16.msra.mxu1 %v12833_v25  ;;  %v2125_v25 = vld [vmem:[#allocation18 + $0x9a8] sm:$0xff]  ;;  %v12871_v21 = vpack.c.bf16 %v2197_v15, %v2189_v13  ;;  %v2262_v15 = vld [vmem:[#allocation18 + $0xdf0] sm:$0xff] }
 0x5c9   : > { %12962 = vmatpush1.bf16.msra.mxu0 %v12961_v26  ;;  %12836 = vmatprep.subr.bf16.mxu1 %v12835_v27  ;;  %v2133_v26 = vld [vmem:[#allocation18 + $0x9e8] sm:$0xff]  ;;  %v2127_v27 = vld [vmem:[#allocation18 + $0x9b8] sm:$0xff] }
 0x5ca   : > { %12964 = vmatprep.subr.bf16.mxu0 %v12963_v31  ;;  %v12855_v30 = vpack.c.bf16 %v2133_v26, %v2125_v25  ;;  %v2124_v31 = vld [vmem:[#allocation18 + $0x9a0] sm:$0xff]  ;;  %v2198_v26 = vld [vmem:[#allocation18 + $0xbf0] sm:$0xff] }
 0x5cc   : > { %12838 = vmatpush1.bf16.msra.mxu1 %v12837_v37  ;;  %v2143_v37 = vld [vmem:[#allocation18 + $0xa38] sm:$0xff] }
 0x5cd   : > { %12966 = vmatpush1.bf16.msra.mxu0 %v12965_v38  ;;  %12840 = vmatprep.subr.bf16.mxu1 %v12839_v39  ;;  %v2151_v38 = vld [vmem:[#allocation18 + $0xa78] sm:$0xff]  ;;  %v12857_v39 = vpack.c.bf16 %v2132_v32, %v2124_v31  ;;  %v13001_v31 = vpack.c.bf16 %v2198_v26, %v2190_v24  ;;  %v2268_v24 = vld [vmem:[#allocation18 + $0xe20] sm:$0xff]  ;;  %v2270_v26 = vld [vmem:[#allocation18 + $0xe30] sm:$0xff] }
 0x5ce   : > { %12968 = vmatprep.subr.bf16.mxu0 %v12967_v44  ;;  %v2148_v44 = vld [vmem:[#allocation18 + $0xa60] sm:$0xff]  ;;  %v12987_v46 = vpack.c.bf16 %v2151_v38, %v2143_v37  ;;  %v2221_v37 = vld [vmem:[#allocation18 + $0xca8] sm:$0xff] }
 0x5cf   : > { %v2229_v38 = vld [vmem:[#allocation18 + $0xce8] sm:$0xff] }
 0x5d0   : > { %12842 = vmatpush1.bf16.msra.mxu1 %v12841_v54  ;;  %v2159_v54 = vld [vmem:[#allocation18 + $0xab8] sm:$0xff] }
 0x5d1   : > { %12970 = vmatpush1.bf16.msra.mxu0 %v12969_v55  ;;  %12844 = vmatprep.subr.bf16.mxu1 %v12843_v51  ;;  %v2167_v55 = vld [vmem:[#allocation18 + $0xaf8] sm:$0xff]  ;;  %v12861_v51 = vpack.c.bf16 %v2148_v44, %v2140_v43  ;;  %v12879_v44 = vpack.c.bf16 %v2229_v38, %v2221_v37  ;;  %v2294_v38 = vld [vmem:[#allocation18 + $0xef0] sm:$0xff] }
 0x5d2   : > { %12972 = vmatprep.subr.bf16.mxu0 %v12971_v57  ;;  %v2156_v57 = vld [vmem:[#allocation18 + $0xaa0] sm:$0xff]  ;;  %v12991_v63 = vpack.c.bf16 %v2167_v55, %v2159_v54  ;;  %v2237_v54 = vld [vmem:[#allocation18 + $0xd28] sm:$0xff] }
 0x5d3   : > { %2719 = vmatmul.mubr.f32.vlgmr.msra.gmra.mrb[8].mxu1 %v14592_v14  ;;  %v12865_v3 = vpack.c.bf16 %v2164_v60, %v2156_v57  ;;  %v2245_v55 = vld [vmem:[#allocation18 + $0xd68] sm:$0xff]  ;;  %v13009_v57 = vpack.c.bf16 %v2230_v53, %v2222_v52  ;;  %v2300_v52 = vld [vmem:[#allocation18 + $0xf20] sm:$0xff]  ;;  %v2302_v53 = vld [vmem:[#allocation18 + $0xf30] sm:$0xff] }
 0x5d4   : > { %2861 = vmatmul.mubr.f32.vlgmr.msra.gmra.mrb[10].mxu0 %v14592_v14  ;;  %12846 = vmatpush1.bf16.msra.mxu1 %v12845_v49  ;;  %v2135_v14 = vld [vmem:[#allocation18 + $0x9f8] sm:$0xff]  ;;  %v2173_v49 = vld [vmem:[#allocation18 + $0xb28] sm:$0xff]  ;;  %v12883_v60 = vpack.c.bf16 %v2245_v55, %v2237_v54  ;;  %v2310_v55 = vld [vmem:[#allocation18 + $0xf70] sm:$0xff] }
 0x5d5   : > { %2789 = vmatprep.mubr.f32.mxu1 %v14597_v20  ;;  %12974 = vmatpush1.bf16.msra.mxu0 %v12973_v2  ;;  %v12983_v34 = vpack.c.bf16 %v2135_v14, %v2127_v27  ;;  %v2183_v2 = vld [vmem:[#allocation18 + $0xb78] sm:$0xff]  ;;  %v12867_v5 = vpack.c.bf16 %v2181_v1, %v2173_v49  ;;  %v2205_v27 = vld [vmem:[#allocation18 + $0xc28] sm:$0xff]  ;;  %v2246_v1 = vld [vmem:[#allocation18 + $0xd70] sm:$0xff] }
 0x5d6   : > { %2931 = vmatprep.mubr.f32.mxu0 %v14597_v20  ;;  %12848 = vmatprep.subr.bf16.mxu1 %v12847_v7  ;;  %v2134_v20 = vld [vmem:[#allocation18 + $0x9f0] sm:$0xff]  ;;  %v2172_v7 = vld [vmem:[#allocation18 + $0xb20] sm:$0xff]  ;;  %v12995_v11 = vpack.c.bf16 %v2183_v2, %v2175_v50  ;;  %v2213_v14 = vld [vmem:[#allocation18 + $0xc68] sm:$0xff] }
 0x5d7   : > { %12976 = vmatprep.subr.bf16.mxu0 %v12975_v12  ;;  %v12985_v40 = vpack.c.bf16 %v2134_v20, %v2126_v33  ;;  %v2182_v12 = vld [vmem:[#allocation18 + $0xb70] sm:$0xff]  ;;  %v12875_v32 = vpack.c.bf16 %v2213_v14, %v2205_v27  ;;  %v2204_v33 = vld [vmem:[#allocation18 + $0xc20] sm:$0xff]  ;;  %v2253_v50 = vld [vmem:[#allocation18 + $0xda8] sm:$0xff] }
 0x5d8   : > { %12850 = vmatpush1.bf16.msra.mxu1 %v12849_v16  ;;  %v2191_v16 = vld [vmem:[#allocation18 + $0xbb8] sm:$0xff]  ;;  %v12997_v19 = vpack.c.bf16 %v2182_v12, %v2174_v9  ;;  %v2206_v20 = vld [vmem:[#allocation18 + $0xc30] sm:$0xff]  ;;  %v2261_v2 = vld [vmem:[#allocation18 + $0xde8] sm:$0xff] }
 0x5d9   : > { %12978 = vmatpush1.bf16.msra.mxu0 %v12977_v17  ;;  %12852 = vmatprep.subr.bf16.mxu1 %v12851_v18  ;;  %v2199_v17 = vld [vmem:[#allocation18 + $0xbf8] sm:$0xff]  ;;  %v12869_v18 = vpack.c.bf16 %v2180_v8, %v2172_v7  ;;  %v13005_v43 = vpack.c.bf16 %v2214_v36, %v2206_v20  ;;  %v13013_v7 = vpack.c.bf16 %v2246_v1, %v2238_v0  ;;  %v2252_v9 = vld [vmem:[#allocation18 + $0xda0] sm:$0xff]  ;;  %v2254_v12 = vld [vmem:[#allocation18 + $0xdb0] sm:$0xff] }
 0x5da   : > { %12980 = vmatprep.subr.bf16.mxu0 %v12979_v23  ;;  %v2196_v23 = vld [vmem:[#allocation18 + $0xbe0] sm:$0xff]  ;;  %v12999_v25 = vpack.c.bf16 %v2199_v17, %v2191_v16  ;;  %v12887_v8 = vpack.c.bf16 %v2261_v2, %v2253_v50  ;;  %v2269_v16 = vld [vmem:[#allocation18 + $0xe28] sm:$0xff]  ;;  %v2278_v14 = vld [vmem:[#allocation18 + $0xe70] sm:$0xff] }
 0x5db   : > { %v2277_v17 = vld [vmem:[#allocation18 + $0xe68] sm:$0xff]  ;;  %v2284_v20 = vld [vmem:[#allocation18 + $0xea0] sm:$0xff]  ;;  %v2286_v36 = vld [vmem:[#allocation18 + $0xeb0] sm:$0xff] }
 0x5dc   : > { %12854 = vmatpush1.bf16.msra.mxu1 %v12853_v28  ;;  %v2207_v28 = vld [vmem:[#allocation18 + $0xc38] sm:$0xff]  ;;  %v2316_v0 = vld [vmem:[#allocation18 + $0xfa0] sm:$0xff]  ;;  %v2318_v1 = vld [vmem:[#allocation18 + $0xfb0] sm:$0xff] }
 0x5dd   : > { %12982 = vmatpush1.bf16.msra.mxu0 %v12981_v29  ;;  %12856 = vmatprep.subr.bf16.mxu1 %v12855_v30  ;;  %v2215_v29 = vld [vmem:[#allocation18 + $0xc78] sm:$0xff]  ;;  %v12873_v30 = vpack.c.bf16 %v2196_v23, %v2188_v22  ;;  %v13017_v22 = vpack.c.bf16 %v2262_v15, %v2254_v12  ;;  %v12891_v23 = vpack.c.bf16 %v2277_v17, %v2269_v16  ;;  %v2326_v2 = vld [vmem:[#allocation18 + $0xff0] sm:$0xff]  ;;  %v3239_v16 = vld [vmem:[%s14517_s18 + $0x88] sm:$0xff] }
 0x5de   : > { %12984 = vmatprep.subr.bf16.mxu0 %v12983_v34  ;;  %v2212_v34 = vld [vmem:[#allocation18 + $0xc60] sm:$0xff]  ;;  %v13003_v35 = vpack.c.bf16 %v2215_v29, %v2207_v28  ;;  %v2285_v28 = vld [vmem:[#allocation18 + $0xea8] sm:$0xff]  ;;  %v3246_v15 = vld [vmem:[%s14517_s18 + $0xc0] sm:$0xff] }
 0x5df   : > { %v2293_v29 = vld [vmem:[#allocation18 + $0xee8] sm:$0xff]  ;;  %v3247_v17 = vld [vmem:[%s14517_s18 + $0xc8] sm:$0xff] }
 0x5e0   : > { %12858 = vmatpush1.bf16.msra.mxu1 %v12857_v39  ;;  %v2223_v39 = vld [vmem:[#allocation18 + $0xcb8] sm:$0xff] }
 0x5e1   : > { %12986 = vmatpush1.bf16.msra.mxu0 %v12985_v40  ;;  %12860 = vmatprep.subr.bf16.mxu1 %v12859_v41  ;;  %v2231_v40 = vld [vmem:[#allocation18 + $0xcf8] sm:$0xff]  ;;  %v12877_v41 = vpack.c.bf16 %v2212_v34, %v2204_v33  ;;  %v13021_v33 = vpack.c.bf16 %v2278_v14, %v2270_v26  ;;  %v12895_v34 = vpack.c.bf16 %v2293_v29, %v2285_v28  ;;  %v3263_v26 = vld [vmem:[%s14517_s18 + $0x148] sm:$0xff] }
 0x5e2   : > { %12988 = vmatprep.subr.bf16.mxu0 %v12987_v46  ;;  %v2228_v46 = vld [vmem:[#allocation18 + $0xce0] sm:$0xff]  ;;  %v13007_v47 = vpack.c.bf16 %v2231_v40, %v2223_v39  ;;  %v2301_v39 = vld [vmem:[#allocation18 + $0xf28] sm:$0xff]  ;;  %v11076_v14 = vcombine.low %v3239_v16, %v3247_v17 }
 0x5e3   : > { %v2309_v40 = vld [vmem:[#allocation18 + $0xf68] sm:$0xff] }
 0x5e4   : > { %12862 = vmatpush1.bf16.msra.mxu1 %v12861_v51  ;;  %v2239_v51 = vld [vmem:[#allocation18 + $0xd38] sm:$0xff] }
 0x5e5   : > { %12990 = vmatpush1.bf16.msra.mxu0 %v12989_v48  ;;  %12864 = vmatprep.subr.bf16.mxu1 %v12863_v56  ;;  %v2247_v48 = vld [vmem:[#allocation18 + $0xd78] sm:$0xff]  ;;  %v12881_v56 = vpack.c.bf16 %v2228_v46, %v2220_v45  ;;  %v13025_v45 = vpack.c.bf16 %v2294_v38, %v2286_v36  ;;  %v12899_v46 = vpack.c.bf16 %v2309_v40, %v2301_v39  ;;  %v3287_v38 = vld [vmem:[%s14517_s18 + $0x208] sm:$0xff] }
 0x5e6   : > { %12992 = vmatprep.subr.bf16.mxu0 %v12991_v63  ;;  %v2244_v63 = vld [vmem:[#allocation18 + $0xd60] sm:$0xff]  ;;  %v13011_v49 = vpack.c.bf16 %v2247_v48, %v2239_v51  ;;  %v2317_v51 = vld [vmem:[#allocation18 + $0xfa8] sm:$0xff]  ;;  %v3286_v36 = vld [vmem:[%s14517_s18 + $0x200] sm:$0xff] }
 0x5e7   : > { %v2325_v48 = vld [vmem:[#allocation18 + $0xfe8] sm:$0xff]  ;;  %v3295_v39 = vld [vmem:[%s14517_s18 + $0x248] sm:$0xff] }
 0x5e8   : > { %12866 = vmatpush1.bf16.msra.mxu1 %v12865_v3  ;;  %v2255_v3 = vld [vmem:[#allocation18 + $0xdb8] sm:$0xff] }
 0x5e9   : > { %12994 = vmatpush1.bf16.msra.mxu0 %v12993_v10  ;;  %12868 = vmatprep.subr.bf16.mxu1 %v12867_v5  ;;  %v2263_v10 = vld [vmem:[#allocation18 + $0xdf8] sm:$0xff]  ;;  %v12885_v5 = vpack.c.bf16 %v2244_v63, %v2236_v62  ;;  %v13029_v62 = vpack.c.bf16 %v2310_v55, %v2302_v53  ;;  %v12903_v63 = vpack.c.bf16 %v2325_v48, %v2317_v51 }
 0x5ea   : > { %12996 = vmatprep.subr.bf16.mxu0 %v12995_v11  ;;  %v2260_v11 = vld [vmem:[#allocation18 + $0xde0] sm:$0xff]  ;;  %v13015_v13 = vpack.c.bf16 %v2263_v10, %v2255_v3  ;;  %v3222_v3 = vld [vmem:[%s14517_s18] sm:$0xff] }
 0x5eb   : > { %v3230_v10 = vld [vmem:[%s14517_s18 + $0x40] sm:$0xff] }
 0x5ec   : > { %12870 = vmatpush1.bf16.msra.mxu1 %v12869_v18  ;;  %v2271_v18 = vld [vmem:[#allocation18 + $0xe38] sm:$0xff] }
 0x5ed   : > { %12998 = vmatpush1.bf16.msra.mxu0 %v12997_v19  ;;  %12872 = vmatprep.subr.bf16.mxu1 %v12871_v21  ;;  %v2279_v19 = vld [vmem:[#allocation18 + $0xe78] sm:$0xff]  ;;  %v12889_v21 = vpack.c.bf16 %v2260_v11, %v2252_v9  ;;  %v13033_v9 = vpack.c.bf16 %v2326_v2, %v2318_v1  ;;  %v11059_v11 = vcombine.high %v3222_v3, %v3230_v10 }
 0x5ee   : > { %13000 = vmatprep.subr.bf16.mxu0 %v12999_v25  ;;  %v2276_v25 = vld [vmem:[#allocation18 + $0xe60] sm:$0xff]  ;;  %v13019_v27 = vpack.c.bf16 %v2279_v19, %v2271_v18  ;;  %v11058_v18 = vcombine.low %v3222_v3, %v3230_v10  ;;  %v14641_v51 = vld [vmem:[%s14517_s18 + $0x800] sm:$0xff] }
 0x5ef   : > { %v14644_v48 = vld [vmem:[%s14517_s18 + $0x840] sm:$0xff] }
 0x5f0   : > { %12874 = vmatpush1.bf16.msra.mxu1 %v12873_v30  ;;  %v2287_v30 = vld [vmem:[#allocation18 + $0xeb8] sm:$0xff]  ;;  %v11314_v1 = vcombine.low %v14641_v51, %v14644_v48 }
 0x5f1   : > { %13002 = vmatpush1.bf16.msra.mxu0 %v13001_v31  ;;  %12876 = vmatprep.subr.bf16.mxu1 %v12875_v32  ;;  %v2295_v31 = vld [vmem:[#allocation18 + $0xef8] sm:$0xff]  ;;  %v12893_v32 = vpack.c.bf16 %v2276_v25, %v2268_v24  ;;  %v3255_v25 = vld [vmem:[%s14517_s18 + $0x108] sm:$0xff] }
 0x5f2   : > { %13004 = vmatprep.subr.bf16.mxu0 %v13003_v35  ;;  %v2292_v35 = vld [vmem:[#allocation18 + $0xee0] sm:$0xff]  ;;  %v13023_v37 = vpack.c.bf16 %v2295_v31, %v2287_v30  ;;  %v3262_v24 = vld [vmem:[%s14517_s18 + $0x140] sm:$0xff]  ;;  %v11093_v29 = vcombine.high %v3255_v25, %v3263_v26 }
 0x5f3   : > { %v3270_v30 = vld [vmem:[%s14517_s18 + $0x180] sm:$0xff] }
 0x5f4   : > { %12878 = vmatpush1.bf16.msra.mxu1 %v12877_v41  ;;  %v2303_v41 = vld [vmem:[#allocation18 + $0xf38] sm:$0xff] }
 0x5f5   : > { %13006 = vmatpush1.bf16.msra.mxu0 %v13005_v43  ;;  %12880 = vmatprep.subr.bf16.mxu1 %v12879_v44  ;;  %v2311_v43 = vld [vmem:[#allocation18 + $0xf78] sm:$0xff]  ;;  %v12897_v44 = vpack.c.bf16 %v2292_v35, %v2284_v20 }
 0x5f6   : > { %13008 = vmatprep.subr.bf16.mxu0 %v13007_v47  ;;  %v2308_v47 = vld [vmem:[#allocation18 + $0xf60] sm:$0xff]  ;;  %v13027_v54 = vpack.c.bf16 %v2311_v43, %v2303_v41  ;;  %v3278_v31 = vld [vmem:[%s14517_s18 + $0x1c0] sm:$0xff] }
 0x5f7   : > { %v11107_v20 = vcombine.high %v3270_v30, %v3278_v31  ;;  %v11106_v40 = vcombine.low %v3270_v30, %v3278_v31 }
 0x5f8   : > { %12882 = vmatpush1.bf16.msra.mxu1 %v12881_v56  ;;  %v2319_v56 = vld [vmem:[#allocation18 + $0xfb8] sm:$0xff] }
 0x5f9   : > { %13010 = vmatpush1.bf16.msra.mxu0 %v13009_v57  ;;  %12884 = vmatprep.subr.bf16.mxu1 %v12883_v60  ;;  %v2327_v57 = vld [vmem:[#allocation18 + $0xff8] sm:$0xff]  ;;  %v12901_v60 = vpack.c.bf16 %v2308_v47, %v2300_v52  ;;  %v3303_v52 = vld [vmem:[%s14517_s18 + $0x288] sm:$0xff] }
 0x5fa   : > { %13012 = vmatprep.subr.bf16.mxu0 %v13011_v49  ;;  %v2324_v49 = vld [vmem:[#allocation18 + $0xfe0] sm:$0xff]  ;;  %v13031_v50 = vpack.c.bf16 %v2327_v57, %v2319_v56 }
 0x5fb   : > { %v3311_v47 = vld [vmem:[%s14517_s18 + $0x2c8] sm:$0xff] }
 0x5fc   : > { %12886 = vmatpush1.bf16.msra.mxu1 %v12885_v5  ;;  %v3223_v5 = vld [vmem:[%s14517_s18 + $0x8] sm:$0xff]  ;;  %v11141_v57 = vcombine.high %v3303_v52, %v3311_v47  ;;  %v11140_v3 = vcombine.low %v3303_v52, %v3311_v47  ;;  %v3414_v47 = vld [vmem:[%s14517_s18 + $0x600] sm:$0xff] }
 0x5fd   : > { %13014 = vmatpush1.bf16.msra.mxu0 %v13013_v7  ;;  %12888 = vmatprep.subr.bf16.mxu1 %v12887_v8  ;;  %v3231_v7 = vld [vmem:[%s14517_s18 + $0x48] sm:$0xff]  ;;  %v12905_v8 = vpack.c.bf16 %v2324_v49, %v2316_v0 }
 0x5fe   : > { %13016 = vmatprep.subr.bf16.mxu0 %v13015_v13  ;;  %v11061_v12 = vcombine.high %v3223_v5, %v3231_v7  ;;  %v3238_v13 = vld [vmem:[%s14517_s18 + $0x80] sm:$0xff]  ;;  %v11060_v19 = vcombine.low %v3223_v5, %v3231_v7  ;;  %v14647_v56 = vld [vmem:[%s14517_s18 + $0x808] sm:$0xff] }
 0x5ff   : > { %v3319_v0 = vld [vmem:[%s14517_s18 + $0x308] sm:$0xff]  ;;  %v3334_v7 = vld [vmem:[%s14517_s18 + $0x380] sm:$0xff] }
 0x600   : > { %12890 = vmatpush1.bf16.msra.mxu1 %v12889_v21  ;;  %v11075_v21 = vcombine.high %v3238_v13, %v3246_v15  ;;  %v3327_v49 = vld [vmem:[%s14517_s18 + $0x348] sm:$0xff] }
 0x601   : > { %13018 = vmatpush1.bf16.msra.mxu0 %v13017_v22  ;;  %12892 = vmatprep.subr.bf16.mxu1 %v12891_v23  ;;  %v11077_v22 = vcombine.high %v3239_v16, %v3247_v17  ;;  %v3254_v23 = vld [vmem:[%s14517_s18 + $0x100] sm:$0xff]  ;;  %v11157_v5 = vcombine.high %v3319_v0, %v3327_v49 }
 0x602   : > { %13020 = vmatprep.subr.bf16.mxu0 %v13019_v27  ;;  %v11074_v27 = vcombine.low %v3238_v13, %v3246_v15  ;;  %v11091_v28 = vcombine.high %v3254_v23, %v3262_v24  ;;  %v11156_v13 = vcombine.low %v3319_v0, %v3327_v49  ;;  %v3350_v17 = vld [vmem:[%s14517_s18 + $0x400] sm:$0xff] }
 0x603   : > { %v3430_v49 = vld [vmem:[%s14517_s18 + $0x680] sm:$0xff] }
 0x604   : > { %12894 = vmatpush1.bf16.msra.mxu1 %v12893_v32  ;;  %v3271_v32 = vld [vmem:[%s14517_s18 + $0x188] sm:$0xff] }
 0x605   : > { %13022 = vmatpush1.bf16.msra.mxu0 %v13021_v33  ;;  %12896 = vmatprep.subr.bf16.mxu1 %v12895_v34  ;;  %v3279_v33 = vld [vmem:[%s14517_s18 + $0x1c8] sm:$0xff]  ;;  %v11090_v34 = vcombine.low %v3254_v23, %v3262_v24 }
 0x606   : > { %13024 = vmatprep.subr.bf16.mxu0 %v13023_v37  ;;  %v11109_v35 = vcombine.high %v3271_v32, %v3279_v33  ;;  %v3294_v37 = vld [vmem:[%s14517_s18 + $0x240] sm:$0xff]  ;;  %v11108_v41 = vcombine.low %v3271_v32, %v3279_v33 }
 0x607   : > { %v11123_v43 = vcombine.high %v3286_v36, %v3294_v37  ;;  %v11122_v53 = vcombine.low %v3286_v36, %v3294_v37  ;;  %v3382_v33 = vld [vmem:[%s14517_s18 + $0x500] sm:$0xff] }
 0x608   : > { %12898 = vmatpush1.bf16.msra.mxu1 %v12897_v44  ;;  %v11125_v44 = vcombine.high %v3287_v38, %v3295_v39 }
 0x609   : > { %13026 = vmatpush1.bf16.msra.mxu0 %v13025_v45  ;;  %12900 = vmatprep.subr.bf16.mxu1 %v12899_v46  ;;  %v3302_v45 = vld [vmem:[%s14517_s18 + $0x280] sm:$0xff] }
 0x60a   : > { %13028 = vmatprep.subr.bf16.mxu0 %v13027_v54  ;;  %v3310_v46 = vld [vmem:[%s14517_s18 + $0x2c0] sm:$0xff]  ;;  %v11124_v54 = vcombine.low %v3287_v38, %v3295_v39 }
 0x60b   : > { %v11139_v55 = vcombine.high %v3302_v45, %v3310_v46  ;;  %v11138_v2 = vcombine.low %v3302_v45, %v3310_v46  ;;  %v3398_v39 = vld [vmem:[%s14517_s18 + $0x580] sm:$0xff] }
 0x60c   : > { %12902 = vmatpush1.bf16.msra.mxu1 %v12901_v60  ;;  %v3318_v60 = vld [vmem:[%s14517_s18 + $0x300] sm:$0xff] }
 0x60d   : > { %13030 = vmatpush1.bf16.msra.mxu0 %v13029_v62  ;;  %12904 = vmatprep.subr.bf16.mxu1 %v12903_v63  ;;  %v3326_v62 = vld [vmem:[%s14517_s18 + $0x340] sm:$0xff]  ;;  %v14652_v63 = vld [vmem:[%s14517_s18 + $0x848] sm:$0xff] }
 0x60e   : > { %13032 = vmatprep.subr.bf16.mxu0 %v13031_v50  ;;  %v11316_v50 = vcombine.low %v14647_v56, %v14652_v63  ;;  %v11155_v10 = vcombine.high %v3318_v60, %v3326_v62 }
 0x610   : > { %12906 = vmatpush1.bf16.msra.mxu1 %v12905_v8  ;;  %v3342_v8 = vld [vmem:[%s14517_s18 + $0x3c0] sm:$0xff] }
 0x611   : > { %13034 = vmatpush1.bf16.msra.mxu0 %v13033_v9  ;;  %9450 = vmatprep.subr.bf16.mxu1 %v11059_v11  ;;  %v3335_v9 = vld [vmem:[%s14517_s18 + $0x388] sm:$0xff]  ;;  %v11171_v15 = vcombine.high %v3334_v7, %v3342_v8 }
 0x612   : > { %9614 = vmatprep.subr.bf16.mxu0 %v11061_v12  ;;  %v3343_v11 = vld [vmem:[%s14517_s18 + $0x3c8] sm:$0xff]  ;;  %v11154_v12 = vcombine.low %v3318_v60, %v3326_v62 }
 0x613   : > { %2790 = vmatmul.mubr.f32.vlgmr.msra.gmra.mrb[8].mxu1 %v14604_v42  ;;  %v11173_v16 = vcombine.high %v3335_v9, %v3343_v11  ;;  %v11172_v23 = vcombine.low %v3335_v9, %v3343_v11  ;;  %v3446_v11 = vld [vmem:[%s14517_s18 + $0x700] sm:$0xff] }
 0x614   : > { %2932 = vmatmul.mubr.f32.vlgmr.msra.gmra.mrb[10].mxu0 %v14604_v42  ;;  %9451 = vmatpush1.bf16.msra.mxu1 %v11058_v18  ;;  %v11092_v42 = vcombine.low %v3255_v25, %v3263_v26  ;;  %v3358_v18 = vld [vmem:[%s14517_s18 + $0x440] sm:$0xff] }
 0x615   : > { %9615 = vmatpush1.bf16.msra.mxu0 %v11060_v19  ;;  %9452 = vmatprep.subr.bf16.mxu1 %v11075_v21  ;;  %v3351_v19 = vld [vmem:[%s14517_s18 + $0x408] sm:$0xff]  ;;  %v11187_v24 = vcombine.high %v3350_v17, %v3358_v18  ;;  %v3366_v26 = vld [vmem:[%s14517_s18 + $0x480] sm:$0xff] }
 0x616   : > { %9616 = vmatprep.subr.bf16.mxu0 %v11077_v22  ;;  %v3359_v21 = vld [vmem:[%s14517_s18 + $0x448] sm:$0xff]  ;;  %v11170_v22 = vcombine.low %v3334_v7, %v3342_v8 }
 0x617   : > { %v11189_v25 = vcombine.high %v3351_v19, %v3359_v21  ;;  %v11188_v30 = vcombine.low %v3351_v19, %v3359_v21  ;;  %v3462_v21 = vld [vmem:[%s14517_s18 + $0x780] sm:$0xff] }
 0x618   : > { %9453 = vmatpush1.bf16.msra.mxu1 %v11074_v27  ;;  %v3374_v27 = vld [vmem:[%s14517_s18 + $0x4c0] sm:$0xff] }
 0x619   : > { %9617 = vmatpush1.bf16.msra.mxu0 %v11076_v14  ;;  %9454 = vmatprep.subr.bf16.mxu1 %v11091_v28  ;;  %v3367_v14 = vld [vmem:[%s14517_s18 + $0x488] sm:$0xff]  ;;  %v11203_v31 = vcombine.high %v3366_v26, %v3374_v27 }
 0x61a   : > { %9618 = vmatprep.subr.bf16.mxu0 %v11093_v29  ;;  %v3375_v28 = vld [vmem:[%s14517_s18 + $0x4c8] sm:$0xff]  ;;  %v11186_v29 = vcombine.low %v3350_v17, %v3358_v18 }
 0x61b   : > { %v11205_v32 = vcombine.high %v3367_v14, %v3375_v28  ;;  %v11204_v36 = vcombine.low %v3367_v14, %v3375_v28 }
 0x61c   : > { %9455 = vmatpush1.bf16.msra.mxu1 %v11090_v34  ;;  %v3390_v34 = vld [vmem:[%s14517_s18 + $0x540] sm:$0xff] }
 0x61d   : > { %9619 = vmatpush1.bf16.msra.mxu0 %v11092_v42  ;;  %9456 = vmatprep.subr.bf16.mxu1 %v11107_v20  ;;  %v3383_v42 = vld [vmem:[%s14517_s18 + $0x508] sm:$0xff]  ;;  %v11219_v37 = vcombine.high %v3382_v33, %v3390_v34 }
 0x61e   : > { %9620 = vmatprep.subr.bf16.mxu0 %v11109_v35  ;;  %v3391_v20 = vld [vmem:[%s14517_s18 + $0x548] sm:$0xff]  ;;  %v11202_v35 = vcombine.low %v3366_v26, %v3374_v27 }
 0x61f   : > { %v11221_v38 = vcombine.high %v3383_v42, %v3391_v20  ;;  %v11220_v45 = vcombine.low %v3383_v42, %v3391_v20 }
 0x620   : > { %9457 = vmatpush1.bf16.msra.mxu1 %v11106_v40  ;;  %v3406_v40 = vld [vmem:[%s14517_s18 + $0x5c0] sm:$0xff] }
 0x621   : > { %9621 = vmatpush1.bf16.msra.mxu0 %v11108_v41  ;;  %9458 = vmatprep.subr.bf16.mxu1 %v11123_v43  ;;  %v3399_v41 = vld [vmem:[%s14517_s18 + $0x588] sm:$0xff]  ;;  %v11235_v46 = vcombine.high %v3398_v39, %v3406_v40 }
 0x622   : > { %9622 = vmatprep.subr.bf16.mxu0 %v11125_v44  ;;  %v3407_v43 = vld [vmem:[%s14517_s18 + $0x5c8] sm:$0xff]  ;;  %v11218_v44 = vcombine.low %v3382_v33, %v3390_v34 }
 0x623   : > { %v11237_v52 = vcombine.high %v3399_v41, %v3407_v43  ;;  %v11236_v60 = vcombine.low %v3399_v41, %v3407_v43 }
 0x624   : > { %9459 = vmatpush1.bf16.msra.mxu1 %v11122_v53  ;;  %v3422_v53 = vld [vmem:[%s14517_s18 + $0x640] sm:$0xff] }
 0x625   : > { %9623 = vmatpush1.bf16.msra.mxu0 %v11124_v54  ;;  %9460 = vmatprep.subr.bf16.mxu1 %v11139_v55  ;;  %v3415_v54 = vld [vmem:[%s14517_s18 + $0x608] sm:$0xff]  ;;  %v11251_v62 = vcombine.high %v3414_v47, %v3422_v53 }
 0x626   : > { %9624 = vmatprep.subr.bf16.mxu0 %v11141_v57  ;;  %v3423_v55 = vld [vmem:[%s14517_s18 + $0x648] sm:$0xff]  ;;  %v11234_v57 = vcombine.low %v3398_v39, %v3406_v40 }
 0x627   : > { %v11253_v0 = vcombine.high %v3415_v54, %v3423_v55  ;;  %v11252_v7 = vcombine.low %v3415_v54, %v3423_v55 }
 0x628   : > { %9461 = vmatpush1.bf16.msra.mxu1 %v11138_v2  ;;  %v3438_v2 = vld [vmem:[%s14517_s18 + $0x6c0] sm:$0xff] }
 0x629   : > { %9625 = vmatpush1.bf16.msra.mxu0 %v11140_v3  ;;  %9462 = vmatprep.subr.bf16.mxu1 %v11155_v10  ;;  %v3431_v3 = vld [vmem:[%s14517_s18 + $0x688] sm:$0xff]  ;;  %v11267_v8 = vcombine.high %v3430_v49, %v3438_v2 }
 0x62a   : > { %9626 = vmatprep.subr.bf16.mxu0 %v11157_v5  ;;  %v3439_v10 = vld [vmem:[%s14517_s18 + $0x6c8] sm:$0xff]  ;;  %v11250_v5 = vcombine.low %v3414_v47, %v3422_v53 }
 0x62b   : > { %v11269_v9 = vcombine.high %v3431_v3, %v3439_v10  ;;  %v11268_v17 = vcombine.low %v3431_v3, %v3439_v10 }
 0x62c   : > { %9463 = vmatpush1.bf16.msra.mxu1 %v11154_v12  ;;  %v3454_v12 = vld [vmem:[%s14517_s18 + $0x740] sm:$0xff] }
 0x62d   : > { %9627 = vmatpush1.bf16.msra.mxu0 %v11156_v13  ;;  %9464 = vmatprep.subr.bf16.mxu1 %v11171_v15  ;;  %v3447_v13 = vld [vmem:[%s14517_s18 + $0x708] sm:$0xff]  ;;  %v11283_v18 = vcombine.high %v3446_v11, %v3454_v12 }
 0x62e   : > { %9628 = vmatprep.subr.bf16.mxu0 %v11173_v16  ;;  %v3455_v15 = vld [vmem:[%s14517_s18 + $0x748] sm:$0xff]  ;;  %v11266_v16 = vcombine.low %v3430_v49, %v3438_v2 }
 0x62f   : > { %v11285_v19 = vcombine.high %v3447_v13, %v3455_v15  ;;  %v11284_v26 = vcombine.low %v3447_v13, %v3455_v15 }
 0x630   : > { %9465 = vmatpush1.bf16.msra.mxu1 %v11170_v22  ;;  %v3470_v22 = vld [vmem:[%s14517_s18 + $0x7c0] sm:$0xff] }
 0x631   : > { %9629 = vmatpush1.bf16.msra.mxu0 %v11172_v23  ;;  %9466 = vmatprep.subr.bf16.mxu1 %v11187_v24  ;;  %v3463_v23 = vld [vmem:[%s14517_s18 + $0x788] sm:$0xff]  ;;  %v11299_v27 = vcombine.high %v3462_v21, %v3470_v22  ;;  %v11298_v28 = vcombine.low %v3462_v21, %v3470_v22 }
 0x632   : > { %9630 = vmatprep.subr.bf16.mxu0 %v11189_v25  ;;  %v3471_v24 = vld [vmem:[%s14517_s18 + $0x7c8] sm:$0xff]  ;;  %v11282_v25 = vcombine.low %v3446_v11, %v3454_v12 }
 0x633   : > { %v11301_v14 = vcombine.high %v3463_v23, %v3471_v24 }
 0x634   : > { %9467 = vmatpush1.bf16.msra.mxu1 %v11186_v29  ;;  %v11300_v29 = vcombine.low %v3463_v23, %v3471_v24 }
 0x635   : > { %9631 = vmatpush1.bf16.msra.mxu0 %v11188_v30  ;;  %9468 = vmatprep.subr.bf16.mxu1 %v11203_v31  ;;  %v11315_v30 = vcombine.high %v14641_v51, %v14644_v48  ;;  %v11317_v31 = vcombine.high %v14647_v56, %v14652_v63  ;;  %v3534_v51 = vld [vmem:[%s14517_s18 + $0x9c0] sm:$0xff]  ;;  %v3527_v48 = vld [vmem:[%s14517_s18 + $0x988] sm:$0xff] }
 0x636   : > { %9632 = vmatprep.subr.bf16.mxu0 %v11205_v32  ;;  %v14700_v32 = vld [vmem:[#allocation19] sm:$0xff] }
 0x637   : > { %v2333_v33 = vrot.slane %v14700_v32, %v14557_v59  ;;  %v2337_v34 = vrot.slane %v14700_v32, %v14560_v61  ;;  %v2345_v42 = vrot.slane %v14700_v32, %v14572_v6  ;;  %v3535_v56 = vld [vmem:[%s14517_s18 + $0x9c8] sm:$0xff] }
 0x638   : > { %9469 = vmatpush1.bf16.msra.mxu1 %v11202_v35 }
 0x639   : > { %9633 = vmatpush1.bf16.msra.mxu0 %v11204_v36  ;;  %9470 = vmatprep.subr.bf16.mxu1 %v11219_v37 }
 0x63a   : > { %9634 = vmatprep.subr.bf16.mxu0 %v11221_v38 }
 0x63c   : > { %9471 = vmatpush1.bf16.msra.mxu1 %v11218_v44 }
 0x63d   : > { %9635 = vmatpush1.bf16.msra.mxu0 %v11220_v45  ;;  %9472 = vmatprep.subr.bf16.mxu1 %v11235_v46 }
 0x63e   : > { %9636 = vmatprep.subr.bf16.mxu0 %v11237_v52 }
 0x640   : > { %9473 = vmatpush1.bf16.msra.mxu1 %v11234_v57 }
 0x641   : > { %9637 = vmatpush1.bf16.msra.mxu0 %v11236_v60  ;;  %9474 = vmatprep.subr.bf16.mxu1 %v11251_v62 }
 0x642   : > { %9638 = vmatprep.subr.bf16.mxu0 %v11253_v0 }
 0x644   : > { %9475 = vmatpush1.bf16.msra.mxu1 %v11250_v5 }
 0x645   : > { %9639 = vmatpush1.bf16.msra.mxu0 %v11252_v7  ;;  %9476 = vmatprep.subr.bf16.mxu1 %v11267_v8  ;;  %v2341_v7 = vrot.slane %v14700_v32, %v14569_v4 }
 0x646   : > { %9640 = vmatprep.subr.bf16.mxu0 %v11269_v9 }
 0x648   : > { %9477 = vmatpush1.bf16.msra.mxu1 %v11266_v16 }
 0x649   : > { %9641 = vmatpush1.bf16.msra.mxu0 %v11268_v17  ;;  %9478 = vmatprep.subr.bf16.mxu1 %v11283_v18 }
 0x64a   : > { %9642 = vmatprep.subr.bf16.mxu0 %v11285_v19 }
 0x64c   : > { %9479 = vmatpush1.bf16.msra.mxu1 %v11282_v25 }
 0x64d   : > { %9643 = vmatpush1.bf16.msra.mxu0 %v11284_v26  ;;  %9480 = vmatprep.subr.bf16.mxu1 %v11299_v27 }
 0x64e   : > { %9644 = vmatprep.subr.bf16.mxu0 %v11301_v14 }
 0x650   : > { %9481 = vmatpush1.bf16.msra.mxu1 %v11298_v28 }
 0x651   : > { %9645 = vmatpush1.bf16.msra.mxu0 %v11300_v29  ;;  %9491 = vmatprep.subr.bf16.mxu1 %v11315_v30 }
 0x652   : > { %9655 = vmatprep.subr.bf16.mxu0 %v11317_v31 }
 0x666   : > { %v2507_v20 = vpop.f32.mrb[6].mxu1  ;;  %v2649_v35 = vpop.f32.mrb[8].mxu0 }
 0x667   : > { %v13035_v36 = vadd.f32 %v2507_v20, %v2333_v33  ;;  %v2509_v37 = vpop.f32.mrb[7].mxu1  ;;  %v2651_v38 = vpop.f32.mrb[9].mxu0  ;;  %v13037_v16 = vadd.f32 %v2649_v35, %v2341_v7 }
 0x668   : > { %v13036_v39 = vadd.f32 %v2509_v37, %v2337_v34  ;;  %v13038_v40 = vadd.f32 %v2651_v38, %v2345_v42 }
 0x669   : > { %v2940_v41 = vrot.slane %v13035_v36, 4  ;;  %v2952_v24 = vrot.slane %v13037_v16, 4 }
 0x66a   : > { %v2946_v43 = vrot.slane %v13036_v39, 4  ;;  %v2958_v44 = vrot.slane %v13038_v40, 4 }
 0x66b   : > { %v2941_v45 = vadd.f32 %v13035_v36, %v2940_v41  ;;  %v2953_v30 = vadd.f32 %v13037_v16, %v2952_v24 }
 0x66c   : > { %v2947_v46 = vadd.f32 %v13036_v39, %v2946_v43  ;;  %v2959_v52 = vadd.f32 %v13038_v40, %v2958_v44 }
 0x66d   : > { %v2942_v47 = vrot.slane %v2941_v45, 2 }
 0x66e   : > { %v2948_v53 = vrot.slane %v2947_v46, 2  ;;  %v2960_v54 = vrot.slane %v2959_v52, 2 }
 0x66f   : > { %v2943_v55 = vadd.f32 %v2942_v47, %v2941_v45  ;;  %v14710_v47 = vld [vmem:[#allocation21] sm:$0xff] }
 0x670   : > { %v2949_v57 = vadd.f32 %v2948_v53, %v2947_v46  ;;  %v2961_v60 = vadd.f32 %v2960_v54, %v2959_v52  ;;  %v14712_v54 = vld [vmem:[#allocation22] sm:$0xff] }
 0x671   : > { %v2944_v62 = vrot.slane %v2943_v55, 1 }
 0x672   : > { %v2950_v0 = vrot.slane %v2949_v57, 1  ;;  %v2962_v49 = vrot.slane %v2961_v60, 1 }
 0x673   : > { %v2945_v2 = vadd.f32 %v2944_v62, %v2943_v55  ;;  %v3096_v55 = vrot.slane %v14710_v47, %v14557_v59  ;;  %v3145_v62 = vrot.slane %v14712_v54, %v14557_v59 }
 0x674   : > { %v2951_v3 = vadd.f32 %v2950_v0, %v2949_v57  ;;  %v2963_v10 = vadd.f32 %v2962_v49, %v2961_v60  ;;  %v3100_v49 = vrot.slane %v14710_v47, %v14560_v61 }
 0x675   : > { %v2988_v5 = vmul.f32 0.125, %v2945_v2 }
 0x676   : > { %v2989_v8 = vmul.f32 0.125, %v2951_v3  ;;  %v2991_v9 = vmul.f32 0.125, %v2963_v10  ;;  %v3108_v3 = vrot.slane %v14710_v47, %v14572_v6 }
 0x677   : > { %v2996_v11 = vsub.f32 %v13035_v36, %v2988_v5  ;;  %v2954_v36 = vrot.slane %v2953_v30, 2 }
 0x678   : > { %v2997_v12 = vsub.f32 %v13036_v39, %v2989_v8  ;;  %v2999_v13 = vsub.f32 %v13038_v40, %v2991_v9  ;;  %v3149_v8 = vrot.slane %v14712_v54, %v14560_v61 }
 0x679   : > { %v3004_v15 = vmul.f32 %v2996_v11, %v2996_v11  ;;  %v2955_v44 = vadd.f32 %v2954_v36, %v2953_v30  ;;  %v3511_v36 = vld [vmem:[%s14517_s18 + $0x908] sm:$0xff] }
 0x67a   : > { %v3005_v17 = vmul.f32 %v2997_v12, %v2997_v12  ;;  %v3007_v18 = vmul.f32 %v2999_v13, %v2999_v13 }
 0x67b   : > { %v3012_v19 = vrot.slane %v3004_v15, 4  ;;  %v2956_v52 = vrot.slane %v2955_v44, 1 }
 0x67c   : > { %v3018_v21 = vrot.slane %v3005_v17, 4  ;;  %v3030_v22 = vrot.slane %v3007_v18, 4 }
 0x67d   : > { %v3013_v23 = vadd.f32 %v3012_v19, %v3004_v15  ;;  %v2957_v53 = vadd.f32 %v2956_v52, %v2955_v44  ;;  %v11365_v52 = vcombine.high %v3527_v48, %v3535_v56 }
 0x67e   : > { %v3019_v25 = vadd.f32 %v3018_v21, %v3005_v17  ;;  %v3031_v26 = vadd.f32 %v3030_v22, %v3007_v18 }
 0x67f   : > { %v3014_v27 = vrot.slane %v3013_v23, 2  ;;  %v2990_v0 = vmul.f32 0.125, %v2957_v53  ;;  %v3542_v53 = vld [vmem:[%s14517_s18 + $0xa00] sm:$0xff] }
 0x680   : > { %v3020_v14 = vrot.slane %v3019_v25, 2  ;;  %v3032_v28 = vrot.slane %v3031_v26, 2 }
 0x681   : > { %v3015_v29 = vadd.f32 %v3014_v27, %v3013_v23  ;;  %v14726_v17 = vsub.f32 %v13037_v16, %v2990_v0  ;;  %v3494_v16 = vld [vmem:[%s14517_s18 + $0x880] sm:$0xff]  ;;  %v11364_v0 = vcombine.low %v3527_v48, %v3535_v56 }
 0x682   : > { %v3021_v31 = vadd.f32 %v3020_v14, %v3019_v25  ;;  %v3033_v33 = vadd.f32 %v3032_v28, %v3031_v26  ;;  %v3502_v27 = vld [vmem:[%s14517_s18 + $0x8c0] sm:$0xff]  ;;  %v3495_v14 = vld [vmem:[%s14517_s18 + $0x888] sm:$0xff] }
 0x683   : > { %v3016_v34 = vrot.slane %v3015_v29, 1  ;;  %v3503_v28 = vld [vmem:[%s14517_s18 + $0x8c8] sm:$0xff]  ;;  %v3622_v48 = vld [vmem:[%s14517_s18 + $0xc80] sm:$0xff] }
 0x684   : > { %v3022_v42 = vrot.slane %v3021_v31, 1  ;;  %v3034_v20 = vrot.slane %v3033_v33, 1  ;;  %v3630_v56 = vld [vmem:[%s14517_s18 + $0xcc0] sm:$0xff] }
 0x685   : > { %v3017_v35 = vadd.f32 %v3016_v34, %v3015_v29  ;;  %v3510_v34 = vld [vmem:[%s14517_s18 + $0x900] sm:$0xff] }
 0x686   : > { %v3023_v37 = vadd.f32 %v3022_v42, %v3021_v31  ;;  %v3035_v38 = vadd.f32 %v3034_v20, %v3033_v33  ;;  %v11331_v42 = vcombine.high %v3494_v16, %v3502_v27  ;;  %v11333_v20 = vcombine.high %v3495_v14, %v3503_v28 }
 0x687   : > { %v3060_v39 = vmul.f32 0.125, %v3017_v35  ;;  %v3518_v35 = vld [vmem:[%s14517_s18 + $0x940] sm:$0xff] }
 0x688   : > { %v3061_v40 = vmul.f32 0.125, %v3023_v37  ;;  %v3063_v41 = vmul.f32 0.125, %v3035_v38  ;;  %v3519_v37 = vld [vmem:[%s14517_s18 + $0x948] sm:$0xff]  ;;  %v11346_v63 = vcombine.low %v3510_v34, %v3518_v35 }
 0x689   : > { %v3068_v43 = vadd.f32 0.8, %v3060_v39  ;;  %v11330_v39 = vcombine.low %v3494_v16, %v3502_v27  ;;  %v11349_v44 = vcombine.high %v3511_v36, %v3519_v37  ;;  %v3590_v27 = vld [vmem:[%s14517_s18 + $0xb80] sm:$0xff] }
 0x68a   : > { %v3069_v45 = vadd.f32 0.8, %v3061_v40  ;;  %v3071_v46 = vadd.f32 0.8, %v3063_v41  ;;  %v11332_v40 = vcombine.low %v3495_v14, %v3503_v28  ;;  %v3598_v14 = vld [vmem:[%s14517_s18 + $0xbc0] sm:$0xff]  ;;  %v3591_v28 = vld [vmem:[%s14517_s18 + $0xb88] sm:$0xff] }
 0x68b   : > { %13371 = vrsqrt.f32 %v3068_v43  ;;  %v11347_v43 = vcombine.high %v3510_v34, %v3518_v35 }
 0x68c   : > { %13373 = vrsqrt.f32 %v3069_v45  ;;  %v3526_v45 = vld [vmem:[%s14517_s18 + $0x980] sm:$0xff] }
 0x68d   : > { %13375 = vrsqrt.f32 %v3071_v46  ;;  %v11363_v46 = vcombine.high %v3526_v45, %v3534_v51 }
 0x695   : > { %v13372_v57 = vpop.eup %13371 }
 0x696   : > { %v3084_v60 = vmul.f32 %v13372_v57, %v2996_v11  ;;  %v13374_v2 = vpop.eup %13373  ;;  %v3157_v11 = vrot.slane %v14712_v54, %v14572_v6  ;;  %v3543_v57 = vld [vmem:[%s14517_s18 + $0xa08] sm:$0xff] }
 0x697   : > { %v13376_v10 = vpop.eup %13375  ;;  %v3085_v7 = vmul.f32 %v13374_v2, %v2997_v12 }
 0x698   : > { %v3133_v5 = vmul.f32 %v3096_v55, %v3084_v60  ;;  %v3087_v9 = vmul.f32 %v13376_v10, %v2999_v13  ;;  %v3006_v13 = vmul.f32 %v14726_v17, %v14726_v17  ;;  %v3550_v55 = vld [vmem:[%s14517_s18 + $0xa40] sm:$0xff]  ;;  %v3551_v60 = vld [vmem:[%s14517_s18 + $0xa48] sm:$0xff] }
 0x699   : > { %v3134_v18 = vmul.f32 %v3100_v49, %v3085_v7  ;;  %v11379_v2 = vcombine.high %v3542_v53, %v3550_v55  ;;  %v3558_v10 = vld [vmem:[%s14517_s18 + $0xa80] sm:$0xff]  ;;  %v3559_v7 = vld [vmem:[%s14517_s18 + $0xa88] sm:$0xff] }
 0x69a   : > { %v3182_v15 = vadd.f32 %v3145_v62, %v3133_v5  ;;  %v3136_v19 = vmul.f32 %v3108_v3, %v3087_v9  ;;  %v3024_v33 = vrot.slane %v3006_v13, 4  ;;  %v11362_v62 = vcombine.low %v3526_v45, %v3534_v51  ;;  %v3566_v5 = vld [vmem:[%s14517_s18 + $0xac0] sm:$0xff] }
 0x69b   : > { %v3183_v22 = vadd.f32 %v3149_v8, %v3134_v18  ;;  %v11381_v3 = vcombine.high %v3543_v57, %v3551_v60  ;;  %v3567_v8 = vld [vmem:[%s14517_s18 + $0xac8] sm:$0xff]  ;;  %v11378_v9 = vcombine.low %v3542_v53, %v3550_v55  ;;  %v11395_v18 = vcombine.high %v3558_v10, %v3566_v5  ;;  %v3638_v55 = vld [vmem:[%s14517_s18 + $0xd00] sm:$0xff] }
 0x69c   : > { %vm3190_vm8 = vcmp.gt.f32.partialorder %v3182_v15, 0.0  ;;  %v3198_v21 = vmul.f32 0.2, %v3182_v15  ;;  %v3185_v12 = vadd.f32 %v3157_v11, %v3136_v19  ;;  %v3025_v41 = vadd.f32 %v3024_v33, %v3006_v13  ;;  %v3583_v13 = vld [vmem:[%s14517_s18 + $0xb48] sm:$0xff] }
 0x69d   : > { %vm3191_vm9 = vcmp.gt.f32.partialorder %v3183_v22, 0.0  ;;  %v3199_v23 = vmul.f32 0.2, %v3183_v22  ;;  %v11380_v11 = vcombine.low %v3543_v57, %v3551_v60  ;;  %v11397_v19 = vcombine.high %v3559_v7, %v3567_v8  ;;  %v3646_v57 = vld [vmem:[%s14517_s18 + $0xd40] sm:$0xff]  ;;  %v3639_v60 = vld [vmem:[%s14517_s18 + $0xd08] sm:$0xff] }
 0x69e   : > { %v3206_v24 = vsel %vm3190_vm8, %v3182_v15, %v3198_v21  ;;  %vm3193_vm10 = vcmp.gt.f32.partialorder %v3185_v12, 0.0  ;;  %v3201_v25 = vmul.f32 0.2, %v3185_v12  ;;  %v3574_v21 = vld [vmem:[%s14517_s18 + $0xb00] sm:$0xff] }
 0x69f   : > { %v3207_v26 = vsel %vm3191_vm9, %v3183_v22, %v3199_v23  ;;  %v14736_v31 = vpack.c.bf16 %v3206_v24, %v3206_v24  ;;  %v3582_v22 = vld [vmem:[%s14517_s18 + $0xb40] sm:$0xff]  ;;  %v11394_v23 = vcombine.low %v3558_v10, %v3566_v5  ;;  %v11396_v24 = vcombine.low %v3559_v7, %v3567_v8  ;;  %v3655_v7 = vld [vmem:[%s14517_s18 + $0xd88] sm:$0xff] }
 0x6a0   : > { %v14734_v29 = vpack.c.bf16 %v3207_v26, %v3207_v26  ;;  %v3209_v30 = vsel %vm3193_vm10, %v3185_v12, %v3201_v25  ;;  %v3575_v12 = vld [vmem:[%s14517_s18 + $0xb08] sm:$0xff]  ;;  %v11411_v16 = vcombine.high %v3574_v21, %v3582_v22  ;;  %v11410_v33 = vcombine.low %v3574_v21, %v3582_v22  ;;  %v3654_v10 = vld [vmem:[%s14517_s18 + $0xd80] sm:$0xff] }
 0x6a1   : > { %v14744_v38 = vpack.c.bf16 %v3209_v30, %v3209_v30  ;;  %v11413_v26 = vcombine.high %v3575_v12, %v3583_v13  ;;  %v3599_v30 = vld [vmem:[%s14517_s18 + $0xbc8] sm:$0xff]  ;;  %v11412_v34 = vcombine.low %v3575_v12, %v3583_v13  ;;  %v3662_v5 = vld [vmem:[%s14517_s18 + $0xdc0] sm:$0xff] }
 0x6a2   : > { %9482 = vmatprep.mubr.bf16.mxu1 %v14734_v29  ;;  %9646 = vmatprep.mubr.bf16.mxu0 %v14734_v29  ;;  %v11429_v35 = vcombine.high %v3591_v28, %v3599_v30  ;;  %v3663_v8 = vld [vmem:[%s14517_s18 + $0xdc8] sm:$0xff]  ;;  %v3678_v21 = vld [vmem:[%s14517_s18 + $0xe40] sm:$0xff] }
 0x6a3   : > { %9483 = vmatmul.mubr.bf16.vlgmr.msra.gmra.mrb[12].mxu1 %v14736_v31  ;;  %9647 = vmatmul.mubr.bf16.vlgmr.msra.gmra.mrb[12].mxu0 %v14736_v31  ;;  %v3671_v22 = vld [vmem:[%s14517_s18 + $0xe08] sm:$0xff] }
 0x6a4   : > { %9492 = vmatpush1.bf16.msra.mxu1 %v11314_v1  ;;  %9656 = vmatpush1.bf16.msra.mxu0 %v11316_v50  ;;  %v11348_v1 = vcombine.low %v3511_v36, %v3519_v37  ;;  %v3026_v50 = vrot.slane %v3025_v41, 2  ;;  %v3606_v36 = vld [vmem:[%s14517_s18 + $0xc00] sm:$0xff]  ;;  %v3679_v12 = vld [vmem:[%s14517_s18 + $0xe48] sm:$0xff] }
 0x6a5   : > { %9523 = vmatprep.mubr.bf16.mxu1 %v14744_v38  ;;  %9687 = vmatprep.mubr.bf16.mxu0 %v14744_v38  ;;  %v3614_v37 = vld [vmem:[%s14517_s18 + $0xc40] sm:$0xff] }
 0x6a6   : > { %9493 = vmatprep.subr.bf16.mxu1 %v11331_v42  ;;  %9657 = vmatprep.subr.bf16.mxu0 %v11333_v20  ;;  %v3027_v49 = vadd.f32 %v3026_v50, %v3025_v41  ;;  %v11427_v20 = vcombine.high %v3590_v27, %v3598_v14  ;;  %v11426_v41 = vcombine.low %v3590_v27, %v3598_v14 }
 0x6a7   : > { %v11443_v45 = vcombine.high %v3606_v36, %v3614_v37  ;;  %v11442_v50 = vcombine.low %v3606_v36, %v3614_v37  ;;  %v3104_v14 = vrot.slane %v14710_v47, %v14569_v4  ;;  %v3702_v36 = vld [vmem:[%s14517_s18 + $0xf00] sm:$0xff]  ;;  %v3153_v37 = vrot.slane %v14712_v54, %v14569_v4 }
 0x6a8   : > { %9494 = vmatpush1.bf16.msra.mxu1 %v11330_v39  ;;  %9658 = vmatpush1.bf16.msra.mxu0 %v11332_v40  ;;  %v3028_v15 = vrot.slane %v3027_v49, 1  ;;  %v3607_v39 = vld [vmem:[%s14517_s18 + $0xc08] sm:$0xff] }
 0x6a9   : > { %9495 = vmatprep.subr.bf16.mxu1 %v11347_v43  ;;  %9659 = vmatprep.subr.bf16.mxu0 %v11349_v44  ;;  %v3615_v40 = vld [vmem:[%s14517_s18 + $0xc48] sm:$0xff]  ;;  %v11428_v43 = vcombine.low %v3591_v28, %v3599_v30  ;;  %v3694_v28 = vld [vmem:[%s14517_s18 + $0xec0] sm:$0xff] }
 0x6aa   : > { %v3029_v25 = vadd.f32 %v3028_v15, %v3027_v49  ;;  %v11445_v51 = vcombine.high %v3607_v39, %v3615_v40  ;;  %v11491_v15 = vcombine.high %v3654_v10, %v3662_v5  ;;  %v3687_v30 = vld [vmem:[%s14517_s18 + $0xe88] sm:$0xff] }
 0x6ac   : > { %9496 = vmatpush1.bf16.msra.mxu1 %v11346_v63  ;;  %9660 = vmatpush1.bf16.msra.mxu0 %v11348_v1  ;;  %v3062_v42 = vmul.f32 0.125, %v3029_v25  ;;  %v3623_v63 = vld [vmem:[%s14517_s18 + $0xc88] sm:$0xff] }
 0x6ad   : > { %9497 = vmatprep.subr.bf16.mxu1 %v11363_v46  ;;  %9661 = vmatprep.subr.bf16.mxu0 %v11365_v52  ;;  %v3631_v1 = vld [vmem:[%s14517_s18 + $0xcc8] sm:$0xff]  ;;  %v11444_v46 = vcombine.low %v3607_v39, %v3615_v40  ;;  %v11459_v52 = vcombine.high %v3622_v48, %v3630_v56  ;;  %v3710_v39 = vld [vmem:[%s14517_s18 + $0xf40] sm:$0xff] }
 0x6ae   : > { %v3070_v44 = vadd.f32 0.8, %v3062_v42  ;;  %v11461_v53 = vcombine.high %v3623_v63, %v3631_v1  ;;  %v11460_v49 = vcombine.low %v3623_v63, %v3631_v1  ;;  %v11508_v42 = vcombine.low %v3671_v22, %v3679_v12  ;;  %v3703_v40 = vld [vmem:[%s14517_s18 + $0xf08] sm:$0xff]  ;;  %v3726_v63 = vld [vmem:[%s14517_s18 + $0xfc0] sm:$0xff] }
 0x6af   : > { %v3719_v1 = vld [vmem:[%s14517_s18 + $0xf88] sm:$0xff] }
 0x6b0   : > { %9498 = vmatpush1.bf16.msra.mxu1 %v11362_v62  ;;  %9662 = vmatpush1.bf16.msra.mxu0 %v11364_v0  ;;  %13377 = vrsqrt.f32 %v3070_v44  ;;  %v3647_v62 = vld [vmem:[%s14517_s18 + $0xd48] sm:$0xff]  ;;  %v11458_v0 = vcombine.low %v3622_v48, %v3630_v56  ;;  %v3718_v48 = vld [vmem:[%s14517_s18 + $0xf80] sm:$0xff] }
 0x6b1   : > { %9499 = vmatprep.subr.bf16.mxu1 %v11379_v2  ;;  %9663 = vmatprep.subr.bf16.mxu0 %v11381_v3  ;;  %v11475_v2 = vcombine.high %v3638_v55, %v3646_v57  ;;  %v11477_v3 = vcombine.high %v3639_v60, %v3647_v62 }
 0x6b4   : > { %9500 = vmatpush1.bf16.msra.mxu1 %v11378_v9  ;;  %9664 = vmatpush1.bf16.msra.mxu0 %v11380_v11  ;;  %v11474_v9 = vcombine.low %v3638_v55, %v3646_v57  ;;  %v11476_v11 = vcombine.low %v3639_v60, %v3647_v62  ;;  %v3734_v57 = vld [vmem:[%s14517_s18 + $0x1000] sm:$0xff] }
 0x6b5   : > { %9501 = vmatprep.subr.bf16.mxu1 %v11395_v18  ;;  %9665 = vmatprep.subr.bf16.mxu0 %v11397_v19  ;;  %v11493_v18 = vcombine.high %v3655_v7, %v3663_v8  ;;  %v3670_v19 = vld [vmem:[%s14517_s18 + $0xe00] sm:$0xff] }
 0x6b6   : > { %v11507_v25 = vcombine.high %v3670_v19, %v3678_v21  ;;  %v3742_v62 = vld [vmem:[%s14517_s18 + $0x1040] sm:$0xff] }
 0x6b8   : > { %9502 = vmatpush1.bf16.msra.mxu1 %v11394_v23  ;;  %9666 = vmatpush1.bf16.msra.mxu0 %v11396_v24  ;;  %v11490_v23 = vcombine.low %v3654_v10, %v3662_v5  ;;  %v11492_v24 = vcombine.low %v3655_v7, %v3663_v8  ;;  %v11571_v10 = vcombine.high %v3734_v57, %v3742_v62  ;;  %v3750_v7 = vld [vmem:[%s14517_s18 + $0x1080] sm:$0xff] }
 0x6b9   : > { %9503 = vmatprep.subr.bf16.mxu1 %v11411_v16  ;;  %9667 = vmatprep.subr.bf16.mxu0 %v11413_v26  ;;  %v11509_v16 = vcombine.high %v3671_v22, %v3679_v12  ;;  %v3686_v26 = vld [vmem:[%s14517_s18 + $0xe80] sm:$0xff]  ;;  %v14828_v12 = vsub.s32 7, %v14554_v58 }
 0x6ba   : > { %v13378_v13 = vpop.eup %13377 }
 0x6bb   : > { %v3086_v27 = vmul.f32 %v13378_v13, %v14726_v17 }
 0x6bc   : > { %9504 = vmatpush1.bf16.msra.mxu1 %v11410_v33  ;;  %9668 = vmatpush1.bf16.msra.mxu0 %v11412_v34  ;;  %v3695_v33 = vld [vmem:[%s14517_s18 + $0xec8] sm:$0xff]  ;;  %v11506_v34 = vcombine.low %v3670_v19, %v3678_v21  ;;  %v14825_v19 = vsub.s32 5, %v14554_v58  ;;  %v11570_v21 = vcombine.low %v3734_v57, %v3742_v62  ;;  %v3806_v57 = vld [vmem:[%s14517_s18 + $0x1240] sm:$0xff] }
 0x6bd   : > { %9505 = vmatprep.subr.bf16.mxu1 %v11427_v20  ;;  %9669 = vmatprep.subr.bf16.mxu0 %v11429_v35  ;;  %v11523_v20 = vcombine.high %v3686_v26, %v3694_v28  ;;  %v11525_v35 = vcombine.high %v3687_v30, %v3695_v33  ;;  %v3135_v17 = vmul.f32 %v3104_v14, %v3086_v27  ;;  %v3767_v27 = vld [vmem:[%s14517_s18 + $0x1108] sm:$0xff] }
 0x6be   : > { %v11524_v44 = vcombine.low %v3687_v30, %v3695_v33  ;;  %v3775_v14 = vld [vmem:[%s14517_s18 + $0x1148] sm:$0xff] }
 0x6bf   : > { %v3184_v56 = vadd.f32 %v3153_v37, %v3135_v17  ;;  %v3807_v62 = vld [vmem:[%s14517_s18 + $0x1248] sm:$0xff] }
 0x6c0   : > { %9506 = vmatpush1.bf16.msra.mxu1 %v11426_v41  ;;  %9670 = vmatpush1.bf16.msra.mxu0 %v11428_v43  ;;  %v3711_v41 = vld [vmem:[%s14517_s18 + $0xf48] sm:$0xff]  ;;  %v11522_v43 = vcombine.low %v3686_v26, %v3694_v28  ;;  %v3774_v26 = vld [vmem:[%s14517_s18 + $0x1140] sm:$0xff]  ;;  %v2353_v28 = vrot.slane %v14700_v32, %v14825_v19 }
 0x6c1   : > { %9507 = vmatprep.subr.bf16.mxu1 %v11443_v45  ;;  %9671 = vmatprep.subr.bf16.mxu0 %v11445_v51  ;;  %v11539_v45 = vcombine.high %v3702_v36, %v3710_v39  ;;  %v11541_v51 = vcombine.high %v3703_v40, %v3711_v41  ;;  %v3200_v60 = vmul.f32 0.2, %v3184_v56  ;;  %vm3192_vm11 = vcmp.gt.f32.partialorder %v3184_v56, 0.0 }
 0x6c3   : > { %v3208_v8 = vsel %vm3192_vm11, %v3184_v56, %v3200_v60  ;;  %v3799_v60 = vld [vmem:[%s14517_s18 + $0x1208] sm:$0xff] }
 0x6c4   : > { %9508 = vmatpush1.bf16.msra.mxu1 %v11442_v50  ;;  %9672 = vmatpush1.bf16.msra.mxu0 %v11444_v46  ;;  %v3727_v50 = vld [vmem:[%s14517_s18 + $0xfc8] sm:$0xff]  ;;  %v11538_v46 = vcombine.low %v3702_v36, %v3710_v39  ;;  %v14830_v13 = vpack.c.bf16 %v3208_v8, %v3208_v8  ;;  %v3782_v36 = vld [vmem:[%s14517_s18 + $0x1180] sm:$0xff]  ;;  %v11637_v8 = vcombine.high %v3799_v60, %v3807_v62 }
 0x6c5   : > { %9509 = vmatprep.subr.bf16.mxu1 %v11459_v52  ;;  %9673 = vmatprep.subr.bf16.mxu0 %v11461_v53  ;;  %v11540_v52 = vcombine.low %v3703_v40, %v3711_v41  ;;  %v11555_v53 = vcombine.high %v3718_v48, %v3726_v63  ;;  %v11557_v55 = vcombine.high %v3719_v1, %v3727_v50  ;;  %v3790_v40 = vld [vmem:[%s14517_s18 + $0x11c0] sm:$0xff]  ;;  %v3783_v41 = vld [vmem:[%s14517_s18 + $0x1188] sm:$0xff] }
 0x6c8   : > { %9510 = vmatpush1.bf16.msra.mxu1 %v11458_v0  ;;  %9674 = vmatpush1.bf16.msra.mxu0 %v11460_v49  ;;  %v3735_v0 = vld [vmem:[%s14517_s18 + $0x1008] sm:$0xff] }
 0x6c9   : > { %9511 = vmatprep.subr.bf16.mxu1 %v11475_v2  ;;  %9675 = vmatprep.subr.bf16.mxu0 %v11477_v3  ;;  %v3743_v49 = vld [vmem:[%s14517_s18 + $0x1048] sm:$0xff]  ;;  %v11554_v2 = vcombine.low %v3718_v48, %v3726_v63  ;;  %v11556_v3 = vcombine.low %v3719_v1, %v3727_v50  ;;  %v11604_v63 = vcombine.low %v3767_v27, %v3775_v14 }
 0x6ca   : > { %v11573_v5 = vcombine.high %v3735_v0, %v3743_v49  ;;  %v11572_v22 = vcombine.low %v3735_v0, %v3743_v49  ;;  %v11619_v50 = vcombine.high %v3782_v36, %v3790_v40 }
 0x6cc   : > { %9512 = vmatpush1.bf16.msra.mxu1 %v11474_v9  ;;  %9676 = vmatpush1.bf16.msra.mxu0 %v11476_v11  ;;  %v14819_v9 = vsub.s32 4, %v14554_v58  ;;  %v3758_v11 = vld [vmem:[%s14517_s18 + $0x10c0] sm:$0xff] }
 0x6cd   : > { %9513 = vmatprep.subr.bf16.mxu1 %v11491_v15  ;;  %9677 = vmatprep.subr.bf16.mxu0 %v11493_v18  ;;  %v3751_v15 = vld [vmem:[%s14517_s18 + $0x1088] sm:$0xff]  ;;  %v11586_v30 = vcombine.low %v3750_v7, %v3758_v11 }
 0x6ce   : > { %v3759_v18 = vld [vmem:[%s14517_s18 + $0x10c8] sm:$0xff] }
 0x6cf   : > { %v11588_v33 = vcombine.low %v3751_v15, %v3759_v18 }
 0x6d0   : > { %9514 = vmatpush1.bf16.msra.mxu1 %v11490_v23  ;;  %9678 = vmatpush1.bf16.msra.mxu0 %v11492_v24  ;;  %v11587_v23 = vcombine.high %v3750_v7, %v3758_v11  ;;  %v11589_v24 = vcombine.high %v3751_v15, %v3759_v18  ;;  %v3814_v11 = vld [vmem:[%s14517_s18 + $0x1280] sm:$0xff] }
 0x6d1   : > { %9515 = vmatprep.subr.bf16.mxu1 %v11507_v25  ;;  %9679 = vmatprep.subr.bf16.mxu0 %v11509_v16  ;;  %v3766_v25 = vld [vmem:[%s14517_s18 + $0x1100] sm:$0xff]  ;;  %v2349_v16 = vrot.slane %v14700_v32, %v14819_v9 }
 0x6d2   : > { %v11602_v56 = vcombine.low %v3766_v25, %v3774_v26 }
 0x6d4   : > { %9516 = vmatpush1.bf16.msra.mxu1 %v11506_v34  ;;  %9680 = vmatpush1.bf16.msra.mxu0 %v11508_v42  ;;  %v2361_v34 = vrot.slane %v14700_v32, %v14828_v12 }
 0x6d5   : > { %9517 = vmatprep.subr.bf16.mxu1 %v11523_v20  ;;  %9681 = vmatprep.subr.bf16.mxu0 %v11525_v35  ;;  %v11603_v20 = vcombine.high %v3766_v25, %v3774_v26  ;;  %v11605_v35 = vcombine.high %v3767_v27, %v3775_v14  ;;  %v11636_v27 = vcombine.low %v3799_v60, %v3807_v62  ;;  %v14871_v14 = vsub.s32 6, %v14554_v58 }
 0x6d8   : > { %9518 = vmatpush1.bf16.msra.mxu1 %v11522_v43  ;;  %9682 = vmatpush1.bf16.msra.mxu0 %v11524_v44  ;;  %v3791_v43 = vld [vmem:[%s14517_s18 + $0x11c8] sm:$0xff] }
 0x6d9   : > { %9519 = vmatprep.subr.bf16.mxu1 %v11539_v45  ;;  %9683 = vmatprep.subr.bf16.mxu0 %v11541_v51 }
 0x6dc   : > { %9520 = vmatpush1.bf16.msra.mxu1 %v11538_v46  ;;  %9684 = vmatpush1.bf16.msra.mxu0 %v11540_v52  ;;  %v11621_v46 = vcombine.high %v3783_v41, %v3791_v43  ;;  %v3798_v52 = vld [vmem:[%s14517_s18 + $0x1200] sm:$0xff] }
 0x6dd   : > { %9521 = vmatprep.subr.bf16.mxu1 %v11555_v53  ;;  %9685 = vmatprep.subr.bf16.mxu0 %v11557_v55  ;;  %v11635_v7 = vcombine.high %v3798_v52, %v3806_v57  ;;  %v11634_v26 = vcombine.low %v3798_v52, %v3806_v57  ;;  %v3855_v57 = vld [vmem:[%s14517_s18 + $0x13c8] sm:$0xff] }
 0x6e0   : > { %9522 = vmatpush1.bf16.msra.mxu1 %v11554_v2  ;;  %9686 = vmatpush1.bf16.msra.mxu0 %v11556_v3  ;;  %v11618_v3 = vcombine.low %v3782_v36, %v3790_v40  ;;  %v3831_v36 = vld [vmem:[%s14517_s18 + $0x1308] sm:$0xff] }
 0x6e1   : > { %9532 = vmatprep.subr.bf16.mxu1 %v11571_v10  ;;  %9696 = vmatprep.subr.bf16.mxu0 %v11573_v5  ;;  %v11620_v10 = vcombine.low %v3783_v41, %v3791_v43 }
 0x6e3   : > { %9524 = vmatmul.mubr.bf16.vlgmr.msra.gmra.mrb[12].mxu1 %v14830_v13  ;;  %9688 = vmatmul.mubr.bf16.vlgmr.msra.gmra.mrb[12].mxu0 %v14830_v13 }
 0x6e4   : > { %9533 = vmatpush1.bf16.msra.mxu1 %v11570_v21  ;;  %9697 = vmatpush1.bf16.msra.mxu0 %v11572_v22  ;;  %v3822_v21 = vld [vmem:[%s14517_s18 + $0x12c0] sm:$0xff]  ;;  %v3815_v22 = vld [vmem:[%s14517_s18 + $0x1288] sm:$0xff] }
 0x6e5   : > { %9534 = vmatprep.subr.bf16.mxu1 %v11587_v23  ;;  %9698 = vmatprep.subr.bf16.mxu0 %v11589_v24  ;;  %v3823_v23 = vld [vmem:[%s14517_s18 + $0x12c8] sm:$0xff]  ;;  %v11650_v58 = vcombine.low %v3814_v11, %v3822_v21 }
 0x6e6   : > { %v2791_v42 = vpop.f32.mrb[8].mxu1 }
 0x6e7   : > { %v14845_v17 = vadd.f32 %v2791_v42, %v2349_v16  ;;  %v14847_v37 = vpop.f32.mrb[10].mxu0  ;;  %v2793_v39 = vpop.f32.mrb[9].mxu1 }
 0x6e8   : > { %v14852_v44 = vadd.f32 %v2793_v39, %v2353_v28  ;;  %v2935_v45 = vpop.f32.mrb[11].mxu0  ;;  %9535 = vmatpush1.bf16.msra.mxu1 %v11586_v30  ;;  %9699 = vmatpush1.bf16.msra.mxu0 %v11588_v33  ;;  %v11651_v30 = vcombine.high %v3814_v11, %v3822_v21  ;;  %v11653_v33 = vcombine.high %v3815_v22, %v3823_v23  ;;  %v3839_v39 = vld [vmem:[%s14517_s18 + $0x1348] sm:$0xff] }
 0x6e9   : > { %v2964_v51 = vrot.slane %v14845_v17, 4  ;;  %v14855_v48 = vadd.f32 %v2935_v45, %v2361_v34  ;;  %9536 = vmatprep.subr.bf16.mxu1 %v11603_v20  ;;  %9700 = vmatprep.subr.bf16.mxu0 %v11605_v35  ;;  %v3830_v34 = vld [vmem:[%s14517_s18 + $0x1300] sm:$0xff]  ;;  %v11652_v45 = vcombine.low %v3815_v22, %v3823_v23  ;;  %v3871_v11 = vld [vmem:[%s14517_s18 + $0x1448] sm:$0xff] }
 0x6ea   : > { %v2970_v1 = vrot.slane %v14852_v44, 4  ;;  %v3838_v35 = vld [vmem:[%s14517_s18 + $0x1340] sm:$0xff] }
 0x6eb   : > { %v2965_v53 = vadd.f32 %v14845_v17, %v2964_v51  ;;  %v2982_v55 = vrot.slane %v14855_v48, 4  ;;  %v2357_v51 = vrot.slane %v14700_v32, %v14871_v14  ;;  %v11666_v62 = vcombine.low %v3830_v34, %v3838_v35 }
 0x6ec   : > { %v2971_v0 = vadd.f32 %v14852_v44, %v2970_v1  ;;  %9537 = vmatpush1.bf16.msra.mxu1 %v11602_v56  ;;  %9701 = vmatpush1.bf16.msra.mxu0 %v11604_v63  ;;  %v11667_v63 = vcombine.high %v3830_v34, %v3838_v35  ;;  %v11669_v1 = vcombine.high %v3831_v36, %v3839_v39  ;;  %v3887_v34 = vld [vmem:[%s14517_s18 + $0x14c8] sm:$0xff] }
 0x6ed   : > { %v2966_v49 = vrot.slane %v2965_v53, 2  ;;  %v2983_v2 = vadd.f32 %v14855_v48, %v2982_v55  ;;  %9538 = vmatprep.subr.bf16.mxu1 %v11619_v50  ;;  %9702 = vmatprep.subr.bf16.mxu0 %v11621_v46  ;;  %v3846_v50 = vld [vmem:[%s14517_s18 + $0x1380] sm:$0xff]  ;;  %v3847_v55 = vld [vmem:[%s14517_s18 + $0x1388] sm:$0xff]  ;;  %v11668_v32 = vcombine.low %v3831_v36, %v3839_v39 }
 0x6ee   : > { %v2972_v5 = vrot.slane %v2971_v0, 2  ;;  %v3854_v46 = vld [vmem:[%s14517_s18 + $0x13c0] sm:$0xff]  ;;  %v11684_v22 = vcombine.low %v3847_v55, %v3855_v57 }
 0x6ef   : > { %v2967_v15 = vadd.f32 %v2966_v49, %v2965_v53  ;;  %v2984_v18 = vrot.slane %v2983_v2, 2  ;;  %v11682_v21 = vcombine.low %v3846_v50, %v3854_v46 }
 0x6f0   : > { %v2973_v24 = vadd.f32 %v2972_v5, %v2971_v0  ;;  %9539 = vmatpush1.bf16.msra.mxu1 %v11618_v3  ;;  %9703 = vmatpush1.bf16.msra.mxu0 %v11620_v10  ;;  %v11685_v3 = vcombine.high %v3847_v55, %v3855_v57  ;;  %v3862_v10 = vld [vmem:[%s14517_s18 + $0x1400] sm:$0xff] }
 0x6f1   : > { %v2968_v25 = vrot.slane %v2967_v15, 1  ;;  %v2985_v16 = vadd.f32 %v2984_v18, %v2983_v2  ;;  %9540 = vmatprep.subr.bf16.mxu1 %v11635_v7  ;;  %9704 = vmatprep.subr.bf16.mxu0 %v11637_v8  ;;  %v14895_v2 = vadd.f32 %v14847_v37, %v2357_v51  ;;  %v3870_v8 = vld [vmem:[%s14517_s18 + $0x1440] sm:$0xff] }
 0x6f2   : > { %v2974_v28 = vrot.slane %v2973_v24, 1 }
 0x6f3   : > { %v2969_v42 = vadd.f32 %v2968_v25, %v2967_v15  ;;  %v2986_v20 = vrot.slane %v2985_v16, 1  ;;  %v2976_v23 = vrot.slane %v14895_v2, 4  ;;  %v11699_v25 = vcombine.high %v3862_v10, %v3870_v8 }
 0x6f4   : > { %v2975_v40 = vadd.f32 %v2974_v28, %v2973_v24  ;;  %9541 = vmatpush1.bf16.msra.mxu1 %v11634_v26  ;;  %9705 = vmatpush1.bf16.msra.mxu0 %v11636_v27  ;;  %v3878_v26 = vld [vmem:[%s14517_s18 + $0x1480] sm:$0xff] }
 0x6f5   : > { %v2992_v41 = vmul.f32 0.125, %v2969_v42  ;;  %v2987_v43 = vadd.f32 %v2986_v20, %v2985_v16  ;;  %9542 = vmatprep.subr.bf16.mxu1 %v11651_v30  ;;  %9706 = vmatprep.subr.bf16.mxu0 %v11653_v33  ;;  %v3886_v27 = vld [vmem:[%s14517_s18 + $0x14c0] sm:$0xff]  ;;  %v3879_v33 = vld [vmem:[%s14517_s18 + $0x1488] sm:$0xff]  ;;  %v11698_v20 = vcombine.low %v3862_v10, %v3870_v8 }
 0x6f6   : > { %v2993_v56 = vmul.f32 0.125, %v2975_v40  ;;  %v11715_v40 = vcombine.high %v3878_v26, %v3886_v27  ;;  %v11714_v57 = vcombine.low %v3878_v26, %v3886_v27  ;;  %v3911_v8 = vld [vmem:[%s14517_s18 + $0x1588] sm:$0xff]  ;;  %v3934_v27 = vld [vmem:[%s14517_s18 + $0x1640] sm:$0xff] }
 0x6f7   : > { %v14882_v52 = vsub.f32 %v14845_v17, %v2992_v41  ;;  %v2995_v53 = vmul.f32 0.125, %v2987_v43  ;;  %v11683_v17 = vcombine.high %v3846_v50, %v3854_v46  ;;  %v2977_v41 = vadd.f32 %v14895_v2, %v2976_v23  ;;  %v3903_v50 = vld [vmem:[%s14517_s18 + $0x1548] sm:$0xff] }
 0x6f8   : > { %v14887_v60 = vsub.f32 %v14852_v44, %v2993_v56  ;;  %9543 = vmatpush1.bf16.msra.mxu1 %v11650_v58  ;;  %9707 = vmatpush1.bf16.msra.mxu0 %v11652_v45  ;;  %v11717_v58 = vcombine.high %v3879_v33, %v3887_v34  ;;  %v3894_v45 = vld [vmem:[%s14517_s18 + $0x1500] sm:$0xff] }
 0x6f9   : > { %v3008_v0 = vmul.f32 %v14882_v52, %v14882_v52  ;;  %v14892_v49 = vsub.f32 %v14855_v48, %v2995_v53  ;;  %9544 = vmatprep.subr.bf16.mxu1 %v11667_v63  ;;  %9708 = vmatprep.subr.bf16.mxu0 %v11669_v1  ;;  %v3863_v48 = vld [vmem:[%s14517_s18 + $0x1408] sm:$0xff]  ;;  %v3902_v63 = vld [vmem:[%s14517_s18 + $0x1540] sm:$0xff] }
 0x6fa   : > { %v3009_v44 = vmul.f32 %v14887_v60, %v14887_v60  ;;  %v11701_v16 = vcombine.high %v3863_v48, %v3871_v11  ;;  %v11700_v39 = vcombine.low %v3863_v48, %v3871_v11  ;;  %v3895_v1 = vld [vmem:[%s14517_s18 + $0x1508] sm:$0xff] }
 0x6fb   : > { %v3036_v5 = vrot.slane %v3008_v0, 4  ;;  %v3011_v7 = vmul.f32 %v14892_v49, %v14892_v49  ;;  %v3919_v48 = vld [vmem:[%s14517_s18 + $0x15c8] sm:$0xff] }
 0x6fc   : > { %v3042_v15 = vrot.slane %v3009_v44, 4  ;;  %9545 = vmatpush1.bf16.msra.mxu1 %v11666_v62  ;;  %9709 = vmatpush1.bf16.msra.mxu0 %v11668_v32  ;;  %v11716_v62 = vcombine.low %v3879_v33, %v3887_v34  ;;  %v2978_v32 = vrot.slane %v2977_v41, 2  ;;  %v11748_v34 = vcombine.low %v3911_v8, %v3919_v48 }
 0x6fd   : > { %v3037_v18 = vadd.f32 %v3036_v5, %v3008_v0  ;;  %v3054_v37 = vrot.slane %v3011_v7, 4  ;;  %9546 = vmatprep.subr.bf16.mxu1 %v11683_v17  ;;  %9710 = vmatprep.subr.bf16.mxu0 %v11685_v3  ;;  %v11731_v17 = vcombine.high %v3894_v45, %v3902_v63  ;;  %v3910_v3 = vld [vmem:[%s14517_s18 + $0x1580] sm:$0xff] }
 0x6fe   : > { %v3043_v24 = vadd.f32 %v3042_v15, %v3009_v44  ;;  %v11733_v44 = vcombine.high %v3895_v1, %v3903_v50 }
 0x6ff   : > { %v3038_v28 = vrot.slane %v3037_v18, 2  ;;  %v3055_v30 = vadd.f32 %v3054_v37, %v3011_v7  ;;  %v3918_v7 = vld [vmem:[%s14517_s18 + $0x15c0] sm:$0xff]  ;;  %v11730_v37 = vcombine.low %v3894_v45, %v3902_v63 }
 0x700   : > { %v3044_v42 = vrot.slane %v3043_v24, 2  ;;  %9547 = vmatpush1.bf16.msra.mxu1 %v11682_v21  ;;  %9711 = vmatpush1.bf16.msra.mxu0 %v11684_v22  ;;  %v11732_v21 = vcombine.low %v3895_v1, %v3903_v50  ;;  %v2979_v22 = vadd.f32 %v2978_v32, %v2977_v41  ;;  %v11746_v33 = vcombine.low %v3910_v3, %v3918_v7  ;;  %v3951_v41 = vld [vmem:[%s14517_s18 + $0x16c8] sm:$0xff]  ;;  %v3958_v63 = vld [vmem:[%s14517_s18 + $0x1700] sm:$0xff] }
 0x701   : > { %v3039_v35 = vadd.f32 %v3038_v28, %v3037_v18  ;;  %v3056_v36 = vrot.slane %v3055_v30, 2  ;;  %9548 = vmatprep.subr.bf16.mxu1 %v11699_v25  ;;  %9712 = vmatprep.subr.bf16.mxu0 %v11701_v16  ;;  %v11749_v25 = vcombine.high %v3911_v8, %v3919_v48  ;;  %v3926_v16 = vld [vmem:[%s14517_s18 + $0x1600] sm:$0xff]  ;;  %v3927_v28 = vld [vmem:[%s14517_s18 + $0x1608] sm:$0xff]  ;;  %v3116_v32 = vrot.slane %v14710_v47, %v14825_v19 }
 0x702   : > { %v3045_v43 = vadd.f32 %v3044_v42, %v3043_v24  ;;  %v11747_v24 = vcombine.high %v3910_v3, %v3918_v7  ;;  %v2980_v42 = vrot.slane %v2979_v22, 1  ;;  %v3966_v1 = vld [vmem:[%s14517_s18 + $0x1740] sm:$0xff]  ;;  %v3959_v50 = vld [vmem:[%s14517_s18 + $0x1708] sm:$0xff] }
 0x703   : > { %v3040_v51 = vrot.slane %v3039_v35, 1  ;;  %v3057_v56 = vadd.f32 %v3056_v36, %v3055_v30  ;;  %v3935_v30 = vld [vmem:[%s14517_s18 + $0x1648] sm:$0xff]  ;;  %v3942_v36 = vld [vmem:[%s14517_s18 + $0x1680] sm:$0xff] }
 0x704   : > { %v3046_v46 = vrot.slane %v3045_v43, 1  ;;  %9549 = vmatpush1.bf16.msra.mxu1 %v11698_v20  ;;  %9713 = vmatpush1.bf16.msra.mxu0 %v11700_v39  ;;  %v11763_v20 = vcombine.high %v3926_v16, %v3934_v27  ;;  %v3950_v39 = vld [vmem:[%s14517_s18 + $0x16c0] sm:$0xff]  ;;  %v2981_v45 = vadd.f32 %v2980_v42, %v2979_v22  ;;  %v3975_v8 = vld [vmem:[%s14517_s18 + $0x1788] sm:$0xff] }
 0x705   : > { %v3041_v53 = vadd.f32 %v3040_v51, %v3039_v35  ;;  %v3058_v55 = vrot.slane %v3057_v56, 1  ;;  %9550 = vmatprep.subr.bf16.mxu1 %v11715_v40  ;;  %9714 = vmatprep.subr.bf16.mxu0 %v11717_v58  ;;  %v11765_v35 = vcombine.high %v3927_v28, %v3935_v30  ;;  %v3943_v40 = vld [vmem:[%s14517_s18 + $0x1688] sm:$0xff]  ;;  %v11764_v58 = vcombine.low %v3927_v28, %v3935_v30  ;;  %v3982_v7 = vld [vmem:[%s14517_s18 + $0x17c0] sm:$0xff] }
 0x706   : > { %v3047_v0 = vadd.f32 %v3046_v46, %v3045_v43  ;;  %v11762_v43 = vcombine.low %v3926_v16, %v3934_v27  ;;  %v11779_v51 = vcombine.high %v3942_v36, %v3950_v39  ;;  %v3967_v46 = vld [vmem:[%s14517_s18 + $0x1748] sm:$0xff]  ;;  %v2994_v3 = vmul.f32 0.125, %v2981_v45  ;;  %v3990_v28 = vld [vmem:[%s14517_s18 + $0x1800] sm:$0xff] }
 0x707   : > { %v3064_v10 = vmul.f32 0.125, %v3041_v53  ;;  %v3059_v5 = vadd.f32 %v3058_v55, %v3057_v56  ;;  %v11781_v56 = vcombine.high %v3943_v40, %v3951_v41  ;;  %v3112_v53 = vrot.slane %v14710_v47, %v14819_v9  ;;  %v3983_v48 = vld [vmem:[%s14517_s18 + $0x17c8] sm:$0xff]  ;;  %v3998_v30 = vld [vmem:[%s14517_s18 + $0x1840] sm:$0xff] }
 0x708   : > { %v3065_v11 = vmul.f32 0.125, %v3047_v0  ;;  %9551 = vmatpush1.bf16.msra.mxu1 %v11714_v57  ;;  %9715 = vmatpush1.bf16.msra.mxu0 %v11716_v62  ;;  %v11778_v55 = vcombine.low %v3942_v36, %v3950_v39  ;;  %v3161_v62 = vrot.slane %v14712_v54, %v14819_v9  ;;  %v11780_v0 = vcombine.low %v3943_v40, %v3951_v41  ;;  %v4006_v45 = vld [vmem:[%s14517_s18 + $0x1880] sm:$0xff] }
 0x709   : > { %v3072_v15 = vadd.f32 0.8, %v3064_v10  ;;  %v3067_v18 = vmul.f32 0.125, %v3059_v5  ;;  %9552 = vmatprep.subr.bf16.mxu1 %v11731_v17  ;;  %9716 = vmatprep.subr.bf16.mxu0 %v11733_v44  ;;  %v3974_v17 = vld [vmem:[%s14517_s18 + $0x1780] sm:$0xff]  ;;  %v11795_v10 = vcombine.high %v3958_v63, %v3966_v1  ;;  %v11797_v5 = vcombine.high %v3959_v50, %v3967_v46 }
 0x70a   : > { %v3073_v23 = vadd.f32 0.8, %v3065_v11  ;;  %v11811_v16 = vcombine.high %v3974_v17, %v3982_v7  ;;  %v14951_v27 = vsub.f32 %v14895_v2, %v2994_v3  ;;  %v11812_v2 = vcombine.low %v3975_v8, %v3983_v48  ;;  %v4023_v3 = vld [vmem:[%s14517_s18 + $0x1908] sm:$0xff] }
 0x70b   : > { %13379 = vrsqrt.f32 %v3072_v15  ;;  %v3075_v26 = vadd.f32 0.8, %v3067_v18  ;;  %v3165_v15 = vrot.slane %v14712_v54, %v14825_v19  ;;  %v3124_v18 = vrot.slane %v14710_v47, %v14828_v12 }
 0x70c   : > { %13381 = vrsqrt.f32 %v3073_v23  ;;  %9553 = vmatpush1.bf16.msra.mxu1 %v11730_v37  ;;  %9717 = vmatpush1.bf16.msra.mxu0 %v11732_v21  ;;  %v3173_v37 = vrot.slane %v14712_v54, %v14828_v12  ;;  %v11794_v23 = vcombine.low %v3958_v63, %v3966_v1  ;;  %v11827_v36 = vcombine.high %v3990_v28, %v3998_v30  ;;  %v4014_v63 = vld [vmem:[%s14517_s18 + $0x18c0] sm:$0xff]  ;;  %v4007_v1 = vld [vmem:[%s14517_s18 + $0x1888] sm:$0xff] }
 0x70d   : > { %13383 = vrsqrt.f32 %v3075_v26  ;;  %9554 = vmatprep.subr.bf16.mxu1 %v11747_v24  ;;  %9718 = vmatprep.subr.bf16.mxu0 %v11749_v25  ;;  %v11796_v24 = vcombine.low %v3959_v50, %v3967_v46  ;;  %v11813_v26 = vcombine.high %v3975_v8, %v3983_v48  ;;  %v3010_v39 = vmul.f32 %v14951_v27, %v14951_v27  ;;  %v4015_v50 = vld [vmem:[%s14517_s18 + $0x18c8] sm:$0xff] }
 0x70e   : > { %v11844_v8 = vcombine.low %v4007_v1, %v4015_v50 }
 0x710   : > { %9555 = vmatpush1.bf16.msra.mxu1 %v11746_v33  ;;  %9719 = vmatpush1.bf16.msra.mxu0 %v11748_v34  ;;  %v3991_v33 = vld [vmem:[%s14517_s18 + $0x1808] sm:$0xff] }
 0x711   : > { %9556 = vmatprep.subr.bf16.mxu1 %v11763_v20  ;;  %9720 = vmatprep.subr.bf16.mxu0 %v11765_v35  ;;  %v3999_v34 = vld [vmem:[%s14517_s18 + $0x1848] sm:$0xff] }
 0x712   : > { %v11829_v41 = vcombine.high %v3991_v33, %v3999_v34 }
 0x714   : > { %9557 = vmatpush1.bf16.msra.mxu1 %v11762_v43  ;;  %9721 = vmatpush1.bf16.msra.mxu0 %v11764_v58 }
 0x715   : > { %v13380_v57 = vpop.eup %13379  ;;  %9558 = vmatprep.subr.bf16.mxu1 %v11779_v51  ;;  %9722 = vmatprep.subr.bf16.mxu0 %v11781_v56  ;;  %v11826_v56 = vcombine.low %v3990_v28, %v3998_v30  ;;  %v4063_v28 = vld [vmem:[%s14517_s18 + $0x1a48] sm:$0xff] }
 0x716   : > { %v3088_v44 = vmul.f32 %v13380_v57, %v14882_v52  ;;  %v13382_v11 = vpop.eup %13381 }
 0x717   : > { %v13384_v52 = vpop.eup %13383  ;;  %v3089_v22 = vmul.f32 %v13382_v11, %v14887_v60 }
 0x718   : > { %v3137_v21 = vmul.f32 %v3112_v53, %v3088_v44  ;;  %v3091_v25 = vmul.f32 %v13384_v52, %v14892_v49  ;;  %9559 = vmatpush1.bf16.msra.mxu1 %v11778_v55  ;;  %9723 = vmatpush1.bf16.msra.mxu0 %v11780_v0  ;;  %v11810_v49 = vcombine.low %v3974_v17, %v3982_v7  ;;  %v4030_v44 = vld [vmem:[%s14517_s18 + $0x1940] sm:$0xff]  ;;  %v4039_v52 = vld [vmem:[%s14517_s18 + $0x1988] sm:$0xff] }
 0x719   : > { %v3138_v54 = vmul.f32 %v3116_v32, %v3089_v22  ;;  %9560 = vmatprep.subr.bf16.mxu1 %v11795_v10  ;;  %9724 = vmatprep.subr.bf16.mxu0 %v11797_v5  ;;  %v11828_v55 = vcombine.low %v3991_v33, %v3999_v34  ;;  %v4022_v32 = vld [vmem:[%s14517_s18 + $0x1900] sm:$0xff]  ;;  %v11843_v0 = vcombine.high %v4006_v45, %v4014_v63  ;;  %v4031_v10 = vld [vmem:[%s14517_s18 + $0x1948] sm:$0xff] }
 0x71a   : > { %v3186_v47 = vadd.f32 %v3161_v62, %v3137_v21  ;;  %v3140_v60 = vmul.f32 %v3124_v18, %v3091_v25  ;;  %v3048_v62 = vrot.slane %v3010_v39, 4  ;;  %v11845_v17 = vcombine.high %v4007_v1, %v4015_v50  ;;  %v4038_v18 = vld [vmem:[%s14517_s18 + $0x1980] sm:$0xff]  ;;  %v4047_v21 = vld [vmem:[%s14517_s18 + $0x19c8] sm:$0xff] }
 0x71b   : > { %v3187_v20 = vadd.f32 %v3165_v15, %v3138_v54  ;;  %v11842_v7 = vcombine.low %v4006_v45, %v4014_v63  ;;  %v11859_v11 = vcombine.high %v4022_v32, %v4030_v44  ;;  %v11861_v15 = vcombine.high %v4023_v3, %v4031_v10  ;;  %v4055_v54 = vld [vmem:[%s14517_s18 + $0x1a08] sm:$0xff]  ;;  %v4094_v45 = vld [vmem:[%s14517_s18 + $0x1b40] sm:$0xff] }
 0x71c   : > { %vm3194_vm12 = vcmp.gt.f32.partialorder %v3186_v47, 0.0  ;;  %v3202_v42 = vmul.f32 0.2, %v3186_v47  ;;  %v3189_v35 = vadd.f32 %v3173_v37, %v3140_v60  ;;  %9561 = vmatpush1.bf16.msra.mxu1 %v11794_v23  ;;  %9725 = vmatpush1.bf16.msra.mxu0 %v11796_v24  ;;  %v3049_v48 = vadd.f32 %v3048_v62, %v3010_v39  ;;  %v4046_v37 = vld [vmem:[%s14517_s18 + $0x19c0] sm:$0xff] }
 0x71d   : > { %vm3195_vm13 = vcmp.gt.f32.partialorder %v3187_v20, 0.0  ;;  %v3203_v40 = vmul.f32 0.2, %v3187_v20  ;;  %9562 = vmatprep.subr.bf16.mxu1 %v11811_v16  ;;  %9726 = vmatprep.subr.bf16.mxu0 %v11813_v26  ;;  %v11858_v22 = vcombine.low %v4022_v32, %v4030_v44  ;;  %v11860_v23 = vcombine.low %v4023_v3, %v4031_v10  ;;  %v4054_v26 = vld [vmem:[%s14517_s18 + $0x1a00] sm:$0xff] }
 0x71e   : > { %v3210_v43 = vsel %vm3194_vm12, %v3186_v47, %v3202_v42  ;;  %vm3197_vm14 = vcmp.gt.f32.partialorder %v3189_v35, 0.0  ;;  %v3205_v58 = vmul.f32 0.2, %v3189_v35  ;;  %v3050_v24 = vrot.slane %v3049_v48, 2  ;;  %v4062_v47 = vld [vmem:[%s14517_s18 + $0x1a40] sm:$0xff] }
 0x71f   : > { %v3211_v51 = vsel %vm3195_vm13, %v3187_v20, %v3203_v40  ;;  %v14965_v57 = vpack.c.bf16 %v3210_v43, %v3210_v43  ;;  %v11875_v25 = vcombine.high %v4038_v18, %v4046_v37  ;;  %v11877_v16 = vcombine.high %v4039_v52, %v4047_v21  ;;  %v4070_v20 = vld [vmem:[%s14517_s18 + $0x1a80] sm:$0xff] }
 0x720   : > { %v14963_v46 = vpack.c.bf16 %v3211_v51, %v3211_v51  ;;  %v3213_v53 = vsel %vm3197_vm14, %v3189_v35, %v3205_v58  ;;  %9563 = vmatpush1.bf16.msra.mxu1 %v11810_v49  ;;  %9727 = vmatpush1.bf16.msra.mxu0 %v11812_v2  ;;  %v11874_v30 = vcombine.low %v4038_v18, %v4046_v37  ;;  %v4078_v49 = vld [vmem:[%s14517_s18 + $0x1ac0] sm:$0xff]  ;;  %v4071_v35 = vld [vmem:[%s14517_s18 + $0x1a88] sm:$0xff] }
 0x721   : > { %9573 = vmatprep.subr.bf16.mxu1 %v11827_v36  ;;  %9737 = vmatprep.subr.bf16.mxu0 %v11829_v41  ;;  %v14973_v5 = vpack.c.bf16 %v3213_v53, %v3213_v53  ;;  %v11876_v60 = vcombine.low %v4039_v52, %v4047_v21  ;;  %v3051_v33 = vadd.f32 %v3050_v24, %v3049_v48  ;;  %v4079_v2 = vld [vmem:[%s14517_s18 + $0x1ac8] sm:$0xff]  ;;  %v4086_v58 = vld [vmem:[%s14517_s18 + $0x1b00] sm:$0xff] }
 0x722   : > { %9564 = vmatprep.mubr.bf16.mxu1 %v14963_v46  ;;  %9728 = vmatprep.mubr.bf16.mxu0 %v14963_v46  ;;  %v11891_v34 = vcombine.high %v4054_v26, %v4062_v47  ;;  %v11893_v42 = vcombine.high %v4055_v54, %v4063_v28  ;;  %v11890_v36 = vcombine.low %v4054_v26, %v4062_v47  ;;  %v4087_v51 = vld [vmem:[%s14517_s18 + $0x1b08] sm:$0xff]  ;;  %v4102_v62 = vld [vmem:[%s14517_s18 + $0x1b80] sm:$0xff] }
 0x723   : > { %9565 = vmatmul.mubr.bf16.vlgmr.msra.gmra.mrb[12].mxu1 %v14965_v57  ;;  %9729 = vmatmul.mubr.bf16.vlgmr.msra.gmra.mrb[12].mxu0 %v14965_v57  ;;  %v11892_v39 = vcombine.low %v4055_v54, %v4063_v28  ;;  %v3052_v40 = vrot.slane %v3051_v33, 1  ;;  %v11907_v41 = vcombine.high %v4070_v20, %v4078_v49  ;;  %v11909_v43 = vcombine.high %v4071_v35, %v4079_v2  ;;  %v4110_v32 = vld [vmem:[%s14517_s18 + $0x1bc0] sm:$0xff]  ;;  %v4127_v18 = vld [vmem:[%s14517_s18 + $0x1c48] sm:$0xff] }
 0x724   : > { %9574 = vmatpush1.bf16.msra.mxu1 %v11826_v56  ;;  %9738 = vmatpush1.bf16.msra.mxu0 %v11828_v55  ;;  %v4095_v56 = vld [vmem:[%s14517_s18 + $0x1b48] sm:$0xff]  ;;  %v11906_v63 = vcombine.low %v4070_v20, %v4078_v49  ;;  %v11908_v1 = vcombine.low %v4071_v35, %v4079_v2  ;;  %v11923_v53 = vcombine.high %v4086_v58, %v4094_v45  ;;  %v4118_v48 = vld [vmem:[%s14517_s18 + $0x1c00] sm:$0xff] }
 0x725   : > { %9605 = vmatprep.mubr.bf16.mxu1 %v14973_v5  ;;  %9769 = vmatprep.mubr.bf16.mxu0 %v14973_v5  ;;  %v3053_v50 = vadd.f32 %v3052_v40, %v3051_v33  ;;  %v11925_v55 = vcombine.high %v4087_v51, %v4095_v56  ;;  %v11922_v44 = vcombine.low %v4086_v58, %v4094_v45  ;;  %v4134_v24 = vld [vmem:[%s14517_s18 + $0x1c80] sm:$0xff]  ;;  %v4143_v26 = vld [vmem:[%s14517_s18 + $0x1cc8] sm:$0xff] }
 0x726   : > { %9575 = vmatprep.subr.bf16.mxu1 %v11843_v0  ;;  %9739 = vmatprep.subr.bf16.mxu0 %v11845_v17  ;;  %v4103_v0 = vld [vmem:[%s14517_s18 + $0x1b88] sm:$0xff]  ;;  %v11924_v3 = vcombine.low %v4087_v51, %v4095_v56  ;;  %v11938_v37 = vcombine.low %v4102_v62, %v4110_v32  ;;  %v4158_v33 = vld [vmem:[%s14517_s18 + $0x1d40] sm:$0xff] }
 0x727   : > { %v4111_v17 = vld [vmem:[%s14517_s18 + $0x1bc8] sm:$0xff]  ;;  %v3066_v10 = vmul.f32 0.125, %v3053_v50  ;;  %v4182_v56 = vld [vmem:[%s14517_s18 + $0x1e00] sm:$0xff] }
 0x728   : > { %9576 = vmatpush1.bf16.msra.mxu1 %v11842_v7  ;;  %9740 = vmatpush1.bf16.msra.mxu0 %v11844_v8  ;;  %v11939_v7 = vcombine.high %v4102_v62, %v4110_v32  ;;  %v11941_v8 = vcombine.high %v4103_v0, %v4111_v17  ;;  %v11940_v52 = vcombine.low %v4103_v0, %v4111_v17  ;;  %v4167_v40 = vld [vmem:[%s14517_s18 + $0x1d88] sm:$0xff]  ;;  %v4198_v17 = vld [vmem:[%s14517_s18 + $0x1e80] sm:$0xff] }
 0x729   : > { %9577 = vmatprep.subr.bf16.mxu1 %v11859_v11  ;;  %9741 = vmatprep.subr.bf16.mxu0 %v11861_v15  ;;  %v4126_v11 = vld [vmem:[%s14517_s18 + $0x1c40] sm:$0xff]  ;;  %v4119_v15 = vld [vmem:[%s14517_s18 + $0x1c08] sm:$0xff]  ;;  %v3074_v21 = vadd.f32 0.8, %v3066_v10 }
 0x72a   : > { %v11954_v47 = vcombine.low %v4118_v48, %v4126_v11  ;;  %v11956_v54 = vcombine.low %v4119_v15, %v4127_v18  ;;  %v4191_v50 = vld [vmem:[%s14517_s18 + $0x1e48] sm:$0xff] }
 0x72b   : > { %13385 = vrsqrt.f32 %v3074_v21  ;;  %v13420_v21 = vld [vmem:[#allocation22] sm:$0xff] }
 0x72c   : > { %9578 = vmatpush1.bf16.msra.mxu1 %v11858_v22  ;;  %9742 = vmatpush1.bf16.msra.mxu0 %v11860_v23  ;;  %v11955_v22 = vcombine.high %v4118_v48, %v4126_v11  ;;  %v11957_v23 = vcombine.high %v4119_v15, %v4127_v18  ;;  %v4207_v48 = vld [vmem:[%s14517_s18 + $0x1ec8] sm:$0xff] }
 0x72d   : > { %9579 = vmatprep.subr.bf16.mxu1 %v11875_v25  ;;  %9743 = vmatprep.subr.bf16.mxu0 %v11877_v16  ;;  %v4142_v25 = vld [vmem:[%s14517_s18 + $0x1cc0] sm:$0xff]  ;;  %v4135_v16 = vld [vmem:[%s14517_s18 + $0x1c88] sm:$0xff] }
 0x72e   : > { %v11971_v28 = vcombine.high %v4134_v24, %v4142_v25  ;;  %v11970_v20 = vcombine.low %v4134_v24, %v4142_v25  ;;  %v11972_v49 = vcombine.low %v4135_v16, %v4143_v26  ;;  %v4215_v24 = vld [vmem:[%s14517_s18 + $0x1f08] sm:$0xff] }
 0x72f   : > { %v4223_v25 = vld [vmem:[%s14517_s18 + $0x1f48] sm:$0xff] }
 0x730   : > { %9580 = vmatpush1.bf16.msra.mxu1 %v11874_v30  ;;  %9744 = vmatpush1.bf16.msra.mxu0 %v11876_v60  ;;  %v11973_v30 = vcombine.high %v4135_v16, %v4143_v26  ;;  %v4150_v60 = vld [vmem:[%s14517_s18 + $0x1d00] sm:$0xff] }
 0x731   : > { %9581 = vmatprep.subr.bf16.mxu1 %v11891_v34  ;;  %9745 = vmatprep.subr.bf16.mxu0 %v11893_v42  ;;  %v4151_v34 = vld [vmem:[%s14517_s18 + $0x1d08] sm:$0xff]  ;;  %v11987_v35 = vcombine.high %v4150_v60, %v4158_v33 }
 0x732   : > { %v4159_v42 = vld [vmem:[%s14517_s18 + $0x1d48] sm:$0xff] }
 0x733   : > { %v11989_v2 = vcombine.high %v4151_v34, %v4159_v42  ;;  %v11988_v58 = vcombine.low %v4151_v34, %v4159_v42  ;;  %v4239_v34 = vld [vmem:[%s14517_s18 + $0x1fc8] sm:$0xff] }
 0x734   : > { %9582 = vmatpush1.bf16.msra.mxu1 %v11890_v36  ;;  %9746 = vmatpush1.bf16.msra.mxu0 %v11892_v39  ;;  %v4166_v36 = vld [vmem:[%s14517_s18 + $0x1d80] sm:$0xff] }
 0x735   : > { %9583 = vmatprep.subr.bf16.mxu1 %v11907_v41  ;;  %9747 = vmatprep.subr.bf16.mxu0 %v11909_v43  ;;  %v4174_v39 = vld [vmem:[%s14517_s18 + $0x1dc0] sm:$0xff]  ;;  %v4175_v41 = vld [vmem:[%s14517_s18 + $0x1dc8] sm:$0xff]  ;;  %v11986_v43 = vcombine.low %v4150_v60, %v4158_v33 }
 0x736   : > { %v12003_v45 = vcombine.high %v4166_v36, %v4174_v39  ;;  %v12005_v51 = vcombine.high %v4167_v40, %v4175_v41  ;;  %v12004_v62 = vcombine.low %v4167_v40, %v4175_v41  ;;  %v4238_v60 = vld [vmem:[%s14517_s18 + $0x1fc0] sm:$0xff]  ;;  %v4231_v33 = vld [vmem:[%s14517_s18 + $0x1f88] sm:$0xff]  ;;  %v3225_v40 = vld [vmem:[%s14517_s18 + $0x18] sm:$0xff] }
 0x737   : > { %v3233_v41 = vld [vmem:[%s14517_s18 + $0x58] sm:$0xff] }
 0x738   : > { %9584 = vmatpush1.bf16.msra.mxu1 %v11906_v63  ;;  %9748 = vmatpush1.bf16.msra.mxu0 %v11908_v1  ;;  %v4190_v63 = vld [vmem:[%s14517_s18 + $0x1e40] sm:$0xff]  ;;  %v4183_v1 = vld [vmem:[%s14517_s18 + $0x1e08] sm:$0xff] }
 0x739   : > { %9585 = vmatprep.subr.bf16.mxu1 %v11923_v53  ;;  %9749 = vmatprep.subr.bf16.mxu0 %v11925_v55  ;;  %v13386_v53 = vpop.eup %13385  ;;  %v12002_v55 = vcombine.low %v4166_v36, %v4174_v39  ;;  %v12019_v32 = vcombine.high %v4182_v56, %v4190_v63  ;;  %v12021_v0 = vcombine.high %v4183_v1, %v4191_v50  ;;  %v3232_v39 = vld [vmem:[%s14517_s18 + $0x50] sm:$0xff] }
 0x73a   : > { %v12018_v11 = vcombine.low %v4182_v56, %v4190_v63  ;;  %v12020_v15 = vcombine.low %v4183_v1, %v4191_v50  ;;  %v3240_v63 = vld [vmem:[%s14517_s18 + $0x90] sm:$0xff]  ;;  %v3241_v50 = vld [vmem:[%s14517_s18 + $0x98] sm:$0xff] }
 0x73b   : > { %v3248_v1 = vld [vmem:[%s14517_s18 + $0xd0] sm:$0xff] }
 0x73c   : > { %9586 = vmatpush1.bf16.msra.mxu1 %v11922_v44  ;;  %9750 = vmatpush1.bf16.msra.mxu0 %v11924_v3  ;;  %v3090_v44 = vmul.f32 %v13386_v53, %v14951_v27  ;;  %v13419_v3 = vld [vmem:[#allocation21] sm:$0xff]  ;;  %v3249_v53 = vld [vmem:[%s14517_s18 + $0xd8] sm:$0xff] }
 0x73d   : > { %9587 = vmatprep.subr.bf16.mxu1 %v11939_v7  ;;  %9751 = vmatprep.subr.bf16.mxu0 %v11941_v8  ;;  %v3120_v10 = vrot.slane %v13419_v3, %v14871_v14  ;;  %v4206_v7 = vld [vmem:[%s14517_s18 + $0x1ec0] sm:$0xff]  ;;  %v4199_v8 = vld [vmem:[%s14517_s18 + $0x1e88] sm:$0xff]  ;;  %v3264_v3 = vld [vmem:[%s14517_s18 + $0x150] sm:$0xff] }
 0x73e   : > { %v12035_v18 = vcombine.high %v4198_v17, %v4206_v7  ;;  %v12034_v16 = vcombine.low %v4198_v17, %v4206_v7  ;;  %v12036_v26 = vcombine.low %v4199_v8, %v4207_v48  ;;  %v11081_v17 = vcombine.high %v3241_v50, %v3249_v53  ;;  %v3265_v7 = vld [vmem:[%s14517_s18 + $0x158] sm:$0xff] }
 0x73f   : > { %v3139_v27 = vmul.f32 %v3120_v10, %v3090_v44  ;;  %v3256_v44 = vld [vmem:[%s14517_s18 + $0x110] sm:$0xff]  ;;  %v3257_v10 = vld [vmem:[%s14517_s18 + $0x118] sm:$0xff] }
 0x740   : > { %9588 = vmatpush1.bf16.msra.mxu1 %v11938_v37  ;;  %9752 = vmatpush1.bf16.msra.mxu0 %v11940_v52  ;;  %v12037_v37 = vcombine.high %v4199_v8, %v4207_v48  ;;  %v4214_v52 = vld [vmem:[%s14517_s18 + $0x1f00] sm:$0xff]  ;;  %v11078_v8 = vcombine.low %v3240_v63, %v3248_v1  ;;  %v11080_v48 = vcombine.low %v3241_v50, %v3249_v53  ;;  %v3337_v50 = vld [vmem:[%s14517_s18 + $0x398] sm:$0xff] }
 0x741   : > { %9589 = vmatprep.subr.bf16.mxu1 %v11955_v22  ;;  %9753 = vmatprep.subr.bf16.mxu0 %v11957_v23  ;;  %v3169_v22 = vrot.slane %v13420_v21, %v14871_v14  ;;  %v4222_v23 = vld [vmem:[%s14517_s18 + $0x1f40] sm:$0xff]  ;;  %v11094_v21 = vcombine.low %v3256_v44, %v3264_v3  ;;  %v3345_v53 = vld [vmem:[%s14517_s18 + $0x3d8] sm:$0xff] }
 0x742   : > { %v12050_v42 = vcombine.low %v4214_v52, %v4222_v23 }
 0x744   : > { %9590 = vmatpush1.bf16.msra.mxu1 %v11954_v47  ;;  %9754 = vmatpush1.bf16.msra.mxu0 %v11956_v54  ;;  %v12051_v47 = vcombine.high %v4214_v52, %v4222_v23  ;;  %v12053_v54 = vcombine.high %v4215_v24, %v4223_v25  ;;  %v3273_v52 = vld [vmem:[%s14517_s18 + $0x198] sm:$0xff] }
 0x745   : > { %9591 = vmatprep.subr.bf16.mxu1 %v11971_v28  ;;  %9755 = vmatprep.subr.bf16.mxu0 %v11973_v30  ;;  %v4230_v28 = vld [vmem:[%s14517_s18 + $0x1f80] sm:$0xff]  ;;  %v3188_v30 = vadd.f32 %v3169_v22, %v3139_v27  ;;  %v3281_v27 = vld [vmem:[%s14517_s18 + $0x1d8] sm:$0xff]  ;;  %v11096_v22 = vcombine.low %v3257_v10, %v3265_v7 }
 0x747   : > { %v3204_v36 = vmul.f32 0.2, %v3188_v30  ;;  %vm3196_vm15 = vcmp.gt.f32.partialorder %v3188_v30, 0.0 }
 0x748   : > { %9592 = vmatpush1.bf16.msra.mxu1 %v11970_v20  ;;  %9756 = vmatpush1.bf16.msra.mxu0 %v11972_v49  ;;  %v12052_v20 = vcombine.low %v4215_v24, %v4223_v25  ;;  %v12067_v49 = vcombine.high %v4230_v28, %v4238_v60  ;;  %v11113_v24 = vcombine.high %v3273_v52, %v3281_v27  ;;  %v3288_v25 = vld [vmem:[%s14517_s18 + $0x210] sm:$0xff] }
 0x749   : > { %9593 = vmatprep.subr.bf16.mxu1 %v11987_v35  ;;  %9757 = vmatprep.subr.bf16.mxu0 %v11989_v2  ;;  %v12069_v35 = vcombine.high %v4231_v33, %v4239_v34  ;;  %v3224_v2 = vld [vmem:[%s14517_s18 + $0x10] sm:$0xff]  ;;  %v3212_v56 = vsel %vm3196_vm15, %v3188_v30, %v3204_v36 }
 0x74c   : > { %9594 = vmatpush1.bf16.msra.mxu1 %v11986_v43  ;;  %9758 = vmatpush1.bf16.msra.mxu0 %v11988_v58  ;;  %v12066_v43 = vcombine.low %v4230_v28, %v4238_v60  ;;  %v12068_v58 = vcombine.low %v4231_v33, %v4239_v34  ;;  %v11112_v28 = vcombine.low %v3273_v52, %v3281_v27  ;;  %v3304_v33 = vld [vmem:[%s14517_s18 + $0x290] sm:$0xff]  ;;  %v3369_v52 = vld [vmem:[%s14517_s18 + $0x498] sm:$0xff] }
 0x74d   : > { %9595 = vmatprep.subr.bf16.mxu1 %v12003_v45  ;;  %9759 = vmatprep.subr.bf16.mxu0 %v12005_v51  ;;  %v11063_v45 = vcombine.high %v3224_v2, %v3232_v39  ;;  %v11065_v51 = vcombine.high %v3225_v40, %v3233_v41  ;;  %v3312_v34 = vld [vmem:[%s14517_s18 + $0x2d0] sm:$0xff]  ;;  %v3377_v27 = vld [vmem:[%s14517_s18 + $0x4d8] sm:$0xff] }
 0x750   : > { %9596 = vmatpush1.bf16.msra.mxu1 %v12002_v55  ;;  %9760 = vmatpush1.bf16.msra.mxu0 %v12004_v62  ;;  %v11062_v55 = vcombine.low %v3224_v2, %v3232_v39  ;;  %v15042_v62 = vpack.c.bf16 %v3212_v56, %v3212_v56  ;;  %v11143_v2 = vcombine.high %v3304_v33, %v3312_v34  ;;  %v3320_v39 = vld [vmem:[%s14517_s18 + $0x310] sm:$0xff] }
 0x751   : > { %9597 = vmatprep.subr.bf16.mxu1 %v12019_v32  ;;  %9761 = vmatprep.subr.bf16.mxu0 %v12021_v0  ;;  %v11064_v32 = vcombine.low %v3225_v40, %v3233_v41  ;;  %v11079_v0 = vcombine.high %v3240_v63, %v3248_v1  ;;  %v3328_v40 = vld [vmem:[%s14517_s18 + $0x350] sm:$0xff]  ;;  %v3321_v41 = vld [vmem:[%s14517_s18 + $0x318] sm:$0xff] }
 0x752   : > { %v3336_v63 = vld [vmem:[%s14517_s18 + $0x390] sm:$0xff] }
 0x753   : > { %v3344_v1 = vld [vmem:[%s14517_s18 + $0x3d0] sm:$0xff] }
 0x754   : > { %9598 = vmatpush1.bf16.msra.mxu1 %v12018_v11  ;;  %9762 = vmatpush1.bf16.msra.mxu0 %v12020_v15  ;;  %v11095_v11 = vcombine.high %v3256_v44, %v3264_v3  ;;  %v11097_v15 = vcombine.high %v3257_v10, %v3265_v7  ;;  %v3352_v44 = vld [vmem:[%s14517_s18 + $0x410] sm:$0xff]  ;;  %v3353_v10 = vld [vmem:[%s14517_s18 + $0x418] sm:$0xff] }
 0x755   : > { %9599 = vmatprep.subr.bf16.mxu1 %v12035_v18  ;;  %9763 = vmatprep.subr.bf16.mxu0 %v12037_v37  ;;  %v3272_v18 = vld [vmem:[%s14517_s18 + $0x190] sm:$0xff]  ;;  %v3361_v7 = vld [vmem:[%s14517_s18 + $0x458] sm:$0xff] }
 0x756   : > { %v3280_v37 = vld [vmem:[%s14517_s18 + $0x1d0] sm:$0xff] }
 0x757   : > { %v11111_v23 = vcombine.high %v3272_v18, %v3280_v37  ;;  %v3360_v3 = vld [vmem:[%s14517_s18 + $0x450] sm:$0xff] }
 0x758   : > { %9600 = vmatpush1.bf16.msra.mxu1 %v12034_v16  ;;  %9764 = vmatpush1.bf16.msra.mxu0 %v12036_v26  ;;  %v3296_v16 = vld [vmem:[%s14517_s18 + $0x250] sm:$0xff]  ;;  %v3289_v26 = vld [vmem:[%s14517_s18 + $0x218] sm:$0xff] }
 0x759   : > { %9601 = vmatprep.subr.bf16.mxu1 %v12051_v47  ;;  %9765 = vmatprep.subr.bf16.mxu0 %v12053_v54  ;;  %v3297_v47 = vld [vmem:[%s14517_s18 + $0x258] sm:$0xff]  ;;  %v11110_v54 = vcombine.low %v3272_v18, %v3280_v37  ;;  %v11127_v30 = vcombine.high %v3288_v25, %v3296_v16  ;;  %v3368_v18 = vld [vmem:[%s14517_s18 + $0x490] sm:$0xff] }
 0x75a   : > { %v11129_v60 = vcombine.high %v3289_v26, %v3297_v47  ;;  %v3376_v37 = vld [vmem:[%s14517_s18 + $0x4d0] sm:$0xff] }
 0x75c   : > { %9602 = vmatpush1.bf16.msra.mxu1 %v12050_v42  ;;  %9766 = vmatpush1.bf16.msra.mxu0 %v12052_v20  ;;  %v3305_v42 = vld [vmem:[%s14517_s18 + $0x298] sm:$0xff] }
 0x75d   : > { %9603 = vmatprep.subr.bf16.mxu1 %v12067_v49  ;;  %9767 = vmatprep.subr.bf16.mxu0 %v12069_v35  ;;  %v3313_v20 = vld [vmem:[%s14517_s18 + $0x2d8] sm:$0xff]  ;;  %v11126_v49 = vcombine.low %v3288_v25, %v3296_v16  ;;  %v11128_v35 = vcombine.low %v3289_v26, %v3297_v47  ;;  %v3384_v25 = vld [vmem:[%s14517_s18 + $0x510] sm:$0xff] }
 0x75e   : > { %v11145_v36 = vcombine.high %v3305_v42, %v3313_v20  ;;  %v3392_v16 = vld [vmem:[%s14517_s18 + $0x550] sm:$0xff]  ;;  %v3385_v26 = vld [vmem:[%s14517_s18 + $0x518] sm:$0xff] }
 0x75f   : > { %v3393_v47 = vld [vmem:[%s14517_s18 + $0x558] sm:$0xff] }
 0x760   : > { %9604 = vmatpush1.bf16.msra.mxu1 %v12066_v43  ;;  %9768 = vmatpush1.bf16.msra.mxu0 %v12068_v58  ;;  %v3329_v43 = vld [vmem:[%s14517_s18 + $0x358] sm:$0xff]  ;;  %v11142_v58 = vcombine.low %v3304_v33, %v3312_v34  ;;  %v3400_v33 = vld [vmem:[%s14517_s18 + $0x590] sm:$0xff] }
 0x761   : > { %9778 = vmatprep.subr.bf16.mxu1 %v11063_v45  ;;  %9942 = vmatprep.subr.bf16.mxu0 %v11065_v51  ;;  %v11144_v45 = vcombine.low %v3305_v42, %v3313_v20  ;;  %v11159_v51 = vcombine.high %v3320_v39, %v3328_v40  ;;  %v11161_v56 = vcombine.high %v3321_v41, %v3329_v43  ;;  %v3408_v34 = vld [vmem:[%s14517_s18 + $0x5d0] sm:$0xff]  ;;  %v3401_v42 = vld [vmem:[%s14517_s18 + $0x598] sm:$0xff] }
 0x762   : > { %v3409_v20 = vld [vmem:[%s14517_s18 + $0x5d8] sm:$0xff] }
 0x763   : > { %9606 = vmatmul.mubr.bf16.vlgmr.msra.gmra.mrb[12].mxu1 %v15042_v62  ;;  %9770 = vmatmul.mubr.bf16.vlgmr.msra.gmra.mrb[12].mxu0 %v15042_v62 }
 0x764   : > { %9779 = vmatpush1.bf16.msra.mxu1 %v11062_v55  ;;  %9810 = vmatprep.mubr.bf16.mxu1 %v14734_v29  ;;  %v11158_v55 = vcombine.low %v3320_v39, %v3328_v40  ;;  %v3416_v39 = vld [vmem:[%s14517_s18 + $0x610] sm:$0xff] }
 0x765   : > { %9943 = vmatpush1.bf16.msra.mxu0 %v11064_v32  ;;  %9974 = vmatprep.mubr.bf16.mxu0 %v14734_v29  ;;  %v11160_v32 = vcombine.low %v3321_v41, %v3329_v43  ;;  %v3424_v40 = vld [vmem:[%s14517_s18 + $0x650] sm:$0xff]  ;;  %v3417_v41 = vld [vmem:[%s14517_s18 + $0x618] sm:$0xff] }
 0x766   : > { %9780 = vmatprep.subr.bf16.mxu1 %v11079_v0  ;;  %9944 = vmatprep.subr.bf16.mxu0 %v11081_v17  ;;  %v11175_v0 = vcombine.high %v3336_v63, %v3344_v1  ;;  %v11177_v17 = vcombine.high %v3337_v50, %v3345_v53  ;;  %v3425_v43 = vld [vmem:[%s14517_s18 + $0x658] sm:$0xff] }
 0x768   : > { %9781 = vmatpush1.bf16.msra.mxu1 %v11078_v8  ;;  %v11174_v8 = vcombine.low %v3336_v63, %v3344_v1  ;;  %v3432_v63 = vld [vmem:[%s14517_s18 + $0x690] sm:$0xff] }
 0x769   : > { %9945 = vmatpush1.bf16.msra.mxu0 %v11080_v48  ;;  %9782 = vmatprep.subr.bf16.mxu1 %v11095_v11  ;;  %v11176_v48 = vcombine.low %v3337_v50, %v3345_v53  ;;  %v11191_v11 = vcombine.high %v3352_v44, %v3360_v3  ;;  %v3440_v1 = vld [vmem:[%s14517_s18 + $0x6d0] sm:$0xff]  ;;  %v3433_v50 = vld [vmem:[%s14517_s18 + $0x698] sm:$0xff] }
 0x76a   : > { %9946 = vmatprep.subr.bf16.mxu0 %v11097_v15  ;;  %v11193_v15 = vcombine.high %v3353_v10, %v3361_v7  ;;  %v3441_v53 = vld [vmem:[%s14517_s18 + $0x6d8] sm:$0xff] }
 0x76c   : > { %9783 = vmatpush1.bf16.msra.mxu1 %v11094_v21  ;;  %v11190_v21 = vcombine.low %v3352_v44, %v3360_v3  ;;  %v3448_v44 = vld [vmem:[%s14517_s18 + $0x710] sm:$0xff] }
 0x76d   : > { %9947 = vmatpush1.bf16.msra.mxu0 %v11096_v22  ;;  %9784 = vmatprep.subr.bf16.mxu1 %v11111_v23  ;;  %v11192_v22 = vcombine.low %v3353_v10, %v3361_v7  ;;  %v11207_v23 = vcombine.high %v3368_v18, %v3376_v37  ;;  %v3456_v3 = vld [vmem:[%s14517_s18 + $0x750] sm:$0xff]  ;;  %v3449_v10 = vld [vmem:[%s14517_s18 + $0x718] sm:$0xff] }
 0x76e   : > { %9948 = vmatprep.subr.bf16.mxu0 %v11113_v24  ;;  %v11209_v24 = vcombine.high %v3369_v52, %v3377_v27  ;;  %v3457_v7 = vld [vmem:[%s14517_s18 + $0x758] sm:$0xff] }
 0x770   : > { %9785 = vmatpush1.bf16.msra.mxu1 %v11110_v54  ;;  %v11206_v54 = vcombine.low %v3368_v18, %v3376_v37  ;;  %v3464_v18 = vld [vmem:[%s14517_s18 + $0x790] sm:$0xff] }
 0x771   : > { %9949 = vmatpush1.bf16.msra.mxu0 %v11112_v28  ;;  %9786 = vmatprep.subr.bf16.mxu1 %v11127_v30  ;;  %v11208_v28 = vcombine.low %v3369_v52, %v3377_v27  ;;  %v11223_v30 = vcombine.high %v3384_v25, %v3392_v16  ;;  %v3472_v37 = vld [vmem:[%s14517_s18 + $0x7d0] sm:$0xff]  ;;  %v3465_v52 = vld [vmem:[%s14517_s18 + $0x798] sm:$0xff] }
 0x772   : > { %9950 = vmatprep.subr.bf16.mxu0 %v11129_v60  ;;  %v11225_v60 = vcombine.high %v3385_v26, %v3393_v47  ;;  %v3473_v27 = vld [vmem:[%s14517_s18 + $0x7d8] sm:$0xff] }
 0x774   : > { %9787 = vmatpush1.bf16.msra.mxu1 %v11126_v49  ;;  %v11222_v49 = vcombine.low %v3384_v25, %v3392_v16  ;;  %v3480_v25 = vld [vmem:[%s14517_s18 + $0x810] sm:$0xff] }
 0x775   : > { %9951 = vmatpush1.bf16.msra.mxu0 %v11128_v35  ;;  %9788 = vmatprep.subr.bf16.mxu1 %v11143_v2  ;;  %v11224_v35 = vcombine.low %v3385_v26, %v3393_v47  ;;  %v11239_v2 = vcombine.high %v3400_v33, %v3408_v34  ;;  %v3488_v16 = vld [vmem:[%s14517_s18 + $0x850] sm:$0xff]  ;;  %v3481_v26 = vld [vmem:[%s14517_s18 + $0x818] sm:$0xff] }
 0x776   : > { %9952 = vmatprep.subr.bf16.mxu0 %v11145_v36  ;;  %v11241_v36 = vcombine.high %v3401_v42, %v3409_v20  ;;  %v3489_v47 = vld [vmem:[%s14517_s18 + $0x858] sm:$0xff] }
 0x778   : > { %9789 = vmatpush1.bf16.msra.mxu1 %v11142_v58  ;;  %v11238_v58 = vcombine.low %v3400_v33, %v3408_v34  ;;  %v3496_v33 = vld [vmem:[%s14517_s18 + $0x890] sm:$0xff] }
 0x779   : > { %9953 = vmatpush1.bf16.msra.mxu0 %v11144_v45  ;;  %9790 = vmatprep.subr.bf16.mxu1 %v11159_v51  ;;  %v11240_v45 = vcombine.low %v3401_v42, %v3409_v20  ;;  %v11255_v51 = vcombine.high %v3416_v39, %v3424_v40  ;;  %v3504_v34 = vld [vmem:[%s14517_s18 + $0x8d0] sm:$0xff]  ;;  %v11318_v42 = vcombine.low %v3480_v25, %v3488_v16  ;;  %v3497_v20 = vld [vmem:[%s14517_s18 + $0x898] sm:$0xff] }
 0x77a   : > { %9954 = vmatprep.subr.bf16.mxu0 %v11161_v56  ;;  %v11257_v56 = vcombine.high %v3417_v41, %v3425_v43 }
 0x77c   : > { %9791 = vmatpush1.bf16.msra.mxu1 %v11158_v55  ;;  %v11254_v55 = vcombine.low %v3416_v39, %v3424_v40  ;;  %v3520_v39 = vld [vmem:[%s14517_s18 + $0x950] sm:$0xff] }
 0x77d   : > { %9955 = vmatpush1.bf16.msra.mxu0 %v11160_v32  ;;  %9792 = vmatprep.subr.bf16.mxu1 %v11175_v0  ;;  %v11256_v32 = vcombine.low %v3417_v41, %v3425_v43  ;;  %v11271_v0 = vcombine.high %v3432_v63, %v3440_v1  ;;  %v3513_v41 = vld [vmem:[%s14517_s18 + $0x918] sm:$0xff] }
 0x77e   : > { %9956 = vmatprep.subr.bf16.mxu0 %v11177_v17  ;;  %v11273_v17 = vcombine.high %v3433_v50, %v3441_v53  ;;  %v3521_v43 = vld [vmem:[%s14517_s18 + $0x958] sm:$0xff] }
 0x780   : > { %9793 = vmatpush1.bf16.msra.mxu1 %v11174_v8  ;;  %v11270_v8 = vcombine.low %v3432_v63, %v3440_v1  ;;  %v3528_v63 = vld [vmem:[%s14517_s18 + $0x990] sm:$0xff] }
 0x781   : > { %9957 = vmatpush1.bf16.msra.mxu0 %v11176_v48  ;;  %9794 = vmatprep.subr.bf16.mxu1 %v11191_v11  ;;  %v11272_v48 = vcombine.low %v3433_v50, %v3441_v53  ;;  %v11287_v11 = vcombine.high %v3448_v44, %v3456_v3  ;;  %v3536_v1 = vld [vmem:[%s14517_s18 + $0x9d0] sm:$0xff]  ;;  %v3529_v50 = vld [vmem:[%s14517_s18 + $0x998] sm:$0xff] }
 0x782   : > { %9958 = vmatprep.subr.bf16.mxu0 %v11193_v15  ;;  %v11289_v15 = vcombine.high %v3449_v10, %v3457_v7  ;;  %v3537_v53 = vld [vmem:[%s14517_s18 + $0x9d8] sm:$0xff] }
 0x784   : > { %9795 = vmatpush1.bf16.msra.mxu1 %v11190_v21  ;;  %v11286_v21 = vcombine.low %v3448_v44, %v3456_v3  ;;  %v3544_v44 = vld [vmem:[%s14517_s18 + $0xa10] sm:$0xff] }
 0x785   : > { %9959 = vmatpush1.bf16.msra.mxu0 %v11192_v22  ;;  %9796 = vmatprep.subr.bf16.mxu1 %v11207_v23  ;;  %v11288_v22 = vcombine.low %v3449_v10, %v3457_v7  ;;  %v11303_v23 = vcombine.high %v3464_v18, %v3472_v37  ;;  %v3552_v3 = vld [vmem:[%s14517_s18 + $0xa50] sm:$0xff]  ;;  %v3545_v10 = vld [vmem:[%s14517_s18 + $0xa18] sm:$0xff] }
 0x786   : > { %9960 = vmatprep.subr.bf16.mxu0 %v11209_v24  ;;  %v11305_v24 = vcombine.high %v3465_v52, %v3473_v27  ;;  %v3553_v7 = vld [vmem:[%s14517_s18 + $0xa58] sm:$0xff] }
 0x788   : > { %9797 = vmatpush1.bf16.msra.mxu1 %v11206_v54  ;;  %v11302_v54 = vcombine.low %v3464_v18, %v3472_v37  ;;  %v3560_v18 = vld [vmem:[%s14517_s18 + $0xa90] sm:$0xff] }
 0x789   : > { %9961 = vmatpush1.bf16.msra.mxu0 %v11208_v28  ;;  %9798 = vmatprep.subr.bf16.mxu1 %v11223_v30  ;;  %v11304_v28 = vcombine.low %v3465_v52, %v3473_v27  ;;  %v11319_v30 = vcombine.high %v3480_v25, %v3488_v16  ;;  %v3568_v37 = vld [vmem:[%s14517_s18 + $0xad0] sm:$0xff]  ;;  %v3561_v52 = vld [vmem:[%s14517_s18 + $0xa98] sm:$0xff] }
 0x78a   : > { %9962 = vmatprep.subr.bf16.mxu0 %v11225_v60  ;;  %v11321_v60 = vcombine.high %v3481_v26, %v3489_v47  ;;  %v3569_v27 = vld [vmem:[%s14517_s18 + $0xad8] sm:$0xff]  ;;  %v3576_v25 = vld [vmem:[%s14517_s18 + $0xb10] sm:$0xff] }
 0x78b   : > { %v3584_v16 = vld [vmem:[%s14517_s18 + $0xb50] sm:$0xff] }
 0x78c   : > { %9799 = vmatpush1.bf16.msra.mxu1 %v11222_v49  ;;  %v3505_v49 = vld [vmem:[%s14517_s18 + $0x8d8] sm:$0xff] }
 0x78d   : > { %9963 = vmatpush1.bf16.msra.mxu0 %v11224_v35  ;;  %9800 = vmatprep.subr.bf16.mxu1 %v11239_v2  ;;  %v11320_v35 = vcombine.low %v3481_v26, %v3489_v47  ;;  %v11335_v2 = vcombine.high %v3496_v33, %v3504_v34  ;;  %v11337_v40 = vcombine.high %v3497_v20, %v3505_v49  ;;  %v3577_v26 = vld [vmem:[%s14517_s18 + $0xb18] sm:$0xff] }
 0x78e   : > { %9964 = vmatprep.subr.bf16.mxu0 %v11241_v36  ;;  %v3512_v36 = vld [vmem:[%s14517_s18 + $0x910] sm:$0xff]  ;;  %v3585_v47 = vld [vmem:[%s14517_s18 + $0xb58] sm:$0xff] }
 0x790   : > { %9801 = vmatpush1.bf16.msra.mxu1 %v11238_v58  ;;  %v11334_v58 = vcombine.low %v3496_v33, %v3504_v34  ;;  %v3592_v33 = vld [vmem:[%s14517_s18 + $0xb90] sm:$0xff] }
 0x791   : > { %9965 = vmatpush1.bf16.msra.mxu0 %v11240_v45  ;;  %9802 = vmatprep.subr.bf16.mxu1 %v11255_v51  ;;  %v11336_v45 = vcombine.low %v3497_v20, %v3505_v49  ;;  %v11351_v51 = vcombine.high %v3512_v36, %v3520_v39  ;;  %v3600_v34 = vld [vmem:[%s14517_s18 + $0xbd0] sm:$0xff]  ;;  %v3601_v20 = vld [vmem:[%s14517_s18 + $0xbd8] sm:$0xff]  ;;  %v11414_v49 = vcombine.low %v3576_v25, %v3584_v16 }
 0x792   : > { %9966 = vmatprep.subr.bf16.mxu0 %v11257_v56  ;;  %v11353_v56 = vcombine.high %v3513_v41, %v3521_v43 }
 0x794   : > { %9803 = vmatpush1.bf16.msra.mxu1 %v11254_v55  ;;  %v11350_v55 = vcombine.low %v3512_v36, %v3520_v39  ;;  %v3608_v39 = vld [vmem:[%s14517_s18 + $0xc10] sm:$0xff] }
 0x795   : > { %9967 = vmatpush1.bf16.msra.mxu0 %v11256_v32  ;;  %9804 = vmatprep.subr.bf16.mxu1 %v11271_v0  ;;  %v11352_v32 = vcombine.low %v3513_v41, %v3521_v43  ;;  %v11367_v0 = vcombine.high %v3528_v63, %v3536_v1  ;;  %v3609_v41 = vld [vmem:[%s14517_s18 + $0xc18] sm:$0xff] }
 0x796   : > { %9968 = vmatprep.subr.bf16.mxu0 %v11273_v17  ;;  %v11369_v17 = vcombine.high %v3529_v50, %v3537_v53  ;;  %v3617_v43 = vld [vmem:[%s14517_s18 + $0xc58] sm:$0xff] }
 0x798   : > { %9805 = vmatpush1.bf16.msra.mxu1 %v11270_v8  ;;  %v11366_v8 = vcombine.low %v3528_v63, %v3536_v1  ;;  %v3624_v63 = vld [vmem:[%s14517_s18 + $0xc90] sm:$0xff] }
 0x799   : > { %9969 = vmatpush1.bf16.msra.mxu0 %v11272_v48  ;;  %9806 = vmatprep.subr.bf16.mxu1 %v11287_v11  ;;  %v11368_v48 = vcombine.low %v3529_v50, %v3537_v53  ;;  %v11383_v11 = vcombine.high %v3544_v44, %v3552_v3  ;;  %v3632_v1 = vld [vmem:[%s14517_s18 + $0xcd0] sm:$0xff]  ;;  %v3625_v50 = vld [vmem:[%s14517_s18 + $0xc98] sm:$0xff] }
 0x79a   : > { %9970 = vmatprep.subr.bf16.mxu0 %v11289_v15  ;;  %v11385_v15 = vcombine.high %v3545_v10, %v3553_v7  ;;  %v3633_v53 = vld [vmem:[%s14517_s18 + $0xcd8] sm:$0xff] }
 0x79c   : > { %9807 = vmatpush1.bf16.msra.mxu1 %v11286_v21  ;;  %v11382_v21 = vcombine.low %v3544_v44, %v3552_v3  ;;  %v3640_v44 = vld [vmem:[%s14517_s18 + $0xd10] sm:$0xff] }
 0x79d   : > { %9971 = vmatpush1.bf16.msra.mxu0 %v11288_v22  ;;  %9808 = vmatprep.subr.bf16.mxu1 %v11303_v23  ;;  %v11384_v22 = vcombine.low %v3545_v10, %v3553_v7  ;;  %v11399_v23 = vcombine.high %v3560_v18, %v3568_v37  ;;  %v3648_v3 = vld [vmem:[%s14517_s18 + $0xd50] sm:$0xff]  ;;  %v3641_v10 = vld [vmem:[%s14517_s18 + $0xd18] sm:$0xff] }
 0x79e   : > { %9972 = vmatprep.subr.bf16.mxu0 %v11305_v24  ;;  %v11401_v24 = vcombine.high %v3561_v52, %v3569_v27  ;;  %v3649_v7 = vld [vmem:[%s14517_s18 + $0xd58] sm:$0xff] }
 0x7a0   : > { %9809 = vmatpush1.bf16.msra.mxu1 %v11302_v54  ;;  %v11398_v54 = vcombine.low %v3560_v18, %v3568_v37  ;;  %v3656_v18 = vld [vmem:[%s14517_s18 + $0xd90] sm:$0xff] }
 0x7a1   : > { %9973 = vmatpush1.bf16.msra.mxu0 %v11304_v28  ;;  %9819 = vmatprep.subr.bf16.mxu1 %v11319_v30  ;;  %v11400_v28 = vcombine.low %v3561_v52, %v3569_v27  ;;  %v11415_v30 = vcombine.high %v3576_v25, %v3584_v16  ;;  %v3664_v37 = vld [vmem:[%s14517_s18 + $0xdd0] sm:$0xff]  ;;  %v3657_v52 = vld [vmem:[%s14517_s18 + $0xd98] sm:$0xff] }
 0x7a2   : > { %9983 = vmatprep.subr.bf16.mxu0 %v11321_v60  ;;  %v11417_v60 = vcombine.high %v3577_v26, %v3585_v47  ;;  %v3665_v27 = vld [vmem:[%s14517_s18 + $0xdd8] sm:$0xff]  ;;  %v3672_v25 = vld [vmem:[%s14517_s18 + $0xe10] sm:$0xff] }
 0x7a3   : > { %9811 = vmatmul.mubr.bf16.vlgmr.msra.gmra.mrb[16].mxu1 %v14736_v31  ;;  %v3680_v16 = vld [vmem:[%s14517_s18 + $0xe50] sm:$0xff] }
 0x7a4   : > { %9975 = vmatmul.mubr.bf16.vlgmr.msra.gmra.mrb[16].mxu0 %v14736_v31  ;;  %9820 = vmatpush1.bf16.msra.mxu1 %v11318_v42  ;;  %v3593_v42 = vld [vmem:[%s14517_s18 + $0xb98] sm:$0xff] }
 0x7a5   : > { %9851 = vmatprep.mubr.bf16.mxu1 %v14744_v38  ;;  %9984 = vmatpush1.bf16.msra.mxu0 %v11320_v35  ;;  %v11416_v35 = vcombine.low %v3577_v26, %v3585_v47  ;;  %v11433_v36 = vcombine.high %v3593_v42, %v3601_v20  ;;  %v3673_v26 = vld [vmem:[%s14517_s18 + $0xe18] sm:$0xff] }
 0x7a6   : > { %10015 = vmatprep.mubr.bf16.mxu0 %v14744_v38  ;;  %9821 = vmatprep.subr.bf16.mxu1 %v11335_v2  ;;  %v11431_v2 = vcombine.high %v3592_v33, %v3600_v34  ;;  %v3681_v47 = vld [vmem:[%s14517_s18 + $0xe58] sm:$0xff] }
 0x7a7   : > { %9985 = vmatprep.subr.bf16.mxu0 %v11337_v40  ;;  %v3616_v40 = vld [vmem:[%s14517_s18 + $0xc50] sm:$0xff] }
 0x7a8   : > { %9822 = vmatpush1.bf16.msra.mxu1 %v11334_v58  ;;  %v11430_v58 = vcombine.low %v3592_v33, %v3600_v34  ;;  %v3688_v33 = vld [vmem:[%s14517_s18 + $0xe90] sm:$0xff] }
 0x7a9   : > { %9986 = vmatpush1.bf16.msra.mxu0 %v11336_v45  ;;  %9823 = vmatprep.subr.bf16.mxu1 %v11351_v51  ;;  %v11432_v45 = vcombine.low %v3593_v42, %v3601_v20  ;;  %v11447_v51 = vcombine.high %v3608_v39, %v3616_v40  ;;  %v3696_v34 = vld [vmem:[%s14517_s18 + $0xed0] sm:$0xff]  ;;  %v3689_v42 = vld [vmem:[%s14517_s18 + $0xe98] sm:$0xff] }
 0x7aa   : > { %9987 = vmatprep.subr.bf16.mxu0 %v11353_v56  ;;  %v11449_v56 = vcombine.high %v3609_v41, %v3617_v43  ;;  %v3697_v20 = vld [vmem:[%s14517_s18 + $0xed8] sm:$0xff] }
 0x7ac   : > { %9824 = vmatpush1.bf16.msra.mxu1 %v11350_v55  ;;  %v11446_v55 = vcombine.low %v3608_v39, %v3616_v40  ;;  %v3704_v39 = vld [vmem:[%s14517_s18 + $0xf10] sm:$0xff] }
 0x7ad   : > { %9988 = vmatpush1.bf16.msra.mxu0 %v11352_v32  ;;  %9825 = vmatprep.subr.bf16.mxu1 %v11367_v0  ;;  %v11448_v32 = vcombine.low %v3609_v41, %v3617_v43  ;;  %v11463_v0 = vcombine.high %v3624_v63, %v3632_v1  ;;  %v3712_v40 = vld [vmem:[%s14517_s18 + $0xf50] sm:$0xff]  ;;  %v3705_v41 = vld [vmem:[%s14517_s18 + $0xf18] sm:$0xff] }
 0x7ae   : > { %9989 = vmatprep.subr.bf16.mxu0 %v11369_v17  ;;  %v11465_v17 = vcombine.high %v3625_v50, %v3633_v53  ;;  %v3713_v43 = vld [vmem:[%s14517_s18 + $0xf58] sm:$0xff] }
 0x7b0   : > { %9826 = vmatpush1.bf16.msra.mxu1 %v11366_v8  ;;  %v11462_v8 = vcombine.low %v3624_v63, %v3632_v1  ;;  %v3720_v63 = vld [vmem:[%s14517_s18 + $0xf90] sm:$0xff] }
 0x7b1   : > { %9990 = vmatpush1.bf16.msra.mxu0 %v11368_v48  ;;  %9827 = vmatprep.subr.bf16.mxu1 %v11383_v11  ;;  %v11464_v48 = vcombine.low %v3625_v50, %v3633_v53  ;;  %v11479_v11 = vcombine.high %v3640_v44, %v3648_v3  ;;  %v3728_v1 = vld [vmem:[%s14517_s18 + $0xfd0] sm:$0xff]  ;;  %v3721_v50 = vld [vmem:[%s14517_s18 + $0xf98] sm:$0xff] }
 0x7b2   : > { %9991 = vmatprep.subr.bf16.mxu0 %v11385_v15  ;;  %v11481_v15 = vcombine.high %v3641_v10, %v3649_v7  ;;  %v3729_v53 = vld [vmem:[%s14517_s18 + $0xfd8] sm:$0xff] }
 0x7b4   : > { %9828 = vmatpush1.bf16.msra.mxu1 %v11382_v21  ;;  %v11478_v21 = vcombine.low %v3640_v44, %v3648_v3  ;;  %v3736_v44 = vld [vmem:[%s14517_s18 + $0x1010] sm:$0xff] }
 0x7b5   : > { %9992 = vmatpush1.bf16.msra.mxu0 %v11384_v22  ;;  %9829 = vmatprep.subr.bf16.mxu1 %v11399_v23  ;;  %v11480_v22 = vcombine.low %v3641_v10, %v3649_v7  ;;  %v11495_v23 = vcombine.high %v3656_v18, %v3664_v37  ;;  %v3744_v3 = vld [vmem:[%s14517_s18 + $0x1050] sm:$0xff]  ;;  %v3737_v10 = vld [vmem:[%s14517_s18 + $0x1018] sm:$0xff] }
 0x7b6   : > { %9993 = vmatprep.subr.bf16.mxu0 %v11401_v24  ;;  %v11497_v24 = vcombine.high %v3657_v52, %v3665_v27  ;;  %v3745_v7 = vld [vmem:[%s14517_s18 + $0x1058] sm:$0xff] }
 0x7b8   : > { %9830 = vmatpush1.bf16.msra.mxu1 %v11398_v54  ;;  %v11494_v54 = vcombine.low %v3656_v18, %v3664_v37  ;;  %v3752_v18 = vld [vmem:[%s14517_s18 + $0x1090] sm:$0xff] }
 0x7b9   : > { %9994 = vmatpush1.bf16.msra.mxu0 %v11400_v28  ;;  %9831 = vmatprep.subr.bf16.mxu1 %v11415_v30  ;;  %v11496_v28 = vcombine.low %v3657_v52, %v3665_v27  ;;  %v11511_v30 = vcombine.high %v3672_v25, %v3680_v16  ;;  %v3760_v37 = vld [vmem:[%s14517_s18 + $0x10d0] sm:$0xff]  ;;  %v11574_v52 = vcombine.low %v3736_v44, %v3744_v3  ;;  %v3753_v27 = vld [vmem:[%s14517_s18 + $0x1098] sm:$0xff] }
 0x7ba   : > { %9995 = vmatprep.subr.bf16.mxu0 %v11417_v60  ;;  %v11513_v60 = vcombine.high %v3673_v26, %v3681_v47 }
 0x7bc   : > { %9832 = vmatpush1.bf16.msra.mxu1 %v11414_v49  ;;  %v11510_v49 = vcombine.low %v3672_v25, %v3680_v16  ;;  %v3776_v25 = vld [vmem:[%s14517_s18 + $0x1150] sm:$0xff] }
 0x7bd   : > { %9996 = vmatpush1.bf16.msra.mxu0 %v11416_v35  ;;  %9833 = vmatprep.subr.bf16.mxu1 %v11431_v2  ;;  %v11512_v35 = vcombine.low %v3673_v26, %v3681_v47  ;;  %v11527_v2 = vcombine.high %v3688_v33, %v3696_v34  ;;  %v3769_v26 = vld [vmem:[%s14517_s18 + $0x1118] sm:$0xff] }
 0x7be   : > { %9997 = vmatprep.subr.bf16.mxu0 %v11433_v36  ;;  %v11529_v36 = vcombine.high %v3689_v42, %v3697_v20  ;;  %v3777_v47 = vld [vmem:[%s14517_s18 + $0x1158] sm:$0xff] }
 0x7c0   : > { %9834 = vmatpush1.bf16.msra.mxu1 %v11430_v58  ;;  %v11526_v58 = vcombine.low %v3688_v33, %v3696_v34  ;;  %v3784_v33 = vld [vmem:[%s14517_s18 + $0x1190] sm:$0xff] }
 0x7c1   : > { %9998 = vmatpush1.bf16.msra.mxu0 %v11432_v45  ;;  %9835 = vmatprep.subr.bf16.mxu1 %v11447_v51  ;;  %v11528_v45 = vcombine.low %v3689_v42, %v3697_v20  ;;  %v11543_v51 = vcombine.high %v3704_v39, %v3712_v40  ;;  %v3792_v34 = vld [vmem:[%s14517_s18 + $0x11d0] sm:$0xff]  ;;  %v3785_v42 = vld [vmem:[%s14517_s18 + $0x1198] sm:$0xff] }
 0x7c2   : > { %9999 = vmatprep.subr.bf16.mxu0 %v11449_v56  ;;  %v11545_v56 = vcombine.high %v3705_v41, %v3713_v43  ;;  %v3793_v20 = vld [vmem:[%s14517_s18 + $0x11d8] sm:$0xff] }
 0x7c4   : > { %9836 = vmatpush1.bf16.msra.mxu1 %v11446_v55  ;;  %v11542_v55 = vcombine.low %v3704_v39, %v3712_v40  ;;  %v3800_v39 = vld [vmem:[%s14517_s18 + $0x1210] sm:$0xff] }
 0x7c5   : > { %10000 = vmatpush1.bf16.msra.mxu0 %v11448_v32  ;;  %9837 = vmatprep.subr.bf16.mxu1 %v11463_v0  ;;  %v11544_v32 = vcombine.low %v3705_v41, %v3713_v43  ;;  %v11559_v0 = vcombine.high %v3720_v63, %v3728_v1  ;;  %v3808_v40 = vld [vmem:[%s14517_s18 + $0x1250] sm:$0xff]  ;;  %v3801_v41 = vld [vmem:[%s14517_s18 + $0x1218] sm:$0xff] }
 0x7c6   : > { %10001 = vmatprep.subr.bf16.mxu0 %v11465_v17  ;;  %v11561_v17 = vcombine.high %v3721_v50, %v3729_v53  ;;  %v3809_v43 = vld [vmem:[%s14517_s18 + $0x1258] sm:$0xff] }
 0x7c8   : > { %9838 = vmatpush1.bf16.msra.mxu1 %v11462_v8  ;;  %v11558_v8 = vcombine.low %v3720_v63, %v3728_v1  ;;  %v3816_v63 = vld [vmem:[%s14517_s18 + $0x1290] sm:$0xff] }
 0x7c9   : > { %10002 = vmatpush1.bf16.msra.mxu0 %v11464_v48  ;;  %9839 = vmatprep.subr.bf16.mxu1 %v11479_v11  ;;  %v11560_v48 = vcombine.low %v3721_v50, %v3729_v53  ;;  %v11575_v11 = vcombine.high %v3736_v44, %v3744_v3  ;;  %v3824_v1 = vld [vmem:[%s14517_s18 + $0x12d0] sm:$0xff]  ;;  %v3817_v50 = vld [vmem:[%s14517_s18 + $0x1298] sm:$0xff] }
 0x7ca   : > { %10003 = vmatprep.subr.bf16.mxu0 %v11481_v15  ;;  %v11577_v15 = vcombine.high %v3737_v10, %v3745_v7  ;;  %v3825_v53 = vld [vmem:[%s14517_s18 + $0x12d8] sm:$0xff]  ;;  %v3832_v44 = vld [vmem:[%s14517_s18 + $0x1310] sm:$0xff] }
 0x7cb   : > { %v3840_v3 = vld [vmem:[%s14517_s18 + $0x1350] sm:$0xff] }
 0x7cc   : > { %9840 = vmatpush1.bf16.msra.mxu1 %v11478_v21  ;;  %v3761_v21 = vld [vmem:[%s14517_s18 + $0x10d8] sm:$0xff] }
 0x7cd   : > { %10004 = vmatpush1.bf16.msra.mxu0 %v11480_v22  ;;  %9841 = vmatprep.subr.bf16.mxu1 %v11495_v23  ;;  %v11576_v22 = vcombine.low %v3737_v10, %v3745_v7  ;;  %v11591_v23 = vcombine.high %v3752_v18, %v3760_v37  ;;  %v11593_v16 = vcombine.high %v3753_v27, %v3761_v21  ;;  %v3833_v10 = vld [vmem:[%s14517_s18 + $0x1318] sm:$0xff] }
 0x7ce   : > { %10005 = vmatprep.subr.bf16.mxu0 %v11497_v24  ;;  %v3768_v24 = vld [vmem:[%s14517_s18 + $0x1110] sm:$0xff]  ;;  %v3841_v7 = vld [vmem:[%s14517_s18 + $0x1358] sm:$0xff] }
 0x7d0   : > { %9842 = vmatpush1.bf16.msra.mxu1 %v11494_v54  ;;  %v11590_v54 = vcombine.low %v3752_v18, %v3760_v37  ;;  %v3848_v18 = vld [vmem:[%s14517_s18 + $0x1390] sm:$0xff] }
 0x7d1   : > { %10006 = vmatpush1.bf16.msra.mxu0 %v11496_v28  ;;  %9843 = vmatprep.subr.bf16.mxu1 %v11511_v30  ;;  %v11592_v28 = vcombine.low %v3753_v27, %v3761_v21  ;;  %v11607_v30 = vcombine.high %v3768_v24, %v3776_v25  ;;  %v3856_v37 = vld [vmem:[%s14517_s18 + $0x13d0] sm:$0xff]  ;;  %v3857_v27 = vld [vmem:[%s14517_s18 + $0x13d8] sm:$0xff]  ;;  %v11670_v21 = vcombine.low %v3832_v44, %v3840_v3 }
 0x7d2   : > { %10007 = vmatprep.subr.bf16.mxu0 %v11513_v60  ;;  %v11609_v60 = vcombine.high %v3769_v26, %v3777_v47 }
 0x7d4   : > { %9844 = vmatpush1.bf16.msra.mxu1 %v11510_v49  ;;  %v11606_v49 = vcombine.low %v3768_v24, %v3776_v25  ;;  %v3864_v25 = vld [vmem:[%s14517_s18 + $0x1410] sm:$0xff] }
 0x7d5   : > { %10008 = vmatpush1.bf16.msra.mxu0 %v11512_v35  ;;  %9845 = vmatprep.subr.bf16.mxu1 %v11527_v2  ;;  %v11608_v35 = vcombine.low %v3769_v26, %v3777_v47  ;;  %v11623_v2 = vcombine.high %v3784_v33, %v3792_v34  ;;  %v3865_v26 = vld [vmem:[%s14517_s18 + $0x1418] sm:$0xff] }
 0x7d6   : > { %10009 = vmatprep.subr.bf16.mxu0 %v11529_v36  ;;  %v11625_v36 = vcombine.high %v3785_v42, %v3793_v20  ;;  %v3873_v47 = vld [vmem:[%s14517_s18 + $0x1458] sm:$0xff] }
 0x7d8   : > { %9846 = vmatpush1.bf16.msra.mxu1 %v11526_v58  ;;  %v11622_v58 = vcombine.low %v3784_v33, %v3792_v34  ;;  %v3880_v33 = vld [vmem:[%s14517_s18 + $0x1490] sm:$0xff] }
 0x7d9   : > { %10010 = vmatpush1.bf16.msra.mxu0 %v11528_v45  ;;  %9847 = vmatprep.subr.bf16.mxu1 %v11543_v51  ;;  %v11624_v45 = vcombine.low %v3785_v42, %v3793_v20  ;;  %v11639_v51 = vcombine.high %v3800_v39, %v3808_v40  ;;  %v3888_v34 = vld [vmem:[%s14517_s18 + $0x14d0] sm:$0xff]  ;;  %v3881_v42 = vld [vmem:[%s14517_s18 + $0x1498] sm:$0xff] }
 0x7da   : > { %10011 = vmatprep.subr.bf16.mxu0 %v11545_v56  ;;  %v11641_v56 = vcombine.high %v3801_v41, %v3809_v43  ;;  %v3889_v20 = vld [vmem:[%s14517_s18 + $0x14d8] sm:$0xff] }
 0x7dc   : > { %9848 = vmatpush1.bf16.msra.mxu1 %v11542_v55  ;;  %v11638_v55 = vcombine.low %v3800_v39, %v3808_v40  ;;  %v3896_v39 = vld [vmem:[%s14517_s18 + $0x1510] sm:$0xff] }
 0x7dd   : > { %10012 = vmatpush1.bf16.msra.mxu0 %v11544_v32  ;;  %9849 = vmatprep.subr.bf16.mxu1 %v11559_v0  ;;  %v11640_v32 = vcombine.low %v3801_v41, %v3809_v43  ;;  %v11655_v0 = vcombine.high %v3816_v63, %v3824_v1  ;;  %v3904_v40 = vld [vmem:[%s14517_s18 + $0x1550] sm:$0xff]  ;;  %v3897_v41 = vld [vmem:[%s14517_s18 + $0x1518] sm:$0xff] }
 0x7de   : > { %10013 = vmatprep.subr.bf16.mxu0 %v11561_v17  ;;  %v11657_v17 = vcombine.high %v3817_v50, %v3825_v53  ;;  %v3905_v43 = vld [vmem:[%s14517_s18 + $0x1558] sm:$0xff] }
 0x7e0   : > { %9850 = vmatpush1.bf16.msra.mxu1 %v11558_v8  ;;  %v11654_v8 = vcombine.low %v3816_v63, %v3824_v1  ;;  %v3912_v63 = vld [vmem:[%s14517_s18 + $0x1590] sm:$0xff] }
 0x7e1   : > { %10014 = vmatpush1.bf16.msra.mxu0 %v11560_v48  ;;  %9860 = vmatprep.subr.bf16.mxu1 %v11575_v11  ;;  %v11656_v48 = vcombine.low %v3817_v50, %v3825_v53  ;;  %v11671_v11 = vcombine.high %v3832_v44, %v3840_v3  ;;  %v3920_v1 = vld [vmem:[%s14517_s18 + $0x15d0] sm:$0xff]  ;;  %v3913_v50 = vld [vmem:[%s14517_s18 + $0x1598] sm:$0xff] }
 0x7e2   : > { %10024 = vmatprep.subr.bf16.mxu0 %v11577_v15  ;;  %v11673_v15 = vcombine.high %v3833_v10, %v3841_v7  ;;  %v3921_v53 = vld [vmem:[%s14517_s18 + $0x15d8] sm:$0xff]  ;;  %v3928_v44 = vld [vmem:[%s14517_s18 + $0x1610] sm:$0xff] }
 0x7e3   : > { %9852 = vmatmul.mubr.bf16.vlgmr.msra.gmra.mrb[16].mxu1 %v14830_v13  ;;  %v3936_v3 = vld [vmem:[%s14517_s18 + $0x1650] sm:$0xff] }
 0x7e4   : > { %10016 = vmatmul.mubr.bf16.vlgmr.msra.gmra.mrb[16].mxu0 %v14830_v13  ;;  %9861 = vmatpush1.bf16.msra.mxu1 %v11574_v52  ;;  %v3849_v52 = vld [vmem:[%s14517_s18 + $0x1398] sm:$0xff] }
 0x7e5   : > { %9892 = vmatprep.mubr.bf16.mxu1 %v14963_v46  ;;  %10025 = vmatpush1.bf16.msra.mxu0 %v11576_v22  ;;  %v11672_v22 = vcombine.low %v3833_v10, %v3841_v7  ;;  %v11689_v24 = vcombine.high %v3849_v52, %v3857_v27  ;;  %v3929_v10 = vld [vmem:[%s14517_s18 + $0x1618] sm:$0xff] }
 0x7e6   : > { %10056 = vmatprep.mubr.bf16.mxu0 %v14963_v46  ;;  %9862 = vmatprep.subr.bf16.mxu1 %v11591_v23  ;;  %v11687_v23 = vcombine.high %v3848_v18, %v3856_v37  ;;  %v3937_v7 = vld [vmem:[%s14517_s18 + $0x1658] sm:$0xff] }
 0x7e7   : > { %10026 = vmatprep.subr.bf16.mxu0 %v11593_v16  ;;  %v3872_v16 = vld [vmem:[%s14517_s18 + $0x1450] sm:$0xff] }
 0x7e8   : > { %9863 = vmatpush1.bf16.msra.mxu1 %v11590_v54  ;;  %v11686_v54 = vcombine.low %v3848_v18, %v3856_v37  ;;  %v3944_v18 = vld [vmem:[%s14517_s18 + $0x1690] sm:$0xff] }
 0x7e9   : > { %10027 = vmatpush1.bf16.msra.mxu0 %v11592_v28  ;;  %9864 = vmatprep.subr.bf16.mxu1 %v11607_v30  ;;  %v11688_v28 = vcombine.low %v3849_v52, %v3857_v27  ;;  %v11703_v30 = vcombine.high %v3864_v25, %v3872_v16  ;;  %v3952_v37 = vld [vmem:[%s14517_s18 + $0x16d0] sm:$0xff]  ;;  %v3945_v52 = vld [vmem:[%s14517_s18 + $0x1698] sm:$0xff] }
 0x7ea   : > { %10028 = vmatprep.subr.bf16.mxu0 %v11609_v60  ;;  %v11705_v60 = vcombine.high %v3865_v26, %v3873_v47  ;;  %v3953_v27 = vld [vmem:[%s14517_s18 + $0x16d8] sm:$0xff] }
 0x7ec   : > { %9865 = vmatpush1.bf16.msra.mxu1 %v11606_v49  ;;  %v11702_v49 = vcombine.low %v3864_v25, %v3872_v16  ;;  %v3960_v25 = vld [vmem:[%s14517_s18 + $0x1710] sm:$0xff] }
 0x7ed   : > { %10029 = vmatpush1.bf16.msra.mxu0 %v11608_v35  ;;  %9866 = vmatprep.subr.bf16.mxu1 %v11623_v2  ;;  %v11704_v35 = vcombine.low %v3865_v26, %v3873_v47  ;;  %v11719_v2 = vcombine.high %v3880_v33, %v3888_v34  ;;  %v3968_v16 = vld [vmem:[%s14517_s18 + $0x1750] sm:$0xff]  ;;  %v3961_v26 = vld [vmem:[%s14517_s18 + $0x1718] sm:$0xff] }
 0x7ee   : > { %10030 = vmatprep.subr.bf16.mxu0 %v11625_v36  ;;  %v11721_v36 = vcombine.high %v3881_v42, %v3889_v20  ;;  %v3969_v47 = vld [vmem:[%s14517_s18 + $0x1758] sm:$0xff] }
 0x7f0   : > { %9867 = vmatpush1.bf16.msra.mxu1 %v11622_v58  ;;  %v11718_v58 = vcombine.low %v3880_v33, %v3888_v34  ;;  %v3976_v33 = vld [vmem:[%s14517_s18 + $0x1790] sm:$0xff] }
 0x7f1   : > { %10031 = vmatpush1.bf16.msra.mxu0 %v11624_v45  ;;  %9868 = vmatprep.subr.bf16.mxu1 %v11639_v51  ;;  %v11720_v45 = vcombine.low %v3881_v42, %v3889_v20  ;;  %v11735_v51 = vcombine.high %v3896_v39, %v3904_v40  ;;  %v3984_v34 = vld [vmem:[%s14517_s18 + $0x17d0] sm:$0xff]  ;;  %v3977_v42 = vld [vmem:[%s14517_s18 + $0x1798] sm:$0xff] }
 0x7f2   : > { %10032 = vmatprep.subr.bf16.mxu0 %v11641_v56  ;;  %v11737_v56 = vcombine.high %v3897_v41, %v3905_v43  ;;  %v3985_v20 = vld [vmem:[%s14517_s18 + $0x17d8] sm:$0xff] }
 0x7f4   : > { %9869 = vmatpush1.bf16.msra.mxu1 %v11638_v55  ;;  %v11734_v55 = vcombine.low %v3896_v39, %v3904_v40  ;;  %v3992_v39 = vld [vmem:[%s14517_s18 + $0x1810] sm:$0xff] }
 0x7f5   : > { %10033 = vmatpush1.bf16.msra.mxu0 %v11640_v32  ;;  %9870 = vmatprep.subr.bf16.mxu1 %v11655_v0  ;;  %v11736_v32 = vcombine.low %v3897_v41, %v3905_v43  ;;  %v11751_v0 = vcombine.high %v3912_v63, %v3920_v1  ;;  %v4000_v40 = vld [vmem:[%s14517_s18 + $0x1850] sm:$0xff]  ;;  %v3993_v41 = vld [vmem:[%s14517_s18 + $0x1818] sm:$0xff] }
 0x7f6   : > { %10034 = vmatprep.subr.bf16.mxu0 %v11657_v17  ;;  %v11753_v17 = vcombine.high %v3913_v50, %v3921_v53  ;;  %v4001_v43 = vld [vmem:[%s14517_s18 + $0x1858] sm:$0xff] }
 0x7f8   : > { %9871 = vmatpush1.bf16.msra.mxu1 %v11654_v8  ;;  %v11750_v8 = vcombine.low %v3912_v63, %v3920_v1  ;;  %v4008_v63 = vld [vmem:[%s14517_s18 + $0x1890] sm:$0xff] }
 0x7f9   : > { %10035 = vmatpush1.bf16.msra.mxu0 %v11656_v48  ;;  %9872 = vmatprep.subr.bf16.mxu1 %v11671_v11  ;;  %v11752_v48 = vcombine.low %v3913_v50, %v3921_v53  ;;  %v11767_v11 = vcombine.high %v3928_v44, %v3936_v3  ;;  %v4016_v1 = vld [vmem:[%s14517_s18 + $0x18d0] sm:$0xff]  ;;  %v11830_v50 = vcombine.low %v3992_v39, %v4000_v40  ;;  %v4009_v53 = vld [vmem:[%s14517_s18 + $0x1898] sm:$0xff] }
 0x7fa   : > { %10036 = vmatprep.subr.bf16.mxu0 %v11673_v15  ;;  %v11769_v15 = vcombine.high %v3929_v10, %v3937_v7 }
 0x7fc   : > { %9873 = vmatpush1.bf16.msra.mxu1 %v11670_v21  ;;  %v11766_v21 = vcombine.low %v3928_v44, %v3936_v3  ;;  %v4032_v44 = vld [vmem:[%s14517_s18 + $0x1950] sm:$0xff] }
 0x7fd   : > { %10037 = vmatpush1.bf16.msra.mxu0 %v11672_v22  ;;  %9874 = vmatprep.subr.bf16.mxu1 %v11687_v23  ;;  %v11768_v22 = vcombine.low %v3929_v10, %v3937_v7  ;;  %v11783_v23 = vcombine.high %v3944_v18, %v3952_v37  ;;  %v4025_v10 = vld [vmem:[%s14517_s18 + $0x1918] sm:$0xff] }
 0x7fe   : > { %10038 = vmatprep.subr.bf16.mxu0 %v11689_v24  ;;  %v11785_v24 = vcombine.high %v3945_v52, %v3953_v27  ;;  %v4033_v7 = vld [vmem:[%s14517_s18 + $0x1958] sm:$0xff] }
 0x800   : > { %9875 = vmatpush1.bf16.msra.mxu1 %v11686_v54  ;;  %v11782_v54 = vcombine.low %v3944_v18, %v3952_v37  ;;  %v4040_v18 = vld [vmem:[%s14517_s18 + $0x1990] sm:$0xff] }
 0x801   : > { %10039 = vmatpush1.bf16.msra.mxu0 %v11688_v28  ;;  %9876 = vmatprep.subr.bf16.mxu1 %v11703_v30  ;;  %v11784_v28 = vcombine.low %v3945_v52, %v3953_v27  ;;  %v11799_v30 = vcombine.high %v3960_v25, %v3968_v16  ;;  %v4048_v37 = vld [vmem:[%s14517_s18 + $0x19d0] sm:$0xff]  ;;  %v4041_v52 = vld [vmem:[%s14517_s18 + $0x1998] sm:$0xff] }
 0x802   : > { %10040 = vmatprep.subr.bf16.mxu0 %v11705_v60  ;;  %v11801_v60 = vcombine.high %v3961_v26, %v3969_v47  ;;  %v4049_v27 = vld [vmem:[%s14517_s18 + $0x19d8] sm:$0xff] }
 0x804   : > { %9877 = vmatpush1.bf16.msra.mxu1 %v11702_v49  ;;  %v11798_v49 = vcombine.low %v3960_v25, %v3968_v16  ;;  %v4056_v25 = vld [vmem:[%s14517_s18 + $0x1a10] sm:$0xff] }
 0x805   : > { %10041 = vmatpush1.bf16.msra.mxu0 %v11704_v35  ;;  %9878 = vmatprep.subr.bf16.mxu1 %v11719_v2  ;;  %v11800_v35 = vcombine.low %v3961_v26, %v3969_v47  ;;  %v11815_v2 = vcombine.high %v3976_v33, %v3984_v34  ;;  %v4064_v16 = vld [vmem:[%s14517_s18 + $0x1a50] sm:$0xff]  ;;  %v4057_v26 = vld [vmem:[%s14517_s18 + $0x1a18] sm:$0xff] }
 0x806   : > { %10042 = vmatprep.subr.bf16.mxu0 %v11721_v36  ;;  %v11817_v36 = vcombine.high %v3977_v42, %v3985_v20  ;;  %v4065_v47 = vld [vmem:[%s14517_s18 + $0x1a58] sm:$0xff] }
 0x808   : > { %9879 = vmatpush1.bf16.msra.mxu1 %v11718_v58  ;;  %v11814_v58 = vcombine.low %v3976_v33, %v3984_v34  ;;  %v4072_v33 = vld [vmem:[%s14517_s18 + $0x1a90] sm:$0xff] }
 0x809   : > { %10043 = vmatpush1.bf16.msra.mxu0 %v11720_v45  ;;  %9880 = vmatprep.subr.bf16.mxu1 %v11735_v51  ;;  %v11816_v45 = vcombine.low %v3977_v42, %v3985_v20  ;;  %v11831_v51 = vcombine.high %v3992_v39, %v4000_v40  ;;  %v4080_v34 = vld [vmem:[%s14517_s18 + $0x1ad0] sm:$0xff]  ;;  %v4073_v42 = vld [vmem:[%s14517_s18 + $0x1a98] sm:$0xff] }
 0x80a   : > { %10044 = vmatprep.subr.bf16.mxu0 %v11737_v56  ;;  %v11833_v56 = vcombine.high %v3993_v41, %v4001_v43  ;;  %v4081_v20 = vld [vmem:[%s14517_s18 + $0x1ad8] sm:$0xff]  ;;  %v4088_v40 = vld [vmem:[%s14517_s18 + $0x1b10] sm:$0xff] }
 0x80b   : > { %v11913_v39 = vcombine.high %v4073_v42, %v4081_v20 }
 0x80c   : > { %9881 = vmatpush1.bf16.msra.mxu1 %v11734_v55  ;;  %v4017_v55 = vld [vmem:[%s14517_s18 + $0x18d8] sm:$0xff] }
 0x80d   : > { %10045 = vmatpush1.bf16.msra.mxu0 %v11736_v32  ;;  %9882 = vmatprep.subr.bf16.mxu1 %v11751_v0  ;;  %v11832_v32 = vcombine.low %v3993_v41, %v4001_v43  ;;  %v11847_v0 = vcombine.high %v4008_v63, %v4016_v1  ;;  %v11849_v3 = vcombine.high %v4009_v53, %v4017_v55  ;;  %v4096_v41 = vld [vmem:[%s14517_s18 + $0x1b50] sm:$0xff] }
 0x80e   : > { %10046 = vmatprep.subr.bf16.mxu0 %v11753_v17  ;;  %v4024_v17 = vld [vmem:[%s14517_s18 + $0x1910] sm:$0xff] }
 0x810   : > { %9883 = vmatpush1.bf16.msra.mxu1 %v11750_v8  ;;  %v11846_v8 = vcombine.low %v4008_v63, %v4016_v1  ;;  %v11910_v1 = vcombine.low %v4072_v33, %v4080_v34 }
 0x811   : > { %10047 = vmatpush1.bf16.msra.mxu0 %v11752_v48  ;;  %9884 = vmatprep.subr.bf16.mxu1 %v11767_v11  ;;  %v11848_v48 = vcombine.low %v4009_v53, %v4017_v55  ;;  %v11863_v11 = vcombine.high %v4024_v17, %v4032_v44  ;;  %v11927_v53 = vcombine.high %v4088_v40, %v4096_v41 }
 0x812   : > { %10048 = vmatprep.subr.bf16.mxu0 %v11769_v15  ;;  %v11865_v15 = vcombine.high %v4025_v10, %v4033_v7 }
 0x814   : > { %9885 = vmatpush1.bf16.msra.mxu1 %v11766_v21  ;;  %v11862_v21 = vcombine.low %v4024_v17, %v4032_v44  ;;  %v4104_v17 = vld [vmem:[%s14517_s18 + $0x1b90] sm:$0xff] }
 0x815   : > { %10049 = vmatpush1.bf16.msra.mxu0 %v11768_v22  ;;  %9886 = vmatprep.subr.bf16.mxu1 %v11783_v23  ;;  %v11864_v22 = vcombine.low %v4025_v10, %v4033_v7  ;;  %v11879_v23 = vcombine.high %v4040_v18, %v4048_v37  ;;  %v4112_v44 = vld [vmem:[%s14517_s18 + $0x1bd0] sm:$0xff] }
 0x816   : > { %10050 = vmatprep.subr.bf16.mxu0 %v11785_v24  ;;  %v11881_v24 = vcombine.high %v4041_v52, %v4049_v27 }
 0x818   : > { %9887 = vmatpush1.bf16.msra.mxu1 %v11782_v54  ;;  %v11878_v54 = vcombine.low %v4040_v18, %v4048_v37 }
 0x819   : > { %10051 = vmatpush1.bf16.msra.mxu0 %v11784_v28  ;;  %9888 = vmatprep.subr.bf16.mxu1 %v11799_v30  ;;  %v11880_v28 = vcombine.low %v4041_v52, %v4049_v27  ;;  %v11895_v30 = vcombine.high %v4056_v25, %v4064_v16  ;;  %v11926_v27 = vcombine.low %v4088_v40, %v4096_v41  ;;  %v4152_v40 = vld [vmem:[%s14517_s18 + $0x1d10] sm:$0xff] }
 0x81a   : > { %10052 = vmatprep.subr.bf16.mxu0 %v11801_v60  ;;  %v11897_v60 = vcombine.high %v4057_v26, %v4065_v47  ;;  %v4160_v41 = vld [vmem:[%s14517_s18 + $0x1d50] sm:$0xff] }
 0x81c   : > { %9889 = vmatpush1.bf16.msra.mxu1 %v11798_v49  ;;  %v11894_v49 = vcombine.low %v4056_v25, %v4064_v16  ;;  %v4120_v16 = vld [vmem:[%s14517_s18 + $0x1c10] sm:$0xff] }
 0x81d   : > { %10053 = vmatpush1.bf16.msra.mxu0 %v11800_v35  ;;  %9890 = vmatprep.subr.bf16.mxu1 %v11815_v2  ;;  %v4246_v35 = vld [vmem:[%s15270_s17] sm:$0xff]  ;;  %v11896_v2 = vcombine.low %v4057_v26, %v4065_v47  ;;  %v4121_v47 = vld [vmem:[%s14517_s18 + $0x1c18] sm:$0xff] }
 0x81e   : > { %10054 = vmatprep.subr.bf16.mxu0 %v11817_v36  ;;  %v11911_v36 = vcombine.high %v4072_v33, %v4080_v34  ;;  %v4253_v43 = vrot.slane %v4246_v35, %v14557_v59  ;;  %v4265_v63 = vrot.slane %v4246_v35, %v14572_v6  ;;  %v4128_v26 = vld [vmem:[%s14517_s18 + $0x1c50] sm:$0xff] }
 0x81f   : > { %v4136_v34 = vld [vmem:[%s14517_s18 + $0x1c90] sm:$0xff] }
 0x820   : > { %9891 = vmatpush1.bf16.msra.mxu1 %v11814_v58  ;;  %v4261_v58 = vrot.slane %v4246_v35, %v14569_v4 }
 0x821   : > { %10055 = vmatpush1.bf16.msra.mxu0 %v11816_v45  ;;  %9901 = vmatprep.subr.bf16.mxu1 %v11831_v51  ;;  %v4089_v45 = vld [vmem:[%s14517_s18 + $0x1b18] sm:$0xff] }
 0x822   : > { %10065 = vmatprep.subr.bf16.mxu0 %v11833_v56  ;;  %v4097_v51 = vld [vmem:[%s14517_s18 + $0x1b58] sm:$0xff]  ;;  %v4257_v56 = vrot.slane %v4246_v35, %v14560_v61  ;;  %v11958_v35 = vcombine.low %v4120_v16, %v4128_v26 }
 0x823   : > { %9893 = vmatmul.mubr.bf16.vlgmr.msra.gmra.mrb[16].mxu1 %v14965_v57 }
 0x824   : > { %10057 = vmatmul.mubr.bf16.vlgmr.msra.gmra.mrb[16].mxu0 %v14965_v57  ;;  %9902 = vmatpush1.bf16.msra.mxu1 %v11830_v50  ;;  %v11912_v50 = vcombine.low %v4073_v42, %v4081_v20  ;;  %v4144_v42 = vld [vmem:[%s14517_s18 + $0x1cd0] sm:$0xff]  ;;  %v4137_v20 = vld [vmem:[%s14517_s18 + $0x1c98] sm:$0xff] }
 0x825   : > { %9933 = vmatprep.mubr.bf16.mxu1 %v14973_v5  ;;  %10066 = vmatpush1.bf16.msra.mxu0 %v11832_v32 }
 0x826   : > { %10097 = vmatprep.mubr.bf16.mxu0 %v14973_v5  ;;  %9903 = vmatprep.subr.bf16.mxu1 %v11847_v0  ;;  %v11929_v0 = vcombine.high %v4089_v45, %v4097_v51 }
 0x827   : > { %10067 = vmatprep.subr.bf16.mxu0 %v11849_v3 }
 0x828   : > { %9904 = vmatpush1.bf16.msra.mxu1 %v11846_v8 }
 0x829   : > { %10068 = vmatpush1.bf16.msra.mxu0 %v11848_v48  ;;  %9905 = vmatprep.subr.bf16.mxu1 %v11863_v11  ;;  %v4105_v48 = vld [vmem:[%s14517_s18 + $0x1b98] sm:$0xff] }
 0x82a   : > { %10069 = vmatprep.subr.bf16.mxu0 %v11865_v15  ;;  %v4113_v11 = vld [vmem:[%s14517_s18 + $0x1bd8] sm:$0xff] }
 0x82b   : > { %v11945_v25 = vcombine.high %v4105_v48, %v4113_v11 }
 0x82c   : > { %9906 = vmatpush1.bf16.msra.mxu1 %v11862_v21 }
 0x82d   : > { %10070 = vmatpush1.bf16.msra.mxu0 %v11864_v22  ;;  %9907 = vmatprep.subr.bf16.mxu1 %v11879_v23  ;;  %v11928_v23 = vcombine.low %v4089_v45, %v4097_v51  ;;  %v4161_v45 = vld [vmem:[%s14517_s18 + $0x1d58] sm:$0xff] }
 0x82e   : > { %10071 = vmatprep.subr.bf16.mxu0 %v11881_v24  ;;  %v11943_v24 = vcombine.high %v4104_v17, %v4112_v44 }
 0x830   : > { %9908 = vmatpush1.bf16.msra.mxu1 %v11878_v54  ;;  %v4129_v54 = vld [vmem:[%s14517_s18 + $0x1c58] sm:$0xff] }
 0x831   : > { %10072 = vmatpush1.bf16.msra.mxu0 %v11880_v28  ;;  %9909 = vmatprep.subr.bf16.mxu1 %v11895_v30  ;;  %v11942_v28 = vcombine.low %v4104_v17, %v4112_v44  ;;  %v11944_v30 = vcombine.low %v4105_v48, %v4113_v11  ;;  %v11961_v33 = vcombine.high %v4121_v47, %v4129_v54  ;;  %v4169_v17 = vld [vmem:[%s14517_s18 + $0x1d98] sm:$0xff]  ;;  %v4184_v48 = vld [vmem:[%s14517_s18 + $0x1e10] sm:$0xff] }
 0x832   : > { %10073 = vmatprep.subr.bf16.mxu0 %v11897_v60  ;;  %v11959_v60 = vcombine.high %v4120_v16, %v4128_v26  ;;  %v4177_v44 = vld [vmem:[%s14517_s18 + $0x1dd8] sm:$0xff]  ;;  %v4192_v11 = vld [vmem:[%s14517_s18 + $0x1e50] sm:$0xff] }
 0x833   : > { %v12022_v16 = vcombine.low %v4184_v48, %v4192_v11 }
 0x834   : > { %9910 = vmatpush1.bf16.msra.mxu1 %v11894_v49  ;;  %v4145_v49 = vld [vmem:[%s14517_s18 + $0x1cd8] sm:$0xff] }
 0x835   : > { %10074 = vmatpush1.bf16.msra.mxu0 %v11896_v2  ;;  %9911 = vmatprep.subr.bf16.mxu1 %v11911_v36  ;;  %v11960_v2 = vcombine.low %v4121_v47, %v4129_v54  ;;  %v11975_v36 = vcombine.high %v4136_v34, %v4144_v42 }
 0x836   : > { %v9607_v55 = vpop.f32.mrb[12].mxu1  ;;  %v9771_v32 = vpop.f32.mrb[12].mxu0  ;;  %10075 = vmatprep.subr.bf16.mxu0 %v11913_v39  ;;  %v11977_v39 = vcombine.high %v4137_v20, %v4145_v49 }
 0x837   : > { %v13043_v3 = vadd.f32 %v9607_v55, %v4253_v43  ;;  %v13045_v10 = vadd.f32 %v9771_v32, %v4261_v58  ;;  %v9609_v7 = vpop.f32.mrb[13].mxu1  ;;  %v9773_v8 = vpop.f32.mrb[13].mxu0  ;;  %v4153_v58 = vld [vmem:[%s14517_s18 + $0x1d18] sm:$0xff]  ;;  %v4168_v32 = vld [vmem:[%s14517_s18 + $0x1d90] sm:$0xff] }
 0x838   : > { %v13044_v15 = vadd.f32 %v9609_v7, %v4257_v56  ;;  %v13046_v18 = vadd.f32 %v9773_v8, %v4265_v63  ;;  %v9611_v37 = vpop.f32.mrb[14].mxu1  ;;  %v9775_v52 = vpop.f32.mrb[14].mxu0  ;;  %9912 = vmatpush1.bf16.msra.mxu1 %v11910_v1  ;;  %v11974_v56 = vcombine.low %v4136_v34, %v4144_v42  ;;  %v11976_v1 = vcombine.low %v4137_v20, %v4145_v49 }
 0x839   : > { %13387 = vtanh.f32 %v13043_v3  ;;  %10076 = vmatpush1.bf16.msra.mxu0 %v11912_v50  ;;  %v9612_v21 = vpop.f32.mrb[15].mxu1  ;;  %v9776_v22 = vpop.f32.mrb[15].mxu0  ;;  %9913 = vmatprep.subr.bf16.mxu1 %v11927_v53  ;;  %v11991_v50 = vcombine.high %v4152_v40, %v4160_v41  ;;  %v11993_v55 = vcombine.high %v4153_v58, %v4161_v45  ;;  %v11990_v3 = vcombine.low %v4152_v40, %v4160_v41 }
 0x83a   : > { %13389 = vtanh.f32 %v13045_v10  ;;  %10077 = vmatprep.subr.bf16.mxu0 %v11929_v0  ;;  %v4176_v0 = vld [vmem:[%s14517_s18 + $0x1dd0] sm:$0xff]  ;;  %v11992_v10 = vcombine.low %v4153_v58, %v4161_v45  ;;  %v12009_v8 = vcombine.high %v4169_v17, %v4177_v44  ;;  %v12008_v52 = vcombine.low %v4169_v17, %v4177_v44  ;;  %v3226_v45 = vld [vmem:[%s14517_s18 + $0x20] sm:$0xff]  ;;  %v3243_v44 = vld [vmem:[%s14517_s18 + $0xa8] sm:$0xff] }
 0x83b   : > { %13391 = vtanh.f32 %v13044_v15  ;;  %v12007_v7 = vcombine.high %v4168_v32, %v4176_v0  ;;  %v4185_v15 = vld [vmem:[%s14517_s18 + $0x1e18] sm:$0xff]  ;;  %v12006_v37 = vcombine.low %v4168_v32, %v4176_v0  ;;  %v4200_v22 = vld [vmem:[%s14517_s18 + $0x1e90] sm:$0xff]  ;;  %v3242_v32 = vld [vmem:[%s14517_s18 + $0xa0] sm:$0xff] }
 0x83c   : > { %13393 = vtanh.f32 %v13046_v18  ;;  %9914 = vmatpush1.bf16.msra.mxu1 %v11926_v27  ;;  %v4193_v18 = vld [vmem:[%s14517_s18 + $0x1e58] sm:$0xff]  ;;  %v12023_v27 = vcombine.high %v4184_v48, %v4192_v11  ;;  %v3250_v0 = vld [vmem:[%s14517_s18 + $0xe0] sm:$0xff] }
 0x83d   : > { %10078 = vmatpush1.bf16.msra.mxu0 %v11928_v23  ;;  %9915 = vmatprep.subr.bf16.mxu1 %v11943_v24  ;;  %v12025_v21 = vcombine.high %v4185_v15, %v4193_v18  ;;  %v4208_v23 = vld [vmem:[%s14517_s18 + $0x1ed0] sm:$0xff]  ;;  %v4201_v24 = vld [vmem:[%s14517_s18 + $0x1e98] sm:$0xff]  ;;  %v12024_v26 = vcombine.low %v4185_v15, %v4193_v18  ;;  %v3266_v48 = vld [vmem:[%s14517_s18 + $0x160] sm:$0xff] }
 0x83e   : > { %10079 = vmatprep.subr.bf16.mxu0 %v11945_v25  ;;  %v4209_v25 = vld [vmem:[%s14517_s18 + $0x1ed8] sm:$0xff]  ;;  %v12039_v47 = vcombine.high %v4200_v22, %v4208_v23  ;;  %v12038_v34 = vcombine.low %v4200_v22, %v4208_v23  ;;  %v3259_v15 = vld [vmem:[%s14517_s18 + $0x128] sm:$0xff]  ;;  %v3274_v22 = vld [vmem:[%s14517_s18 + $0x1a0] sm:$0xff] }
 0x83f   : > { %v12041_v54 = vcombine.high %v4201_v24, %v4209_v25  ;;  %v12040_v42 = vcombine.low %v4201_v24, %v4209_v25  ;;  %v3267_v18 = vld [vmem:[%s14517_s18 + $0x168] sm:$0xff]  ;;  %v3282_v23 = vld [vmem:[%s14517_s18 + $0x1e0] sm:$0xff] }
 0x840   : > { %9916 = vmatpush1.bf16.msra.mxu1 %v11942_v28  ;;  %v4216_v28 = vld [vmem:[%s14517_s18 + $0x1f10] sm:$0xff]  ;;  %v3275_v24 = vld [vmem:[%s14517_s18 + $0x1a8] sm:$0xff] }
 0x841   : > { %10080 = vmatpush1.bf16.msra.mxu0 %v11944_v30  ;;  %9917 = vmatprep.subr.bf16.mxu1 %v11959_v60  ;;  %v4224_v30 = vld [vmem:[%s14517_s18 + $0x1f50] sm:$0xff]  ;;  %v4217_v60 = vld [vmem:[%s14517_s18 + $0x1f18] sm:$0xff]  ;;  %v3283_v25 = vld [vmem:[%s14517_s18 + $0x1e8] sm:$0xff] }
 0x842   : > { %10081 = vmatprep.subr.bf16.mxu0 %v11961_v33  ;;  %v4225_v33 = vld [vmem:[%s14517_s18 + $0x1f58] sm:$0xff]  ;;  %v12055_v20 = vcombine.high %v4216_v28, %v4224_v30  ;;  %v12054_v40 = vcombine.low %v4216_v28, %v4224_v30  ;;  %v3290_v28 = vld [vmem:[%s14517_s18 + $0x220] sm:$0xff] }
 0x843   : > { %v13388_v43 = vpop.eup %13387  ;;  %v12057_v49 = vcombine.high %v4217_v60, %v4225_v33  ;;  %v12056_v41 = vcombine.low %v4217_v60, %v4225_v33  ;;  %v3298_v30 = vld [vmem:[%s14517_s18 + $0x260] sm:$0xff]  ;;  %v3291_v60 = vld [vmem:[%s14517_s18 + $0x228] sm:$0xff] }
 0x844   : > { %v13390_v51 = vpop.eup %13389  ;;  %10778 = vst [vmem:[%s15307_s27] sm:$0xff] %v13388_v43  ;;  %9918 = vmatpush1.bf16.msra.mxu1 %v11958_v35  ;;  %v4232_v35 = vld [vmem:[%s14517_s18 + $0x1f90] sm:$0xff]  ;;  %v3299_v33 = vld [vmem:[%s14517_s18 + $0x268] sm:$0xff] }
 0x845   : > { %v13392_v63 = vpop.eup %13391  ;;  %10780 = vst [vmem:[%s15307_s27 + $0x10] sm:$0xff] %v13390_v51  ;;  %10082 = vmatpush1.bf16.msra.mxu0 %v11960_v2  ;;  %9919 = vmatprep.subr.bf16.mxu1 %v11975_v36  ;;  %v4240_v2 = vld [vmem:[%s14517_s18 + $0x1fd0] sm:$0xff]  ;;  %v4233_v36 = vld [vmem:[%s14517_s18 + $0x1f98] sm:$0xff]  ;;  %v3234_v51 = vld [vmem:[%s14517_s18 + $0x60] sm:$0xff] }
 0x846   : > { %v13394_v53 = vpop.eup %13393  ;;  %10779 = vst [vmem:[%s15307_s27 + $0x8] sm:$0xff] %v13392_v63  ;;  %10083 = vmatprep.subr.bf16.mxu0 %v11977_v39  ;;  %v4241_v39 = vld [vmem:[%s14517_s18 + $0x1fd8] sm:$0xff]  ;;  %v12071_v43 = vcombine.high %v4232_v35, %v4240_v2  ;;  %v3235_v63 = vld [vmem:[%s14517_s18 + $0x68] sm:$0xff]  ;;  %v11066_v17 = vcombine.low %v3226_v45, %v3234_v51 }
 0x847   : > { %10781 = vst [vmem:[%s15307_s27 + $0x18] sm:$0xff] %v13394_v53  ;;  %v12073_v58 = vcombine.high %v4233_v36, %v4241_v39  ;;  %v11067_v53 = vcombine.high %v3226_v45, %v3234_v51  ;;  %v3322_v45 = vld [vmem:[%s14517_s18 + $0x320] sm:$0xff] }
 0x848   : > { %9920 = vmatpush1.bf16.msra.mxu1 %v11974_v56  ;;  %v3227_v56 = vld [vmem:[%s14517_s18 + $0x28] sm:$0xff]  ;;  %v3330_v51 = vld [vmem:[%s14517_s18 + $0x360] sm:$0xff] }
 0x849   : > { %10084 = vmatpush1.bf16.msra.mxu0 %v11976_v1  ;;  %9921 = vmatprep.subr.bf16.mxu1 %v11991_v50  ;;  %v12070_v1 = vcombine.low %v4232_v35, %v4240_v2  ;;  %v12072_v50 = vcombine.low %v4233_v36, %v4241_v39  ;;  %v3306_v35 = vld [vmem:[%s14517_s18 + $0x2a0] sm:$0xff]  ;;  %v3307_v36 = vld [vmem:[%s14517_s18 + $0x2a8] sm:$0xff] }
 0x84a   : > { %10085 = vmatprep.subr.bf16.mxu0 %v11993_v55  ;;  %v11069_v55 = vcombine.high %v3227_v56, %v3235_v63  ;;  %v3314_v2 = vld [vmem:[%s14517_s18 + $0x2e0] sm:$0xff]  ;;  %v3315_v39 = vld [vmem:[%s14517_s18 + $0x2e8] sm:$0xff] }
 0x84c   : > { %9922 = vmatpush1.bf16.msra.mxu1 %v11990_v3  ;;  %v3251_v3 = vld [vmem:[%s14517_s18 + $0xe8] sm:$0xff] }
 0x84d   : > { %10086 = vmatpush1.bf16.msra.mxu0 %v11992_v10  ;;  %9923 = vmatprep.subr.bf16.mxu1 %v12007_v7  ;;  %v11068_v10 = vcombine.low %v3227_v56, %v3235_v63  ;;  %v11083_v7 = vcombine.high %v3242_v32, %v3250_v0  ;;  %v11085_v11 = vcombine.high %v3243_v44, %v3251_v3  ;;  %v3323_v56 = vld [vmem:[%s14517_s18 + $0x328] sm:$0xff] }
 0x84e   : > { %10087 = vmatprep.subr.bf16.mxu0 %v12009_v8  ;;  %v3258_v8 = vld [vmem:[%s14517_s18 + $0x120] sm:$0xff]  ;;  %v3331_v63 = vld [vmem:[%s14517_s18 + $0x368] sm:$0xff] }
 0x850   : > { %9924 = vmatpush1.bf16.msra.mxu1 %v12006_v37  ;;  %v11082_v37 = vcombine.low %v3242_v32, %v3250_v0  ;;  %v3338_v32 = vld [vmem:[%s14517_s18 + $0x3a0] sm:$0xff] }
 0x851   : > { %10088 = vmatpush1.bf16.msra.mxu0 %v12008_v52  ;;  %9925 = vmatprep.subr.bf16.mxu1 %v12023_v27  ;;  %v11084_v52 = vcombine.low %v3243_v44, %v3251_v3  ;;  %v11099_v27 = vcombine.high %v3258_v8, %v3266_v48  ;;  %v3346_v0 = vld [vmem:[%s14517_s18 + $0x3e0] sm:$0xff]  ;;  %v3347_v44 = vld [vmem:[%s14517_s18 + $0x3e8] sm:$0xff]  ;;  %v11162_v3 = vcombine.low %v3322_v45, %v3330_v51 }
 0x852   : > { %10089 = vmatprep.subr.bf16.mxu0 %v12025_v21  ;;  %v11101_v21 = vcombine.high %v3259_v15, %v3267_v18 }
 0x854   : > { %9926 = vmatpush1.bf16.msra.mxu1 %v12022_v16  ;;  %v11098_v16 = vcombine.low %v3258_v8, %v3266_v48  ;;  %v3354_v48 = vld [vmem:[%s14517_s18 + $0x420] sm:$0xff] }
 0x855   : > { %10090 = vmatpush1.bf16.msra.mxu0 %v12024_v26  ;;  %9927 = vmatprep.subr.bf16.mxu1 %v12039_v47  ;;  %v11100_v26 = vcombine.low %v3259_v15, %v3267_v18  ;;  %v11115_v47 = vcombine.high %v3274_v22, %v3282_v23  ;;  %v3355_v15 = vld [vmem:[%s14517_s18 + $0x428] sm:$0xff] }
 0x856   : > { %10091 = vmatprep.subr.bf16.mxu0 %v12041_v54  ;;  %v11117_v54 = vcombine.high %v3275_v24, %v3283_v25  ;;  %v3363_v18 = vld [vmem:[%s14517_s18 + $0x468] sm:$0xff] }
 0x858   : > { %9928 = vmatpush1.bf16.msra.mxu1 %v12038_v34  ;;  %v11114_v34 = vcombine.low %v3274_v22, %v3282_v23  ;;  %v3370_v22 = vld [vmem:[%s14517_s18 + $0x4a0] sm:$0xff] }
 0x859   : > { %10092 = vmatpush1.bf16.msra.mxu0 %v12040_v42  ;;  %9929 = vmatprep.subr.bf16.mxu1 %v12055_v20  ;;  %v11116_v42 = vcombine.low %v3275_v24, %v3283_v25  ;;  %v11131_v20 = vcombine.high %v3290_v28, %v3298_v30  ;;  %v3378_v23 = vld [vmem:[%s14517_s18 + $0x4e0] sm:$0xff]  ;;  %v3371_v24 = vld [vmem:[%s14517_s18 + $0x4a8] sm:$0xff] }
 0x85a   : > { %10093 = vmatprep.subr.bf16.mxu0 %v12057_v49  ;;  %v11133_v49 = vcombine.high %v3291_v60, %v3299_v33  ;;  %v3379_v25 = vld [vmem:[%s14517_s18 + $0x4e8] sm:$0xff] }
 0x85c   : > { %9930 = vmatpush1.bf16.msra.mxu1 %v12054_v40  ;;  %v11130_v40 = vcombine.low %v3290_v28, %v3298_v30  ;;  %v3386_v28 = vld [vmem:[%s14517_s18 + $0x520] sm:$0xff] }
 0x85d   : > { %10094 = vmatpush1.bf16.msra.mxu0 %v12056_v41  ;;  %9931 = vmatprep.subr.bf16.mxu1 %v12071_v43  ;;  %v11132_v41 = vcombine.low %v3291_v60, %v3299_v33  ;;  %v11147_v43 = vcombine.high %v3306_v35, %v3314_v2  ;;  %v3394_v30 = vld [vmem:[%s14517_s18 + $0x560] sm:$0xff]  ;;  %v3387_v60 = vld [vmem:[%s14517_s18 + $0x528] sm:$0xff] }
 0x85e   : > { %10095 = vmatprep.subr.bf16.mxu0 %v12073_v58  ;;  %v11149_v58 = vcombine.high %v3307_v36, %v3315_v39  ;;  %v3395_v33 = vld [vmem:[%s14517_s18 + $0x568] sm:$0xff] }
 0x860   : > { %9932 = vmatpush1.bf16.msra.mxu1 %v12070_v1  ;;  %v11146_v1 = vcombine.low %v3306_v35, %v3314_v2  ;;  %v3402_v35 = vld [vmem:[%s14517_s18 + $0x5a0] sm:$0xff] }
 0x861   : > { %10096 = vmatpush1.bf16.msra.mxu0 %v12072_v50  ;;  %10106 = vmatprep.subr.bf16.mxu1 %v11067_v53  ;;  %v11148_v50 = vcombine.low %v3307_v36, %v3315_v39  ;;  %v11163_v53 = vcombine.high %v3322_v45, %v3330_v51  ;;  %v3410_v2 = vld [vmem:[%s14517_s18 + $0x5e0] sm:$0xff]  ;;  %v3403_v36 = vld [vmem:[%s14517_s18 + $0x5a8] sm:$0xff] }
 0x862   : > { %10270 = vmatprep.subr.bf16.mxu0 %v11069_v55  ;;  %v11165_v55 = vcombine.high %v3323_v56, %v3331_v63  ;;  %v3411_v39 = vld [vmem:[%s14517_s18 + $0x5e8] sm:$0xff]  ;;  %v3418_v45 = vld [vmem:[%s14517_s18 + $0x620] sm:$0xff] }
 0x863   : > { %9934 = vmatmul.mubr.bf16.vlgmr.msra.gmra.mrb[16].mxu1 %v15042_v62  ;;  %v3426_v51 = vld [vmem:[%s14517_s18 + $0x660] sm:$0xff] }
 0x864   : > { %10098 = vmatmul.mubr.bf16.vlgmr.msra.gmra.mrb[16].mxu0 %v15042_v62  ;;  %10107 = vmatpush1.bf16.msra.mxu1 %v11066_v17  ;;  %v3339_v17 = vld [vmem:[%s14517_s18 + $0x3a8] sm:$0xff] }
 0x865   : > { %10138 = vmatprep.mubr.bf16.mxu1 %v14734_v29  ;;  %10271 = vmatpush1.bf16.msra.mxu0 %v11068_v10  ;;  %v11164_v10 = vcombine.low %v3323_v56, %v3331_v63  ;;  %v11181_v8 = vcombine.high %v3339_v17, %v3347_v44  ;;  %v3419_v56 = vld [vmem:[%s14517_s18 + $0x628] sm:$0xff] }
 0x866   : > { %10302 = vmatprep.mubr.bf16.mxu0 %v14734_v29  ;;  %10108 = vmatprep.subr.bf16.mxu1 %v11083_v7  ;;  %v11179_v7 = vcombine.high %v3338_v32, %v3346_v0  ;;  %v3427_v63 = vld [vmem:[%s14517_s18 + $0x668] sm:$0xff] }
 0x867   : > { %10272 = vmatprep.subr.bf16.mxu0 %v11085_v11  ;;  %v3362_v11 = vld [vmem:[%s14517_s18 + $0x460] sm:$0xff] }
 0x868   : > { %10109 = vmatpush1.bf16.msra.mxu1 %v11082_v37  ;;  %v11178_v37 = vcombine.low %v3338_v32, %v3346_v0  ;;  %v3434_v32 = vld [vmem:[%s14517_s18 + $0x6a0] sm:$0xff] }
 0x869   : > { %10273 = vmatpush1.bf16.msra.mxu0 %v11084_v52  ;;  %10110 = vmatprep.subr.bf16.mxu1 %v11099_v27  ;;  %v11180_v52 = vcombine.low %v3339_v17, %v3347_v44  ;;  %v11195_v27 = vcombine.high %v3354_v48, %v3362_v11  ;;  %v3442_v0 = vld [vmem:[%s14517_s18 + $0x6e0] sm:$0xff]  ;;  %v3435_v17 = vld [vmem:[%s14517_s18 + $0x6a8] sm:$0xff] }
 0x86a   : > { %10274 = vmatprep.subr.bf16.mxu0 %v11101_v21  ;;  %v11197_v21 = vcombine.high %v3355_v15, %v3363_v18  ;;  %v3443_v44 = vld [vmem:[%s14517_s18 + $0x6e8] sm:$0xff] }
 0x86c   : > { %10111 = vmatpush1.bf16.msra.mxu1 %v11098_v16  ;;  %v11194_v16 = vcombine.low %v3354_v48, %v3362_v11  ;;  %v3450_v48 = vld [vmem:[%s14517_s18 + $0x720] sm:$0xff] }
 0x86d   : > { %10275 = vmatpush1.bf16.msra.mxu0 %v11100_v26  ;;  %10112 = vmatprep.subr.bf16.mxu1 %v11115_v47  ;;  %v11196_v26 = vcombine.low %v3355_v15, %v3363_v18  ;;  %v11211_v47 = vcombine.high %v3370_v22, %v3378_v23  ;;  %v3458_v11 = vld [vmem:[%s14517_s18 + $0x760] sm:$0xff]  ;;  %v3451_v15 = vld [vmem:[%s14517_s18 + $0x728] sm:$0xff] }
 0x86e   : > { %10276 = vmatprep.subr.bf16.mxu0 %v11117_v54  ;;  %v11213_v54 = vcombine.high %v3371_v24, %v3379_v25  ;;  %v3459_v18 = vld [vmem:[%s14517_s18 + $0x768] sm:$0xff] }
 0x870   : > { %10113 = vmatpush1.bf16.msra.mxu1 %v11114_v34  ;;  %v11210_v34 = vcombine.low %v3370_v22, %v3378_v23  ;;  %v3466_v22 = vld [vmem:[%s14517_s18 + $0x7a0] sm:$0xff] }
 0x871   : > { %10277 = vmatpush1.bf16.msra.mxu0 %v11116_v42  ;;  %10114 = vmatprep.subr.bf16.mxu1 %v11131_v20  ;;  %v11212_v42 = vcombine.low %v3371_v24, %v3379_v25  ;;  %v11227_v20 = vcombine.high %v3386_v28, %v3394_v30  ;;  %v3474_v23 = vld [vmem:[%s14517_s18 + $0x7e0] sm:$0xff]  ;;  %v3467_v24 = vld [vmem:[%s14517_s18 + $0x7a8] sm:$0xff] }
 0x872   : > { %10278 = vmatprep.subr.bf16.mxu0 %v11133_v49  ;;  %v11229_v49 = vcombine.high %v3387_v60, %v3395_v33  ;;  %v3475_v25 = vld [vmem:[%s14517_s18 + $0x7e8] sm:$0xff] }
 0x874   : > { %10115 = vmatpush1.bf16.msra.mxu1 %v11130_v40  ;;  %v11226_v40 = vcombine.low %v3386_v28, %v3394_v30  ;;  %v3482_v28 = vld [vmem:[%s14517_s18 + $0x820] sm:$0xff] }
 0x875   : > { %10279 = vmatpush1.bf16.msra.mxu0 %v11132_v41  ;;  %10116 = vmatprep.subr.bf16.mxu1 %v11147_v43  ;;  %v11228_v41 = vcombine.low %v3387_v60, %v3395_v33  ;;  %v11243_v43 = vcombine.high %v3402_v35, %v3410_v2  ;;  %v3490_v30 = vld [vmem:[%s14517_s18 + $0x860] sm:$0xff]  ;;  %v3483_v60 = vld [vmem:[%s14517_s18 + $0x828] sm:$0xff] }
 0x876   : > { %10280 = vmatprep.subr.bf16.mxu0 %v11149_v58  ;;  %v11245_v58 = vcombine.high %v3403_v36, %v3411_v39  ;;  %v3491_v33 = vld [vmem:[%s14517_s18 + $0x868] sm:$0xff] }
 0x878   : > { %10117 = vmatpush1.bf16.msra.mxu1 %v11146_v1  ;;  %v11242_v1 = vcombine.low %v3402_v35, %v3410_v2  ;;  %v3498_v35 = vld [vmem:[%s14517_s18 + $0x8a0] sm:$0xff] }
 0x879   : > { %10281 = vmatpush1.bf16.msra.mxu0 %v11148_v50  ;;  %10118 = vmatprep.subr.bf16.mxu1 %v11163_v53  ;;  %v11244_v50 = vcombine.low %v3403_v36, %v3411_v39  ;;  %v11259_v53 = vcombine.high %v3418_v45, %v3426_v51  ;;  %v3506_v2 = vld [vmem:[%s14517_s18 + $0x8e0] sm:$0xff]  ;;  %v11322_v36 = vcombine.low %v3482_v28, %v3490_v30  ;;  %v3499_v39 = vld [vmem:[%s14517_s18 + $0x8a8] sm:$0xff] }
 0x87a   : > { %10282 = vmatprep.subr.bf16.mxu0 %v11165_v55  ;;  %v11261_v55 = vcombine.high %v3419_v56, %v3427_v63 }
 0x87c   : > { %10119 = vmatpush1.bf16.msra.mxu1 %v11162_v3  ;;  %v11258_v3 = vcombine.low %v3418_v45, %v3426_v51  ;;  %v3522_v45 = vld [vmem:[%s14517_s18 + $0x960] sm:$0xff] }
 0x87d   : > { %10283 = vmatpush1.bf16.msra.mxu0 %v11164_v10  ;;  %10120 = vmatprep.subr.bf16.mxu1 %v11179_v7  ;;  %v11260_v10 = vcombine.low %v3419_v56, %v3427_v63  ;;  %v11275_v7 = vcombine.high %v3434_v32, %v3442_v0  ;;  %v3515_v56 = vld [vmem:[%s14517_s18 + $0x928] sm:$0xff] }
 0x87e   : > { %10284 = vmatprep.subr.bf16.mxu0 %v11181_v8  ;;  %v11277_v8 = vcombine.high %v3435_v17, %v3443_v44  ;;  %v3523_v63 = vld [vmem:[%s14517_s18 + $0x968] sm:$0xff] }
 0x880   : > { %10121 = vmatpush1.bf16.msra.mxu1 %v11178_v37  ;;  %v11274_v37 = vcombine.low %v3434_v32, %v3442_v0  ;;  %v3530_v32 = vld [vmem:[%s14517_s18 + $0x9a0] sm:$0xff] }
 0x881   : > { %10285 = vmatpush1.bf16.msra.mxu0 %v11180_v52  ;;  %10122 = vmatprep.subr.bf16.mxu1 %v11195_v27  ;;  %v11276_v52 = vcombine.low %v3435_v17, %v3443_v44  ;;  %v11291_v27 = vcombine.high %v3450_v48, %v3458_v11  ;;  %v3538_v0 = vld [vmem:[%s14517_s18 + $0x9e0] sm:$0xff]  ;;  %v3531_v17 = vld [vmem:[%s14517_s18 + $0x9a8] sm:$0xff] }
 0x882   : > { %10286 = vmatprep.subr.bf16.mxu0 %v11197_v21  ;;  %v11293_v21 = vcombine.high %v3451_v15, %v3459_v18  ;;  %v3539_v44 = vld [vmem:[%s14517_s18 + $0x9e8] sm:$0xff] }
 0x884   : > { %10123 = vmatpush1.bf16.msra.mxu1 %v11194_v16  ;;  %v11290_v16 = vcombine.low %v3450_v48, %v3458_v11  ;;  %v3546_v48 = vld [vmem:[%s14517_s18 + $0xa20] sm:$0xff] }
 0x885   : > { %10287 = vmatpush1.bf16.msra.mxu0 %v11196_v26  ;;  %10124 = vmatprep.subr.bf16.mxu1 %v11211_v47  ;;  %v11292_v26 = vcombine.low %v3451_v15, %v3459_v18  ;;  %v11307_v47 = vcombine.high %v3466_v22, %v3474_v23  ;;  %v3554_v11 = vld [vmem:[%s14517_s18 + $0xa60] sm:$0xff]  ;;  %v3547_v15 = vld [vmem:[%s14517_s18 + $0xa28] sm:$0xff] }
 0x886   : > { %10288 = vmatprep.subr.bf16.mxu0 %v11213_v54  ;;  %v11309_v54 = vcombine.high %v3467_v24, %v3475_v25  ;;  %v3555_v18 = vld [vmem:[%s14517_s18 + $0xa68] sm:$0xff] }
 0x888   : > { %10125 = vmatpush1.bf16.msra.mxu1 %v11210_v34  ;;  %v11306_v34 = vcombine.low %v3466_v22, %v3474_v23  ;;  %v3562_v22 = vld [vmem:[%s14517_s18 + $0xaa0] sm:$0xff] }
 0x889   : > { %10289 = vmatpush1.bf16.msra.mxu0 %v11212_v42  ;;  %10126 = vmatprep.subr.bf16.mxu1 %v11227_v20  ;;  %v11308_v42 = vcombine.low %v3467_v24, %v3475_v25  ;;  %v11323_v20 = vcombine.high %v3482_v28, %v3490_v30  ;;  %v3570_v23 = vld [vmem:[%s14517_s18 + $0xae0] sm:$0xff]  ;;  %v3563_v24 = vld [vmem:[%s14517_s18 + $0xaa8] sm:$0xff] }
 0x88a   : > { %10290 = vmatprep.subr.bf16.mxu0 %v11229_v49  ;;  %v11325_v49 = vcombine.high %v3483_v60, %v3491_v33  ;;  %v3571_v25 = vld [vmem:[%s14517_s18 + $0xae8] sm:$0xff]  ;;  %v3578_v28 = vld [vmem:[%s14517_s18 + $0xb20] sm:$0xff] }
 0x88b   : > { %v3586_v30 = vld [vmem:[%s14517_s18 + $0xb60] sm:$0xff] }
 0x88c   : > { %10127 = vmatpush1.bf16.msra.mxu1 %v11226_v40  ;;  %v3507_v40 = vld [vmem:[%s14517_s18 + $0x8e8] sm:$0xff] }
 0x88d   : > { %10291 = vmatpush1.bf16.msra.mxu0 %v11228_v41  ;;  %10128 = vmatprep.subr.bf16.mxu1 %v11243_v43  ;;  %v11324_v41 = vcombine.low %v3483_v60, %v3491_v33  ;;  %v11339_v43 = vcombine.high %v3498_v35, %v3506_v2  ;;  %v11341_v51 = vcombine.high %v3499_v39, %v3507_v40  ;;  %v3579_v60 = vld [vmem:[%s14517_s18 + $0xb28] sm:$0xff] }
 0x88e   : > { %10292 = vmatprep.subr.bf16.mxu0 %v11245_v58  ;;  %v3514_v58 = vld [vmem:[%s14517_s18 + $0x920] sm:$0xff]  ;;  %v3587_v33 = vld [vmem:[%s14517_s18 + $0xb68] sm:$0xff] }
 0x890   : > { %10129 = vmatpush1.bf16.msra.mxu1 %v11242_v1  ;;  %v11338_v1 = vcombine.low %v3498_v35, %v3506_v2  ;;  %v3594_v35 = vld [vmem:[%s14517_s18 + $0xba0] sm:$0xff] }
 0x891   : > { %10293 = vmatpush1.bf16.msra.mxu0 %v11244_v50  ;;  %10130 = vmatprep.subr.bf16.mxu1 %v11259_v53  ;;  %v11340_v50 = vcombine.low %v3499_v39, %v3507_v40  ;;  %v11355_v53 = vcombine.high %v3514_v58, %v3522_v45  ;;  %v3602_v2 = vld [vmem:[%s14517_s18 + $0xbe0] sm:$0xff]  ;;  %v3603_v39 = vld [vmem:[%s14517_s18 + $0xbe8] sm:$0xff]  ;;  %v11418_v40 = vcombine.low %v3578_v28, %v3586_v30 }
 0x892   : > { %10294 = vmatprep.subr.bf16.mxu0 %v11261_v55  ;;  %v11357_v55 = vcombine.high %v3515_v56, %v3523_v63 }
 0x894   : > { %10131 = vmatpush1.bf16.msra.mxu1 %v11258_v3  ;;  %v11354_v3 = vcombine.low %v3514_v58, %v3522_v45  ;;  %v3610_v45 = vld [vmem:[%s14517_s18 + $0xc20] sm:$0xff] }
 0x895   : > { %10295 = vmatpush1.bf16.msra.mxu0 %v11260_v10  ;;  %10132 = vmatprep.subr.bf16.mxu1 %v11275_v7  ;;  %v11356_v10 = vcombine.low %v3515_v56, %v3523_v63  ;;  %v11371_v7 = vcombine.high %v3530_v32, %v3538_v0  ;;  %v3611_v56 = vld [vmem:[%s14517_s18 + $0xc28] sm:$0xff] }
 0x896   : > { %10296 = vmatprep.subr.bf16.mxu0 %v11277_v8  ;;  %v11373_v8 = vcombine.high %v3531_v17, %v3539_v44  ;;  %v3619_v63 = vld [vmem:[%s14517_s18 + $0xc68] sm:$0xff] }
 0x898   : > { %10133 = vmatpush1.bf16.msra.mxu1 %v11274_v37  ;;  %v11370_v37 = vcombine.low %v3530_v32, %v3538_v0  ;;  %v3626_v32 = vld [vmem:[%s14517_s18 + $0xca0] sm:$0xff] }
 0x899   : > { %10297 = vmatpush1.bf16.msra.mxu0 %v11276_v52  ;;  %10134 = vmatprep.subr.bf16.mxu1 %v11291_v27  ;;  %v11372_v52 = vcombine.low %v3531_v17, %v3539_v44  ;;  %v11387_v27 = vcombine.high %v3546_v48, %v3554_v11  ;;  %v3634_v0 = vld [vmem:[%s14517_s18 + $0xce0] sm:$0xff]  ;;  %v3627_v17 = vld [vmem:[%s14517_s18 + $0xca8] sm:$0xff] }
 0x89a   : > { %10298 = vmatprep.subr.bf16.mxu0 %v11293_v21  ;;  %v11389_v21 = vcombine.high %v3547_v15, %v3555_v18  ;;  %v3635_v44 = vld [vmem:[%s14517_s18 + $0xce8] sm:$0xff] }
 0x89c   : > { %10135 = vmatpush1.bf16.msra.mxu1 %v11290_v16  ;;  %v11386_v16 = vcombine.low %v3546_v48, %v3554_v11  ;;  %v3642_v48 = vld [vmem:[%s14517_s18 + $0xd20] sm:$0xff] }
 0x89d   : > { %10299 = vmatpush1.bf16.msra.mxu0 %v11292_v26  ;;  %10136 = vmatprep.subr.bf16.mxu1 %v11307_v47  ;;  %v11388_v26 = vcombine.low %v3547_v15, %v3555_v18  ;;  %v11403_v47 = vcombine.high %v3562_v22, %v3570_v23  ;;  %v3650_v11 = vld [vmem:[%s14517_s18 + $0xd60] sm:$0xff]  ;;  %v3643_v15 = vld [vmem:[%s14517_s18 + $0xd28] sm:$0xff] }
 0x89e   : > { %10300 = vmatprep.subr.bf16.mxu0 %v11309_v54  ;;  %v11405_v54 = vcombine.high %v3563_v24, %v3571_v25  ;;  %v3651_v18 = vld [vmem:[%s14517_s18 + $0xd68] sm:$0xff] }
 0x8a0   : > { %10137 = vmatpush1.bf16.msra.mxu1 %v11306_v34  ;;  %v11402_v34 = vcombine.low %v3562_v22, %v3570_v23  ;;  %v3658_v22 = vld [vmem:[%s14517_s18 + $0xda0] sm:$0xff] }
 0x8a1   : > { %10301 = vmatpush1.bf16.msra.mxu0 %v11308_v42  ;;  %10147 = vmatprep.subr.bf16.mxu1 %v11323_v20  ;;  %v11404_v42 = vcombine.low %v3563_v24, %v3571_v25  ;;  %v11419_v20 = vcombine.high %v3578_v28, %v3586_v30  ;;  %v3666_v23 = vld [vmem:[%s14517_s18 + $0xde0] sm:$0xff]  ;;  %v3659_v24 = vld [vmem:[%s14517_s18 + $0xda8] sm:$0xff] }
 0x8a2   : > { %10311 = vmatprep.subr.bf16.mxu0 %v11325_v49  ;;  %v11421_v49 = vcombine.high %v3579_v60, %v3587_v33  ;;  %v3667_v25 = vld [vmem:[%s14517_s18 + $0xde8] sm:$0xff]  ;;  %v3674_v28 = vld [vmem:[%s14517_s18 + $0xe20] sm:$0xff] }
 0x8a3   : > { %10139 = vmatmul.mubr.bf16.vlgmr.msra.gmra.mrb[20].mxu1 %v14736_v31  ;;  %v3682_v30 = vld [vmem:[%s14517_s18 + $0xe60] sm:$0xff] }
 0x8a4   : > { %10303 = vmatmul.mubr.bf16.vlgmr.msra.gmra.mrb[20].mxu0 %v14736_v31  ;;  %10148 = vmatpush1.bf16.msra.mxu1 %v11322_v36  ;;  %v3595_v36 = vld [vmem:[%s14517_s18 + $0xba8] sm:$0xff] }
 0x8a5   : > { %10179 = vmatprep.mubr.bf16.mxu1 %v14744_v38  ;;  %10312 = vmatpush1.bf16.msra.mxu0 %v11324_v41  ;;  %v11420_v41 = vcombine.low %v3579_v60, %v3587_v33  ;;  %v11437_v58 = vcombine.high %v3595_v36, %v3603_v39  ;;  %v3675_v60 = vld [vmem:[%s14517_s18 + $0xe28] sm:$0xff] }
 0x8a6   : > { %10343 = vmatprep.mubr.bf16.mxu0 %v14744_v38  ;;  %10149 = vmatprep.subr.bf16.mxu1 %v11339_v43  ;;  %v11435_v43 = vcombine.high %v3594_v35, %v3602_v2  ;;  %v3683_v33 = vld [vmem:[%s14517_s18 + $0xe68] sm:$0xff] }
 0x8a7   : > { %10313 = vmatprep.subr.bf16.mxu0 %v11341_v51  ;;  %v3618_v51 = vld [vmem:[%s14517_s18 + $0xc60] sm:$0xff] }
 0x8a8   : > { %10150 = vmatpush1.bf16.msra.mxu1 %v11338_v1  ;;  %v11434_v1 = vcombine.low %v3594_v35, %v3602_v2  ;;  %v3690_v35 = vld [vmem:[%s14517_s18 + $0xea0] sm:$0xff] }
 0x8a9   : > { %10314 = vmatpush1.bf16.msra.mxu0 %v11340_v50  ;;  %10151 = vmatprep.subr.bf16.mxu1 %v11355_v53  ;;  %v11436_v50 = vcombine.low %v3595_v36, %v3603_v39  ;;  %v11451_v53 = vcombine.high %v3610_v45, %v3618_v51  ;;  %v3698_v2 = vld [vmem:[%s14517_s18 + $0xee0] sm:$0xff]  ;;  %v3691_v36 = vld [vmem:[%s14517_s18 + $0xea8] sm:$0xff] }
 0x8aa   : > { %10315 = vmatprep.subr.bf16.mxu0 %v11357_v55  ;;  %v11453_v55 = vcombine.high %v3611_v56, %v3619_v63  ;;  %v3699_v39 = vld [vmem:[%s14517_s18 + $0xee8] sm:$0xff] }
 0x8ac   : > { %10152 = vmatpush1.bf16.msra.mxu1 %v11354_v3  ;;  %v11450_v3 = vcombine.low %v3610_v45, %v3618_v51  ;;  %v3706_v45 = vld [vmem:[%s14517_s18 + $0xf20] sm:$0xff] }
 0x8ad   : > { %10316 = vmatpush1.bf16.msra.mxu0 %v11356_v10  ;;  %10153 = vmatprep.subr.bf16.mxu1 %v11371_v7  ;;  %v11452_v10 = vcombine.low %v3611_v56, %v3619_v63  ;;  %v11467_v7 = vcombine.high %v3626_v32, %v3634_v0  ;;  %v3714_v51 = vld [vmem:[%s14517_s18 + $0xf60] sm:$0xff]  ;;  %v3707_v56 = vld [vmem:[%s14517_s18 + $0xf28] sm:$0xff] }
 0x8ae   : > { %10317 = vmatprep.subr.bf16.mxu0 %v11373_v8  ;;  %v11469_v8 = vcombine.high %v3627_v17, %v3635_v44  ;;  %v3715_v63 = vld [vmem:[%s14517_s18 + $0xf68] sm:$0xff] }
 0x8b0   : > { %10154 = vmatpush1.bf16.msra.mxu1 %v11370_v37  ;;  %v11466_v37 = vcombine.low %v3626_v32, %v3634_v0  ;;  %v3722_v32 = vld [vmem:[%s14517_s18 + $0xfa0] sm:$0xff] }
 0x8b1   : > { %10318 = vmatpush1.bf16.msra.mxu0 %v11372_v52  ;;  %10155 = vmatprep.subr.bf16.mxu1 %v11387_v27  ;;  %v11468_v52 = vcombine.low %v3627_v17, %v3635_v44  ;;  %v11483_v27 = vcombine.high %v3642_v48, %v3650_v11  ;;  %v3730_v0 = vld [vmem:[%s14517_s18 + $0xfe0] sm:$0xff]  ;;  %v3723_v17 = vld [vmem:[%s14517_s18 + $0xfa8] sm:$0xff] }
 0x8b2   : > { %10319 = vmatprep.subr.bf16.mxu0 %v11389_v21  ;;  %v11485_v21 = vcombine.high %v3643_v15, %v3651_v18  ;;  %v3731_v44 = vld [vmem:[%s14517_s18 + $0xfe8] sm:$0xff] }
 0x8b4   : > { %10156 = vmatpush1.bf16.msra.mxu1 %v11386_v16  ;;  %v11482_v16 = vcombine.low %v3642_v48, %v3650_v11  ;;  %v3738_v48 = vld [vmem:[%s14517_s18 + $0x1020] sm:$0xff] }
 0x8b5   : > { %10320 = vmatpush1.bf16.msra.mxu0 %v11388_v26  ;;  %10157 = vmatprep.subr.bf16.mxu1 %v11403_v47  ;;  %v11484_v26 = vcombine.low %v3643_v15, %v3651_v18  ;;  %v11499_v47 = vcombine.high %v3658_v22, %v3666_v23  ;;  %v3746_v11 = vld [vmem:[%s14517_s18 + $0x1060] sm:$0xff]  ;;  %v3739_v15 = vld [vmem:[%s14517_s18 + $0x1028] sm:$0xff] }
 0x8b6   : > { %10321 = vmatprep.subr.bf16.mxu0 %v11405_v54  ;;  %v11501_v54 = vcombine.high %v3659_v24, %v3667_v25  ;;  %v3747_v18 = vld [vmem:[%s14517_s18 + $0x1068] sm:$0xff] }
 0x8b8   : > { %10158 = vmatpush1.bf16.msra.mxu1 %v11402_v34  ;;  %v11498_v34 = vcombine.low %v3658_v22, %v3666_v23  ;;  %v3754_v22 = vld [vmem:[%s14517_s18 + $0x10a0] sm:$0xff] }
 0x8b9   : > { %10322 = vmatpush1.bf16.msra.mxu0 %v11404_v42  ;;  %10159 = vmatprep.subr.bf16.mxu1 %v11419_v20  ;;  %v11500_v42 = vcombine.low %v3659_v24, %v3667_v25  ;;  %v11515_v20 = vcombine.high %v3674_v28, %v3682_v30  ;;  %v3762_v23 = vld [vmem:[%s14517_s18 + $0x10e0] sm:$0xff]  ;;  %v11578_v24 = vcombine.low %v3738_v48, %v3746_v11  ;;  %v3755_v25 = vld [vmem:[%s14517_s18 + $0x10a8] sm:$0xff] }
 0x8ba   : > { %10323 = vmatprep.subr.bf16.mxu0 %v11421_v49  ;;  %v11517_v49 = vcombine.high %v3675_v60, %v3683_v33 }
 0x8bc   : > { %10160 = vmatpush1.bf16.msra.mxu1 %v11418_v40  ;;  %v11514_v40 = vcombine.low %v3674_v28, %v3682_v30  ;;  %v3778_v28 = vld [vmem:[%s14517_s18 + $0x1160] sm:$0xff] }
 0x8bd   : > { %10324 = vmatpush1.bf16.msra.mxu0 %v11420_v41  ;;  %10161 = vmatprep.subr.bf16.mxu1 %v11435_v43  ;;  %v11516_v41 = vcombine.low %v3675_v60, %v3683_v33  ;;  %v11531_v43 = vcombine.high %v3690_v35, %v3698_v2  ;;  %v3771_v60 = vld [vmem:[%s14517_s18 + $0x1128] sm:$0xff] }
 0x8be   : > { %10325 = vmatprep.subr.bf16.mxu0 %v11437_v58  ;;  %v11533_v58 = vcombine.high %v3691_v36, %v3699_v39  ;;  %v3779_v33 = vld [vmem:[%s14517_s18 + $0x1168] sm:$0xff] }
 0x8c0   : > { %10162 = vmatpush1.bf16.msra.mxu1 %v11434_v1  ;;  %v11530_v1 = vcombine.low %v3690_v35, %v3698_v2  ;;  %v3786_v35 = vld [vmem:[%s14517_s18 + $0x11a0] sm:$0xff] }
 0x8c1   : > { %10326 = vmatpush1.bf16.msra.mxu0 %v11436_v50  ;;  %10163 = vmatprep.subr.bf16.mxu1 %v11451_v53  ;;  %v11532_v50 = vcombine.low %v3691_v36, %v3699_v39  ;;  %v11547_v53 = vcombine.high %v3706_v45, %v3714_v51  ;;  %v3794_v2 = vld [vmem:[%s14517_s18 + $0x11e0] sm:$0xff]  ;;  %v3787_v36 = vld [vmem:[%s14517_s18 + $0x11a8] sm:$0xff] }
 0x8c2   : > { %10327 = vmatprep.subr.bf16.mxu0 %v11453_v55  ;;  %v11549_v55 = vcombine.high %v3707_v56, %v3715_v63  ;;  %v3795_v39 = vld [vmem:[%s14517_s18 + $0x11e8] sm:$0xff] }
 0x8c4   : > { %10164 = vmatpush1.bf16.msra.mxu1 %v11450_v3  ;;  %v11546_v3 = vcombine.low %v3706_v45, %v3714_v51  ;;  %v3802_v45 = vld [vmem:[%s14517_s18 + $0x1220] sm:$0xff] }
 0x8c5   : > { %10328 = vmatpush1.bf16.msra.mxu0 %v11452_v10  ;;  %10165 = vmatprep.subr.bf16.mxu1 %v11467_v7  ;;  %v11548_v10 = vcombine.low %v3707_v56, %v3715_v63  ;;  %v11563_v7 = vcombine.high %v3722_v32, %v3730_v0  ;;  %v3810_v51 = vld [vmem:[%s14517_s18 + $0x1260] sm:$0xff]  ;;  %v3803_v56 = vld [vmem:[%s14517_s18 + $0x1228] sm:$0xff] }
 0x8c6   : > { %10329 = vmatprep.subr.bf16.mxu0 %v11469_v8  ;;  %v11565_v8 = vcombine.high %v3723_v17, %v3731_v44  ;;  %v3811_v63 = vld [vmem:[%s14517_s18 + $0x1268] sm:$0xff] }
 0x8c8   : > { %10166 = vmatpush1.bf16.msra.mxu1 %v11466_v37  ;;  %v11562_v37 = vcombine.low %v3722_v32, %v3730_v0  ;;  %v3818_v32 = vld [vmem:[%s14517_s18 + $0x12a0] sm:$0xff] }
 0x8c9   : > { %10330 = vmatpush1.bf16.msra.mxu0 %v11468_v52  ;;  %10167 = vmatprep.subr.bf16.mxu1 %v11483_v27  ;;  %v11564_v52 = vcombine.low %v3723_v17, %v3731_v44  ;;  %v11579_v27 = vcombine.high %v3738_v48, %v3746_v11  ;;  %v3826_v0 = vld [vmem:[%s14517_s18 + $0x12e0] sm:$0xff]  ;;  %v3819_v17 = vld [vmem:[%s14517_s18 + $0x12a8] sm:$0xff] }
 0x8ca   : > { %10331 = vmatprep.subr.bf16.mxu0 %v11485_v21  ;;  %v11581_v21 = vcombine.high %v3739_v15, %v3747_v18  ;;  %v3827_v44 = vld [vmem:[%s14517_s18 + $0x12e8] sm:$0xff]  ;;  %v3834_v48 = vld [vmem:[%s14517_s18 + $0x1320] sm:$0xff] }
 0x8cb   : > { %v3842_v11 = vld [vmem:[%s14517_s18 + $0x1360] sm:$0xff] }
 0x8cc   : > { %10168 = vmatpush1.bf16.msra.mxu1 %v11482_v16  ;;  %v3763_v16 = vld [vmem:[%s14517_s18 + $0x10e8] sm:$0xff] }
 0x8cd   : > { %10332 = vmatpush1.bf16.msra.mxu0 %v11484_v26  ;;  %10169 = vmatprep.subr.bf16.mxu1 %v11499_v47  ;;  %v11580_v26 = vcombine.low %v3739_v15, %v3747_v18  ;;  %v11595_v47 = vcombine.high %v3754_v22, %v3762_v23  ;;  %v11597_v30 = vcombine.high %v3755_v25, %v3763_v16  ;;  %v3835_v15 = vld [vmem:[%s14517_s18 + $0x1328] sm:$0xff] }
 0x8ce   : > { %10333 = vmatprep.subr.bf16.mxu0 %v11501_v54  ;;  %v3770_v54 = vld [vmem:[%s14517_s18 + $0x1120] sm:$0xff]  ;;  %v3843_v18 = vld [vmem:[%s14517_s18 + $0x1368] sm:$0xff] }
 0x8d0   : > { %10170 = vmatpush1.bf16.msra.mxu1 %v11498_v34  ;;  %v11594_v34 = vcombine.low %v3754_v22, %v3762_v23  ;;  %v3850_v22 = vld [vmem:[%s14517_s18 + $0x13a0] sm:$0xff] }
 0x8d1   : > { %10334 = vmatpush1.bf16.msra.mxu0 %v11500_v42  ;;  %10171 = vmatprep.subr.bf16.mxu1 %v11515_v20  ;;  %v11596_v42 = vcombine.low %v3755_v25, %v3763_v16  ;;  %v11611_v20 = vcombine.high %v3770_v54, %v3778_v28  ;;  %v3858_v23 = vld [vmem:[%s14517_s18 + $0x13e0] sm:$0xff]  ;;  %v3859_v25 = vld [vmem:[%s14517_s18 + $0x13e8] sm:$0xff]  ;;  %v11674_v16 = vcombine.low %v3834_v48, %v3842_v11 }
 0x8d2   : > { %10335 = vmatprep.subr.bf16.mxu0 %v11517_v49  ;;  %v11613_v49 = vcombine.high %v3771_v60, %v3779_v33 }
 0x8d4   : > { %10172 = vmatpush1.bf16.msra.mxu1 %v11514_v40  ;;  %v11610_v40 = vcombine.low %v3770_v54, %v3778_v28  ;;  %v3866_v28 = vld [vmem:[%s14517_s18 + $0x1420] sm:$0xff] }
 0x8d5   : > { %10336 = vmatpush1.bf16.msra.mxu0 %v11516_v41  ;;  %10173 = vmatprep.subr.bf16.mxu1 %v11531_v43  ;;  %v11612_v41 = vcombine.low %v3771_v60, %v3779_v33  ;;  %v11627_v43 = vcombine.high %v3786_v35, %v3794_v2  ;;  %v3867_v60 = vld [vmem:[%s14517_s18 + $0x1428] sm:$0xff] }
 0x8d6   : > { %10337 = vmatprep.subr.bf16.mxu0 %v11533_v58  ;;  %v11629_v58 = vcombine.high %v3787_v36, %v3795_v39  ;;  %v3875_v33 = vld [vmem:[%s14517_s18 + $0x1468] sm:$0xff] }
 0x8d8   : > { %10174 = vmatpush1.bf16.msra.mxu1 %v11530_v1  ;;  %v11626_v1 = vcombine.low %v3786_v35, %v3794_v2  ;;  %v3882_v35 = vld [vmem:[%s14517_s18 + $0x14a0] sm:$0xff] }
 0x8d9   : > { %10338 = vmatpush1.bf16.msra.mxu0 %v11532_v50  ;;  %10175 = vmatprep.subr.bf16.mxu1 %v11547_v53  ;;  %v11628_v50 = vcombine.low %v3787_v36, %v3795_v39  ;;  %v11643_v53 = vcombine.high %v3802_v45, %v3810_v51  ;;  %v3890_v2 = vld [vmem:[%s14517_s18 + $0x14e0] sm:$0xff]  ;;  %v3883_v36 = vld [vmem:[%s14517_s18 + $0x14a8] sm:$0xff] }
 0x8da   : > { %10339 = vmatprep.subr.bf16.mxu0 %v11549_v55  ;;  %v11645_v55 = vcombine.high %v3803_v56, %v3811_v63  ;;  %v3891_v39 = vld [vmem:[%s14517_s18 + $0x14e8] sm:$0xff] }
 0x8dc   : > { %10176 = vmatpush1.bf16.msra.mxu1 %v11546_v3  ;;  %v11642_v3 = vcombine.low %v3802_v45, %v3810_v51  ;;  %v3898_v45 = vld [vmem:[%s14517_s18 + $0x1520] sm:$0xff] }
 0x8dd   : > { %10340 = vmatpush1.bf16.msra.mxu0 %v11548_v10  ;;  %10177 = vmatprep.subr.bf16.mxu1 %v11563_v7  ;;  %v11644_v10 = vcombine.low %v3803_v56, %v3811_v63  ;;  %v11659_v7 = vcombine.high %v3818_v32, %v3826_v0  ;;  %v3906_v51 = vld [vmem:[%s14517_s18 + $0x1560] sm:$0xff]  ;;  %v3899_v56 = vld [vmem:[%s14517_s18 + $0x1528] sm:$0xff] }
 0x8de   : > { %10341 = vmatprep.subr.bf16.mxu0 %v11565_v8  ;;  %v11661_v8 = vcombine.high %v3819_v17, %v3827_v44  ;;  %v3907_v63 = vld [vmem:[%s14517_s18 + $0x1568] sm:$0xff] }
 0x8e0   : > { %10178 = vmatpush1.bf16.msra.mxu1 %v11562_v37  ;;  %v11658_v37 = vcombine.low %v3818_v32, %v3826_v0  ;;  %v3914_v32 = vld [vmem:[%s14517_s18 + $0x15a0] sm:$0xff] }
 0x8e1   : > { %10342 = vmatpush1.bf16.msra.mxu0 %v11564_v52  ;;  %10188 = vmatprep.subr.bf16.mxu1 %v11579_v27  ;;  %v11660_v52 = vcombine.low %v3819_v17, %v3827_v44  ;;  %v11675_v27 = vcombine.high %v3834_v48, %v3842_v11  ;;  %v3922_v0 = vld [vmem:[%s14517_s18 + $0x15e0] sm:$0xff]  ;;  %v3915_v17 = vld [vmem:[%s14517_s18 + $0x15a8] sm:$0xff] }
 0x8e2   : > { %10352 = vmatprep.subr.bf16.mxu0 %v11581_v21  ;;  %v11677_v21 = vcombine.high %v3835_v15, %v3843_v18  ;;  %v3923_v44 = vld [vmem:[%s14517_s18 + $0x15e8] sm:$0xff]  ;;  %v3930_v48 = vld [vmem:[%s14517_s18 + $0x1620] sm:$0xff] }
 0x8e3   : > { %10180 = vmatmul.mubr.bf16.vlgmr.msra.gmra.mrb[20].mxu1 %v14830_v13  ;;  %v3938_v11 = vld [vmem:[%s14517_s18 + $0x1660] sm:$0xff] }
 0x8e4   : > { %10344 = vmatmul.mubr.bf16.vlgmr.msra.gmra.mrb[20].mxu0 %v14830_v13  ;;  %10189 = vmatpush1.bf16.msra.mxu1 %v11578_v24  ;;  %v3851_v24 = vld [vmem:[%s14517_s18 + $0x13a8] sm:$0xff] }
 0x8e5   : > { %10220 = vmatprep.mubr.bf16.mxu1 %v14963_v46  ;;  %10353 = vmatpush1.bf16.msra.mxu0 %v11580_v26  ;;  %v11676_v26 = vcombine.low %v3835_v15, %v3843_v18  ;;  %v11693_v54 = vcombine.high %v3851_v24, %v3859_v25  ;;  %v3931_v15 = vld [vmem:[%s14517_s18 + $0x1628] sm:$0xff] }
 0x8e6   : > { %10384 = vmatprep.mubr.bf16.mxu0 %v14963_v46  ;;  %10190 = vmatprep.subr.bf16.mxu1 %v11595_v47  ;;  %v11691_v47 = vcombine.high %v3850_v22, %v3858_v23  ;;  %v3939_v18 = vld [vmem:[%s14517_s18 + $0x1668] sm:$0xff] }
 0x8e7   : > { %10354 = vmatprep.subr.bf16.mxu0 %v11597_v30  ;;  %v3874_v30 = vld [vmem:[%s14517_s18 + $0x1460] sm:$0xff] }
 0x8e8   : > { %10191 = vmatpush1.bf16.msra.mxu1 %v11594_v34  ;;  %v11690_v34 = vcombine.low %v3850_v22, %v3858_v23  ;;  %v3946_v22 = vld [vmem:[%s14517_s18 + $0x16a0] sm:$0xff] }
 0x8e9   : > { %10355 = vmatpush1.bf16.msra.mxu0 %v11596_v42  ;;  %10192 = vmatprep.subr.bf16.mxu1 %v11611_v20  ;;  %v11692_v42 = vcombine.low %v3851_v24, %v3859_v25  ;;  %v11707_v20 = vcombine.high %v3866_v28, %v3874_v30  ;;  %v3954_v23 = vld [vmem:[%s14517_s18 + $0x16e0] sm:$0xff]  ;;  %v3947_v24 = vld [vmem:[%s14517_s18 + $0x16a8] sm:$0xff] }
 0x8ea   : > { %10356 = vmatprep.subr.bf16.mxu0 %v11613_v49  ;;  %v11709_v49 = vcombine.high %v3867_v60, %v3875_v33  ;;  %v3955_v25 = vld [vmem:[%s14517_s18 + $0x16e8] sm:$0xff] }
 0x8ec   : > { %10193 = vmatpush1.bf16.msra.mxu1 %v11610_v40  ;;  %v11706_v40 = vcombine.low %v3866_v28, %v3874_v30  ;;  %v3962_v28 = vld [vmem:[%s14517_s18 + $0x1720] sm:$0xff] }
 0x8ed   : > { %10357 = vmatpush1.bf16.msra.mxu0 %v11612_v41  ;;  %10194 = vmatprep.subr.bf16.mxu1 %v11627_v43  ;;  %v11708_v41 = vcombine.low %v3867_v60, %v3875_v33  ;;  %v11723_v43 = vcombine.high %v3882_v35, %v3890_v2  ;;  %v3970_v30 = vld [vmem:[%s14517_s18 + $0x1760] sm:$0xff]  ;;  %v3963_v60 = vld [vmem:[%s14517_s18 + $0x1728] sm:$0xff] }
 0x8ee   : > { %10358 = vmatprep.subr.bf16.mxu0 %v11629_v58  ;;  %v11725_v58 = vcombine.high %v3883_v36, %v3891_v39  ;;  %v3971_v33 = vld [vmem:[%s14517_s18 + $0x1768] sm:$0xff] }
 0x8f0   : > { %10195 = vmatpush1.bf16.msra.mxu1 %v11626_v1  ;;  %v11722_v1 = vcombine.low %v3882_v35, %v3890_v2  ;;  %v3978_v35 = vld [vmem:[%s14517_s18 + $0x17a0] sm:$0xff] }
 0x8f1   : > { %10359 = vmatpush1.bf16.msra.mxu0 %v11628_v50  ;;  %10196 = vmatprep.subr.bf16.mxu1 %v11643_v53  ;;  %v11724_v50 = vcombine.low %v3883_v36, %v3891_v39  ;;  %v11739_v53 = vcombine.high %v3898_v45, %v3906_v51  ;;  %v3986_v2 = vld [vmem:[%s14517_s18 + $0x17e0] sm:$0xff]  ;;  %v3979_v36 = vld [vmem:[%s14517_s18 + $0x17a8] sm:$0xff] }
 0x8f2   : > { %10360 = vmatprep.subr.bf16.mxu0 %v11645_v55  ;;  %v11741_v55 = vcombine.high %v3899_v56, %v3907_v63  ;;  %v3987_v39 = vld [vmem:[%s14517_s18 + $0x17e8] sm:$0xff] }
 0x8f4   : > { %10197 = vmatpush1.bf16.msra.mxu1 %v11642_v3  ;;  %v11738_v3 = vcombine.low %v3898_v45, %v3906_v51  ;;  %v3994_v45 = vld [vmem:[%s14517_s18 + $0x1820] sm:$0xff] }
 0x8f5   : > { %10361 = vmatpush1.bf16.msra.mxu0 %v11644_v10  ;;  %10198 = vmatprep.subr.bf16.mxu1 %v11659_v7  ;;  %v11740_v10 = vcombine.low %v3899_v56, %v3907_v63  ;;  %v11755_v7 = vcombine.high %v3914_v32, %v3922_v0  ;;  %v4002_v51 = vld [vmem:[%s14517_s18 + $0x1860] sm:$0xff]  ;;  %v3995_v56 = vld [vmem:[%s14517_s18 + $0x1828] sm:$0xff] }
 0x8f6   : > { %10362 = vmatprep.subr.bf16.mxu0 %v11661_v8  ;;  %v11757_v8 = vcombine.high %v3915_v17, %v3923_v44  ;;  %v4003_v63 = vld [vmem:[%s14517_s18 + $0x1868] sm:$0xff] }
 0x8f8   : > { %10199 = vmatpush1.bf16.msra.mxu1 %v11658_v37  ;;  %v11754_v37 = vcombine.low %v3914_v32, %v3922_v0  ;;  %v4010_v32 = vld [vmem:[%s14517_s18 + $0x18a0] sm:$0xff] }
 0x8f9   : > { %10363 = vmatpush1.bf16.msra.mxu0 %v11660_v52  ;;  %10200 = vmatprep.subr.bf16.mxu1 %v11675_v27  ;;  %v11756_v52 = vcombine.low %v3915_v17, %v3923_v44  ;;  %v11771_v27 = vcombine.high %v3930_v48, %v3938_v11  ;;  %v4018_v0 = vld [vmem:[%s14517_s18 + $0x18e0] sm:$0xff]  ;;  %v11834_v17 = vcombine.low %v3994_v45, %v4002_v51  ;;  %v4011_v44 = vld [vmem:[%s14517_s18 + $0x18a8] sm:$0xff] }
 0x8fa   : > { %10364 = vmatprep.subr.bf16.mxu0 %v11677_v21  ;;  %v11773_v21 = vcombine.high %v3931_v15, %v3939_v18 }
 0x8fc   : > { %10201 = vmatpush1.bf16.msra.mxu1 %v11674_v16  ;;  %v11770_v16 = vcombine.low %v3930_v48, %v3938_v11  ;;  %v4034_v48 = vld [vmem:[%s14517_s18 + $0x1960] sm:$0xff] }
 0x8fd   : > { %10365 = vmatpush1.bf16.msra.mxu0 %v11676_v26  ;;  %10202 = vmatprep.subr.bf16.mxu1 %v11691_v47  ;;  %v11772_v26 = vcombine.low %v3931_v15, %v3939_v18  ;;  %v11787_v47 = vcombine.high %v3946_v22, %v3954_v23  ;;  %v4027_v15 = vld [vmem:[%s14517_s18 + $0x1928] sm:$0xff] }
 0x8fe   : > { %10366 = vmatprep.subr.bf16.mxu0 %v11693_v54  ;;  %v11789_v54 = vcombine.high %v3947_v24, %v3955_v25  ;;  %v4035_v18 = vld [vmem:[%s14517_s18 + $0x1968] sm:$0xff] }
 0x900   : > { %10203 = vmatpush1.bf16.msra.mxu1 %v11690_v34  ;;  %v11786_v34 = vcombine.low %v3946_v22, %v3954_v23  ;;  %v4042_v22 = vld [vmem:[%s14517_s18 + $0x19a0] sm:$0xff] }
 0x901   : > { %10367 = vmatpush1.bf16.msra.mxu0 %v11692_v42  ;;  %10204 = vmatprep.subr.bf16.mxu1 %v11707_v20  ;;  %v11788_v42 = vcombine.low %v3947_v24, %v3955_v25  ;;  %v11803_v20 = vcombine.high %v3962_v28, %v3970_v30  ;;  %v4050_v23 = vld [vmem:[%s14517_s18 + $0x19e0] sm:$0xff]  ;;  %v4043_v24 = vld [vmem:[%s14517_s18 + $0x19a8] sm:$0xff] }
 0x902   : > { %10368 = vmatprep.subr.bf16.mxu0 %v11709_v49  ;;  %v11805_v49 = vcombine.high %v3963_v60, %v3971_v33  ;;  %v4051_v25 = vld [vmem:[%s14517_s18 + $0x19e8] sm:$0xff] }
 0x904   : > { %10205 = vmatpush1.bf16.msra.mxu1 %v11706_v40  ;;  %v11802_v40 = vcombine.low %v3962_v28, %v3970_v30  ;;  %v4058_v28 = vld [vmem:[%s14517_s18 + $0x1a20] sm:$0xff] }
 0x905   : > { %10369 = vmatpush1.bf16.msra.mxu0 %v11708_v41  ;;  %10206 = vmatprep.subr.bf16.mxu1 %v11723_v43  ;;  %v11804_v41 = vcombine.low %v3963_v60, %v3971_v33  ;;  %v11819_v43 = vcombine.high %v3978_v35, %v3986_v2  ;;  %v4066_v30 = vld [vmem:[%s14517_s18 + $0x1a60] sm:$0xff]  ;;  %v4059_v60 = vld [vmem:[%s14517_s18 + $0x1a28] sm:$0xff] }
 0x906   : > { %10370 = vmatprep.subr.bf16.mxu0 %v11725_v58  ;;  %v11821_v58 = vcombine.high %v3979_v36, %v3987_v39  ;;  %v4067_v33 = vld [vmem:[%s14517_s18 + $0x1a68] sm:$0xff] }
 0x908   : > { %10207 = vmatpush1.bf16.msra.mxu1 %v11722_v1  ;;  %v11818_v1 = vcombine.low %v3978_v35, %v3986_v2  ;;  %v4074_v35 = vld [vmem:[%s14517_s18 + $0x1aa0] sm:$0xff] }
 0x909   : > { %10371 = vmatpush1.bf16.msra.mxu0 %v11724_v50  ;;  %10208 = vmatprep.subr.bf16.mxu1 %v11739_v53  ;;  %v11820_v50 = vcombine.low %v3979_v36, %v3987_v39  ;;  %v11835_v53 = vcombine.high %v3994_v45, %v4002_v51  ;;  %v4082_v2 = vld [vmem:[%s14517_s18 + $0x1ae0] sm:$0xff]  ;;  %v4075_v36 = vld [vmem:[%s14517_s18 + $0x1aa8] sm:$0xff] }
 0x90a   : > { %10372 = vmatprep.subr.bf16.mxu0 %v11741_v55  ;;  %v11837_v55 = vcombine.high %v3995_v56, %v4003_v63  ;;  %v4083_v39 = vld [vmem:[%s14517_s18 + $0x1ae8] sm:$0xff]  ;;  %v4090_v45 = vld [vmem:[%s14517_s18 + $0x1b20] sm:$0xff] }
 0x90b   : > { %v4098_v51 = vld [vmem:[%s14517_s18 + $0x1b60] sm:$0xff] }
 0x90c   : > { %10209 = vmatpush1.bf16.msra.mxu1 %v11738_v3  ;;  %v4019_v3 = vld [vmem:[%s14517_s18 + $0x18e8] sm:$0xff] }
 0x90d   : > { %10373 = vmatpush1.bf16.msra.mxu0 %v11740_v10  ;;  %10210 = vmatprep.subr.bf16.mxu1 %v11755_v7  ;;  %v11836_v10 = vcombine.low %v3995_v56, %v4003_v63  ;;  %v11851_v7 = vcombine.high %v4010_v32, %v4018_v0  ;;  %v11853_v11 = vcombine.high %v4011_v44, %v4019_v3  ;;  %v13421_v56 = vld [vmem:[%s15270_s17] sm:$0xff] }
 0x90e   : > { %10374 = vmatprep.subr.bf16.mxu0 %v11757_v8  ;;  %v4026_v8 = vld [vmem:[%s14517_s18 + $0x1920] sm:$0xff]  ;;  %v4269_v63 = vrot.slane %v13421_v56, %v14819_v9 }
 0x910   : > { %10211 = vmatpush1.bf16.msra.mxu1 %v11754_v37  ;;  %v11850_v37 = vcombine.low %v4010_v32, %v4018_v0  ;;  %v11914_v32 = vcombine.low %v4074_v35, %v4082_v2  ;;  %v4281_v0 = vrot.slane %v13421_v56, %v14828_v12 }
 0x911   : > { %10375 = vmatpush1.bf16.msra.mxu0 %v11756_v52  ;;  %10212 = vmatprep.subr.bf16.mxu1 %v11771_v27  ;;  %v11852_v52 = vcombine.low %v4011_v44, %v4019_v3  ;;  %v11867_v27 = vcombine.high %v4026_v8, %v4034_v48  ;;  %v11931_v44 = vcombine.high %v4090_v45, %v4098_v51 }
 0x912   : > { %10376 = vmatprep.subr.bf16.mxu0 %v11773_v21  ;;  %v11869_v21 = vcombine.high %v4027_v15, %v4035_v18 }
 0x914   : > { %10213 = vmatpush1.bf16.msra.mxu1 %v11770_v16  ;;  %v11866_v16 = vcombine.low %v4026_v8, %v4034_v48  ;;  %v4114_v8 = vld [vmem:[%s14517_s18 + $0x1be0] sm:$0xff] }
 0x915   : > { %10377 = vmatpush1.bf16.msra.mxu0 %v11772_v26  ;;  %10214 = vmatprep.subr.bf16.mxu1 %v11787_v47  ;;  %v11868_v26 = vcombine.low %v4027_v15, %v4035_v18  ;;  %v11883_v47 = vcombine.high %v4042_v22, %v4050_v23  ;;  %v4107_v18 = vld [vmem:[%s14517_s18 + $0x1ba8] sm:$0xff] }
 0x916   : > { %10378 = vmatprep.subr.bf16.mxu0 %v11789_v54  ;;  %v11885_v54 = vcombine.high %v4043_v24, %v4051_v25 }
 0x918   : > { %10215 = vmatpush1.bf16.msra.mxu1 %v11786_v34  ;;  %v11882_v34 = vcombine.low %v4042_v22, %v4050_v23  ;;  %v11930_v23 = vcombine.low %v4090_v45, %v4098_v51  ;;  %v4154_v51 = vld [vmem:[%s14517_s18 + $0x1d20] sm:$0xff] }
 0x919   : > { %10379 = vmatpush1.bf16.msra.mxu0 %v11788_v42  ;;  %10216 = vmatprep.subr.bf16.mxu1 %v11803_v20  ;;  %v11884_v42 = vcombine.low %v4043_v24, %v4051_v25  ;;  %v11899_v20 = vcombine.high %v4058_v28, %v4066_v30 }
 0x91a   : > { %10380 = vmatprep.subr.bf16.mxu0 %v11805_v49  ;;  %v11901_v49 = vcombine.high %v4059_v60, %v4067_v33 }
 0x91c   : > { %10217 = vmatpush1.bf16.msra.mxu1 %v11802_v40  ;;  %v11898_v40 = vcombine.low %v4058_v28, %v4066_v30  ;;  %v4122_v30 = vld [vmem:[%s14517_s18 + $0x1c20] sm:$0xff] }
 0x91d   : > { %10381 = vmatpush1.bf16.msra.mxu0 %v11804_v41  ;;  %10218 = vmatprep.subr.bf16.mxu1 %v11819_v43  ;;  %v11900_v41 = vcombine.low %v4059_v60, %v4067_v33  ;;  %v11915_v43 = vcombine.high %v4074_v35, %v4082_v2  ;;  %v4130_v60 = vld [vmem:[%s14517_s18 + $0x1c60] sm:$0xff]  ;;  %v4123_v33 = vld [vmem:[%s14517_s18 + $0x1c28] sm:$0xff] }
 0x91e   : > { %10382 = vmatprep.subr.bf16.mxu0 %v11821_v58  ;;  %v11917_v58 = vcombine.high %v4075_v36, %v4083_v39  ;;  %v4138_v2 = vld [vmem:[%s14517_s18 + $0x1ca0] sm:$0xff] }
 0x920   : > { %10219 = vmatpush1.bf16.msra.mxu1 %v11818_v1  ;;  %v4091_v1 = vld [vmem:[%s14517_s18 + $0x1b28] sm:$0xff] }
 0x921   : > { %10383 = vmatpush1.bf16.msra.mxu0 %v11820_v50  ;;  %10229 = vmatprep.subr.bf16.mxu1 %v11835_v53  ;;  %v4099_v50 = vld [vmem:[%s14517_s18 + $0x1b68] sm:$0xff]  ;;  %v4277_v53 = vrot.slane %v13421_v56, %v14871_v14 }
 0x922   : > { %10393 = vmatprep.subr.bf16.mxu0 %v11837_v55  ;;  %v4273_v55 = vrot.slane %v13421_v56, %v14825_v19  ;;  %v4162_v56 = vld [vmem:[%s14517_s18 + $0x1d60] sm:$0xff] }
 0x923   : > { %10221 = vmatmul.mubr.bf16.vlgmr.msra.gmra.mrb[20].mxu1 %v14965_v57 }
 0x924   : > { %10385 = vmatmul.mubr.bf16.vlgmr.msra.gmra.mrb[20].mxu0 %v14965_v57  ;;  %10230 = vmatpush1.bf16.msra.mxu1 %v11834_v17  ;;  %v11916_v17 = vcombine.low %v4075_v36, %v4083_v39  ;;  %v4146_v36 = vld [vmem:[%s14517_s18 + $0x1ce0] sm:$0xff]  ;;  %v4139_v39 = vld [vmem:[%s14517_s18 + $0x1ca8] sm:$0xff] }
 0x925   : > { %10261 = vmatprep.mubr.bf16.mxu1 %v14973_v5  ;;  %10394 = vmatpush1.bf16.msra.mxu0 %v11836_v10  ;;  %v11933_v10 = vcombine.high %v4091_v1, %v4099_v50 }
 0x926   : > { %10425 = vmatprep.mubr.bf16.mxu0 %v14973_v5  ;;  %10231 = vmatprep.subr.bf16.mxu1 %v11851_v7  ;;  %v4106_v7 = vld [vmem:[%s14517_s18 + $0x1ba0] sm:$0xff] }
 0x927   : > { %10395 = vmatprep.subr.bf16.mxu0 %v11853_v11 }
 0x928   : > { %10232 = vmatpush1.bf16.msra.mxu1 %v11850_v37  ;;  %v4115_v37 = vld [vmem:[%s14517_s18 + $0x1be8] sm:$0xff] }
 0x929   : > { %10396 = vmatpush1.bf16.msra.mxu0 %v11852_v52  ;;  %10233 = vmatprep.subr.bf16.mxu1 %v11867_v27  ;;  %v11949_v28 = vcombine.high %v4107_v18, %v4115_v37 }
 0x92a   : > { %10397 = vmatprep.subr.bf16.mxu0 %v11869_v21 }
 0x92c   : > { %10234 = vmatpush1.bf16.msra.mxu1 %v11866_v16 }
 0x92d   : > { %10398 = vmatpush1.bf16.msra.mxu0 %v11868_v26  ;;  %10235 = vmatprep.subr.bf16.mxu1 %v11883_v47  ;;  %v11932_v26 = vcombine.low %v4091_v1, %v4099_v50  ;;  %v11947_v47 = vcombine.high %v4106_v7, %v4114_v8  ;;  %v4155_v1 = vld [vmem:[%s14517_s18 + $0x1d28] sm:$0xff] }
 0x92e   : > { %10399 = vmatprep.subr.bf16.mxu0 %v11885_v54  ;;  %v4163_v50 = vld [vmem:[%s14517_s18 + $0x1d68] sm:$0xff] }
 0x930   : > { %10236 = vmatpush1.bf16.msra.mxu1 %v11882_v34  ;;  %v4131_v34 = vld [vmem:[%s14517_s18 + $0x1c68] sm:$0xff] }
 0x931   : > { %10400 = vmatpush1.bf16.msra.mxu0 %v11884_v42  ;;  %10237 = vmatprep.subr.bf16.mxu1 %v11899_v20  ;;  %v11946_v42 = vcombine.low %v4106_v7, %v4114_v8  ;;  %v11948_v20 = vcombine.low %v4107_v18, %v4115_v37  ;;  %v11965_v35 = vcombine.high %v4123_v33, %v4131_v34  ;;  %v4178_v7 = vld [vmem:[%s14517_s18 + $0x1de0] sm:$0xff]  ;;  %v4171_v8 = vld [vmem:[%s14517_s18 + $0x1da8] sm:$0xff] }
 0x932   : > { %10401 = vmatprep.subr.bf16.mxu0 %v11901_v49  ;;  %v11963_v49 = vcombine.high %v4122_v30, %v4130_v60 }
 0x934   : > { %10238 = vmatpush1.bf16.msra.mxu1 %v11898_v40  ;;  %v4147_v40 = vld [vmem:[%s14517_s18 + $0x1ce8] sm:$0xff] }
 0x935   : > { %10402 = vmatpush1.bf16.msra.mxu0 %v11900_v41  ;;  %10239 = vmatprep.subr.bf16.mxu1 %v11915_v43  ;;  %v11962_v41 = vcombine.low %v4122_v30, %v4130_v60  ;;  %v11964_v43 = vcombine.low %v4123_v33, %v4131_v34  ;;  %v11981_v45 = vcombine.high %v4139_v39, %v4147_v40 }
 0x936   : > { %v9935_v3 = vpop.f32.mrb[16].mxu1  ;;  %10403 = vmatprep.subr.bf16.mxu0 %v11917_v58  ;;  %v11979_v58 = vcombine.high %v4138_v2, %v4146_v36 }
 0x937   : > { %v13047_v48 = vadd.f32 %v9935_v3, %v4269_v63  ;;  %v10099_v11 = vpop.f32.mrb[16].mxu0  ;;  %v9937_v15 = vpop.f32.mrb[17].mxu1  ;;  %v11997_v3 = vcombine.high %v4155_v1, %v4163_v50 }
 0x938   : > { %v13049_v52 = vadd.f32 %v10099_v11, %v4277_v53  ;;  %v13048_v27 = vadd.f32 %v9937_v15, %v4273_v55  ;;  %v10101_v21 = vpop.f32.mrb[17].mxu0  ;;  %v9939_v22 = vpop.f32.mrb[18].mxu1  ;;  %10240 = vmatpush1.bf16.msra.mxu1 %v11914_v32  ;;  %v11978_v55 = vcombine.low %v4138_v2, %v4146_v36  ;;  %v11994_v11 = vcombine.low %v4154_v51, %v4162_v56 }
 0x939   : > { %13395 = vtanh.f32 %v13047_v48  ;;  %v13050_v24 = vadd.f32 %v10101_v21, %v4281_v0  ;;  %v10103_v25 = vpop.f32.mrb[18].mxu0  ;;  %10404 = vmatpush1.bf16.msra.mxu0 %v11916_v17  ;;  %v9940_v16 = vpop.f32.mrb[19].mxu1  ;;  %10241 = vmatprep.subr.bf16.mxu1 %v11931_v44  ;;  %v11980_v0 = vcombine.low %v4139_v39, %v4147_v40  ;;  %v11995_v17 = vcombine.high %v4154_v51, %v4162_v56  ;;  %v4179_v48 = vld [vmem:[%s14517_s18 + $0x1de8] sm:$0xff] }
 0x93a   : > { %13397 = vtanh.f32 %v13049_v52  ;;  %v10104_v54 = vpop.f32.mrb[19].mxu0  ;;  %10405 = vmatprep.subr.bf16.mxu0 %v11933_v10  ;;  %v4170_v10 = vld [vmem:[%s14517_s18 + $0x1da0] sm:$0xff]  ;;  %v11996_v15 = vcombine.low %v4155_v1, %v4163_v50  ;;  %v12013_v37 = vcombine.high %v4171_v8, %v4179_v48  ;;  %v4187_v21 = vld [vmem:[%s14517_s18 + $0x1e28] sm:$0xff]  ;;  %v3228_v50 = vld [vmem:[%s14517_s18 + $0x30] sm:$0xff] }
 0x93b   : > { %13399 = vtanh.f32 %v13048_v27  ;;  %v12011_v18 = vcombine.high %v4170_v10, %v4178_v7  ;;  %v4186_v52 = vld [vmem:[%s14517_s18 + $0x1e20] sm:$0xff]  ;;  %v4195_v22 = vld [vmem:[%s14517_s18 + $0x1e68] sm:$0xff] }
 0x93c   : > { %13401 = vtanh.f32 %v13050_v24  ;;  %10242 = vmatpush1.bf16.msra.mxu1 %v11930_v23  ;;  %v4194_v27 = vld [vmem:[%s14517_s18 + $0x1e60] sm:$0xff]  ;;  %v12010_v23 = vcombine.low %v4170_v10, %v4178_v7  ;;  %v12012_v24 = vcombine.low %v4171_v8, %v4179_v48  ;;  %v12029_v16 = vcombine.high %v4187_v21, %v4195_v22  ;;  %v4203_v54 = vld [vmem:[%s14517_s18 + $0x1ea8] sm:$0xff]  ;;  %v3244_v10 = vld [vmem:[%s14517_s18 + $0xb0] sm:$0xff] }
 0x93d   : > { %10406 = vmatpush1.bf16.msra.mxu0 %v11932_v26  ;;  %10243 = vmatprep.subr.bf16.mxu1 %v11947_v47  ;;  %v12027_v25 = vcombine.high %v4186_v52, %v4194_v27  ;;  %v4202_v26 = vld [vmem:[%s14517_s18 + $0x1ea0] sm:$0xff]  ;;  %v12026_v30 = vcombine.low %v4186_v52, %v4194_v27  ;;  %v12028_v60 = vcombine.low %v4187_v21, %v4195_v22  ;;  %v3252_v7 = vld [vmem:[%s14517_s18 + $0xf0] sm:$0xff]  ;;  %v3245_v48 = vld [vmem:[%s14517_s18 + $0xb8] sm:$0xff] }
 0x93e   : > { %10407 = vmatprep.subr.bf16.mxu0 %v11949_v28  ;;  %v4210_v47 = vld [vmem:[%s14517_s18 + $0x1ee0] sm:$0xff]  ;;  %v4211_v28 = vld [vmem:[%s14517_s18 + $0x1ee8] sm:$0xff]  ;;  %v3268_v52 = vld [vmem:[%s14517_s18 + $0x170] sm:$0xff] }
 0x93f   : > { %v12043_v33 = vcombine.high %v4202_v26, %v4210_v47  ;;  %v12045_v34 = vcombine.high %v4203_v54, %v4211_v28  ;;  %v12042_v2 = vcombine.low %v4202_v26, %v4210_v47  ;;  %v12044_v36 = vcombine.low %v4203_v54, %v4211_v28  ;;  %v3261_v21 = vld [vmem:[%s14517_s18 + $0x138] sm:$0xff]  ;;  %v3276_v26 = vld [vmem:[%s14517_s18 + $0x1b0] sm:$0xff] }
 0x940   : > { %10244 = vmatpush1.bf16.msra.mxu1 %v11946_v42  ;;  %v4218_v42 = vld [vmem:[%s14517_s18 + $0x1f20] sm:$0xff]  ;;  %v3269_v22 = vld [vmem:[%s14517_s18 + $0x178] sm:$0xff]  ;;  %v3284_v47 = vld [vmem:[%s14517_s18 + $0x1f0] sm:$0xff] }
 0x941   : > { %10408 = vmatpush1.bf16.msra.mxu0 %v11948_v20  ;;  %10245 = vmatprep.subr.bf16.mxu1 %v11963_v49  ;;  %v4226_v20 = vld [vmem:[%s14517_s18 + $0x1f60] sm:$0xff]  ;;  %v4219_v49 = vld [vmem:[%s14517_s18 + $0x1f28] sm:$0xff]  ;;  %v3277_v54 = vld [vmem:[%s14517_s18 + $0x1b8] sm:$0xff] }
 0x942   : > { %10409 = vmatprep.subr.bf16.mxu0 %v11965_v35  ;;  %v4227_v35 = vld [vmem:[%s14517_s18 + $0x1f68] sm:$0xff]  ;;  %v12059_v39 = vcombine.high %v4218_v42, %v4226_v20  ;;  %v12058_v51 = vcombine.low %v4218_v42, %v4226_v20  ;;  %v3285_v28 = vld [vmem:[%s14517_s18 + $0x1f8] sm:$0xff]  ;;  %v3300_v42 = vld [vmem:[%s14517_s18 + $0x270] sm:$0xff] }
 0x943   : > { %v13396_v63 = vpop.eup %13395  ;;  %v12061_v40 = vcombine.high %v4219_v49, %v4227_v35  ;;  %v12060_v56 = vcombine.low %v4219_v49, %v4227_v35  ;;  %v3293_v20 = vld [vmem:[%s14517_s18 + $0x238] sm:$0xff]  ;;  %v11118_v35 = vcombine.low %v3276_v26, %v3284_v47 }
 0x944   : > { %v13398_v53 = vpop.eup %13397  ;;  %10782 = vst [vmem:[%s15307_s27 + $0x20] sm:$0xff] %v13396_v63  ;;  %10246 = vmatpush1.bf16.msra.mxu1 %v11962_v41  ;;  %v4234_v41 = vld [vmem:[%s14517_s18 + $0x1fa0] sm:$0xff]  ;;  %v3301_v49 = vld [vmem:[%s14517_s18 + $0x278] sm:$0xff] }
 0x945   : > { %v13400_v32 = vpop.eup %13399  ;;  %10784 = vst [vmem:[%s15307_s27 + $0x30] sm:$0xff] %v13398_v53  ;;  %10410 = vmatpush1.bf16.msra.mxu0 %v11964_v43  ;;  %10247 = vmatprep.subr.bf16.mxu1 %v11979_v58  ;;  %v4242_v43 = vld [vmem:[%s14517_s18 + $0x1fe0] sm:$0xff]  ;;  %v4235_v58 = vld [vmem:[%s14517_s18 + $0x1fa8] sm:$0xff]  ;;  %v3236_v53 = vld [vmem:[%s14517_s18 + $0x70] sm:$0xff] }
 0x946   : > { %v13402_v44 = vpop.eup %13401  ;;  %10783 = vst [vmem:[%s15307_s27 + $0x28] sm:$0xff] %v13400_v32  ;;  %10411 = vmatprep.subr.bf16.mxu0 %v11981_v45  ;;  %v4243_v45 = vld [vmem:[%s14517_s18 + $0x1fe8] sm:$0xff]  ;;  %v12075_v63 = vcombine.high %v4234_v41, %v4242_v43  ;;  %v3237_v32 = vld [vmem:[%s14517_s18 + $0x78] sm:$0xff]  ;;  %v11070_v8 = vcombine.low %v3228_v50, %v3236_v53 }
 0x947   : > { %10785 = vst [vmem:[%s15307_s27 + $0x38] sm:$0xff] %v13402_v44  ;;  %v12077_v1 = vcombine.high %v4235_v58, %v4243_v45  ;;  %v11071_v44 = vcombine.high %v3228_v50, %v3236_v53  ;;  %v3332_v50 = vld [vmem:[%s14517_s18 + $0x370] sm:$0xff]  ;;  %v3325_v53 = vld [vmem:[%s14517_s18 + $0x338] sm:$0xff] }
 0x948   : > { %10248 = vmatpush1.bf16.msra.mxu1 %v11978_v55  ;;  %v3229_v55 = vld [vmem:[%s14517_s18 + $0x38] sm:$0xff] }
 0x949   : > { %10412 = vmatpush1.bf16.msra.mxu0 %v11980_v0  ;;  %10249 = vmatprep.subr.bf16.mxu1 %v11995_v17  ;;  %v12074_v0 = vcombine.low %v4234_v41, %v4242_v43  ;;  %v12076_v17 = vcombine.low %v4235_v58, %v4243_v45  ;;  %v3316_v41 = vld [vmem:[%s14517_s18 + $0x2f0] sm:$0xff]  ;;  %v3309_v43 = vld [vmem:[%s14517_s18 + $0x2b8] sm:$0xff] }
 0x94a   : > { %10413 = vmatprep.subr.bf16.mxu0 %v11997_v3  ;;  %v11073_v3 = vcombine.high %v3229_v55, %v3237_v32  ;;  %v3317_v58 = vld [vmem:[%s14517_s18 + $0x2f8] sm:$0xff] }
 0x94c   : > { %10250 = vmatpush1.bf16.msra.mxu1 %v11994_v11  ;;  %v3253_v11 = vld [vmem:[%s14517_s18 + $0xf8] sm:$0xff] }
 0x94d   : > { %10414 = vmatpush1.bf16.msra.mxu0 %v11996_v15  ;;  %10251 = vmatprep.subr.bf16.mxu1 %v12011_v18  ;;  %v11072_v15 = vcombine.low %v3229_v55, %v3237_v32  ;;  %v11087_v18 = vcombine.high %v3244_v10, %v3252_v7  ;;  %v11089_v27 = vcombine.high %v3245_v48, %v3253_v11  ;;  %v3333_v55 = vld [vmem:[%s14517_s18 + $0x378] sm:$0xff] }
 0x94e   : > { %10415 = vmatprep.subr.bf16.mxu0 %v12013_v37  ;;  %v3260_v37 = vld [vmem:[%s14517_s18 + $0x130] sm:$0xff] }
 0x950   : > { %10252 = vmatpush1.bf16.msra.mxu1 %v12010_v23  ;;  %v11086_v23 = vcombine.low %v3244_v10, %v3252_v7  ;;  %v3348_v10 = vld [vmem:[%s14517_s18 + $0x3f0] sm:$0xff]  ;;  %v3341_v7 = vld [vmem:[%s14517_s18 + $0x3b8] sm:$0xff] }
 0x951   : > { %10416 = vmatpush1.bf16.msra.mxu0 %v12012_v24  ;;  %10253 = vmatprep.subr.bf16.mxu1 %v12027_v25  ;;  %v11088_v24 = vcombine.low %v3245_v48, %v3253_v11  ;;  %v11103_v25 = vcombine.high %v3260_v37, %v3268_v52  ;;  %v11168_v11 = vcombine.low %v3325_v53, %v3333_v55 }
 0x952   : > { %10417 = vmatprep.subr.bf16.mxu0 %v12029_v16  ;;  %v11105_v16 = vcombine.high %v3261_v21, %v3269_v22 }
 0x954   : > { %10254 = vmatpush1.bf16.msra.mxu1 %v12026_v30  ;;  %v11102_v30 = vcombine.low %v3260_v37, %v3268_v52  ;;  %v3356_v37 = vld [vmem:[%s14517_s18 + $0x430] sm:$0xff] }
 0x955   : > { %10418 = vmatpush1.bf16.msra.mxu0 %v12028_v60  ;;  %10255 = vmatprep.subr.bf16.mxu1 %v12043_v33  ;;  %v11104_v60 = vcombine.low %v3261_v21, %v3269_v22  ;;  %v11119_v33 = vcombine.high %v3276_v26, %v3284_v47  ;;  %v3364_v52 = vld [vmem:[%s14517_s18 + $0x470] sm:$0xff]  ;;  %v3365_v21 = vld [vmem:[%s14517_s18 + $0x478] sm:$0xff] }
 0x956   : > { %10419 = vmatprep.subr.bf16.mxu0 %v12045_v34  ;;  %v3292_v34 = vld [vmem:[%s14517_s18 + $0x230] sm:$0xff]  ;;  %v3373_v47 = vld [vmem:[%s14517_s18 + $0x4b8] sm:$0xff] }
 0x957   : > { %v11134_v45 = vcombine.low %v3292_v34, %v3300_v42  ;;  %v3380_v26 = vld [vmem:[%s14517_s18 + $0x4f0] sm:$0xff] }
 0x958   : > { %10256 = vmatpush1.bf16.msra.mxu1 %v12042_v2  ;;  %v11120_v2 = vcombine.low %v3277_v54, %v3285_v28 }
 0x959   : > { %10420 = vmatpush1.bf16.msra.mxu0 %v12044_v36  ;;  %10257 = vmatprep.subr.bf16.mxu1 %v12059_v39  ;;  %v11135_v36 = vcombine.high %v3292_v34, %v3300_v42  ;;  %v11137_v39 = vcombine.high %v3293_v20, %v3301_v49  ;;  %v3396_v34 = vld [vmem:[%s14517_s18 + $0x570] sm:$0xff]  ;;  %v3389_v42 = vld [vmem:[%s14517_s18 + $0x538] sm:$0xff] }
 0x95a   : > { %10421 = vmatprep.subr.bf16.mxu0 %v12061_v40  ;;  %v3308_v40 = vld [vmem:[%s14517_s18 + $0x2b0] sm:$0xff] }
 0x95b   : > { %v11150_v32 = vcombine.low %v3308_v40, %v3316_v41 }
 0x95c   : > { %10258 = vmatpush1.bf16.msra.mxu1 %v12058_v51  ;;  %v11136_v51 = vcombine.low %v3293_v20, %v3301_v49  ;;  %v3397_v20 = vld [vmem:[%s14517_s18 + $0x578] sm:$0xff] }
 0x95d   : > { %10422 = vmatpush1.bf16.msra.mxu0 %v12060_v56  ;;  %10259 = vmatprep.subr.bf16.mxu1 %v12075_v63  ;;  %v11151_v56 = vcombine.high %v3308_v40, %v3316_v41  ;;  %v11153_v63 = vcombine.high %v3309_v43, %v3317_v58  ;;  %v3412_v40 = vld [vmem:[%s14517_s18 + $0x5f0] sm:$0xff]  ;;  %v3405_v41 = vld [vmem:[%s14517_s18 + $0x5b8] sm:$0xff] }
 0x95e   : > { %10423 = vmatprep.subr.bf16.mxu0 %v12077_v1  ;;  %v3324_v1 = vld [vmem:[%s14517_s18 + $0x330] sm:$0xff] }
 0x95f   : > { %v11166_v48 = vcombine.low %v3324_v1, %v3332_v50 }
 0x960   : > { %10260 = vmatpush1.bf16.msra.mxu1 %v12074_v0  ;;  %v11152_v0 = vcombine.low %v3309_v43, %v3317_v58  ;;  %v3413_v43 = vld [vmem:[%s14517_s18 + $0x5f8] sm:$0xff] }
 0x961   : > { %10424 = vmatpush1.bf16.msra.mxu0 %v12076_v17  ;;  %10434 = vmatprep.subr.bf16.mxu1 %v11071_v44  ;;  %v11167_v17 = vcombine.high %v3324_v1, %v3332_v50  ;;  %v11169_v44 = vcombine.high %v3325_v53, %v3333_v55  ;;  %v3428_v1 = vld [vmem:[%s14517_s18 + $0x670] sm:$0xff]  ;;  %v3421_v50 = vld [vmem:[%s14517_s18 + $0x638] sm:$0xff] }
 0x962   : > { %10598 = vmatprep.subr.bf16.mxu0 %v11073_v3  ;;  %v3340_v3 = vld [vmem:[%s14517_s18 + $0x3b0] sm:$0xff]  ;;  %v3429_v53 = vld [vmem:[%s14517_s18 + $0x678] sm:$0xff] }
 0x963   : > { %10262 = vmatmul.mubr.bf16.vlgmr.msra.gmra.mrb[20].mxu1 %v15042_v62  ;;  %v11182_v22 = vcombine.low %v3340_v3, %v3348_v10 }
 0x964   : > { %10426 = vmatmul.mubr.bf16.vlgmr.msra.gmra.mrb[20].mxu0 %v15042_v62  ;;  %10435 = vmatpush1.bf16.msra.mxu1 %v11070_v8  ;;  %v3349_v8 = vld [vmem:[%s14517_s18 + $0x3f8] sm:$0xff] }
 0x965   : > { %10466 = vmatprep.mubr.bf16.mxu1 %v14734_v29  ;;  %10599 = vmatpush1.bf16.msra.mxu0 %v11072_v15  ;;  %v11183_v15 = vcombine.high %v3340_v3, %v3348_v10  ;;  %v3444_v3 = vld [vmem:[%s14517_s18 + $0x6f0] sm:$0xff]  ;;  %v3437_v10 = vld [vmem:[%s14517_s18 + $0x6b8] sm:$0xff] }
 0x966   : > { %10630 = vmatprep.mubr.bf16.mxu0 %v14734_v29  ;;  %10436 = vmatprep.subr.bf16.mxu1 %v11087_v18  ;;  %v11121_v29 = vcombine.high %v3277_v54, %v3285_v28  ;;  %v11185_v18 = vcombine.high %v3341_v7, %v3349_v8  ;;  %v3381_v54 = vld [vmem:[%s14517_s18 + $0x4f8] sm:$0xff]  ;;  %v11198_v28 = vcombine.low %v3356_v37, %v3364_v52 }
 0x967   : > { %10600 = vmatprep.subr.bf16.mxu0 %v11089_v27  ;;  %v3357_v27 = vld [vmem:[%s14517_s18 + $0x438] sm:$0xff] }
 0x968   : > { %10437 = vmatpush1.bf16.msra.mxu1 %v11086_v23  ;;  %v11184_v23 = vcombine.low %v3341_v7, %v3349_v8  ;;  %v3445_v7 = vld [vmem:[%s14517_s18 + $0x6f8] sm:$0xff] }
 0x969   : > { %10601 = vmatpush1.bf16.msra.mxu0 %v11088_v24  ;;  %10438 = vmatprep.subr.bf16.mxu1 %v11103_v25  ;;  %v11199_v24 = vcombine.high %v3356_v37, %v3364_v52  ;;  %v11201_v25 = vcombine.high %v3357_v27, %v3365_v21  ;;  %v3460_v37 = vld [vmem:[%s14517_s18 + $0x770] sm:$0xff]  ;;  %v3453_v52 = vld [vmem:[%s14517_s18 + $0x738] sm:$0xff] }
 0x96a   : > { %10602 = vmatprep.subr.bf16.mxu0 %v11105_v16  ;;  %v3372_v16 = vld [vmem:[%s14517_s18 + $0x4b0] sm:$0xff] }
 0x96b   : > { %v11214_v49 = vcombine.low %v3372_v16, %v3380_v26 }
 0x96c   : > { %10439 = vmatpush1.bf16.msra.mxu1 %v11102_v30  ;;  %v11200_v30 = vcombine.low %v3357_v27, %v3365_v21  ;;  %v3461_v27 = vld [vmem:[%s14517_s18 + $0x778] sm:$0xff] }
 0x96d   : > { %10603 = vmatpush1.bf16.msra.mxu0 %v11104_v60  ;;  %10440 = vmatprep.subr.bf16.mxu1 %v11119_v33  ;;  %v11215_v60 = vcombine.high %v3372_v16, %v3380_v26  ;;  %v11217_v33 = vcombine.high %v3373_v47, %v3381_v54  ;;  %v3476_v16 = vld [vmem:[%s14517_s18 + $0x7f0] sm:$0xff]  ;;  %v3469_v26 = vld [vmem:[%s14517_s18 + $0x7b8] sm:$0xff] }
 0x96e   : > { %10604 = vmatprep.subr.bf16.mxu0 %v11121_v29  ;;  %v3388_v29 = vld [vmem:[%s14517_s18 + $0x530] sm:$0xff] }
 0x96f   : > { %v11230_v58 = vcombine.low %v3388_v29, %v3396_v34 }
 0x970   : > { %10441 = vmatpush1.bf16.msra.mxu1 %v11118_v35  ;;  %v11216_v35 = vcombine.low %v3373_v47, %v3381_v54  ;;  %v3477_v47 = vld [vmem:[%s14517_s18 + $0x7f8] sm:$0xff] }
 0x971   : > { %10605 = vmatpush1.bf16.msra.mxu0 %v11120_v2  ;;  %10442 = vmatprep.subr.bf16.mxu1 %v11135_v36  ;;  %v11231_v2 = vcombine.high %v3388_v29, %v3396_v34  ;;  %v11233_v36 = vcombine.high %v3389_v42, %v3397_v20  ;;  %v3492_v29 = vld [vmem:[%s14517_s18 + $0x870] sm:$0xff]  ;;  %v3485_v34 = vld [vmem:[%s14517_s18 + $0x838] sm:$0xff] }
 0x972   : > { %10606 = vmatprep.subr.bf16.mxu0 %v11137_v39  ;;  %v3404_v39 = vld [vmem:[%s14517_s18 + $0x5b0] sm:$0xff] }
 0x973   : > { %v11246_v55 = vcombine.low %v3404_v39, %v3412_v40 }
 0x974   : > { %10443 = vmatpush1.bf16.msra.mxu1 %v11134_v45  ;;  %v11232_v45 = vcombine.low %v3389_v42, %v3397_v20  ;;  %v3493_v42 = vld [vmem:[%s14517_s18 + $0x878] sm:$0xff] }
 0x975   : > { %10607 = vmatpush1.bf16.msra.mxu0 %v11136_v51  ;;  %10444 = vmatprep.subr.bf16.mxu1 %v11151_v56  ;;  %v11247_v51 = vcombine.high %v3404_v39, %v3412_v40  ;;  %v11249_v56 = vcombine.high %v3405_v41, %v3413_v43  ;;  %v3508_v39 = vld [vmem:[%s14517_s18 + $0x8f0] sm:$0xff] }
 0x976   : > { %10608 = vmatprep.subr.bf16.mxu0 %v11153_v63  ;;  %v3420_v63 = vld [vmem:[%s14517_s18 + $0x630] sm:$0xff] }
 0x977   : > { %v11262_v8 = vcombine.low %v3420_v63, %v3428_v1 }
 0x978   : > { %10445 = vmatpush1.bf16.msra.mxu1 %v11150_v32  ;;  %v11248_v32 = vcombine.low %v3405_v41, %v3413_v43  ;;  %v3501_v41 = vld [vmem:[%s14517_s18 + $0x8b8] sm:$0xff] }
 0x979   : > { %10609 = vmatpush1.bf16.msra.mxu0 %v11152_v0  ;;  %10446 = vmatprep.subr.bf16.mxu1 %v11167_v17  ;;  %v11263_v0 = vcombine.high %v3420_v63, %v3428_v1  ;;  %v11265_v17 = vcombine.high %v3421_v50, %v3429_v53  ;;  %v3509_v43 = vld [vmem:[%s14517_s18 + $0x8f8] sm:$0xff] }
 0x97a   : > { %10610 = vmatprep.subr.bf16.mxu0 %v11169_v44  ;;  %v3436_v44 = vld [vmem:[%s14517_s18 + $0x6b0] sm:$0xff]  ;;  %v11345_v63 = vcombine.high %v3501_v41, %v3509_v43  ;;  %v3517_v1 = vld [vmem:[%s14517_s18 + $0x938] sm:$0xff] }
 0x97b   : > { %v11278_v21 = vcombine.low %v3436_v44, %v3444_v3 }
 0x97c   : > { %10447 = vmatpush1.bf16.msra.mxu1 %v11166_v48  ;;  %v11264_v48 = vcombine.low %v3421_v50, %v3429_v53  ;;  %v3525_v50 = vld [vmem:[%s14517_s18 + $0x978] sm:$0xff] }
 0x97d   : > { %10611 = vmatpush1.bf16.msra.mxu0 %v11168_v11  ;;  %10448 = vmatprep.subr.bf16.mxu1 %v11183_v15  ;;  %v11279_v11 = vcombine.high %v3436_v44, %v3444_v3  ;;  %v11281_v15 = vcombine.high %v3437_v10, %v3445_v7  ;;  %v3540_v44 = vld [vmem:[%s14517_s18 + $0x9f0] sm:$0xff]  ;;  %v3533_v3 = vld [vmem:[%s14517_s18 + $0x9b8] sm:$0xff] }
 0x97e   : > { %10612 = vmatprep.subr.bf16.mxu0 %v11185_v18  ;;  %v3452_v18 = vld [vmem:[%s14517_s18 + $0x730] sm:$0xff] }
 0x97f   : > { %v11294_v54 = vcombine.low %v3452_v18, %v3460_v37 }
 0x980   : > { %10449 = vmatpush1.bf16.msra.mxu1 %v11182_v22  ;;  %v11280_v22 = vcombine.low %v3437_v10, %v3445_v7  ;;  %v11360_v7 = vcombine.low %v3517_v1, %v3525_v50 }
 0x981   : > { %10613 = vmatpush1.bf16.msra.mxu0 %v11184_v23  ;;  %10450 = vmatprep.subr.bf16.mxu1 %v11199_v24  ;;  %v11295_v23 = vcombine.high %v3452_v18, %v3460_v37  ;;  %v11297_v24 = vcombine.high %v3453_v52, %v3461_v27  ;;  %v3557_v18 = vld [vmem:[%s14517_s18 + $0xa78] sm:$0xff] }
 0x982   : > { %10614 = vmatprep.subr.bf16.mxu0 %v11201_v25  ;;  %v3468_v25 = vld [vmem:[%s14517_s18 + $0x7b0] sm:$0xff] }
 0x983   : > { %v11310_v20 = vcombine.low %v3468_v25, %v3476_v16 }
 0x984   : > { %10451 = vmatpush1.bf16.msra.mxu1 %v11198_v28  ;;  %v11296_v28 = vcombine.low %v3453_v52, %v3461_v27 }
 0x985   : > { %10615 = vmatpush1.bf16.msra.mxu0 %v11200_v30  ;;  %10452 = vmatprep.subr.bf16.mxu1 %v11215_v60  ;;  %v11311_v30 = vcombine.high %v3468_v25, %v3476_v16  ;;  %v11313_v60 = vcombine.high %v3469_v26, %v3477_v47  ;;  %v3573_v25 = vld [vmem:[%s14517_s18 + $0xaf8] sm:$0xff] }
 0x986   : > { %10616 = vmatprep.subr.bf16.mxu0 %v11217_v33  ;;  %v3484_v33 = vld [vmem:[%s14517_s18 + $0x830] sm:$0xff] }
 0x987   : > { %v11326_v40 = vcombine.low %v3484_v33, %v3492_v29 }
 0x988   : > { %10453 = vmatpush1.bf16.msra.mxu1 %v11214_v49  ;;  %v11312_v49 = vcombine.low %v3469_v26, %v3477_v47 }
 0x989   : > { %10617 = vmatpush1.bf16.msra.mxu0 %v11216_v35  ;;  %10454 = vmatprep.subr.bf16.mxu1 %v11231_v2  ;;  %v11327_v35 = vcombine.high %v3484_v33, %v3492_v29  ;;  %v11329_v2 = vcombine.high %v3485_v34, %v3493_v42  ;;  %v3589_v33 = vld [vmem:[%s14517_s18 + $0xb78] sm:$0xff] }
 0x98a   : > { %10618 = vmatprep.subr.bf16.mxu0 %v11233_v36  ;;  %v3500_v36 = vld [vmem:[%s14517_s18 + $0x8b0] sm:$0xff] }
 0x98b   : > { %v11342_v53 = vcombine.low %v3500_v36, %v3508_v39 }
 0x98c   : > { %10455 = vmatpush1.bf16.msra.mxu1 %v11230_v58  ;;  %v11328_v58 = vcombine.low %v3485_v34, %v3493_v42 }
 0x98d   : > { %10619 = vmatpush1.bf16.msra.mxu0 %v11232_v45  ;;  %10456 = vmatprep.subr.bf16.mxu1 %v11247_v51  ;;  %v11343_v45 = vcombine.high %v3500_v36, %v3508_v39  ;;  %v3516_v51 = vld [vmem:[%s14517_s18 + $0x930] sm:$0xff]  ;;  %v3605_v36 = vld [vmem:[%s14517_s18 + $0xbf8] sm:$0xff] }
 0x98e   : > { %10620 = vmatprep.subr.bf16.mxu0 %v11249_v56  ;;  %v3524_v56 = vld [vmem:[%s14517_s18 + $0x970] sm:$0xff] }
 0x98f   : > { %v11358_v10 = vcombine.low %v3516_v51, %v3524_v56 }
 0x990   : > { %10457 = vmatpush1.bf16.msra.mxu1 %v11246_v55  ;;  %v11344_v55 = vcombine.low %v3501_v41, %v3509_v43 }
 0x991   : > { %10621 = vmatpush1.bf16.msra.mxu0 %v11248_v32  ;;  %10458 = vmatprep.subr.bf16.mxu1 %v11263_v0  ;;  %v11359_v32 = vcombine.high %v3516_v51, %v3524_v56  ;;  %v11361_v0 = vcombine.high %v3517_v1, %v3525_v50  ;;  %v3613_v51 = vld [vmem:[%s14517_s18 + $0xc38] sm:$0xff] }
 0x992   : > { %10622 = vmatprep.subr.bf16.mxu0 %v11265_v17  ;;  %v3532_v17 = vld [vmem:[%s14517_s18 + $0x9b0] sm:$0xff]  ;;  %v3621_v56 = vld [vmem:[%s14517_s18 + $0xc78] sm:$0xff] }
 0x993   : > { %v11374_v37 = vcombine.low %v3532_v17, %v3540_v44 }
 0x994   : > { %10459 = vmatpush1.bf16.msra.mxu1 %v11262_v8  ;;  %v11375_v8 = vcombine.high %v3532_v17, %v3540_v44  ;;  %v3637_v17 = vld [vmem:[%s14517_s18 + $0xcf8] sm:$0xff] }
 0x995   : > { %10623 = vmatpush1.bf16.msra.mxu0 %v11264_v48  ;;  %10460 = vmatprep.subr.bf16.mxu1 %v11279_v11  ;;  %v3548_v48 = vld [vmem:[%s14517_s18 + $0xa30] sm:$0xff] }
 0x996   : > { %10624 = vmatprep.subr.bf16.mxu0 %v11281_v15  ;;  %v3556_v11 = vld [vmem:[%s14517_s18 + $0xa70] sm:$0xff]  ;;  %v3549_v15 = vld [vmem:[%s14517_s18 + $0xa38] sm:$0xff] }
 0x997   : > { %v11391_v27 = vcombine.high %v3548_v48, %v3556_v11  ;;  %v11390_v16 = vcombine.low %v3548_v48, %v3556_v11  ;;  %v11392_v26 = vcombine.low %v3549_v15, %v3557_v18  ;;  %v3653_v48 = vld [vmem:[%s14517_s18 + $0xd78] sm:$0xff] }
 0x998   : > { %10461 = vmatpush1.bf16.msra.mxu1 %v11278_v21  ;;  %v11393_v21 = vcombine.high %v3549_v15, %v3557_v18 }
 0x999   : > { %10625 = vmatpush1.bf16.msra.mxu0 %v11280_v22  ;;  %10462 = vmatprep.subr.bf16.mxu1 %v11295_v23  ;;  %v3564_v22 = vld [vmem:[%s14517_s18 + $0xab0] sm:$0xff] }
 0x99a   : > { %10626 = vmatprep.subr.bf16.mxu0 %v11297_v24  ;;  %v3572_v23 = vld [vmem:[%s14517_s18 + $0xaf0] sm:$0xff]  ;;  %v3565_v24 = vld [vmem:[%s14517_s18 + $0xab8] sm:$0xff] }
 0x99b   : > { %v11407_v47 = vcombine.high %v3564_v22, %v3572_v23  ;;  %v11406_v29 = vcombine.low %v3564_v22, %v3572_v23  ;;  %v11408_v34 = vcombine.low %v3565_v24, %v3573_v25  ;;  %v3669_v22 = vld [vmem:[%s14517_s18 + $0xdf8] sm:$0xff] }
 0x99c   : > { %10463 = vmatpush1.bf16.msra.mxu1 %v11294_v54  ;;  %v11409_v54 = vcombine.high %v3565_v24, %v3573_v25 }
 0x99d   : > { %10627 = vmatpush1.bf16.msra.mxu0 %v11296_v28  ;;  %10464 = vmatprep.subr.bf16.mxu1 %v11311_v30  ;;  %v3580_v28 = vld [vmem:[%s14517_s18 + $0xb30] sm:$0xff] }
 0x99e   : > { %10628 = vmatprep.subr.bf16.mxu0 %v11313_v60  ;;  %v3588_v30 = vld [vmem:[%s14517_s18 + $0xb70] sm:$0xff]  ;;  %v3581_v60 = vld [vmem:[%s14517_s18 + $0xb38] sm:$0xff] }
 0x99f   : > { %v11423_v42 = vcombine.high %v3580_v28, %v3588_v30  ;;  %v11422_v39 = vcombine.low %v3580_v28, %v3588_v30  ;;  %v3685_v28 = vld [vmem:[%s14517_s18 + $0xe78] sm:$0xff] }
 0x9a0   : > { %10465 = vmatpush1.bf16.msra.mxu1 %v11310_v20  ;;  %v11425_v20 = vcombine.high %v3581_v60, %v3589_v33 }
 0x9a1   : > { %10629 = vmatpush1.bf16.msra.mxu0 %v11312_v49  ;;  %10475 = vmatprep.subr.bf16.mxu1 %v11327_v35  ;;  %v3596_v49 = vld [vmem:[%s14517_s18 + $0xbb0] sm:$0xff] }
 0x9a2   : > { %10639 = vmatprep.subr.bf16.mxu0 %v11329_v2  ;;  %v3604_v35 = vld [vmem:[%s14517_s18 + $0xbf0] sm:$0xff]  ;;  %v3597_v2 = vld [vmem:[%s14517_s18 + $0xbb8] sm:$0xff] }
 0x9a3   : > { %10467 = vmatmul.mubr.bf16.vlgmr.msra.gmra.mrb[24].mxu1 %v14736_v31  ;;  %v11439_v41 = vcombine.high %v3596_v49, %v3604_v35  ;;  %v11441_v43 = vcombine.high %v3597_v2, %v3605_v36  ;;  %v11440_v1 = vcombine.low %v3597_v2, %v3605_v36 }
 0x9a4   : > { %10631 = vmatmul.mubr.bf16.vlgmr.msra.gmra.mrb[24].mxu0 %v14736_v31  ;;  %10476 = vmatpush1.bf16.msra.mxu1 %v11326_v40  ;;  %v3541_v31 = vld [vmem:[%s14517_s18 + $0x9f8] sm:$0xff]  ;;  %v11424_v40 = vcombine.low %v3581_v60, %v3589_v33 }
 0x9a5   : > { %10507 = vmatprep.mubr.bf16.mxu1 %v14744_v38  ;;  %10640 = vmatpush1.bf16.msra.mxu0 %v11328_v58  ;;  %v11376_v52 = vcombine.low %v3533_v3, %v3541_v31  ;;  %v3612_v58 = vld [vmem:[%s14517_s18 + $0xc30] sm:$0xff] }
 0x9a6   : > { %10671 = vmatprep.mubr.bf16.mxu0 %v14744_v38  ;;  %10477 = vmatprep.subr.bf16.mxu1 %v11343_v45  ;;  %v11377_v38 = vcombine.high %v3533_v3, %v3541_v31  ;;  %v3620_v45 = vld [vmem:[%s14517_s18 + $0xc70] sm:$0xff]  ;;  %v11456_v3 = vcombine.low %v3613_v51, %v3621_v56 }
 0x9a7   : > { %10641 = vmatprep.subr.bf16.mxu0 %v11345_v63  ;;  %v11438_v63 = vcombine.low %v3596_v49, %v3604_v35  ;;  %v11455_v50 = vcombine.high %v3612_v58, %v3620_v45  ;;  %v11454_v44 = vcombine.low %v3612_v58, %v3620_v45  ;;  %v3701_v49 = vld [vmem:[%s14517_s18 + $0xef8] sm:$0xff] }
 0x9a8   : > { %10478 = vmatpush1.bf16.msra.mxu1 %v11342_v53  ;;  %v11457_v53 = vcombine.high %v3613_v51, %v3621_v56  ;;  %v3717_v58 = vld [vmem:[%s14517_s18 + $0xf78] sm:$0xff] }
 0x9a9   : > { %10642 = vmatpush1.bf16.msra.mxu0 %v11344_v55  ;;  %10479 = vmatprep.subr.bf16.mxu1 %v11359_v32  ;;  %v3628_v55 = vld [vmem:[%s14517_s18 + $0xcb0] sm:$0xff] }
 0x9aa   : > { %10643 = vmatprep.subr.bf16.mxu0 %v11361_v0  ;;  %v3636_v32 = vld [vmem:[%s14517_s18 + $0xcf0] sm:$0xff]  ;;  %v3629_v0 = vld [vmem:[%s14517_s18 + $0xcb8] sm:$0xff] }
 0x9ab   : > { %v11471_v31 = vcombine.high %v3628_v55, %v3636_v32  ;;  %v11470_v11 = vcombine.low %v3628_v55, %v3636_v32  ;;  %v11472_v15 = vcombine.low %v3629_v0, %v3637_v17  ;;  %v3733_v55 = vld [vmem:[%s14517_s18 + $0xff8] sm:$0xff] }
 0x9ac   : > { %10480 = vmatpush1.bf16.msra.mxu1 %v11358_v10  ;;  %v11473_v10 = vcombine.high %v3629_v0, %v3637_v17 }
 0x9ad   : > { %10644 = vmatpush1.bf16.msra.mxu0 %v11360_v7  ;;  %10481 = vmatprep.subr.bf16.mxu1 %v11375_v8  ;;  %v3644_v7 = vld [vmem:[%s14517_s18 + $0xd30] sm:$0xff] }
 0x9ae   : > { %10645 = vmatprep.subr.bf16.mxu0 %v11377_v38  ;;  %v3652_v8 = vld [vmem:[%s14517_s18 + $0xd70] sm:$0xff]  ;;  %v3645_v38 = vld [vmem:[%s14517_s18 + $0xd38] sm:$0xff] }
 0x9af   : > { %v11487_v18 = vcombine.high %v3644_v7, %v3652_v8  ;;  %v11486_v23 = vcombine.low %v3644_v7, %v3652_v8  ;;  %v11488_v24 = vcombine.low %v3645_v38, %v3653_v48  ;;  %v3749_v7 = vld [vmem:[%s14517_s18 + $0x1078] sm:$0xff] }
 0x9b0   : > { %10482 = vmatpush1.bf16.msra.mxu1 %v11374_v37  ;;  %v11489_v37 = vcombine.high %v3645_v38, %v3653_v48 }
 0x9b1   : > { %10646 = vmatpush1.bf16.msra.mxu0 %v11376_v52  ;;  %10483 = vmatprep.subr.bf16.mxu1 %v11391_v27  ;;  %v3660_v52 = vld [vmem:[%s14517_s18 + $0xdb0] sm:$0xff] }
 0x9b2   : > { %10647 = vmatprep.subr.bf16.mxu0 %v11393_v21  ;;  %v3668_v27 = vld [vmem:[%s14517_s18 + $0xdf0] sm:$0xff]  ;;  %v3661_v21 = vld [vmem:[%s14517_s18 + $0xdb8] sm:$0xff] }
 0x9b3   : > { %v11503_v25 = vcombine.high %v3660_v52, %v3668_v27  ;;  %v11502_v30 = vcombine.low %v3660_v52, %v3668_v27  ;;  %v11504_v60 = vcombine.low %v3661_v21, %v3669_v22  ;;  %v3757_v52 = vld [vmem:[%s14517_s18 + $0x10b8] sm:$0xff] }
 0x9b4   : > { %10484 = vmatpush1.bf16.msra.mxu1 %v11390_v16  ;;  %v11505_v16 = vcombine.high %v3661_v21, %v3669_v22  ;;  %v3765_v27 = vld [vmem:[%s14517_s18 + $0x10f8] sm:$0xff] }
 0x9b5   : > { %10648 = vmatpush1.bf16.msra.mxu0 %v11392_v26  ;;  %10485 = vmatprep.subr.bf16.mxu1 %v11407_v47  ;;  %v3676_v26 = vld [vmem:[%s14517_s18 + $0xe30] sm:$0xff] }
 0x9b6   : > { %10649 = vmatprep.subr.bf16.mxu0 %v11409_v54  ;;  %v3684_v47 = vld [vmem:[%s14517_s18 + $0xe70] sm:$0xff]  ;;  %v3677_v54 = vld [vmem:[%s14517_s18 + $0xe38] sm:$0xff] }
 0x9b7   : > { %v11519_v33 = vcombine.high %v3676_v26, %v3684_v47  ;;  %v11518_v35 = vcombine.low %v3676_v26, %v3684_v47  ;;  %v11520_v2 = vcombine.low %v3677_v54, %v3685_v28  ;;  %v3781_v26 = vld [vmem:[%s14517_s18 + $0x1178] sm:$0xff] }
 0x9b8   : > { %10486 = vmatpush1.bf16.msra.mxu1 %v11406_v29  ;;  %v11521_v29 = vcombine.high %v3677_v54, %v3685_v28  ;;  %v11600_v54 = vcombine.low %v3757_v52, %v3765_v27 }
 0x9b9   : > { %10650 = vmatpush1.bf16.msra.mxu0 %v11408_v34  ;;  %10487 = vmatprep.subr.bf16.mxu1 %v11423_v42  ;;  %v3692_v34 = vld [vmem:[%s14517_s18 + $0xeb0] sm:$0xff] }
 0x9ba   : > { %10651 = vmatprep.subr.bf16.mxu0 %v11425_v20  ;;  %v3700_v42 = vld [vmem:[%s14517_s18 + $0xef0] sm:$0xff]  ;;  %v3693_v20 = vld [vmem:[%s14517_s18 + $0xeb8] sm:$0xff] }
 0x9bb   : > { %v11535_v36 = vcombine.high %v3692_v34, %v3700_v42  ;;  %v11534_v45 = vcombine.low %v3692_v34, %v3700_v42  ;;  %v11536_v51 = vcombine.low %v3693_v20, %v3701_v49 }
 0x9bc   : > { %10488 = vmatpush1.bf16.msra.mxu1 %v11422_v39  ;;  %v11537_v39 = vcombine.high %v3693_v20, %v3701_v49  ;;  %v3804_v49 = vld [vmem:[%s14517_s18 + $0x1230] sm:$0xff] }
 0x9bd   : > { %10652 = vmatpush1.bf16.msra.mxu0 %v11424_v40  ;;  %10489 = vmatprep.subr.bf16.mxu1 %v11439_v41  ;;  %v3708_v40 = vld [vmem:[%s14517_s18 + $0xf30] sm:$0xff] }
 0x9be   : > { %10653 = vmatprep.subr.bf16.mxu0 %v11441_v43  ;;  %v3716_v41 = vld [vmem:[%s14517_s18 + $0xf70] sm:$0xff]  ;;  %v3709_v43 = vld [vmem:[%s14517_s18 + $0xf38] sm:$0xff] }
 0x9bf   : > { %v11551_v56 = vcombine.high %v3708_v40, %v3716_v41  ;;  %v11550_v32 = vcombine.low %v3708_v40, %v3716_v41  ;;  %v11552_v0 = vcombine.low %v3709_v43, %v3717_v58 }
 0x9c0   : > { %10490 = vmatpush1.bf16.msra.mxu1 %v11438_v63  ;;  %v11553_v63 = vcombine.high %v3709_v43, %v3717_v58  ;;  %v3820_v58 = vld [vmem:[%s14517_s18 + $0x12b0] sm:$0xff] }
 0x9c1   : > { %10654 = vmatpush1.bf16.msra.mxu0 %v11440_v1  ;;  %10491 = vmatprep.subr.bf16.mxu1 %v11455_v50  ;;  %v3724_v1 = vld [vmem:[%s14517_s18 + $0xfb0] sm:$0xff] }
 0x9c2   : > { %10655 = vmatprep.subr.bf16.mxu0 %v11457_v53  ;;  %v3732_v50 = vld [vmem:[%s14517_s18 + $0xff0] sm:$0xff]  ;;  %v3725_v53 = vld [vmem:[%s14517_s18 + $0xfb8] sm:$0xff] }
 0x9c3   : > { %v11567_v17 = vcombine.high %v3724_v1, %v3732_v50  ;;  %v11566_v8 = vcombine.low %v3724_v1, %v3732_v50  ;;  %v11568_v38 = vcombine.low %v3725_v53, %v3733_v55 }
 0x9c4   : > { %10492 = vmatpush1.bf16.msra.mxu1 %v11454_v44  ;;  %v11569_v44 = vcombine.high %v3725_v53, %v3733_v55  ;;  %v3836_v55 = vld [vmem:[%s14517_s18 + $0x1330] sm:$0xff] }
 0x9c5   : > { %10656 = vmatpush1.bf16.msra.mxu0 %v11456_v3  ;;  %10493 = vmatprep.subr.bf16.mxu1 %v11471_v31  ;;  %v3740_v3 = vld [vmem:[%s14517_s18 + $0x1030] sm:$0xff] }
 0x9c6   : > { %10657 = vmatprep.subr.bf16.mxu0 %v11473_v10  ;;  %v3748_v31 = vld [vmem:[%s14517_s18 + $0x1070] sm:$0xff]  ;;  %v3741_v10 = vld [vmem:[%s14517_s18 + $0x1038] sm:$0xff] }
 0x9c7   : > { %v11583_v48 = vcombine.high %v3740_v3, %v3748_v31  ;;  %v11584_v21 = vcombine.low %v3741_v10, %v3749_v7 }
 0x9c8   : > { %10494 = vmatpush1.bf16.msra.mxu1 %v11470_v11  ;;  %v11585_v11 = vcombine.high %v3741_v10, %v3749_v7  ;;  %v3852_v7 = vld [vmem:[%s14517_s18 + $0x13b0] sm:$0xff] }
 0x9c9   : > { %10658 = vmatpush1.bf16.msra.mxu0 %v11472_v15  ;;  %10495 = vmatprep.subr.bf16.mxu1 %v11487_v18  ;;  %v3756_v15 = vld [vmem:[%s14517_s18 + $0x10b0] sm:$0xff] }
 0x9ca   : > { %10659 = vmatprep.subr.bf16.mxu0 %v11489_v37  ;;  %v3764_v18 = vld [vmem:[%s14517_s18 + $0x10f0] sm:$0xff]  ;;  %v11582_v37 = vcombine.low %v3740_v3, %v3748_v31 }
 0x9cb   : > { %v11599_v22 = vcombine.high %v3756_v15, %v3764_v18  ;;  %v11598_v47 = vcombine.low %v3756_v15, %v3764_v18 }
 0x9cc   : > { %10496 = vmatpush1.bf16.msra.mxu1 %v11486_v23  ;;  %v3772_v23 = vld [vmem:[%s14517_s18 + $0x1130] sm:$0xff] }
 0x9cd   : > { %10660 = vmatpush1.bf16.msra.mxu0 %v11488_v24  ;;  %10497 = vmatprep.subr.bf16.mxu1 %v11503_v25  ;;  %v3780_v24 = vld [vmem:[%s14517_s18 + $0x1170] sm:$0xff]  ;;  %v11601_v25 = vcombine.high %v3757_v52, %v3765_v27 }
 0x9ce   : > { %10661 = vmatprep.subr.bf16.mxu0 %v11505_v16  ;;  %v3773_v16 = vld [vmem:[%s14517_s18 + $0x1138] sm:$0xff]  ;;  %v11615_v28 = vcombine.high %v3772_v23, %v3780_v24  ;;  %v11614_v34 = vcombine.low %v3772_v23, %v3780_v24  ;;  %v3868_v52 = vld [vmem:[%s14517_s18 + $0x1430] sm:$0xff] }
 0x9cf   : > { %v11616_v42 = vcombine.low %v3773_v16, %v3781_v26  ;;  %v3876_v27 = vld [vmem:[%s14517_s18 + $0x1470] sm:$0xff] }
 0x9d0   : > { %10498 = vmatpush1.bf16.msra.mxu1 %v11502_v30  ;;  %v11617_v30 = vcombine.high %v3773_v16, %v3781_v26  ;;  %v3884_v26 = vld [vmem:[%s14517_s18 + $0x14b0] sm:$0xff] }
 0x9d1   : > { %10662 = vmatpush1.bf16.msra.mxu0 %v11504_v60  ;;  %10499 = vmatprep.subr.bf16.mxu1 %v11519_v33  ;;  %v3788_v60 = vld [vmem:[%s14517_s18 + $0x11b0] sm:$0xff] }
 0x9d2   : > { %10663 = vmatprep.subr.bf16.mxu0 %v11521_v29  ;;  %v3796_v33 = vld [vmem:[%s14517_s18 + $0x11f0] sm:$0xff]  ;;  %v3789_v29 = vld [vmem:[%s14517_s18 + $0x11b8] sm:$0xff] }
 0x9d3   : > { %v11631_v20 = vcombine.high %v3788_v60, %v3796_v33 }
 0x9d4   : > { %10500 = vmatpush1.bf16.msra.mxu1 %v11518_v35  ;;  %v3812_v35 = vld [vmem:[%s14517_s18 + $0x1270] sm:$0xff] }
 0x9d5   : > { %10664 = vmatpush1.bf16.msra.mxu0 %v11520_v2  ;;  %10501 = vmatprep.subr.bf16.mxu1 %v11535_v36  ;;  %v3805_v2 = vld [vmem:[%s14517_s18 + $0x1238] sm:$0xff]  ;;  %v11647_v41 = vcombine.high %v3804_v49, %v3812_v35 }
 0x9d6   : > { %10665 = vmatprep.subr.bf16.mxu0 %v11537_v39  ;;  %v3813_v36 = vld [vmem:[%s14517_s18 + $0x1278] sm:$0xff]  ;;  %v11630_v39 = vcombine.low %v3788_v60, %v3796_v33 }
 0x9d7   : > { %v11649_v43 = vcombine.high %v3805_v2, %v3813_v36  ;;  %v11648_v1 = vcombine.low %v3805_v2, %v3813_v36  ;;  %v3916_v36 = vld [vmem:[%s14517_s18 + $0x15b0] sm:$0xff] }
 0x9d8   : > { %10502 = vmatpush1.bf16.msra.mxu1 %v11534_v45  ;;  %v3828_v45 = vld [vmem:[%s14517_s18 + $0x12f0] sm:$0xff] }
 0x9d9   : > { %10666 = vmatpush1.bf16.msra.mxu0 %v11536_v51  ;;  %10503 = vmatprep.subr.bf16.mxu1 %v11551_v56  ;;  %v3821_v51 = vld [vmem:[%s14517_s18 + $0x12b8] sm:$0xff]  ;;  %v11663_v50 = vcombine.high %v3820_v58, %v3828_v45 }
 0x9da   : > { %10667 = vmatprep.subr.bf16.mxu0 %v11553_v63  ;;  %v3829_v56 = vld [vmem:[%s14517_s18 + $0x12f8] sm:$0xff]  ;;  %v11646_v63 = vcombine.low %v3804_v49, %v3812_v35 }
 0x9db   : > { %v11665_v53 = vcombine.high %v3821_v51, %v3829_v56  ;;  %v11664_v3 = vcombine.low %v3821_v51, %v3829_v56  ;;  %v3932_v56 = vld [vmem:[%s14517_s18 + $0x1630] sm:$0xff] }
 0x9dc   : > { %10504 = vmatpush1.bf16.msra.mxu1 %v11550_v32  ;;  %v3844_v32 = vld [vmem:[%s14517_s18 + $0x1370] sm:$0xff] }
 0x9dd   : > { %10668 = vmatpush1.bf16.msra.mxu0 %v11552_v0  ;;  %10505 = vmatprep.subr.bf16.mxu1 %v11567_v17  ;;  %v3837_v0 = vld [vmem:[%s14517_s18 + $0x1338] sm:$0xff]  ;;  %v11679_v31 = vcombine.high %v3836_v55, %v3844_v32 }
 0x9de   : > { %10669 = vmatprep.subr.bf16.mxu0 %v11569_v44  ;;  %v3845_v17 = vld [vmem:[%s14517_s18 + $0x1378] sm:$0xff]  ;;  %v11662_v44 = vcombine.low %v3820_v58, %v3828_v45 }
 0x9df   : > { %v11681_v10 = vcombine.high %v3837_v0, %v3845_v17  ;;  %v11680_v15 = vcombine.low %v3837_v0, %v3845_v17  ;;  %v3948_v17 = vld [vmem:[%s14517_s18 + $0x16b0] sm:$0xff] }
 0x9e0   : > { %10506 = vmatpush1.bf16.msra.mxu1 %v11566_v8  ;;  %v3860_v8 = vld [vmem:[%s14517_s18 + $0x13f0] sm:$0xff] }
 0x9e1   : > { %10670 = vmatpush1.bf16.msra.mxu0 %v11568_v38  ;;  %10516 = vmatprep.subr.bf16.mxu1 %v11583_v48  ;;  %v3853_v38 = vld [vmem:[%s14517_s18 + $0x13b8] sm:$0xff]  ;;  %v11695_v18 = vcombine.high %v3852_v7, %v3860_v8  ;;  %v11694_v23 = vcombine.low %v3852_v7, %v3860_v8 }
 0x9e2   : > { %10680 = vmatprep.subr.bf16.mxu0 %v11585_v11  ;;  %v3861_v48 = vld [vmem:[%s14517_s18 + $0x13f8] sm:$0xff]  ;;  %v11678_v11 = vcombine.low %v3836_v55, %v3844_v32 }
 0x9e3   : > { %10508 = vmatmul.mubr.bf16.vlgmr.msra.gmra.mrb[24].mxu1 %v14830_v13  ;;  %v11696_v24 = vcombine.low %v3853_v38, %v3861_v48 }
 0x9e4   : > { %10672 = vmatmul.mubr.bf16.vlgmr.msra.gmra.mrb[24].mxu0 %v14830_v13  ;;  %10517 = vmatpush1.bf16.msra.mxu1 %v11582_v37  ;;  %v3797_v13 = vld [vmem:[%s14517_s18 + $0x11f8] sm:$0xff]  ;;  %v11697_v37 = vcombine.high %v3853_v38, %v3861_v48  ;;  %v3964_v48 = vld [vmem:[%s14517_s18 + $0x1730] sm:$0xff] }
 0x9e5   : > { %10548 = vmatprep.mubr.bf16.mxu1 %v14963_v46  ;;  %10681 = vmatpush1.bf16.msra.mxu0 %v11584_v21  ;;  %v11632_v40 = vcombine.low %v3789_v29, %v3797_v13  ;;  %v3869_v21 = vld [vmem:[%s14517_s18 + $0x1438] sm:$0xff] }
 0x9e6   : > { %10712 = vmatprep.mubr.bf16.mxu0 %v14963_v46  ;;  %10518 = vmatprep.subr.bf16.mxu1 %v11599_v22  ;;  %v11633_v46 = vcombine.high %v3789_v29, %v3797_v13  ;;  %v3877_v22 = vld [vmem:[%s14517_s18 + $0x1478] sm:$0xff]  ;;  %v3900_v13 = vld [vmem:[%s14517_s18 + $0x1530] sm:$0xff] }
 0x9e7   : > { %10682 = vmatprep.subr.bf16.mxu0 %v11601_v25  ;;  %v11711_v25 = vcombine.high %v3868_v52, %v3876_v27  ;;  %v11713_v16 = vcombine.high %v3869_v21, %v3877_v22  ;;  %v11712_v60 = vcombine.low %v3869_v21, %v3877_v22  ;;  %v3980_v22 = vld [vmem:[%s14517_s18 + $0x17b0] sm:$0xff] }
 0x9e8   : > { %10519 = vmatpush1.bf16.msra.mxu1 %v11598_v47  ;;  %v3892_v47 = vld [vmem:[%s14517_s18 + $0x14f0] sm:$0xff] }
 0x9e9   : > { %10683 = vmatpush1.bf16.msra.mxu0 %v11600_v54  ;;  %10520 = vmatprep.subr.bf16.mxu1 %v11615_v28  ;;  %v3885_v54 = vld [vmem:[%s14517_s18 + $0x14b8] sm:$0xff]  ;;  %v11727_v33 = vcombine.high %v3884_v26, %v3892_v47 }
 0x9ea   : > { %10684 = vmatprep.subr.bf16.mxu0 %v11617_v30  ;;  %v3893_v28 = vld [vmem:[%s14517_s18 + $0x14f8] sm:$0xff]  ;;  %v11710_v30 = vcombine.low %v3868_v52, %v3876_v27 }
 0x9eb   : > { %v11729_v29 = vcombine.high %v3885_v54, %v3893_v28  ;;  %v11728_v49 = vcombine.low %v3885_v54, %v3893_v28  ;;  %v3996_v28 = vld [vmem:[%s14517_s18 + $0x1830] sm:$0xff] }
 0x9ec   : > { %10521 = vmatpush1.bf16.msra.mxu1 %v11614_v34  ;;  %v3908_v34 = vld [vmem:[%s14517_s18 + $0x1570] sm:$0xff] }
 0x9ed   : > { %10685 = vmatpush1.bf16.msra.mxu0 %v11616_v42  ;;  %10522 = vmatprep.subr.bf16.mxu1 %v11631_v20  ;;  %v3901_v42 = vld [vmem:[%s14517_s18 + $0x1538] sm:$0xff]  ;;  %v11743_v35 = vcombine.high %v3900_v13, %v3908_v34 }
 0x9ee   : > { %10686 = vmatprep.subr.bf16.mxu0 %v11633_v46  ;;  %v3909_v20 = vld [vmem:[%s14517_s18 + $0x1578] sm:$0xff]  ;;  %v11726_v46 = vcombine.low %v3884_v26, %v3892_v47 }
 0x9ef   : > { %v11745_v2 = vcombine.high %v3901_v42, %v3909_v20  ;;  %v11744_v58 = vcombine.low %v3901_v42, %v3909_v20  ;;  %v4012_v20 = vld [vmem:[%s14517_s18 + $0x18b0] sm:$0xff] }
 0x9f0   : > { %10523 = vmatpush1.bf16.msra.mxu1 %v11630_v39  ;;  %v3924_v39 = vld [vmem:[%s14517_s18 + $0x15f0] sm:$0xff] }
 0x9f1   : > { %10687 = vmatpush1.bf16.msra.mxu0 %v11632_v40  ;;  %10524 = vmatprep.subr.bf16.mxu1 %v11647_v41  ;;  %v3917_v40 = vld [vmem:[%s14517_s18 + $0x15b8] sm:$0xff]  ;;  %v11759_v45 = vcombine.high %v3916_v36, %v3924_v39 }
 0x9f2   : > { %10688 = vmatprep.subr.bf16.mxu0 %v11649_v43  ;;  %v3925_v41 = vld [vmem:[%s14517_s18 + $0x15f8] sm:$0xff]  ;;  %v11742_v43 = vcombine.low %v3900_v13, %v3908_v34 }
 0x9f3   : > { %v11761_v51 = vcombine.high %v3917_v40, %v3925_v41  ;;  %v11760_v55 = vcombine.low %v3917_v40, %v3925_v41  ;;  %v4028_v40 = vld [vmem:[%s14517_s18 + $0x1930] sm:$0xff] }
 0x9f4   : > { %10525 = vmatpush1.bf16.msra.mxu1 %v11646_v63  ;;  %v3940_v63 = vld [vmem:[%s14517_s18 + $0x1670] sm:$0xff] }
 0x9f5   : > { %10689 = vmatpush1.bf16.msra.mxu0 %v11648_v1  ;;  %10526 = vmatprep.subr.bf16.mxu1 %v11663_v50  ;;  %v3933_v1 = vld [vmem:[%s14517_s18 + $0x1638] sm:$0xff]  ;;  %v11775_v32 = vcombine.high %v3932_v56, %v3940_v63  ;;  %v4036_v41 = vld [vmem:[%s14517_s18 + $0x1970] sm:$0xff] }
 0x9f6   : > { %10690 = vmatprep.subr.bf16.mxu0 %v11665_v53  ;;  %v3941_v50 = vld [vmem:[%s14517_s18 + $0x1678] sm:$0xff]  ;;  %v11758_v53 = vcombine.low %v3916_v36, %v3924_v39 }
 0x9f7   : > { %v11777_v0 = vcombine.high %v3933_v1, %v3941_v50  ;;  %v11776_v7 = vcombine.low %v3933_v1, %v3941_v50  ;;  %v4044_v50 = vld [vmem:[%s14517_s18 + $0x19b0] sm:$0xff] }
 0x9f8   : > { %10527 = vmatpush1.bf16.msra.mxu1 %v11662_v44  ;;  %v3956_v44 = vld [vmem:[%s14517_s18 + $0x16f0] sm:$0xff] }
 0x9f9   : > { %10691 = vmatpush1.bf16.msra.mxu0 %v11664_v3  ;;  %10528 = vmatprep.subr.bf16.mxu1 %v11679_v31  ;;  %v3949_v3 = vld [vmem:[%s14517_s18 + $0x16b8] sm:$0xff]  ;;  %v11791_v8 = vcombine.high %v3948_v17, %v3956_v44 }
 0x9fa   : > { %10692 = vmatprep.subr.bf16.mxu0 %v11681_v10  ;;  %v3957_v31 = vld [vmem:[%s14517_s18 + $0x16f8] sm:$0xff]  ;;  %v11774_v10 = vcombine.low %v3932_v56, %v3940_v63  ;;  %v11871_v63 = vcombine.high %v4028_v40, %v4036_v41 }
 0x9fb   : > { %v11793_v38 = vcombine.high %v3949_v3, %v3957_v31  ;;  %v11792_v52 = vcombine.low %v3949_v3, %v3957_v31  ;;  %v4068_v3 = vld [vmem:[%s14517_s18 + $0x1a70] sm:$0xff]  ;;  %v4061_v31 = vld [vmem:[%s14517_s18 + $0x1a38] sm:$0xff] }
 0x9fc   : > { %10529 = vmatpush1.bf16.msra.mxu1 %v11678_v11  ;;  %v3972_v11 = vld [vmem:[%s14517_s18 + $0x1770] sm:$0xff] }
 0x9fd   : > { %10693 = vmatpush1.bf16.msra.mxu0 %v11680_v15  ;;  %10530 = vmatprep.subr.bf16.mxu1 %v11695_v18  ;;  %v3965_v15 = vld [vmem:[%s14517_s18 + $0x1738] sm:$0xff]  ;;  %v11807_v27 = vcombine.high %v3964_v48, %v3972_v11 }
 0x9fe   : > { %10694 = vmatprep.subr.bf16.mxu0 %v11697_v37  ;;  %v3973_v18 = vld [vmem:[%s14517_s18 + $0x1778] sm:$0xff]  ;;  %v11790_v37 = vcombine.low %v3948_v17, %v3956_v44  ;;  %v4060_v44 = vld [vmem:[%s14517_s18 + $0x1a30] sm:$0xff] }
 0x9ff   : > { %v11809_v21 = vcombine.high %v3965_v15, %v3973_v18  ;;  %v11808_v26 = vcombine.low %v3965_v15, %v3973_v18  ;;  %v4084_v15 = vld [vmem:[%s14517_s18 + $0x1af0] sm:$0xff]  ;;  %v4077_v18 = vld [vmem:[%s14517_s18 + $0x1ab8] sm:$0xff] }
 0xa00   : > { %10531 = vmatpush1.bf16.msra.mxu1 %v11694_v23  ;;  %v3988_v23 = vld [vmem:[%s14517_s18 + $0x17f0] sm:$0xff] }
 0xa01   : > { %10695 = vmatpush1.bf16.msra.mxu0 %v11696_v24  ;;  %10532 = vmatprep.subr.bf16.mxu1 %v11711_v25  ;;  %v3981_v24 = vld [vmem:[%s14517_s18 + $0x17b8] sm:$0xff]  ;;  %v11823_v47 = vcombine.high %v3980_v22, %v3988_v23 }
 0xa02   : > { %10696 = vmatprep.subr.bf16.mxu0 %v11713_v16  ;;  %v3989_v25 = vld [vmem:[%s14517_s18 + $0x17f8] sm:$0xff]  ;;  %v11806_v16 = vcombine.low %v3964_v48, %v3972_v11  ;;  %v4076_v11 = vld [vmem:[%s14517_s18 + $0x1ab0] sm:$0xff] }
 0xa03   : > { %v11825_v54 = vcombine.high %v3981_v24, %v3989_v25  ;;  %v11824_v13 = vcombine.low %v3981_v24, %v3989_v25  ;;  %v4092_v24 = vld [vmem:[%s14517_s18 + $0x1b30] sm:$0xff] }
 0xa04   : > { %10533 = vmatpush1.bf16.msra.mxu1 %v11710_v30  ;;  %v4004_v30 = vld [vmem:[%s14517_s18 + $0x1870] sm:$0xff] }
 0xa05   : > { %10697 = vmatpush1.bf16.msra.mxu0 %v11712_v60  ;;  %10534 = vmatprep.subr.bf16.mxu1 %v11727_v33  ;;  %v3997_v60 = vld [vmem:[%s14517_s18 + $0x1838] sm:$0xff]  ;;  %v11839_v34 = vcombine.high %v3996_v28, %v4004_v30  ;;  %v4100_v25 = vld [vmem:[%s14517_s18 + $0x1b70] sm:$0xff] }
 0xa06   : > { %10698 = vmatprep.subr.bf16.mxu0 %v11729_v29  ;;  %v4005_v33 = vld [vmem:[%s14517_s18 + $0x1878] sm:$0xff]  ;;  %v11822_v29 = vcombine.low %v3980_v22, %v3988_v23  ;;  %v11919_v22 = vcombine.high %v4076_v11, %v4084_v15 }
 0xa07   : > { %v11841_v42 = vcombine.high %v3997_v60, %v4005_v33  ;;  %v11840_v36 = vcombine.low %v3997_v60, %v4005_v33 }
 0xa08   : > { %10535 = vmatpush1.bf16.msra.mxu1 %v11726_v46  ;;  %v4020_v46 = vld [vmem:[%s14517_s18 + $0x18f0] sm:$0xff] }
 0xa09   : > { %10699 = vmatpush1.bf16.msra.mxu0 %v11728_v49  ;;  %10536 = vmatprep.subr.bf16.mxu1 %v11743_v35  ;;  %v11838_v49 = vcombine.low %v3996_v28, %v4004_v30  ;;  %v4013_v35 = vld [vmem:[%s14517_s18 + $0x18b8] sm:$0xff]  ;;  %v11855_v39 = vcombine.high %v4012_v20, %v4020_v46  ;;  %v11918_v30 = vcombine.low %v4076_v11, %v4084_v15 }
 0xa0a   : > { %10700 = vmatprep.subr.bf16.mxu0 %v11745_v2  ;;  %v4021_v2 = vld [vmem:[%s14517_s18 + $0x18f8] sm:$0xff] }
 0xa0b   : > { %v11856_v56 = vcombine.low %v4013_v35, %v4021_v2  ;;  %v4157_v15 = vld [vmem:[%s14517_s18 + $0x1d38] sm:$0xff] }
 0xa0c   : > { %10537 = vmatpush1.bf16.msra.mxu1 %v11742_v43  ;;  %v11857_v43 = vcombine.high %v4013_v35, %v4021_v2  ;;  %v4117_v35 = vld [vmem:[%s14517_s18 + $0x1bf8] sm:$0xff] }
 0xa0d   : > { %10701 = vmatpush1.bf16.msra.mxu0 %v11744_v58  ;;  %10538 = vmatprep.subr.bf16.mxu1 %v11759_v45  ;;  %v4029_v58 = vld [vmem:[%s14517_s18 + $0x1938] sm:$0xff] }
 0xa0e   : > { %10702 = vmatprep.subr.bf16.mxu0 %v11761_v51  ;;  %v4037_v45 = vld [vmem:[%s14517_s18 + $0x1978] sm:$0xff]  ;;  %v11854_v51 = vcombine.low %v4012_v20, %v4020_v46 }
 0xa0f   : > { %v11873_v1 = vcombine.high %v4029_v58, %v4037_v45 }
 0xa10   : > { %10539 = vmatpush1.bf16.msra.mxu1 %v11758_v53  ;;  %v4052_v53 = vld [vmem:[%s14517_s18 + $0x19f0] sm:$0xff] }
 0xa11   : > { %10703 = vmatpush1.bf16.msra.mxu0 %v11760_v55  ;;  %10540 = vmatprep.subr.bf16.mxu1 %v11775_v32  ;;  %v4045_v55 = vld [vmem:[%s14517_s18 + $0x19b8] sm:$0xff]  ;;  %v11870_v32 = vcombine.low %v4028_v40, %v4036_v41  ;;  %v11887_v17 = vcombine.high %v4044_v50, %v4052_v53 }
 0xa12   : > { %10704 = vmatprep.subr.bf16.mxu0 %v11777_v0  ;;  %v11872_v0 = vcombine.low %v4029_v58, %v4037_v45 }
 0xa14   : > { %10541 = vmatpush1.bf16.msra.mxu1 %v11774_v10  ;;  %v4069_v10 = vld [vmem:[%s14517_s18 + $0x1a78] sm:$0xff] }
 0xa15   : > { %10705 = vmatpush1.bf16.msra.mxu0 %v11776_v7  ;;  %10542 = vmatprep.subr.bf16.mxu1 %v11791_v8  ;;  %v11886_v7 = vcombine.low %v4044_v50, %v4052_v53  ;;  %v11905_v48 = vcombine.high %v4061_v31, %v4069_v10  ;;  %v4125_v50 = vld [vmem:[%s14517_s18 + $0x1c38] sm:$0xff] }
 0xa16   : > { %10706 = vmatprep.subr.bf16.mxu0 %v11793_v38  ;;  %v11903_v38 = vcombine.high %v4060_v44, %v4068_v3  ;;  %v4133_v53 = vld [vmem:[%s14517_s18 + $0x1c78] sm:$0xff] }
 0xa18   : > { %10543 = vmatpush1.bf16.msra.mxu1 %v11790_v37  ;;  %v4085_v37 = vld [vmem:[%s14517_s18 + $0x1af8] sm:$0xff] }
 0xa19   : > { %10707 = vmatpush1.bf16.msra.mxu0 %v11792_v52  ;;  %10544 = vmatprep.subr.bf16.mxu1 %v11807_v27  ;;  %v11902_v52 = vcombine.low %v4060_v44, %v4068_v3  ;;  %v15851_v27 = vld [vmem:[%s15270_s17 + $0x8] sm:$0xff]  ;;  %v11921_v23 = vcombine.high %v4077_v18, %v4085_v37  ;;  %v11920_v33 = vcombine.low %v4077_v18, %v4085_v37 }
 0xa1a   : > { %10708 = vmatprep.subr.bf16.mxu0 %v11809_v21  ;;  %v11904_v21 = vcombine.low %v4061_v31, %v4069_v10  ;;  %v4289_v28 = vrot.slane %v15851_v27, %v14560_v61  ;;  %v4297_v60 = vrot.slane %v15851_v27, %v14572_v6  ;;  %v11934_v6 = vcombine.low %v4092_v24, %v4100_v25  ;;  %v4141_v44 = vld [vmem:[%s14517_s18 + $0x1cb8] sm:$0xff] }
 0xa1b   : > { %v4149_v3 = vld [vmem:[%s14517_s18 + $0x1cf8] sm:$0xff]  ;;  %v11968_v10 = vcombine.low %v4125_v50, %v4133_v53 }
 0xa1c   : > { %10545 = vmatpush1.bf16.msra.mxu1 %v11806_v16  ;;  %v4285_v16 = vrot.slane %v15851_v27, %v14557_v59  ;;  %v11935_v59 = vcombine.high %v4092_v24, %v4100_v25  ;;  %v4165_v18 = vld [vmem:[%s14517_s18 + $0x1d78] sm:$0xff] }
 0xa1d   : > { %10709 = vmatpush1.bf16.msra.mxu0 %v11808_v26  ;;  %10546 = vmatprep.subr.bf16.mxu1 %v11823_v47  ;;  %v4093_v26 = vld [vmem:[%s14517_s18 + $0x1b38] sm:$0xff]  ;;  %v12001_v25 = vcombine.high %v4157_v15, %v4165_v18 }
 0xa1e   : > { %10710 = vmatprep.subr.bf16.mxu0 %v11825_v54  ;;  %v4101_v47 = vld [vmem:[%s14517_s18 + $0x1b78] sm:$0xff]  ;;  %v4293_v54 = vrot.slane %v15851_v27, %v14569_v4 }
 0xa1f   : > { %v11936_v58 = vcombine.low %v4093_v26, %v4101_v47 }
 0xa20   : > { %10547 = vmatpush1.bf16.msra.mxu1 %v11822_v29 }
 0xa21   : > { %10711 = vmatpush1.bf16.msra.mxu0 %v11824_v13  ;;  %10557 = vmatprep.subr.bf16.mxu1 %v11839_v34  ;;  %v11937_v13 = vcombine.high %v4093_v26, %v4101_v47  ;;  %v4108_v34 = vld [vmem:[%s14517_s18 + $0x1bb0] sm:$0xff]  ;;  %v4173_v47 = vld [vmem:[%s14517_s18 + $0x1db8] sm:$0xff] }
 0xa22   : > { %10721 = vmatprep.subr.bf16.mxu0 %v11841_v42  ;;  %v4116_v42 = vld [vmem:[%s14517_s18 + $0x1bf0] sm:$0xff] }
 0xa23   : > { %10549 = vmatmul.mubr.bf16.vlgmr.msra.gmra.mrb[24].mxu1 %v14965_v57  ;;  %v11951_v45 = vcombine.high %v4108_v34, %v4116_v42  ;;  %v4180_v26 = vld [vmem:[%s14517_s18 + $0x1df0] sm:$0xff] }
 0xa24   : > { %10713 = vmatmul.mubr.bf16.vlgmr.msra.gmra.mrb[24].mxu0 %v14965_v57  ;;  %10558 = vmatpush1.bf16.msra.mxu1 %v11838_v49  ;;  %v4053_v57 = vld [vmem:[%s14517_s18 + $0x19f8] sm:$0xff] }
 0xa25   : > { %10589 = vmatprep.mubr.bf16.mxu1 %v14973_v5  ;;  %10722 = vmatpush1.bf16.msra.mxu0 %v11840_v36  ;;  %v11888_v8 = vcombine.low %v4045_v55, %v4053_v57  ;;  %v4109_v49 = vld [vmem:[%s14517_s18 + $0x1bb8] sm:$0xff] }
 0xa26   : > { %10753 = vmatprep.mubr.bf16.mxu0 %v14973_v5  ;;  %10559 = vmatprep.subr.bf16.mxu1 %v11855_v39  ;;  %v11889_v5 = vcombine.high %v4045_v55, %v4053_v57  ;;  %v11950_v55 = vcombine.low %v4108_v34, %v4116_v42  ;;  %v11952_v57 = vcombine.low %v4109_v49, %v4117_v35  ;;  %v4197_v34 = vld [vmem:[%s14517_s18 + $0x1e78] sm:$0xff] }
 0xa27   : > { %10723 = vmatprep.subr.bf16.mxu0 %v11857_v43 }
 0xa28   : > { %10560 = vmatpush1.bf16.msra.mxu1 %v11854_v51 }
 0xa29   : > { %10724 = vmatpush1.bf16.msra.mxu0 %v11856_v56  ;;  %10561 = vmatprep.subr.bf16.mxu1 %v11871_v63  ;;  %v11953_v56 = vcombine.high %v4109_v49, %v4117_v35  ;;  %v4124_v63 = vld [vmem:[%s14517_s18 + $0x1c30] sm:$0xff] }
 0xa2a   : > { %10725 = vmatprep.subr.bf16.mxu0 %v11873_v1  ;;  %v4132_v1 = vld [vmem:[%s14517_s18 + $0x1c70] sm:$0xff] }
 0xa2b   : > { %v11966_v31 = vcombine.low %v4124_v63, %v4132_v1  ;;  %v4204_v49 = vld [vmem:[%s14517_s18 + $0x1eb0] sm:$0xff] }
 0xa2c   : > { %10562 = vmatpush1.bf16.msra.mxu1 %v11870_v32  ;;  %v11967_v32 = vcombine.high %v4124_v63, %v4132_v1  ;;  %v4212_v35 = vld [vmem:[%s14517_s18 + $0x1ef0] sm:$0xff] }
 0xa2d   : > { %10726 = vmatpush1.bf16.msra.mxu0 %v11872_v0  ;;  %10563 = vmatprep.subr.bf16.mxu1 %v11887_v17  ;;  %v11969_v0 = vcombine.high %v4125_v50, %v4133_v53  ;;  %v4140_v17 = vld [vmem:[%s14517_s18 + $0x1cb0] sm:$0xff] }
 0xa2e   : > { %10727 = vmatprep.subr.bf16.mxu0 %v11889_v5  ;;  %v4148_v5 = vld [vmem:[%s14517_s18 + $0x1cf0] sm:$0xff] }
 0xa2f   : > { %v4236_v50 = vld [vmem:[%s14517_s18 + $0x1fb0] sm:$0xff] }
 0xa30   : > { %10564 = vmatpush1.bf16.msra.mxu1 %v11886_v7  ;;  %v11983_v7 = vcombine.high %v4140_v17, %v4148_v5  ;;  %v4244_v53 = vld [vmem:[%s14517_s18 + $0x1ff0] sm:$0xff] }
 0xa31   : > { %10728 = vmatpush1.bf16.msra.mxu0 %v11888_v8  ;;  %10565 = vmatprep.subr.bf16.mxu1 %v11903_v38  ;;  %v11985_v8 = vcombine.high %v4141_v44, %v4149_v3  ;;  %v4156_v38 = vld [vmem:[%s14517_s18 + $0x1d30] sm:$0xff] }
 0xa32   : > { %10729 = vmatprep.subr.bf16.mxu0 %v11905_v48  ;;  %v4164_v48 = vld [vmem:[%s14517_s18 + $0x1d70] sm:$0xff] }
 0xa34   : > { %10566 = vmatpush1.bf16.msra.mxu1 %v11902_v52  ;;  %v11982_v52 = vcombine.low %v4140_v17, %v4148_v5  ;;  %v12079_v17 = vcombine.high %v4236_v50, %v4244_v53 }
 0xa35   : > { %10730 = vmatpush1.bf16.msra.mxu0 %v11904_v21  ;;  %10567 = vmatprep.subr.bf16.mxu1 %v11919_v22  ;;  %v11984_v22 = vcombine.low %v4141_v44, %v4149_v3  ;;  %v12078_v44 = vcombine.low %v4236_v50, %v4244_v53 }
 0xa36   : > { %v10263_v29 = vpop.f32.mrb[20].mxu1  ;;  %10731 = vmatprep.subr.bf16.mxu0 %v11921_v23  ;;  %v11999_v23 = vcombine.high %v4156_v38, %v4164_v48 }
 0xa37   : > { %v13051_v20 = vadd.f32 %v10263_v29, %v4285_v16  ;;  %v10427_v4 = vpop.f32.mrb[20].mxu0  ;;  %v10265_v46 = vpop.f32.mrb[21].mxu1  ;;  %v4172_v16 = vld [vmem:[%s14517_s18 + $0x1db0] sm:$0xff] }
 0xa38   : > { %v13053_v61 = vadd.f32 %v10427_v4, %v4293_v54  ;;  %v13052_v2 = vadd.f32 %v10265_v46, %v4289_v28  ;;  %v10429_v36 = vpop.f32.mrb[21].mxu0  ;;  %v10267_v39 = vpop.f32.mrb[22].mxu1  ;;  %10568 = vmatpush1.bf16.msra.mxu1 %v11918_v30  ;;  %v4181_v54 = vld [vmem:[%s14517_s18 + $0x1df8] sm:$0xff]  ;;  %v11998_v28 = vcombine.low %v4156_v38, %v4164_v48  ;;  %v12000_v30 = vcombine.low %v4157_v15, %v4165_v18  ;;  %v4196_v29 = vld [vmem:[%s14517_s18 + $0x1e70] sm:$0xff] }
 0xa39   : > { %13403 = vtanh.f32 %v13051_v20  ;;  %v13054_v40 = vadd.f32 %v10429_v36, %v4297_v60  ;;  %v10431_v41 = vpop.f32.mrb[22].mxu0  ;;  %10732 = vmatpush1.bf16.msra.mxu0 %v11920_v33  ;;  %v10268_v43 = vpop.f32.mrb[23].mxu1  ;;  %10569 = vmatprep.subr.bf16.mxu1 %v11935_v59  ;;  %v12015_v60 = vcombine.high %v4172_v16, %v4180_v26  ;;  %v12017_v33 = vcombine.high %v4173_v47, %v4181_v54  ;;  %v4188_v59 = vld [vmem:[%s14517_s18 + $0x1e30] sm:$0xff] }
 0xa3a   : > { %13405 = vtanh.f32 %v13053_v61  ;;  %v10432_v51 = vpop.f32.mrb[23].mxu0  ;;  %10733 = vmatprep.subr.bf16.mxu0 %v11937_v13  ;;  %v4189_v13 = vld [vmem:[%s14517_s18 + $0x1e38] sm:$0xff]  ;;  %v12014_v42 = vcombine.low %v4172_v16, %v4180_v26  ;;  %v12016_v20 = vcombine.low %v4173_v47, %v4181_v54  ;;  %v12031_v4 = vcombine.high %v4188_v59, %v4196_v29  ;;  %v4220_v41 = vld [vmem:[%s14517_s18 + $0x1f30] sm:$0xff] }
 0xa3b   : > { %13407 = vtanh.f32 %v13052_v2  ;;  %v12033_v46 = vcombine.high %v4189_v13, %v4197_v34  ;;  %v4205_v61 = vld [vmem:[%s14517_s18 + $0x1eb8] sm:$0xff]  ;;  %v12030_v36 = vcombine.low %v4188_v59, %v4196_v29  ;;  %v12032_v39 = vcombine.low %v4189_v13, %v4197_v34  ;;  %v4228_v43 = vld [vmem:[%s14517_s18 + $0x1f70] sm:$0xff] }
 0xa3c   : > { %13409 = vtanh.f32 %v13054_v40  ;;  %10570 = vmatpush1.bf16.msra.mxu1 %v11934_v6  ;;  %v4213_v2 = vld [vmem:[%s14517_s18 + $0x1ef8] sm:$0xff]  ;;  %v12047_v6 = vcombine.high %v4204_v49, %v4212_v35  ;;  %v12046_v51 = vcombine.low %v4204_v49, %v4212_v35  ;;  %v12063_v63 = vcombine.high %v4220_v41, %v4228_v43 }
 0xa3d   : > { %10734 = vmatpush1.bf16.msra.mxu0 %v11936_v58  ;;  %10571 = vmatprep.subr.bf16.mxu1 %v11951_v45  ;;  %v12049_v40 = vcombine.high %v4205_v61, %v4213_v2  ;;  %v4221_v58 = vld [vmem:[%s14517_s18 + $0x1f38] sm:$0xff] }
 0xa3e   : > { %10735 = vmatprep.subr.bf16.mxu0 %v11953_v56  ;;  %v4229_v45 = vld [vmem:[%s14517_s18 + $0x1f78] sm:$0xff]  ;;  %v12048_v56 = vcombine.low %v4205_v61, %v4213_v2 }
 0xa3f   : > { %v12065_v1 = vcombine.high %v4221_v58, %v4229_v45 }
 0xa40   : > { %10572 = vmatpush1.bf16.msra.mxu1 %v11950_v55  ;;  %v4237_v55 = vld [vmem:[%s14517_s18 + $0x1fb8] sm:$0xff] }
 0xa41   : > { %10736 = vmatpush1.bf16.msra.mxu0 %v11952_v57  ;;  %10573 = vmatprep.subr.bf16.mxu1 %v11967_v32  ;;  %v4245_v57 = vld [vmem:[%s14517_s18 + $0x1ff8] sm:$0xff]  ;;  %v12062_v32 = vcombine.low %v4220_v41, %v4228_v43 }
 0xa42   : > { %10737 = vmatprep.subr.bf16.mxu0 %v11969_v0  ;;  %v12064_v0 = vcombine.low %v4221_v58, %v4229_v45  ;;  %v12081_v5 = vcombine.high %v4237_v55, %v4245_v57  ;;  %v12080_v3 = vcombine.low %v4237_v55, %v4245_v57 }
 0xa43   : > { %v13404_v11 = vpop.eup %13403 }
 0xa44   : > { %v13406_v37 = vpop.eup %13405  ;;  %10786 = vst [vmem:[%s15307_s27 + $0x40] sm:$0xff] %v13404_v11  ;;  %10574 = vmatpush1.bf16.msra.mxu1 %v11966_v31  ;;  %v4301_v31 = vrot.slane %v15851_v27, %v14819_v9 }
 0xa45   : > { %v13408_v21 = vpop.eup %13407  ;;  %10788 = vst [vmem:[%s15307_s27 + $0x50] sm:$0xff] %v13406_v37  ;;  %10738 = vmatpush1.bf16.msra.mxu0 %v11968_v10  ;;  %10575 = vmatprep.subr.bf16.mxu1 %v11983_v7  ;;  %v4309_v10 = vrot.slane %v15851_v27, %v14871_v14  ;;  %v4305_v7 = vrot.slane %v15851_v27, %v14825_v19 }
 0xa46   : > { %v13410_v24 = vpop.eup %13409  ;;  %10787 = vst [vmem:[%s15307_s27 + $0x48] sm:$0xff] %v13408_v21  ;;  %10739 = vmatprep.subr.bf16.mxu0 %v11985_v8  ;;  %v4313_v8 = vrot.slane %v15851_v27, %v14828_v12 }
 0xa47   : > { %10789 = vst [vmem:[%s15307_s27 + $0x58] sm:$0xff] %v13410_v24 }
 0xa48   : > { %10576 = vmatpush1.bf16.msra.mxu1 %v11982_v52 }
 0xa49   : > { %10740 = vmatpush1.bf16.msra.mxu0 %v11984_v22  ;;  %10577 = vmatprep.subr.bf16.mxu1 %v11999_v23 }
 0xa4a   : > { %10741 = vmatprep.subr.bf16.mxu0 %v12001_v25 }
 0xa4c   : > { %10578 = vmatpush1.bf16.msra.mxu1 %v11998_v28 }
 0xa4d   : > { %10742 = vmatpush1.bf16.msra.mxu0 %v12000_v30  ;;  %10579 = vmatprep.subr.bf16.mxu1 %v12015_v60 }
 0xa4e   : > { %10743 = vmatprep.subr.bf16.mxu0 %v12017_v33 }
 0xa50   : > { %10580 = vmatpush1.bf16.msra.mxu1 %v12014_v42 }
 0xa51   : > { %10744 = vmatpush1.bf16.msra.mxu0 %v12016_v20  ;;  %10581 = vmatprep.subr.bf16.mxu1 %v12031_v4 }
 0xa52   : > { %10745 = vmatprep.subr.bf16.mxu0 %v12033_v46 }
 0xa54   : > { %10582 = vmatpush1.bf16.msra.mxu1 %v12030_v36 }
 0xa55   : > { %10746 = vmatpush1.bf16.msra.mxu0 %v12032_v39  ;;  %10583 = vmatprep.subr.bf16.mxu1 %v12047_v6 }
 0xa56   : > { %10747 = vmatprep.subr.bf16.mxu0 %v12049_v40 }
 0xa58   : > { %10584 = vmatpush1.bf16.msra.mxu1 %v12046_v51 }
 0xa59   : > { %10748 = vmatpush1.bf16.msra.mxu0 %v12048_v56  ;;  %10585 = vmatprep.subr.bf16.mxu1 %v12063_v63 }
 0xa5a   : > { %10749 = vmatprep.subr.bf16.mxu0 %v12065_v1 }
 0xa5c   : > { %10586 = vmatpush1.bf16.msra.mxu1 %v12062_v32 }
 0xa5d   : > { %10750 = vmatpush1.bf16.msra.mxu0 %v12064_v0  ;;  %10587 = vmatprep.subr.bf16.mxu1 %v12079_v17 }
 0xa5e   : > { %10751 = vmatprep.subr.bf16.mxu0 %v12081_v5 }
 0xa60   : > { %10588 = vmatpush1.bf16.msra.mxu1 %v12078_v44 }
 0xa61   : > { %10752 = vmatpush1.bf16.msra.mxu0 %v12080_v3 }
 0xa63   : > { %10590 = vmatmul.mubr.bf16.vlgmr.msra.gmra.mrb[24].mxu1 %v15042_v62 }
 0xa64   : > { %10754 = vmatmul.mubr.bf16.vlgmr.msra.gmra.mrb[24].mxu0 %v15042_v62 }
 0xb36   : > { %v10591_v38 = vpop.f32.mrb[24].mxu1 }
 0xb37   : > { %v13055_v48 = vadd.f32 %v10591_v38, %v4301_v31  ;;  %v10755_v11 = vpop.f32.mrb[24].mxu0  ;;  %v10593_v15 = vpop.f32.mrb[25].mxu1 }
 0xb38   : > { %v13057_v18 = vadd.f32 %v10755_v11, %v4309_v10  ;;  %v13056_v62 = vadd.f32 %v10593_v15, %v4305_v7  ;;  %v10757_v37 = vpop.f32.mrb[25].mxu0  ;;  %v10595_v9 = vpop.f32.mrb[26].mxu1 }
 0xb39   : > { %13411 = vtanh.f32 %v13055_v48  ;;  %v13058_v14 = vadd.f32 %v10757_v37, %v4313_v8  ;;  %v10759_v52 = vpop.f32.mrb[26].mxu0  ;;  %v10596_v21 = vpop.f32.mrb[27].mxu1 }
 0xb3a   : > { %13413 = vtanh.f32 %v13057_v18  ;;  %v10760_v19 = vpop.f32.mrb[27].mxu0 }
 0xb3b   : > { %13415 = vtanh.f32 %v13056_v62 }
 0xb3c   : > { %13417 = vtanh.f32 %v13058_v14 }
 0xb43   : > { %v13412_v12 = vpop.eup %13411 }
 0xb44   : > { %v13414_v27 = vpop.eup %13413  ;;  %10790 = vst [vmem:[%s15307_s27 + $0x60] sm:$0xff] %v13412_v12 }
 0xb45   : > { %v13416_v22 = vpop.eup %13415  ;;  %10792 = vst [vmem:[%s15307_s27 + $0x70] sm:$0xff] %v13414_v27 }
 0xb46   : > { %v13418_v23 = vpop.eup %13417  ;;  %10791 = vst [vmem:[%s15307_s27 + $0x68] sm:$0xff] %v13416_v22 }
 0xb47   : > { %10793 = vst [vmem:[%s15307_s27 + $0x78] sm:$0xff] %v13418_v23 }
 0xb48 PF: > { %p32_p0 = scmp.ge.s32.totalorder %s14252_s13, 8   ;;  %s16039_s24 = smov %s13932_s25 }
 0xb49   : > { %s16040_s25 = smov %s13936_s26  ;;  %s16041_s26 = smov %s14263_s21 }
 0xb4a   : > { %s16042_s27 = smov %s14252_s13  ;;  %34 = sbr.rel (!%p32_p0) target bundleno = 27 (0x1b), region = 194 }
 0xb51   :  { %10816 = vsyncpa [#allocation3], 1 }
 0xb52   :  { %10818 = vsyncpa [#allocation3 + $0x1], 1 }
 0xb53   :  { %10819 = vsyncpa [#allocation5], 1 }
 0xb54   :  { %10820 = vsyncpa [#allocation8], 1 }
 0xb55   :  { %10821 = vsyncpa [#allocation11], 1 }
 0xb56   :  { %10822 = vsyncpa [#allocation14], 1 }
 0xb57   :  { %10823 = vsyncpa [#allocation17], 1 }
 0xb58   :  { %10824 = vsyncpa [#allocation20], 1 }
 0xb59   :  { %10825 = vsyncpa [#allocation23], 1 }

</bundles_post_ra>
